<compile_context>
chip_gen: v7x
topology: tpu7x:2x2x1
jax: 0.10.0
libtpu: 0.0.40
codegen_flags: <defaults>
</compile_context>

<pallas_src>
from functools import partial

import jax
import jax.numpy as jnp
from jax.experimental import pallas as pl
from jax.experimental.pallas import tpu as pltpu

EPS = 1e-5                      # torch.nn.InstanceNorm3d default eps
_SQRT1_2 = 0.7071067811865476
S = 8                           # img_size; D*H*W = 512 = 4 x 128 lanes (lane dense)
DHW = S * S * S

_TAPS = [(od, oh, ow) for od in (-1, 0, 1) for oh in (-1, 0, 1) for ow in (-1, 0, 1)]
_PARITY = [(ad, ah, aw) for ad in (0, 1) for ah in (0, 1) for aw in (0, 1)]


# ----------------------------------------------------------------------------- helpers
def _ceil8(n):
    return ((n + 7) // 8) * 8


def _erf(x):
    # Abramowitz & Stegun 7.1.26 (|err| < 1.5e-7) -> matches torch GELU('none') in f32.
    a1, a2, a3, a4, a5 = 0.254829592, -0.284496736, 1.421413741, -1.453152027, 1.061405429
    p = 0.3275911
    ax = jnp.abs(x)
    t = 1.0 / (1.0 + p * ax)
    poly = t * (a1 + t * (a2 + t * (a3 + t * (a4 + t * a5))))
    y = 1.0 - poly * jnp.exp(-ax * ax)
    return jnp.where(x >= 0.0, y, -y)


def _gelu(x):
    # TODO(synk): tanh-approx GELU would move more work onto the idle EUP slot but it
    # differs from torch.nn.GELU(approximate='none'); keeping the erf form for fidelity.
    return 0.5 * x * (1.0 + _erf(x * _SQRT1_2))


def _roll(x, off):
    """y[..., p] = x[..., (p + off) % n] -- one XLU lane rotation per tap."""
    n = x.shape[-1]
    shift = (-off) % n            # pltpu.roll matches jnp.roll semantics
    if shift == 0:
        return x
    return pltpu.roll(x, shift, axis=x.ndim - 1)


# ----------------------------------------------------------------------------- kernel
def _fused_kernel(*refs, c2, c4, bpg, final, dw_mxu):
    f32 = jnp.float32
    tc2 = 2 * c2

    n_in = 6 if final else 7
    in_refs, o_ref, scratch = refs[:n_in], refs[n_in], refs[n_in + 1:]
    if final:
        x_ref, m_ref, wf_ref, wdw_ref, wr_ref, ball_ref = in_refs
        wu_ref = None
    else:
        x_ref, m_ref, wf_ref, wdw_ref, wr_ref, wu_ref, ball_ref = in_refs
    si = 0
    taps_ref = None
    if dw_mxu:
        taps_ref = scratch[si]
        si += 1
    yt_ref = scratch[si] if not final else None

    # static offsets into the packed bias column (wrapper pads each segment to 8 rows)
    o_front = 0
    o_dw = o_front + _ceil8(3 * c2)
    o_r = o_dw + _ceil8(tc2)
    o_u = o_r + _ceil8(c2)

    # constants hoisted out of the batch loop (JAX does not CSE broadcasts)
    m_int = m_ref[0:1, :]                     # 6^3 interior mask
    m7 = m_ref[1:2, :]                        # d,h,w < 7 mask (valid upsample outputs)
    wf = wf_ref[...]                          # (3c2, cin)  rows = [p/g ; h]
    wdw = wdw_ref[...]                        # (2c2, 27*2c2) dense  OR  (2c2, 27) taps
    wr = wr_ref[...]                          # (c2, c2)
    b_front = ball_ref[o_front:o_front + 3 * c2, :]
    b_dw = ball_ref[o_dw:o_dw + tc2, :]
    b_r = ball_ref[o_r:o_r + c2, :]
    if not final:
        wu = wu_ref[...]                      # (8c4, 8c2) parity-folded upsample conv
        b_u = ball_ref[o_u:o_u + 8 * c4, :]

    n_int = float((S - 2) ** 3)
    n_up = float(8 * (S - 1) ** 3)

    for i in range(bpg):                      # small static batch loop inside one step
        x = x_ref[i]                          # (cin, 512) lane dense

        # ---- fused front matmul: Conv1x1(Cin->C2) and the p/g Conv1x1s in one pass --
        front = jnp.dot(wf, x, preferred_element_type=f32) + b_front      # (3c2, 512)
        pg = front[:tc2, :]                   # 8-sublane aligned slice
        h = front[tc2:, :]

        # ---- depthwise 3x3x3 valid conv + pad3d fused (centred conv on 8^3 grid) ----
        if dw_mxu:
            for t, (od, oh, ow) in enumerate(_TAPS):
                off = od * S * S + oh * S + ow
                taps_ref[t * tc2:(t + 1) * tc2, :] = _roll(pg, off)
            dw = jnp.dot(wdw, taps_ref[...], preferred_element_type=f32) + b_dw
        else:
            dw = jnp.zeros_like(pg)
            for t, (od, oh, ow) in enumerate(_TAPS):
                off = od * S * S + oh * S + ow
                dw = dw + wdw[:, t:t + 1] * _roll(pg, off)
            dw = dw + b_dw
        p_full = dw[:c2, :]                   # passthrough branch (borders unused)
        g_full = dw[c2:, :]                   # gate branch

        # ---- gate: InstanceNorm over the un-padded 6^3 interior, GELU, border -> 0 --
        g_mean = jnp.sum(g_full * m_int, axis=1, keepdims=True) / n_int
        g_d = (g_full - g_mean) * m_int
        g_var = jnp.sum(g_d * g_d, axis=1, keepdims=True) / n_int
        g_act = _gelu(g_d * jax.lax.rsqrt(g_var + EPS))          # exactly 0 on border
        prod = p_full * g_act                                    # == pad3d(p * g, h)

        # ---- rectifire: 1x1 conv -> InstanceNorm over full 8^3 -> residual ----------
        r = jnp.dot(wr, prod, preferred_element_type=f32) + b_r
        r_mean = jnp.sum(r, axis=1, keepdims=True) / float(DHW)
        r_d = r - r_mean
        r_var = jnp.sum(r_d * r_d, axis=1, keepdims=True) / float(DHW)
        y = h + r_d * jax.lax.rsqrt(r_var + EPS)                 # (c2, 512)

        if final:
            o_ref[i] = y
        else:
            # ---- nearest-x2 upsample + Conv3x3x3(valid) folded into one matmul ------
            for t, (ad, ah, aw) in enumerate(_PARITY):
                off = ad * S * S + ah * S + aw
                yt_ref[t * c2:(t + 1) * c2, :] = _roll(y, off)
            up = jnp.dot(wu, yt_ref[...], preferred_element_type=f32) + b_u  # (8c4,512)

            # InstanceNorm over 14^3 = the 8 parity slabs restricted to the 7^3 mask;
            # accumulate elementwise first -> only ONE cross-lane reduce per statistic.
            u_acc = up[0:c4, :]
            for pp in range(1, 8):
                u_acc = u_acc + up[pp * c4:(pp + 1) * c4, :]
            u_mean = jnp.sum(u_acc * m7, axis=1, keepdims=True) / n_up       # (c4,1)
            sq = None
            for pp in range(8):
                d = up[pp * c4:(pp + 1) * c4, :] - u_mean
                sq = d * d if sq is None else sq + d * d
            u_inv = jax.lax.rsqrt(jnp.sum(sq * m7, axis=1, keepdims=True) / n_up + EPS)
            for pp in range(8):                # Dropout3d(eval) = identity
                d = up[pp * c4:(pp + 1) * c4, :] - u_mean
                o_ref[i, pp * c4:(pp + 1) * c4, :] = _gelu(d * u_inv)


# ----------------------------------------------------------------------------- wrapper
def _const_spec(a):
    zeros = (0,) * a.ndim
    return pl.BlockSpec(a.shape, lambda b: zeros)


def _masks():
    idx = jnp.arange(DHW)
    d = idx // (S * S)
    h = (idx // S) % S
    w = idx % S
    interior = ((d >= 1) & (d < S - 1) & (h >= 1) & (h < S - 1) & (w >= 1) & (w < S - 1))
    valid7 = (d < S - 1) & (h < S - 1) & (w < S - 1)
    return jnp.stack([interior, valid7]).astype(jnp.float32)           # (2, 512)


def _combined_upsample_weights(wu):
    """Fold nearest-x2 upsample into the 3x3x3 conv: per output parity the conv collapses
    to a 2x2x2 conv on the un-upsampled grid with summed taps."""
    hp = jax.lax.Precision.HIGHEST
    c4, c2 = wu.shape[0], wu.shape[1]
    A = jnp.array([[[1., 1., 0.], [0., 0., 1.]],
                   [[1., 0., 0.], [0., 1., 1.]]], jnp.float32)          # A[parity, a, k]
    w2 = jnp.einsum('dak,ebl,fcm,oiklm->defoiabc', A, A, A, wu, precision=hp)
    w2 = jnp.transpose(w2, (0, 1, 2, 3, 5, 6, 7, 4))   # (pd,ph,pw,co,ad,ah,aw,ci)
    return w2.reshape(8 * c4, 8 * c2)


def _batch_per_step(B):
    """One grid step on single-TC chips; keep >=2 parallel steps on dual-TC chips."""
    try:
        kind = jax.devices()[0].device_kind.lower()
    except Exception:
        kind = ""
    dual_tc = ("v4" in kind) or ("7" in kind)            # v4 megacore / v7x: 2 TCs
    min_steps = 2 if dual_tc else 1
    best = 1
    for d in range(1, min(B, 8) + 1):                    # cap the in-kernel unroll
        if B % d == 0 and B // d >= min_steps:
            best = d
    return best
    # TODO(synk): for B == 1 on a dual-TC chip the second core stays idle; splitting the
    # parity/lane halves across a size-2 grid axis would recover it.


def transformer_block_up(x, params, final=False):
    hp = jax.lax.Precision.HIGHEST
    B, cin, D, H, W = x.shape
    assert (D, H, W) == (S, S, S), "kernel is specialised to img_size == 8"
    assert cin % 4 == 0
    c2, c4 = cin // 2, cin // 4
    tc2 = 2 * c2
    dw_mxu = tc2 <= 32                 # block-sparse MXU depthwise only while it is tiny

    x4 = x.reshape(B, cin, DHW).astype(jnp.float32)
    masks = _masks()

    # fold Conv1x1(Cin->C2) with the p/g Conv1x1s:  rows = [p/g ; h]  (8-aligned slices)
    w0 = params["w0"].reshape(c2, cin)
    b0 = params["b0"]
    wpg1 = jnp.concatenate([params["wp1"].reshape(c2, c2),
                            params["wg1"].reshape(c2, c2)], axis=0)
    bpg1 = jnp.concatenate([params["bp1"], params["bg1"]])
    wf = jnp.concatenate([jnp.dot(wpg1, w0, precision=hp), w0], axis=0)      # (3c2, cin)
    bf = jnp.concatenate([jnp.dot(wpg1, b0, precision=hp) + bpg1, b0])       # (3c2,)

    w27 = jnp.concatenate([params["wp2"].reshape(c2, 27),
                           params["wg2"].reshape(c2, 27)], axis=0)           # (2c2, 27)
    bdw = jnp.concatenate([params["bp2"], params["bg2"]])
    if dw_mxu:
        eye = jnp.eye(tc2, dtype=jnp.float32)
        wdw = (w27[:, :, None] * eye[:, None, :]).reshape(tc2, 27 * tc2)     # block-sparse
    else:
        wdw = w27

    wr = params["wr"].reshape(c2, c2)
    br = params["br"]

    bias_segs = [bf, bdw, br]
    args = [x4, masks, wf, wdw, wr]
    if not final:
        wu2 = _combined_upsample_weights(params["wu"].reshape(c4, c2, 3, 3, 3))
        args.append(wu2)
        bias_segs.append(jnp.tile(params["bu"], 8))                          # (8c4,)
    ball = jnp.concatenate(
        [jnp.pad(s, (0, _ceil8(s.shape[0]) - s.shape[0])) for s in bias_segs]
    ).reshape(-1, 1)
    args.append(ball)

    bpg = _batch_per_step(B)
    out_rows = c2 if final else 8 * c4

    in_specs = [pl.BlockSpec((bpg, cin, DHW), lambda b: (b, 0, 0))]
    in_specs += [_const_spec(a) for a in args[1:]]

    scratch_shapes = []
    if dw_mxu:
        scratch_shapes.append(pltpu.VMEM((27 * tc2, DHW), jnp.float32))
    if not final:
        scratch_shapes.append(pltpu.VMEM((8 * c2, DHW), jnp.float32))

    out = pl.pallas_call(
        partial(_fused_kernel, c2=c2, c4=c4, bpg=bpg, final=final, dw_mxu=dw_mxu),
        out_shape=jax.ShapeDtypeStruct((B, out_rows, DHW), jnp.float32),
        grid=(B // bpg,),
        in_specs=in_specs,
        out_specs=pl.BlockSpec((bpg, out_rows, DHW), lambda b: (b, 0, 0)),
        scratch_shapes=scratch_shapes,
        compiler_params=pltpu.CompilerParams(dimension_semantics=("parallel",)),
    )(*args)

    if final:
        return out.reshape(B, c2, S, S, S)

    # Interleave the 8 parity slabs (each a 7^3 block on the 8^3 lane grid) into the
    # (B, c4, 14, 14, 14) output; tiny JAX-side layout glue.
    o = out.reshape(B, 2, 2, 2, c4, S, S, S)[..., :S - 1, :S - 1, :S - 1]
    o = jnp.transpose(o, (0, 4, 5, 1, 6, 2, 7, 3))     # (B, co, m, pd, n, ph, q, pw)
    n_out = 2 * S - 2
    return o.reshape(B, c4, n_out, n_out, n_out)


# ----------------------------------------------------------------- pure-JAX reference
def _reference(x, params, final=False):
    """Dense eval-mode reference of TransformerBlockUp.forward (no Pallas)."""
    hp = jax.lax.Precision.HIGHEST

    def conv1x1(v, w, b):
        return jnp.einsum("oc,bcdhw->bodhw", w, v, precision=hp) \
            + b[None, :, None, None, None]

    def depthwise3(v, w, b):                       # valid depthwise 3x3x3, w: (C,3,3,3)
        Bv, C, D, H, W = v.shape
        out = jnp.zeros((Bv, C, D - 2, H - 2, W - 2), jnp.float32)
        for kd in range(3):
            for kh in range(3):
                for kw in range(3):
                    out = out + (w[None, :, kd, kh, kw, None, None, None]
                                 * v[:, :, kd:kd + D - 2, kh:kh + H - 2, kw:kw + W - 2])
        return out + b[None, :, None, None, None]

    def conv3(v, w, b):                            # valid dense 3x3x3, w: (Co,Ci,3,3,3)
        Bv, Ci, D, H, W = v.shape
        out = None
        for kd in range(3):
            for kh in range(3):
                for kw in range(3):
                    term = jnp.einsum("oc,bcdhw->bodhw", w[:, :, kd, kh, kw],
                                      v[:, :, kd:kd + D - 2, kh:kh + H - 2, kw:kw + W - 2],
                                      precision=hp)
                    out = term if out is None else out + term
        return out + b[None, :, None, None, None]

    def inorm(v):                                  # InstanceNorm3d, affine=False
        m = jnp.mean(v, axis=(2, 3, 4), keepdims=True)
        var = jnp.mean((v - m) ** 2, axis=(2, 3, 4), keepdims=True)
        return (v - m) * jax.lax.rsqrt(var + EPS)

    def gelu(v):                                   # torch.nn.GELU(approximate='none')
        return 0.5 * v * (1.0 + jax.lax.erf(v * _SQRT1_2))

    h = conv1x1(x, params["w0"], params["b0"])
    p = depthwise3(conv1x1(h, params["wp1"], params["bp1"]), params["wp2"], params["bp2"])
    g = depthwise3(conv1x1(h, params["wg1"], params["bg1"]), params["wg2"], params["bg2"])
    g = gelu(inorm(g))
    y = jnp.pad(p * g, ((0, 0), (0, 0), (1, 1), (1, 1), (1, 1)))   # pad3d(p*g, h)
    y = h + inorm(conv1x1(y, params["wr"], params["br"]))          # Dropout3d eval = id
    if final:
        return y
    u = jnp.repeat(jnp.repeat(jnp.repeat(y, 2, axis=2), 2, axis=3), 2, axis=4)
    u = conv3(u, params["wu"], params["bu"])
    return gelu(inorm(u))                                          # Dropout3d eval = id


def init_params(key, in_c):
    c2, c4 = in_c // 2, in_c // 4
    ks = jax.random.split(key, 14)
    r = lambda k, shape, s: jax.random.normal(k, shape, jnp.float32) * s
    return {
        "w0": r(ks[0], (c2, in_c), 0.20), "b0": r(ks[1], (c2,), 0.05),
        "wp1": r(ks[2], (c2, c2), 0.20), "bp1": r(ks[3], (c2,), 0.05),
        "wp2": r(ks[4], (c2, 3, 3, 3), 0.10), "bp2": r(ks[5], (c2,), 0.05),
        "wg1": r(ks[6], (c2, c2), 0.20), "bg1": r(ks[7], (c2,), 0.05),
        "wg2": r(ks[8], (c2, 3, 3, 3), 0.10), "bg2": r(ks[9], (c2,), 0.05),
        "wr": r(ks[10], (c2, c2), 0.20), "br": r(ks[11], (c2,), 0.05),
        "wu": r(ks[12], (c4, c2, 3, 3, 3), 0.10), "bu": r(ks[13], (c4,), 0.05),
    }


if __name__ == "__main__":
    key = jax.random.PRNGKey(0)
    kx, kp = jax.random.split(key)

    B, in_c = 2, 8                  # img_size = 8; FourierGateAttention branch discarded
    x = jax.random.normal(kx, (B, in_c, S, S, S), jnp.float32)
    params = init_params(kp, in_c)

    # not-final path (with upsample)
    fwd = jax.jit(partial(transformer_block_up, final=False))
    y = jax.block_until_ready(fwd(x, params))
    expected = (B, in_c // 4, 2 * S - 2, 2 * S - 2, 2 * S - 2)
    assert y.shape == expected, (y.shape, expected)
    assert bool(jnp.all(jnp.isfinite(y)))
    y_ref = jax.jit(partial(_reference, final=False))(x, params)
    assert bool(jnp.allclose(y, y_ref, atol=2e-2, rtol=2e-2)), \
        float(jnp.max(jnp.abs(y - y_ref)))

    # final path (no upsample)
    fwd_f = jax.jit(partial(transformer_block_up, final=True))
    z = jax.block_until_ready(fwd_f(x, params))
    assert z.shape == (B, in_c // 2, S, S, S), z.shape
    z_ref = jax.jit(partial(_reference, final=True))(x, params)
    assert bool(jnp.allclose(z, z_ref, atol=2e-2, rtol=2e-2)), \
        float(jnp.max(jnp.abs(z - z_ref)))

    print("KERNEL_OK")
</pallas_src>

<mosaic_0001>
module attributes {stable_mosaic.version = 11 : i64} {
  func.func @_fused_kernel(%arg0: i32, %arg1: memref<2x8x512xf32, #tpu.memory_space<vmem>>, %arg2: memref<2x512xf32, #tpu.memory_space<vmem>>, %arg3: memref<12x8xf32, #tpu.memory_space<vmem>>, %arg4: memref<8x216xf32, #tpu.memory_space<vmem>>, %arg5: memref<4x4xf32, #tpu.memory_space<vmem>>, %arg6: memref<16x32xf32, #tpu.memory_space<vmem>>, %arg7: memref<48x1xf32, #tpu.memory_space<vmem>>, %arg8: memref<2x16x512xf32, #tpu.memory_space<vmem>>, %arg9: memref<216x512xf32, #tpu.memory_space<vmem>>, %arg10: memref<32x512xf32, #tpu.memory_space<vmem>>) attributes {dimension_semantics = [#tpu.dimension_semantics<parallel>], iteration_bounds = array<i64: 1>, scalar_prefetch = 0 : i64, scratch_operands = 2 : i64, tpu.core_type = #tpu.core_type<tc>, window_params = [{transform_indices = @transform_0, window_bounds = array<i64: 2, 8, 512>}, {pipeline_mode = #tpu.pipeline_mode<synchronous>, transform_indices = @transform_1, window_bounds = array<i64: 2, 512>}, {pipeline_mode = #tpu.pipeline_mode<synchronous>, transform_indices = @transform_2, window_bounds = array<i64: 12, 8>}, {pipeline_mode = #tpu.pipeline_mode<synchronous>, transform_indices = @transform_3, window_bounds = array<i64: 8, 216>}, {pipeline_mode = #tpu.pipeline_mode<synchronous>, transform_indices = @transform_4, window_bounds = array<i64: 4, 4>}, {pipeline_mode = #tpu.pipeline_mode<synchronous>, transform_indices = @transform_5, window_bounds = array<i64: 16, 32>}, {pipeline_mode = #tpu.pipeline_mode<synchronous>, transform_indices = @transform_6, window_bounds = array<i64: 48, 1>}, {transform_indices = @transform_7, window_bounds = array<i64: 2, 16, 512>}]} {
    %c0 = arith.constant 0 : index
    %c0_0 = arith.constant 0 : index
    %0 = vector.load %arg2[%c0, %c0_0] : memref<2x512xf32, #tpu.memory_space<vmem>>, vector<1x512xf32>
    %c1 = arith.constant 1 : index
    %c0_1 = arith.constant 0 : index
    %1 = vector.load %arg2[%c1, %c0_1] : memref<2x512xf32, #tpu.memory_space<vmem>>, vector<1x512xf32>
    %c0_2 = arith.constant 0 : index
    %c0_3 = arith.constant 0 : index
    %2 = vector.load %arg3[%c0_2, %c0_3] : memref<12x8xf32, #tpu.memory_space<vmem>>, vector<12x8xf32>
    %c0_4 = arith.constant 0 : index
    %c0_5 = arith.constant 0 : index
    %3 = vector.load %arg4[%c0_4, %c0_5] : memref<8x216xf32, #tpu.memory_space<vmem>>, vector<8x216xf32>
    %c0_6 = arith.constant 0 : index
    %c0_7 = arith.constant 0 : index
    %4 = vector.load %arg5[%c0_6, %c0_7] : memref<4x4xf32, #tpu.memory_space<vmem>>, vector<4x4xf32>
    %c0_8 = arith.constant 0 : index
    %c0_9 = arith.constant 0 : index
    %5 = vector.load %arg7[%c0_8, %c0_9] : memref<48x1xf32, #tpu.memory_space<vmem>>, vector<12x1xf32>
    %c16 = arith.constant 16 : index
    %c0_10 = arith.constant 0 : index
    %6 = vector.load %arg7[%c16, %c0_10] : memref<48x1xf32, #tpu.memory_space<vmem>>, vector<8x1xf32>
    %c24 = arith.constant 24 : index
    %c0_11 = arith.constant 0 : index
    %7 = vector.load %arg7[%c24, %c0_11] : memref<48x1xf32, #tpu.memory_space<vmem>>, vector<4x1xf32>
    %c0_12 = arith.constant 0 : index
    %c0_13 = arith.constant 0 : index
    %8 = vector.load %arg6[%c0_12, %c0_13] : memref<16x32xf32, #tpu.memory_space<vmem>>, vector<16x32xf32>
    %c32 = arith.constant 32 : index
    %c0_14 = arith.constant 0 : index
    %9 = vector.load %arg7[%c32, %c0_14] : memref<48x1xf32, #tpu.memory_space<vmem>>, vector<16x1xf32>
    %c0_15 = arith.constant 0 : index
    %c0_16 = arith.constant 0 : index
    %c0_17 = arith.constant 0 : index
    %10 = vector.load %arg1[%c0_15, %c0_16, %c0_17] : memref<2x8x512xf32, #tpu.memory_space<vmem>>, vector<1x8x512xf32>
    %11 = vector.shape_cast %10 : vector<1x8x512xf32> to vector<8x512xf32>
    %cst = arith.constant dense<0.000000e+00> : vector<12x512xf32>
    %12 = tpu.matmul %2, %11, %cst {dimension_numbers = #tpu.dot_dimension_numbers<[1], [0], [0], [1], [0, 0, 1, 1], [], []>} : vector<12x8xf32>, vector<8x512xf32>, vector<12x512xf32> -> vector<12x512xf32>
    %13 = vector.broadcast %5 : vector<12x1xf32> to vector<12x512xf32>
    %14 = arith.addf %12, %13 : vector<12x512xf32>
    %15 = vector.extract_strided_slice %14 {offsets = [0, 0], sizes = [8, 512], strides = [1, 1]} : vector<12x512xf32> to vector<8x512xf32>
    %16 = vector.extract_strided_slice %14 {offsets = [8, 0], sizes = [4, 512], strides = [1, 1]} : vector<12x512xf32> to vector<4x512xf32>
    %c73_i32 = arith.constant 73 : i32
    %17 = tpu.dynamic_rotate %15 by %c73_i32 dim 1 : vector<8x512xf32>, i32 -> vector<8x512xf32>
    %c0_18 = arith.constant 0 : index
    %c0_19 = arith.constant 0 : index
    %18 = vector.load %arg9[%c0_18, %c0_19] : memref<216x512xf32, #tpu.memory_space<vmem>>, vector<8x512xf32>
    tpu.vector_store %arg9[%c0_18, %c0_19], %17 {strides = array<i32>} : memref<216x512xf32, #tpu.memory_space<vmem>>, vector<8x512xf32>,
    %c72_i32 = arith.constant 72 : i32
    %19 = tpu.dynamic_rotate %15 by %c72_i32 dim 1 : vector<8x512xf32>, i32 -> vector<8x512xf32>
    %c8 = arith.constant 8 : index
    %c0_20 = arith.constant 0 : index
    %20 = vector.load %arg9[%c8, %c0_20] : memref<216x512xf32, #tpu.memory_space<vmem>>, vector<8x512xf32>
    tpu.vector_store %arg9[%c8, %c0_20], %19 {strides = array<i32>} : memref<216x512xf32, #tpu.memory_space<vmem>>, vector<8x512xf32>,
    %c71_i32 = arith.constant 71 : i32
    %21 = tpu.dynamic_rotate %15 by %c71_i32 dim 1 : vector<8x512xf32>, i32 -> vector<8x512xf32>
    %c16_21 = arith.constant 16 : index
    %c0_22 = arith.constant 0 : index
    %22 = vector.load %arg9[%c16_21, %c0_22] : memref<216x512xf32, #tpu.memory_space<vmem>>, vector<8x512xf32>
    tpu.vector_store %arg9[%c16_21, %c0_22], %21 {strides = array<i32>} : memref<216x512xf32, #tpu.memory_space<vmem>>, vector<8x512xf32>,
    %c65_i32 = arith.constant 65 : i32
    %23 = tpu.dynamic_rotate %15 by %c65_i32 dim 1 : vector<8x512xf32>, i32 -> vector<8x512xf32>
    %c24_23 = arith.constant 24 : index
    %c0_24 = arith.constant 0 : index
    %24 = vector.load %arg9[%c24_23, %c0_24] : memref<216x512xf32, #tpu.memory_space<vmem>>, vector<8x512xf32>
    tpu.vector_store %arg9[%c24_23, %c0_24], %23 {strides = array<i32>} : memref<216x512xf32, #tpu.memory_space<vmem>>, vector<8x512xf32>,
    %c64_i32 = arith.constant 64 : i32
    %25 = tpu.dynamic_rotate %15 by %c64_i32 dim 1 : vector<8x512xf32>, i32 -> vector<8x512xf32>
    %c32_25 = arith.constant 32 : index
    %c0_26 = arith.constant 0 : index
    %26 = vector.load %arg9[%c32_25, %c0_26] : memref<216x512xf32, #tpu.memory_space<vmem>>, vector<8x512xf32>
    tpu.vector_store %arg9[%c32_25, %c0_26], %25 {strides = array<i32>} : memref<216x512xf32, #tpu.memory_space<vmem>>, vector<8x512xf32>,
    %c63_i32 = arith.constant 63 : i32
    %27 = tpu.dynamic_rotate %15 by %c63_i32 dim 1 : vector<8x512xf32>, i32 -> vector<8x512xf32>
    %c40 = arith.constant 40 : index
    %c0_27 = arith.constant 0 : index
    %28 = vector.load %arg9[%c40, %c0_27] : memref<216x512xf32, #tpu.memory_space<vmem>>, vector<8x512xf32>
    tpu.vector_store %arg9[%c40, %c0_27], %27 {strides = array<i32>} : memref<216x512xf32, #tpu.memory_space<vmem>>, vector<8x512xf32>,
    %c57_i32 = arith.constant 57 : i32
    %29 = tpu.dynamic_rotate %15 by %c57_i32 dim 1 : vector<8x512xf32>, i32 -> vector<8x512xf32>
    %c48 = arith.constant 48 : index
    %c0_28 = arith.constant 0 : index
    %30 = vector.load %arg9[%c48, %c0_28] : memref<216x512xf32, #tpu.memory_space<vmem>>, vector<8x512xf32>
    tpu.vector_store %arg9[%c48, %c0_28], %29 {strides = array<i32>} : memref<216x512xf32, #tpu.memory_space<vmem>>, vector<8x512xf32>,
    %c56_i32 = arith.constant 56 : i32
    %31 = tpu.dynamic_rotate %15 by %c56_i32 dim 1 : vector<8x512xf32>, i32 -> vector<8x512xf32>
    %c56 = arith.constant 56 : index
    %c0_29 = arith.constant 0 : index
    %32 = vector.load %arg9[%c56, %c0_29] : memref<216x512xf32, #tpu.memory_space<vmem>>, vector<8x512xf32>
    tpu.vector_store %arg9[%c56, %c0_29], %31 {strides = array<i32>} : memref<216x512xf32, #tpu.memory_space<vmem>>, vector<8x512xf32>,
    %c55_i32 = arith.constant 55 : i32
    %33 = tpu.dynamic_rotate %15 by %c55_i32 dim 1 : vector<8x512xf32>, i32 -> vector<8x512xf32>
    %c64 = arith.constant 64 : index
    %c0_30 = arith.constant 0 : index
    %34 = vector.load %arg9[%c64, %c0_30] : memref<216x512xf32, #tpu.memory_space<vmem>>, vector<8x512xf32>
    tpu.vector_store %arg9[%c64, %c0_30], %33 {strides = array<i32>} : memref<216x512xf32, #tpu.memory_space<vmem>>, vector<8x512xf32>,
    %c9_i32 = arith.constant 9 : i32
    %35 = tpu.dynamic_rotate %15 by %c9_i32 dim 1 : vector<8x512xf32>, i32 -> vector<8x512xf32>
    %c72 = arith.constant 72 : index
    %c0_31 = arith.constant 0 : index
    %36 = vector.load %arg9[%c72, %c0_31] : memref<216x512xf32, #tpu.memory_space<vmem>>, vector<8x512xf32>
    tpu.vector_store %arg9[%c72, %c0_31], %35 {strides = array<i32>} : memref<216x512xf32, #tpu.memory_space<vmem>>, vector<8x512xf32>,
    %c8_i32 = arith.constant 8 : i32
    %37 = tpu.dynamic_rotate %15 by %c8_i32 dim 1 : vector<8x512xf32>, i32 -> vector<8x512xf32>
    %c80 = arith.constant 80 : index
    %c0_32 = arith.constant 0 : index
    %38 = vector.load %arg9[%c80, %c0_32] : memref<216x512xf32, #tpu.memory_space<vmem>>, vector<8x512xf32>
    tpu.vector_store %arg9[%c80, %c0_32], %37 {strides = array<i32>} : memref<216x512xf32, #tpu.memory_space<vmem>>, vector<8x512xf32>,
    %c7_i32 = arith.constant 7 : i32
    %39 = tpu.dynamic_rotate %15 by %c7_i32 dim 1 : vector<8x512xf32>, i32 -> vector<8x512xf32>
    %c88 = arith.constant 88 : index
    %c0_33 = arith.constant 0 : index
    %40 = vector.load %arg9[%c88, %c0_33] : memref<216x512xf32, #tpu.memory_space<vmem>>, vector<8x512xf32>
    tpu.vector_store %arg9[%c88, %c0_33], %39 {strides = array<i32>} : memref<216x512xf32, #tpu.memory_space<vmem>>, vector<8x512xf32>,
    %c1_i32 = arith.constant 1 : i32
    %41 = tpu.dynamic_rotate %15 by %c1_i32 dim 1 : vector<8x512xf32>, i32 -> vector<8x512xf32>
    %c96 = arith.constant 96 : index
    %c0_34 = arith.constant 0 : index
    %42 = vector.load %arg9[%c96, %c0_34] : memref<216x512xf32, #tpu.memory_space<vmem>>, vector<8x512xf32>
    tpu.vector_store %arg9[%c96, %c0_34], %41 {strides = array<i32>} : memref<216x512xf32, #tpu.memory_space<vmem>>, vector<8x512xf32>,
    %c104 = arith.constant 104 : index
    %c0_35 = arith.constant 0 : index
    %43 = vector.load %arg9[%c104, %c0_35] : memref<216x512xf32, #tpu.memory_space<vmem>>, vector<8x512xf32>
    tpu.vector_store %arg9[%c104, %c0_35], %15 {strides = array<i32>} : memref<216x512xf32, #tpu.memory_space<vmem>>, vector<8x512xf32>,
    %c511_i32 = arith.constant 511 : i32
    %44 = tpu.dynamic_rotate %15 by %c511_i32 dim 1 : vector<8x512xf32>, i32 -> vector<8x512xf32>
    %c112 = arith.constant 112 : index
    %c0_36 = arith.constant 0 : index
    %45 = vector.load %arg9[%c112, %c0_36] : memref<216x512xf32, #tpu.memory_space<vmem>>, vector<8x512xf32>
    tpu.vector_store %arg9[%c112, %c0_36], %44 {strides = array<i32>} : memref<216x512xf32, #tpu.memory_space<vmem>>, vector<8x512xf32>,
    %c505_i32 = arith.constant 505 : i32
    %46 = tpu.dynamic_rotate %15 by %c505_i32 dim 1 : vector<8x512xf32>, i32 -> vector<8x512xf32>
    %c120 = arith.constant 120 : index
    %c0_37 = arith.constant 0 : index
    %47 = vector.load %arg9[%c120, %c0_37] : memref<216x512xf32, #tpu.memory_space<vmem>>, vector<8x512xf32>
    tpu.vector_store %arg9[%c120, %c0_37], %46 {strides = array<i32>} : memref<216x512xf32, #tpu.memory_space<vmem>>, vector<8x512xf32>,
    %c504_i32 = arith.constant 504 : i32
    %48 = tpu.dynamic_rotate %15 by %c504_i32 dim 1 : vector<8x512xf32>, i32 -> vector<8x512xf32>
    %c128 = arith.constant 128 : index
    %c0_38 = arith.constant 0 : index
    %49 = vector.load %arg9[%c128, %c0_38] : memref<216x512xf32, #tpu.memory_space<vmem>>, vector<8x512xf32>
    tpu.vector_store %arg9[%c128, %c0_38], %48 {strides = array<i32>} : memref<216x512xf32, #tpu.memory_space<vmem>>, vector<8x512xf32>,
    %c503_i32 = arith.constant 503 : i32
    %50 = tpu.dynamic_rotate %15 by %c503_i32 dim 1 : vector<8x512xf32>, i32 -> vector<8x512xf32>
    %c136 = arith.constant 136 : index
    %c0_39 = arith.constant 0 : index
    %51 = vector.load %arg9[%c136, %c0_39] : memref<216x512xf32, #tpu.memory_space<vmem>>, vector<8x512xf32>
    tpu.vector_store %arg9[%c136, %c0_39], %50 {strides = array<i32>} : memref<216x512xf32, #tpu.memory_space<vmem>>, vector<8x512xf32>,
    %c457_i32 = arith.constant 457 : i32
    %52 = tpu.dynamic_rotate %15 by %c457_i32 dim 1 : vector<8x512xf32>, i32 -> vector<8x512xf32>
    %c144 = arith.constant 144 : index
    %c0_40 = arith.constant 0 : index
    %53 = vector.load %arg9[%c144, %c0_40] : memref<216x512xf32, #tpu.memory_space<vmem>>, vector<8x512xf32>
    tpu.vector_store %arg9[%c144, %c0_40], %52 {strides = array<i32>} : memref<216x512xf32, #tpu.memory_space<vmem>>, vector<8x512xf32>,
    %c456_i32 = arith.constant 456 : i32
    %54 = tpu.dynamic_rotate %15 by %c456_i32 dim 1 : vector<8x512xf32>, i32 -> vector<8x512xf32>
    %c152 = arith.constant 152 : index
    %c0_41 = arith.constant 0 : index
    %55 = vector.load %arg9[%c152, %c0_41] : memref<216x512xf32, #tpu.memory_space<vmem>>, vector<8x512xf32>
    tpu.vector_store %arg9[%c152, %c0_41], %54 {strides = array<i32>} : memref<216x512xf32, #tpu.memory_space<vmem>>, vector<8x512xf32>,
    %c455_i32 = arith.constant 455 : i32
    %56 = tpu.dynamic_rotate %15 by %c455_i32 dim 1 : vector<8x512xf32>, i32 -> vector<8x512xf32>
    %c160 = arith.constant 160 : index
    %c0_42 = arith.constant 0 : index
    %57 = vector.load %arg9[%c160, %c0_42] : memref<216x512xf32, #tpu.memory_space<vmem>>, vector<8x512xf32>
    tpu.vector_store %arg9[%c160, %c0_42], %56 {strides = array<i32>} : memref<216x512xf32, #tpu.memory_space<vmem>>, vector<8x512xf32>,
    %c449_i32 = arith.constant 449 : i32
    %58 = tpu.dynamic_rotate %15 by %c449_i32 dim 1 : vector<8x512xf32>, i32 -> vector<8x512xf32>
    %c168 = arith.constant 168 : index
    %c0_43 = arith.constant 0 : index
    %59 = vector.load %arg9[%c168, %c0_43] : memref<216x512xf32, #tpu.memory_space<vmem>>, vector<8x512xf32>
    tpu.vector_store %arg9[%c168, %c0_43], %58 {strides = array<i32>} : memref<216x512xf32, #tpu.memory_space<vmem>>, vector<8x512xf32>,
    %c448_i32 = arith.constant 448 : i32
    %60 = tpu.dynamic_rotate %15 by %c448_i32 dim 1 : vector<8x512xf32>, i32 -> vector<8x512xf32>
    %c176 = arith.constant 176 : index
    %c0_44 = arith.constant 0 : index
    %61 = vector.load %arg9[%c176, %c0_44] : memref<216x512xf32, #tpu.memory_space<vmem>>, vector<8x512xf32>
    tpu.vector_store %arg9[%c176, %c0_44], %60 {strides = array<i32>} : memref<216x512xf32, #tpu.memory_space<vmem>>, vector<8x512xf32>,
    %c447_i32 = arith.constant 447 : i32
    %62 = tpu.dynamic_rotate %15 by %c447_i32 dim 1 : vector<8x512xf32>, i32 -> vector<8x512xf32>
    %c184 = arith.constant 184 : index
    %c0_45 = arith.constant 0 : index
    %63 = vector.load %arg9[%c184, %c0_45] : memref<216x512xf32, #tpu.memory_space<vmem>>, vector<8x512xf32>
    tpu.vector_store %arg9[%c184, %c0_45], %62 {strides = array<i32>} : memref<216x512xf32, #tpu.memory_space<vmem>>, vector<8x512xf32>,
    %c441_i32 = arith.constant 441 : i32
    %64 = tpu.dynamic_rotate %15 by %c441_i32 dim 1 : vector<8x512xf32>, i32 -> vector<8x512xf32>
    %c192 = arith.constant 192 : index
    %c0_46 = arith.constant 0 : index
    %65 = vector.load %arg9[%c192, %c0_46] : memref<216x512xf32, #tpu.memory_space<vmem>>, vector<8x512xf32>
    tpu.vector_store %arg9[%c192, %c0_46], %64 {strides = array<i32>} : memref<216x512xf32, #tpu.memory_space<vmem>>, vector<8x512xf32>,
    %c440_i32 = arith.constant 440 : i32
    %66 = tpu.dynamic_rotate %15 by %c440_i32 dim 1 : vector<8x512xf32>, i32 -> vector<8x512xf32>
    %c200 = arith.constant 200 : index
    %c0_47 = arith.constant 0 : index
    %67 = vector.load %arg9[%c200, %c0_47] : memref<216x512xf32, #tpu.memory_space<vmem>>, vector<8x512xf32>
    tpu.vector_store %arg9[%c200, %c0_47], %66 {strides = array<i32>} : memref<216x512xf32, #tpu.memory_space<vmem>>, vector<8x512xf32>,
    %c439_i32 = arith.constant 439 : i32
    %68 = tpu.dynamic_rotate %15 by %c439_i32 dim 1 : vector<8x512xf32>, i32 -> vector<8x512xf32>
    %c208 = arith.constant 208 : index
    %c0_48 = arith.constant 0 : index
    %69 = vector.load %arg9[%c208, %c0_48] : memref<216x512xf32, #tpu.memory_space<vmem>>, vector<8x512xf32>
    tpu.vector_store %arg9[%c208, %c0_48], %68 {strides = array<i32>} : memref<216x512xf32, #tpu.memory_space<vmem>>, vector<8x512xf32>,
    %c0_49 = arith.constant 0 : index
    %c0_50 = arith.constant 0 : index
    %70 = vector.load %arg9[%c0_49, %c0_50] : memref<216x512xf32, #tpu.memory_space<vmem>>, vector<216x512xf32>
    %cst_51 = arith.constant dense<0.000000e+00> : vector<8x512xf32>
    %71 = tpu.matmul %3, %70, %cst_51 {dimension_numbers = #tpu.dot_dimension_numbers<[1], [0], [0], [1], [0, 0, 1, 1], [], []>} : vector<8x216xf32>, vector<216x512xf32>, vector<8x512xf32> -> vector<8x512xf32>
    %72 = vector.broadcast %6 : vector<8x1xf32> to vector<8x512xf32>
    %73 = arith.addf %71, %72 : vector<8x512xf32>
    %74 = vector.extract_strided_slice %73 {offsets = [0, 0], sizes = [4, 512], strides = [1, 1]} : vector<8x512xf32> to vector<4x512xf32>
    %75 = vector.extract_strided_slice %73 {offsets = [4, 0], sizes = [4, 512], strides = [1, 1]} : vector<8x512xf32> to vector<4x512xf32>
    %76 = vector.broadcast %0 : vector<1x512xf32> to vector<4x512xf32>
    %77 = arith.mulf %75, %76 : vector<4x512xf32>
    %cst_52 = arith.constant dense<0.000000e+00> : vector<4xf32>
    %78 = vector.multi_reduction <add>, %77, %cst_52 [1] : vector<4x512xf32> to vector<4xf32>
    %79 = vector.shape_cast %78 : vector<4xf32> to vector<4x1xf32>
    %cst_53 = arith.constant 2.160000e+02 : f32
    %80 = vector.broadcast %cst_53 : f32 to vector<4x1xf32>
    %81 = arith.divf %79, %80 : vector<4x1xf32>
    %82 = vector.broadcast %81 : vector<4x1xf32> to vector<4x512xf32>
    %83 = arith.subf %75, %82 : vector<4x512xf32>
    %84 = vector.broadcast %0 : vector<1x512xf32> to vector<4x512xf32>
    %85 = arith.mulf %83, %84 : vector<4x512xf32>
    %86 = arith.mulf %85, %85 : vector<4x512xf32>
    %cst_54 = arith.constant dense<0.000000e+00> : vector<4xf32>
    %87 = vector.multi_reduction <add>, %86, %cst_54 [1] : vector<4x512xf32> to vector<4xf32>
    %88 = vector.shape_cast %87 : vector<4xf32> to vector<4x1xf32>
    %cst_55 = arith.constant 2.160000e+02 : f32
    %89 = vector.broadcast %cst_55 : f32 to vector<4x1xf32>
    %90 = arith.divf %88, %89 : vector<4x1xf32>
    %cst_56 = arith.constant 9.99999974E-6 : f32
    %91 = vector.broadcast %cst_56 : f32 to vector<4x1xf32>
    %92 = arith.addf %90, %91 : vector<4x1xf32>
    %93 = math.rsqrt %92 : vector<4x1xf32>
    %94 = vector.broadcast %93 : vector<4x1xf32> to vector<4x512xf32>
    %95 = arith.mulf %85, %94 : vector<4x512xf32>
    %cst_57 = arith.constant 5.000000e-01 : f32
    %96 = vector.broadcast %cst_57 : f32 to vector<4x512xf32>
    %97 = arith.mulf %96, %95 : vector<4x512xf32>
    %cst_58 = arith.constant 0.707106769 : f32
    %98 = vector.broadcast %cst_58 : f32 to vector<4x512xf32>
    %99 = arith.mulf %95, %98 : vector<4x512xf32>
    %100 = math.absf %99 : vector<4x512xf32>
    %cst_59 = arith.constant 0.327591091 : f32
    %101 = vector.broadcast %cst_59 : f32 to vector<4x512xf32>
    %102 = arith.mulf %101, %100 : vector<4x512xf32>
    %cst_60 = arith.constant 1.000000e+00 : f32
    %103 = vector.broadcast %cst_60 : f32 to vector<4x512xf32>
    %104 = arith.addf %103, %102 : vector<4x512xf32>
    %cst_61 = arith.constant 1.000000e+00 : f32
    %105 = vector.broadcast %cst_61 : f32 to vector<4x512xf32>
    %106 = arith.divf %105, %104 : vector<4x512xf32>
    %cst_62 = arith.constant 1.06140542 : f32
    %107 = vector.broadcast %cst_62 : f32 to vector<4x512xf32>
    %108 = arith.mulf %106, %107 : vector<4x512xf32>
    %cst_63 = arith.constant -1.45315206 : f32
    %109 = vector.broadcast %cst_63 : f32 to vector<4x512xf32>
    %110 = arith.addf %109, %108 : vector<4x512xf32>
    %111 = arith.mulf %106, %110 : vector<4x512xf32>
    %cst_64 = arith.constant 1.42141378 : f32
    %112 = vector.broadcast %cst_64 : f32 to vector<4x512xf32>
    %113 = arith.addf %112, %111 : vector<4x512xf32>
    %114 = arith.mulf %106, %113 : vector<4x512xf32>
    %cst_65 = arith.constant -0.284496725 : f32
    %115 = vector.broadcast %cst_65 : f32 to vector<4x512xf32>
    %116 = arith.addf %115, %114 : vector<4x512xf32>
    %117 = arith.mulf %106, %116 : vector<4x512xf32>
    %cst_66 = arith.constant 0.254829586 : f32
    %118 = vector.broadcast %cst_66 : f32 to vector<4x512xf32>
    %119 = arith.addf %118, %117 : vector<4x512xf32>
    %120 = arith.mulf %106, %119 : vector<4x512xf32>
    %cst_67 = arith.constant 0.000000e+00 : f32
    %121 = vector.broadcast %cst_67 : f32 to vector<4x512xf32>
    %122 = arith.subf %121, %100 : vector<4x512xf32>
    %123 = arith.mulf %122, %100 : vector<4x512xf32>
    %124 = math.exp %123 : vector<4x512xf32>
    %125 = arith.mulf %120, %124 : vector<4x512xf32>
    %cst_68 = arith.constant 1.000000e+00 : f32
    %126 = vector.broadcast %cst_68 : f32 to vector<4x512xf32>
    %127 = arith.subf %126, %125 : vector<4x512xf32>
    %cst_69 = arith.constant 0.000000e+00 : f32
    %128 = vector.broadcast %cst_69 : f32 to vector<4x512xf32>
    %129 = arith.cmpf oge, %99, %128 : vector<4x512xf32>
    %cst_70 = arith.constant 0.000000e+00 : f32
    %130 = vector.broadcast %cst_70 : f32 to vector<4x512xf32>
    %131 = arith.subf %130, %127 : vector<4x512xf32>
    %132 = arith.select %129, %127, %131 : vector<4x512xi1>, vector<4x512xf32>
    %cst_71 = arith.constant 1.000000e+00 : f32
    %133 = vector.broadcast %cst_71 : f32 to vector<4x512xf32>
    %134 = arith.addf %133, %132 : vector<4x512xf32>
    %135 = arith.mulf %97, %134 : vector<4x512xf32>
    %136 = arith.mulf %74, %135 : vector<4x512xf32>
    %cst_72 = arith.constant dense<0.000000e+00> : vector<4x512xf32>
    %137 = tpu.matmul %4, %136, %cst_72 {dimension_numbers = #tpu.dot_dimension_numbers<[1], [0], [0], [1], [0, 0, 1, 1], [], []>} : vector<4x4xf32>, vector<4x512xf32>, vector<4x512xf32> -> vector<4x512xf32>
    %138 = vector.broadcast %7 : vector<4x1xf32> to vector<4x512xf32>
    %139 = arith.addf %137, %138 : vector<4x512xf32>
    %cst_73 = arith.constant dense<0.000000e+00> : vector<4xf32>
    %140 = vector.multi_reduction <add>, %139, %cst_73 [1] : vector<4x512xf32> to vector<4xf32>
    %141 = vector.shape_cast %140 : vector<4xf32> to vector<4x1xf32>
    %cst_74 = arith.constant 5.120000e+02 : f32
    %142 = vector.broadcast %cst_74 : f32 to vector<4x1xf32>
    %143 = arith.divf %141, %142 : vector<4x1xf32>
    %144 = vector.broadcast %143 : vector<4x1xf32> to vector<4x512xf32>
    %145 = arith.subf %139, %144 : vector<4x512xf32>
    %146 = arith.mulf %145, %145 : vector<4x512xf32>
    %cst_75 = arith.constant dense<0.000000e+00> : vector<4xf32>
    %147 = vector.multi_reduction <add>, %146, %cst_75 [1] : vector<4x512xf32> to vector<4xf32>
    %148 = vector.shape_cast %147 : vector<4xf32> to vector<4x1xf32>
    %cst_76 = arith.constant 5.120000e+02 : f32
    %149 = vector.broadcast %cst_76 : f32 to vector<4x1xf32>
    %150 = arith.divf %148, %149 : vector<4x1xf32>
    %cst_77 = arith.constant 9.99999974E-6 : f32
    %151 = vector.broadcast %cst_77 : f32 to vector<4x1xf32>
    %152 = arith.addf %150, %151 : vector<4x1xf32>
    %153 = math.rsqrt %152 : vector<4x1xf32>
    %154 = vector.broadcast %153 : vector<4x1xf32> to vector<4x512xf32>
    %155 = arith.mulf %145, %154 : vector<4x512xf32>
    %156 = arith.addf %16, %155 : vector<4x512xf32>
    %c0_78 = arith.constant 0 : index
    %c0_79 = arith.constant 0 : index
    %157 = vector.load %arg10[%c0_78, %c0_79] : memref<32x512xf32, #tpu.memory_space<vmem>>, vector<4x512xf32>
    tpu.vector_store %arg10[%c0_78, %c0_79], %156 {strides = array<i32>} : memref<32x512xf32, #tpu.memory_space<vmem>>, vector<4x512xf32>,
    %c511_i32_80 = arith.constant 511 : i32
    %158 = tpu.dynamic_rotate %156 by %c511_i32_80 dim 1 : vector<4x512xf32>, i32 -> vector<4x512xf32>
    %c4 = arith.constant 4 : index
    %c0_81 = arith.constant 0 : index
    %159 = vector.load %arg10[%c4, %c0_81] : memref<32x512xf32, #tpu.memory_space<vmem>>, vector<4x512xf32>
    tpu.vector_store %arg10[%c4, %c0_81], %158 {strides = array<i32>} : memref<32x512xf32, #tpu.memory_space<vmem>>, vector<4x512xf32>,
    %c504_i32_82 = arith.constant 504 : i32
    %160 = tpu.dynamic_rotate %156 by %c504_i32_82 dim 1 : vector<4x512xf32>, i32 -> vector<4x512xf32>
    %c8_83 = arith.constant 8 : index
    %c0_84 = arith.constant 0 : index
    %161 = vector.load %arg10[%c8_83, %c0_84] : memref<32x512xf32, #tpu.memory_space<vmem>>, vector<4x512xf32>
    tpu.vector_store %arg10[%c8_83, %c0_84], %160 {strides = array<i32>} : memref<32x512xf32, #tpu.memory_space<vmem>>, vector<4x512xf32>,
    %c503_i32_85 = arith.constant 503 : i32
    %162 = tpu.dynamic_rotate %156 by %c503_i32_85 dim 1 : vector<4x512xf32>, i32 -> vector<4x512xf32>
    %c12 = arith.constant 12 : index
    %c0_86 = arith.constant 0 : index
    %163 = vector.load %arg10[%c12, %c0_86] : memref<32x512xf32, #tpu.memory_space<vmem>>, vector<4x512xf32>
    tpu.vector_store %arg10[%c12, %c0_86], %162 {strides = array<i32>} : memref<32x512xf32, #tpu.memory_space<vmem>>, vector<4x512xf32>,
    %c448_i32_87 = arith.constant 448 : i32
    %164 = tpu.dynamic_rotate %156 by %c448_i32_87 dim 1 : vector<4x512xf32>, i32 -> vector<4x512xf32>
    %c16_88 = arith.constant 16 : index
    %c0_89 = arith.constant 0 : index
    %165 = vector.load %arg10[%c16_88, %c0_89] : memref<32x512xf32, #tpu.memory_space<vmem>>, vector<4x512xf32>
    tpu.vector_store %arg10[%c16_88, %c0_89], %164 {strides = array<i32>} : memref<32x512xf32, #tpu.memory_space<vmem>>, vector<4x512xf32>,
    %c447_i32_90 = arith.constant 447 : i32
    %166 = tpu.dynamic_rotate %156 by %c447_i32_90 dim 1 : vector<4x512xf32>, i32 -> vector<4x512xf32>
    %c20 = arith.constant 20 : index
    %c0_91 = arith.constant 0 : index
    %167 = vector.load %arg10[%c20, %c0_91] : memref<32x512xf32, #tpu.memory_space<vmem>>, vector<4x512xf32>
    tpu.vector_store %arg10[%c20, %c0_91], %166 {strides = array<i32>} : memref<32x512xf32, #tpu.memory_space<vmem>>, vector<4x512xf32>,
    %c440_i32_92 = arith.constant 440 : i32
    %168 = tpu.dynamic_rotate %156 by %c440_i32_92 dim 1 : vector<4x512xf32>, i32 -> vector<4x512xf32>
    %c24_93 = arith.constant 24 : index
    %c0_94 = arith.constant 0 : index
    %169 = vector.load %arg10[%c24_93, %c0_94] : memref<32x512xf32, #tpu.memory_space<vmem>>, vector<4x512xf32>
    tpu.vector_store %arg10[%c24_93, %c0_94], %168 {strides = array<i32>} : memref<32x512xf32, #tpu.memory_space<vmem>>, vector<4x512xf32>,
    %c439_i32_95 = arith.constant 439 : i32
    %170 = tpu.dynamic_rotate %156 by %c439_i32_95 dim 1 : vector<4x512xf32>, i32 -> vector<4x512xf32>
    %c28 = arith.constant 28 : index
    %c0_96 = arith.constant 0 : index
    %171 = vector.load %arg10[%c28, %c0_96] : memref<32x512xf32, #tpu.memory_space<vmem>>, vector<4x512xf32>
    tpu.vector_store %arg10[%c28, %c0_96], %170 {strides = array<i32>} : memref<32x512xf32, #tpu.memory_space<vmem>>, vector<4x512xf32>,
    %c0_97 = arith.constant 0 : index
    %c0_98 = arith.constant 0 : index
    %172 = vector.load %arg10[%c0_97, %c0_98] : memref<32x512xf32, #tpu.memory_space<vmem>>, vector<32x512xf32>
    %cst_99 = arith.constant dense<0.000000e+00> : vector<16x512xf32>
    %173 = tpu.matmul %8, %172, %cst_99 {dimension_numbers = #tpu.dot_dimension_numbers<[1], [0], [0], [1], [0, 0, 1, 1], [], []>} : vector<16x32xf32>, vector<32x512xf32>, vector<16x512xf32> -> vector<16x512xf32>
    %174 = vector.broadcast %9 : vector<16x1xf32> to vector<16x512xf32>
    %175 = arith.addf %173, %174 : vector<16x512xf32>
    %176 = vector.extract_strided_slice %175 {offsets = [0, 0], sizes = [2, 512], strides = [1, 1]} : vector<16x512xf32> to vector<2x512xf32>
    %177 = vector.extract_strided_slice %175 {offsets = [2, 0], sizes = [2, 512], strides = [1, 1]} : vector<16x512xf32> to vector<2x512xf32>
    %178 = arith.addf %176, %177 : vector<2x512xf32>
    %179 = vector.extract_strided_slice %175 {offsets = [4, 0], sizes = [2, 512], strides = [1, 1]} : vector<16x512xf32> to vector<2x512xf32>
    %180 = arith.addf %178, %179 : vector<2x512xf32>
    %181 = vector.extract_strided_slice %175 {offsets = [6, 0], sizes = [2, 512], strides = [1, 1]} : vector<16x512xf32> to vector<2x512xf32>
    %182 = arith.addf %180, %181 : vector<2x512xf32>
    %183 = vector.extract_strided_slice %175 {offsets = [8, 0], sizes = [2, 512], strides = [1, 1]} : vector<16x512xf32> to vector<2x512xf32>
    %184 = arith.addf %182, %183 : vector<2x512xf32>
    %185 = vector.extract_strided_slice %175 {offsets = [10, 0], sizes = [2, 512], strides = [1, 1]} : vector<16x512xf32> to vector<2x512xf32>
    %186 = arith.addf %184, %185 : vector<2x512xf32>
    %187 = vector.extract_strided_slice %175 {offsets = [12, 0], sizes = [2, 512], strides = [1, 1]} : vector<16x512xf32> to vector<2x512xf32>
    %188 = arith.addf %186, %187 : vector<2x512xf32>
    %189 = vector.extract_strided_slice %175 {offsets = [14, 0], sizes = [2, 512], strides = [1, 1]} : vector<16x512xf32> to vector<2x512xf32>
    %190 = arith.addf %188, %189 : vector<2x512xf32>
    %191 = vector.broadcast %1 : vector<1x512xf32> to vector<2x512xf32>
    %192 = arith.mulf %190, %191 : vector<2x512xf32>
    %cst_100 = arith.constant dense<0.000000e+00> : vector<2xf32>
    %193 = vector.multi_reduction <add>, %192, %cst_100 [1] : vector<2x512xf32> to vector<2xf32>
    %194 = vector.shape_cast %193 : vector<2xf32> to vector<2x1xf32>
    %cst_101 = arith.constant 2.744000e+03 : f32
    %195 = vector.broadcast %cst_101 : f32 to vector<2x1xf32>
    %196 = arith.divf %194, %195 : vector<2x1xf32>
    %197 = vector.extract_strided_slice %175 {offsets = [0, 0], sizes = [2, 512], strides = [1, 1]} : vector<16x512xf32> to vector<2x512xf32>
    %198 = vector.broadcast %196 : vector<2x1xf32> to vector<2x512xf32>
    %199 = arith.subf %197, %198 : vector<2x512xf32>
    %200 = arith.mulf %199, %199 : vector<2x512xf32>
    %201 = vector.extract_strided_slice %175 {offsets = [2, 0], sizes = [2, 512], strides = [1, 1]} : vector<16x512xf32> to vector<2x512xf32>
    %202 = vector.broadcast %196 : vector<2x1xf32> to vector<2x512xf32>
    %203 = arith.subf %201, %202 : vector<2x512xf32>
    %204 = arith.mulf %203, %203 : vector<2x512xf32>
    %205 = arith.addf %200, %204 : vector<2x512xf32>
    %206 = vector.extract_strided_slice %175 {offsets = [4, 0], sizes = [2, 512], strides = [1, 1]} : vector<16x512xf32> to vector<2x512xf32>
    %207 = vector.broadcast %196 : vector<2x1xf32> to vector<2x512xf32>
    %208 = arith.subf %206, %207 : vector<2x512xf32>
    %209 = arith.mulf %208, %208 : vector<2x512xf32>
    %210 = arith.addf %205, %209 : vector<2x512xf32>
    %211 = vector.extract_strided_slice %175 {offsets = [6, 0], sizes = [2, 512], strides = [1, 1]} : vector<16x512xf32> to vector<2x512xf32>
    %212 = vector.broadcast %196 : vector<2x1xf32> to vector<2x512xf32>
    %213 = arith.subf %211, %212 : vector<2x512xf32>
    %214 = arith.mulf %213, %213 : vector<2x512xf32>
    %215 = arith.addf %210, %214 : vector<2x512xf32>
    %216 = vector.extract_strided_slice %175 {offsets = [8, 0], sizes = [2, 512], strides = [1, 1]} : vector<16x512xf32> to vector<2x512xf32>
    %217 = vector.broadcast %196 : vector<2x1xf32> to vector<2x512xf32>
    %218 = arith.subf %216, %217 : vector<2x512xf32>
    %219 = arith.mulf %218, %218 : vector<2x512xf32>
    %220 = arith.addf %215, %219 : vector<2x512xf32>
    %221 = vector.extract_strided_slice %175 {offsets = [10, 0], sizes = [2, 512], strides = [1, 1]} : vector<16x512xf32> to vector<2x512xf32>
    %222 = vector.broadcast %196 : vector<2x1xf32> to vector<2x512xf32>
    %223 = arith.subf %221, %222 : vector<2x512xf32>
    %224 = arith.mulf %223, %223 : vector<2x512xf32>
    %225 = arith.addf %220, %224 : vector<2x512xf32>
    %226 = vector.extract_strided_slice %175 {offsets = [12, 0], sizes = [2, 512], strides = [1, 1]} : vector<16x512xf32> to vector<2x512xf32>
    %227 = vector.broadcast %196 : vector<2x1xf32> to vector<2x512xf32>
    %228 = arith.subf %226, %227 : vector<2x512xf32>
    %229 = arith.mulf %228, %228 : vector<2x512xf32>
    %230 = arith.addf %225, %229 : vector<2x512xf32>
    %231 = vector.extract_strided_slice %175 {offsets = [14, 0], sizes = [2, 512], strides = [1, 1]} : vector<16x512xf32> to vector<2x512xf32>
    %232 = vector.broadcast %196 : vector<2x1xf32> to vector<2x512xf32>
    %233 = arith.subf %231, %232 : vector<2x512xf32>
    %234 = arith.mulf %233, %233 : vector<2x512xf32>
    %235 = arith.addf %230, %234 : vector<2x512xf32>
    %236 = vector.broadcast %1 : vector<1x512xf32> to vector<2x512xf32>
    %237 = arith.mulf %235, %236 : vector<2x512xf32>
    %cst_102 = arith.constant dense<0.000000e+00> : vector<2xf32>
    %238 = vector.multi_reduction <add>, %237, %cst_102 [1] : vector<2x512xf32> to vector<2xf32>
    %239 = vector.shape_cast %238 : vector<2xf32> to vector<2x1xf32>
    %cst_103 = arith.constant 2.744000e+03 : f32
    %240 = vector.broadcast %cst_103 : f32 to vector<2x1xf32>
    %241 = arith.divf %239, %240 : vector<2x1xf32>
    %cst_104 = arith.constant 9.99999974E-6 : f32
    %242 = vector.broadcast %cst_104 : f32 to vector<2x1xf32>
    %243 = arith.addf %241, %242 : vector<2x1xf32>
    %244 = math.rsqrt %243 : vector<2x1xf32>
    %245 = vector.extract_strided_slice %175 {offsets = [0, 0], sizes = [2, 512], strides = [1, 1]} : vector<16x512xf32> to vector<2x512xf32>
    %246 = vector.broadcast %196 : vector<2x1xf32> to vector<2x512xf32>
    %247 = arith.subf %245, %246 : vector<2x512xf32>
    %248 = vector.broadcast %244 : vector<2x1xf32> to vector<2x512xf32>
    %249 = arith.mulf %247, %248 : vector<2x512xf32>
    %cst_105 = arith.constant 5.000000e-01 : f32
    %250 = vector.broadcast %cst_105 : f32 to vector<2x512xf32>
    %251 = arith.mulf %250, %249 : vector<2x512xf32>
    %cst_106 = arith.constant 0.707106769 : f32
    %252 = vector.broadcast %cst_106 : f32 to vector<2x512xf32>
    %253 = arith.mulf %249, %252 : vector<2x512xf32>
    %254 = math.absf %253 : vector<2x512xf32>
    %cst_107 = arith.constant 0.327591091 : f32
    %255 = vector.broadcast %cst_107 : f32 to vector<2x512xf32>
    %256 = arith.mulf %255, %254 : vector<2x512xf32>
    %cst_108 = arith.constant 1.000000e+00 : f32
    %257 = vector.broadcast %cst_108 : f32 to vector<2x512xf32>
    %258 = arith.addf %257, %256 : vector<2x512xf32>
    %cst_109 = arith.constant 1.000000e+00 : f32
    %259 = vector.broadcast %cst_109 : f32 to vector<2x512xf32>
    %260 = arith.divf %259, %258 : vector<2x512xf32>
    %cst_110 = arith.constant 1.06140542 : f32
    %261 = vector.broadcast %cst_110 : f32 to vector<2x512xf32>
    %262 = arith.mulf %260, %261 : vector<2x512xf32>
    %cst_111 = arith.constant -1.45315206 : f32
    %263 = vector.broadcast %cst_111 : f32 to vector<2x512xf32>
    %264 = arith.addf %263, %262 : vector<2x512xf32>
    %265 = arith.mulf %260, %264 : vector<2x512xf32>
    %cst_112 = arith.constant 1.42141378 : f32
    %266 = vector.broadcast %cst_112 : f32 to vector<2x512xf32>
    %267 = arith.addf %266, %265 : vector<2x512xf32>
    %268 = arith.mulf %260, %267 : vector<2x512xf32>
    %cst_113 = arith.constant -0.284496725 : f32
    %269 = vector.broadcast %cst_113 : f32 to vector<2x512xf32>
    %270 = arith.addf %269, %268 : vector<2x512xf32>
    %271 = arith.mulf %260, %270 : vector<2x512xf32>
    %cst_114 = arith.constant 0.254829586 : f32
    %272 = vector.broadcast %cst_114 : f32 to vector<2x512xf32>
    %273 = arith.addf %272, %271 : vector<2x512xf32>
    %274 = arith.mulf %260, %273 : vector<2x512xf32>
    %cst_115 = arith.constant 0.000000e+00 : f32
    %275 = vector.broadcast %cst_115 : f32 to vector<2x512xf32>
    %276 = arith.subf %275, %254 : vector<2x512xf32>
    %277 = arith.mulf %276, %254 : vector<2x512xf32>
    %278 = math.exp %277 : vector<2x512xf32>
    %279 = arith.mulf %274, %278 : vector<2x512xf32>
    %cst_116 = arith.constant 1.000000e+00 : f32
    %280 = vector.broadcast %cst_116 : f32 to vector<2x512xf32>
    %281 = arith.subf %280, %279 : vector<2x512xf32>
    %cst_117 = arith.constant 0.000000e+00 : f32
    %282 = vector.broadcast %cst_117 : f32 to vector<2x512xf32>
    %283 = arith.cmpf oge, %253, %282 : vector<2x512xf32>
    %cst_118 = arith.constant 0.000000e+00 : f32
    %284 = vector.broadcast %cst_118 : f32 to vector<2x512xf32>
    %285 = arith.subf %284, %281 : vector<2x512xf32>
    %286 = arith.select %283, %281, %285 : vector<2x512xi1>, vector<2x512xf32>
    %cst_119 = arith.constant 1.000000e+00 : f32
    %287 = vector.broadcast %cst_119 : f32 to vector<2x512xf32>
    %288 = arith.addf %287, %286 : vector<2x512xf32>
    %289 = arith.mulf %251, %288 : vector<2x512xf32>
    %c0_120 = arith.constant 0 : index
    %c0_121 = arith.constant 0 : index
    %c0_122 = arith.constant 0 : index
    %290 = vector.load %arg8[%c0_120, %c0_121, %c0_122] : memref<2x16x512xf32, #tpu.memory_space<vmem>>, vector<1x2x512xf32>
    %291 = vector.shape_cast %290 : vector<1x2x512xf32> to vector<2x512xf32>
    %292 = vector.shape_cast %289 : vector<2x512xf32> to vector<1x2x512xf32>
    tpu.vector_store %arg8[%c0_120, %c0_121, %c0_122], %292 {strides = array<i32>} : memref<2x16x512xf32, #tpu.memory_space<vmem>>, vector<1x2x512xf32>,
    %293 = vector.extract_strided_slice %175 {offsets = [2, 0], sizes = [2, 512], strides = [1, 1]} : vector<16x512xf32> to vector<2x512xf32>
    %294 = vector.broadcast %196 : vector<2x1xf32> to vector<2x512xf32>
    %295 = arith.subf %293, %294 : vector<2x512xf32>
    %296 = vector.broadcast %244 : vector<2x1xf32> to vector<2x512xf32>
    %297 = arith.mulf %295, %296 : vector<2x512xf32>
    %cst_123 = arith.constant 5.000000e-01 : f32
    %298 = vector.broadcast %cst_123 : f32 to vector<2x512xf32>
    %299 = arith.mulf %298, %297 : vector<2x512xf32>
    %cst_124 = arith.constant 0.707106769 : f32
    %300 = vector.broadcast %cst_124 : f32 to vector<2x512xf32>
    %301 = arith.mulf %297, %300 : vector<2x512xf32>
    %302 = math.absf %301 : vector<2x512xf32>
    %cst_125 = arith.constant 0.327591091 : f32
    %303 = vector.broadcast %cst_125 : f32 to vector<2x512xf32>
    %304 = arith.mulf %303, %302 : vector<2x512xf32>
    %cst_126 = arith.constant 1.000000e+00 : f32
    %305 = vector.broadcast %cst_126 : f32 to vector<2x512xf32>
    %306 = arith.addf %305, %304 : vector<2x512xf32>
    %cst_127 = arith.constant 1.000000e+00 : f32
    %307 = vector.broadcast %cst_127 : f32 to vector<2x512xf32>
    %308 = arith.divf %307, %306 : vector<2x512xf32>
    %cst_128 = arith.constant 1.06140542 : f32
    %309 = vector.broadcast %cst_128 : f32 to vector<2x512xf32>
    %310 = arith.mulf %308, %309 : vector<2x512xf32>
    %cst_129 = arith.constant -1.45315206 : f32
    %311 = vector.broadcast %cst_129 : f32 to vector<2x512xf32>
    %312 = arith.addf %311, %310 : vector<2x512xf32>
    %313 = arith.mulf %308, %312 : vector<2x512xf32>
    %cst_130 = arith.constant 1.42141378 : f32
    %314 = vector.broadcast %cst_130 : f32 to vector<2x512xf32>
    %315 = arith.addf %314, %313 : vector<2x512xf32>
    %316 = arith.mulf %308, %315 : vector<2x512xf32>
    %cst_131 = arith.constant -0.284496725 : f32
    %317 = vector.broadcast %cst_131 : f32 to vector<2x512xf32>
    %318 = arith.addf %317, %316 : vector<2x512xf32>
    %319 = arith.mulf %308, %318 : vector<2x512xf32>
    %cst_132 = arith.constant 0.254829586 : f32
    %320 = vector.broadcast %cst_132 : f32 to vector<2x512xf32>
    %321 = arith.addf %320, %319 : vector<2x512xf32>
    %322 = arith.mulf %308, %321 : vector<2x512xf32>
    %cst_133 = arith.constant 0.000000e+00 : f32
    %323 = vector.broadcast %cst_133 : f32 to vector<2x512xf32>
    %324 = arith.subf %323, %302 : vector<2x512xf32>
    %325 = arith.mulf %324, %302 : vector<2x512xf32>
    %326 = math.exp %325 : vector<2x512xf32>
    %327 = arith.mulf %322, %326 : vector<2x512xf32>
    %cst_134 = arith.constant 1.000000e+00 : f32
    %328 = vector.broadcast %cst_134 : f32 to vector<2x512xf32>
    %329 = arith.subf %328, %327 : vector<2x512xf32>
    %cst_135 = arith.constant 0.000000e+00 : f32
    %330 = vector.broadcast %cst_135 : f32 to vector<2x512xf32>
    %331 = arith.cmpf oge, %301, %330 : vector<2x512xf32>
    %cst_136 = arith.constant 0.000000e+00 : f32
    %332 = vector.broadcast %cst_136 : f32 to vector<2x512xf32>
    %333 = arith.subf %332, %329 : vector<2x512xf32>
    %334 = arith.select %331, %329, %333 : vector<2x512xi1>, vector<2x512xf32>
    %cst_137 = arith.constant 1.000000e+00 : f32
    %335 = vector.broadcast %cst_137 : f32 to vector<2x512xf32>
    %336 = arith.addf %335, %334 : vector<2x512xf32>
    %337 = arith.mulf %299, %336 : vector<2x512xf32>
    %c0_138 = arith.constant 0 : index
    %c2 = arith.constant 2 : index
    %c0_139 = arith.constant 0 : index
    %338 = vector.load %arg8[%c0_138, %c2, %c0_139] : memref<2x16x512xf32, #tpu.memory_space<vmem>>, vector<1x2x512xf32>
    %339 = vector.shape_cast %338 : vector<1x2x512xf32> to vector<2x512xf32>
    %340 = vector.shape_cast %337 : vector<2x512xf32> to vector<1x2x512xf32>
    tpu.vector_store %arg8[%c0_138, %c2, %c0_139], %340 {strides = array<i32>} : memref<2x16x512xf32, #tpu.memory_space<vmem>>, vector<1x2x512xf32>,
    %341 = vector.extract_strided_slice %175 {offsets = [4, 0], sizes = [2, 512], strides = [1, 1]} : vector<16x512xf32> to vector<2x512xf32>
    %342 = vector.broadcast %196 : vector<2x1xf32> to vector<2x512xf32>
    %343 = arith.subf %341, %342 : vector<2x512xf32>
    %344 = vector.broadcast %244 : vector<2x1xf32> to vector<2x512xf32>
    %345 = arith.mulf %343, %344 : vector<2x512xf32>
    %cst_140 = arith.constant 5.000000e-01 : f32
    %346 = vector.broadcast %cst_140 : f32 to vector<2x512xf32>
    %347 = arith.mulf %346, %345 : vector<2x512xf32>
    %cst_141 = arith.constant 0.707106769 : f32
    %348 = vector.broadcast %cst_141 : f32 to vector<2x512xf32>
    %349 = arith.mulf %345, %348 : vector<2x512xf32>
    %350 = math.absf %349 : vector<2x512xf32>
    %cst_142 = arith.constant 0.327591091 : f32
    %351 = vector.broadcast %cst_142 : f32 to vector<2x512xf32>
    %352 = arith.mulf %351, %350 : vector<2x512xf32>
    %cst_143 = arith.constant 1.000000e+00 : f32
    %353 = vector.broadcast %cst_143 : f32 to vector<2x512xf32>
    %354 = arith.addf %353, %352 : vector<2x512xf32>
    %cst_144 = arith.constant 1.000000e+00 : f32
    %355 = vector.broadcast %cst_144 : f32 to vector<2x512xf32>
    %356 = arith.divf %355, %354 : vector<2x512xf32>
    %cst_145 = arith.constant 1.06140542 : f32
    %357 = vector.broadcast %cst_145 : f32 to vector<2x512xf32>
    %358 = arith.mulf %356, %357 : vector<2x512xf32>
    %cst_146 = arith.constant -1.45315206 : f32
    %359 = vector.broadcast %cst_146 : f32 to vector<2x512xf32>
    %360 = arith.addf %359, %358 : vector<2x512xf32>
    %361 = arith.mulf %356, %360 : vector<2x512xf32>
    %cst_147 = arith.constant 1.42141378 : f32
    %362 = vector.broadcast %cst_147 : f32 to vector<2x512xf32>
    %363 = arith.addf %362, %361 : vector<2x512xf32>
    %364 = arith.mulf %356, %363 : vector<2x512xf32>
    %cst_148 = arith.constant -0.284496725 : f32
    %365 = vector.broadcast %cst_148 : f32 to vector<2x512xf32>
    %366 = arith.addf %365, %364 : vector<2x512xf32>
    %367 = arith.mulf %356, %366 : vector<2x512xf32>
    %cst_149 = arith.constant 0.254829586 : f32
    %368 = vector.broadcast %cst_149 : f32 to vector<2x512xf32>
    %369 = arith.addf %368, %367 : vector<2x512xf32>
    %370 = arith.mulf %356, %369 : vector<2x512xf32>
    %cst_150 = arith.constant 0.000000e+00 : f32
    %371 = vector.broadcast %cst_150 : f32 to vector<2x512xf32>
    %372 = arith.subf %371, %350 : vector<2x512xf32>
    %373 = arith.mulf %372, %350 : vector<2x512xf32>
    %374 = math.exp %373 : vector<2x512xf32>
    %375 = arith.mulf %370, %374 : vector<2x512xf32>
    %cst_151 = arith.constant 1.000000e+00 : f32
    %376 = vector.broadcast %cst_151 : f32 to vector<2x512xf32>
    %377 = arith.subf %376, %375 : vector<2x512xf32>
    %cst_152 = arith.constant 0.000000e+00 : f32
    %378 = vector.broadcast %cst_152 : f32 to vector<2x512xf32>
    %379 = arith.cmpf oge, %349, %378 : vector<2x512xf32>
    %cst_153 = arith.constant 0.000000e+00 : f32
    %380 = vector.broadcast %cst_153 : f32 to vector<2x512xf32>
    %381 = arith.subf %380, %377 : vector<2x512xf32>
    %382 = arith.select %379, %377, %381 : vector<2x512xi1>, vector<2x512xf32>
    %cst_154 = arith.constant 1.000000e+00 : f32
    %383 = vector.broadcast %cst_154 : f32 to vector<2x512xf32>
    %384 = arith.addf %383, %382 : vector<2x512xf32>
    %385 = arith.mulf %347, %384 : vector<2x512xf32>
    %c0_155 = arith.constant 0 : index
    %c4_156 = arith.constant 4 : index
    %c0_157 = arith.constant 0 : index
    %386 = vector.load %arg8[%c0_155, %c4_156, %c0_157] : memref<2x16x512xf32, #tpu.memory_space<vmem>>, vector<1x2x512xf32>
    %387 = vector.shape_cast %386 : vector<1x2x512xf32> to vector<2x512xf32>
    %388 = vector.shape_cast %385 : vector<2x512xf32> to vector<1x2x512xf32>
    tpu.vector_store %arg8[%c0_155, %c4_156, %c0_157], %388 {strides = array<i32>} : memref<2x16x512xf32, #tpu.memory_space<vmem>>, vector<1x2x512xf32>,
    %389 = vector.extract_strided_slice %175 {offsets = [6, 0], sizes = [2, 512], strides = [1, 1]} : vector<16x512xf32> to vector<2x512xf32>
    %390 = vector.broadcast %196 : vector<2x1xf32> to vector<2x512xf32>
    %391 = arith.subf %389, %390 : vector<2x512xf32>
    %392 = vector.broadcast %244 : vector<2x1xf32> to vector<2x512xf32>
    %393 = arith.mulf %391, %392 : vector<2x512xf32>
    %cst_158 = arith.constant 5.000000e-01 : f32
    %394 = vector.broadcast %cst_158 : f32 to vector<2x512xf32>
    %395 = arith.mulf %394, %393 : vector<2x512xf32>
    %cst_159 = arith.constant 0.707106769 : f32
    %396 = vector.broadcast %cst_159 : f32 to vector<2x512xf32>
    %397 = arith.mulf %393, %396 : vector<2x512xf32>
    %398 = math.absf %397 : vector<2x512xf32>
    %cst_160 = arith.constant 0.327591091 : f32
    %399 = vector.broadcast %cst_160 : f32 to vector<2x512xf32>
    %400 = arith.mulf %399, %398 : vector<2x512xf32>
    %cst_161 = arith.constant 1.000000e+00 : f32
    %401 = vector.broadcast %cst_161 : f32 to vector<2x512xf32>
    %402 = arith.addf %401, %400 : vector<2x512xf32>
    %cst_162 = arith.constant 1.000000e+00 : f32
    %403 = vector.broadcast %cst_162 : f32 to vector<2x512xf32>
    %404 = arith.divf %403, %402 : vector<2x512xf32>
    %cst_163 = arith.constant 1.06140542 : f32
    %405 = vector.broadcast %cst_163 : f32 to vector<2x512xf32>
    %406 = arith.mulf %404, %405 : vector<2x512xf32>
    %cst_164 = arith.constant -1.45315206 : f32
    %407 = vector.broadcast %cst_164 : f32 to vector<2x512xf32>
    %408 = arith.addf %407, %406 : vector<2x512xf32>
    %409 = arith.mulf %404, %408 : vector<2x512xf32>
    %cst_165 = arith.constant 1.42141378 : f32
    %410 = vector.broadcast %cst_165 : f32 to vector<2x512xf32>
    %411 = arith.addf %410, %409 : vector<2x512xf32>
    %412 = arith.mulf %404, %411 : vector<2x512xf32>
    %cst_166 = arith.constant -0.284496725 : f32
    %413 = vector.broadcast %cst_166 : f32 to vector<2x512xf32>
    %414 = arith.addf %413, %412 : vector<2x512xf32>
    %415 = arith.mulf %404, %414 : vector<2x512xf32>
    %cst_167 = arith.constant 0.254829586 : f32
    %416 = vector.broadcast %cst_167 : f32 to vector<2x512xf32>
    %417 = arith.addf %416, %415 : vector<2x512xf32>
    %418 = arith.mulf %404, %417 : vector<2x512xf32>
    %cst_168 = arith.constant 0.000000e+00 : f32
    %419 = vector.broadcast %cst_168 : f32 to vector<2x512xf32>
    %420 = arith.subf %419, %398 : vector<2x512xf32>
    %421 = arith.mulf %420, %398 : vector<2x512xf32>
    %422 = math.exp %421 : vector<2x512xf32>
    %423 = arith.mulf %418, %422 : vector<2x512xf32>
    %cst_169 = arith.constant 1.000000e+00 : f32
    %424 = vector.broadcast %cst_169 : f32 to vector<2x512xf32>
    %425 = arith.subf %424, %423 : vector<2x512xf32>
    %cst_170 = arith.constant 0.000000e+00 : f32
    %426 = vector.broadcast %cst_170 : f32 to vector<2x512xf32>
    %427 = arith.cmpf oge, %397, %426 : vector<2x512xf32>
    %cst_171 = arith.constant 0.000000e+00 : f32
    %428 = vector.broadcast %cst_171 : f32 to vector<2x512xf32>
    %429 = arith.subf %428, %425 : vector<2x512xf32>
    %430 = arith.select %427, %425, %429 : vector<2x512xi1>, vector<2x512xf32>
    %cst_172 = arith.constant 1.000000e+00 : f32
    %431 = vector.broadcast %cst_172 : f32 to vector<2x512xf32>
    %432 = arith.addf %431, %430 : vector<2x512xf32>
    %433 = arith.mulf %395, %432 : vector<2x512xf32>
    %c0_173 = arith.constant 0 : index
    %c6 = arith.constant 6 : index
    %c0_174 = arith.constant 0 : index
    %434 = vector.load %arg8[%c0_173, %c6, %c0_174] : memref<2x16x512xf32, #tpu.memory_space<vmem>>, vector<1x2x512xf32>
    %435 = vector.shape_cast %434 : vector<1x2x512xf32> to vector<2x512xf32>
    %436 = vector.shape_cast %433 : vector<2x512xf32> to vector<1x2x512xf32>
    tpu.vector_store %arg8[%c0_173, %c6, %c0_174], %436 {strides = array<i32>} : memref<2x16x512xf32, #tpu.memory_space<vmem>>, vector<1x2x512xf32>,
    %437 = vector.extract_strided_slice %175 {offsets = [8, 0], sizes = [2, 512], strides = [1, 1]} : vector<16x512xf32> to vector<2x512xf32>
    %438 = vector.broadcast %196 : vector<2x1xf32> to vector<2x512xf32>
    %439 = arith.subf %437, %438 : vector<2x512xf32>
    %440 = vector.broadcast %244 : vector<2x1xf32> to vector<2x512xf32>
    %441 = arith.mulf %439, %440 : vector<2x512xf32>
    %cst_175 = arith.constant 5.000000e-01 : f32
    %442 = vector.broadcast %cst_175 : f32 to vector<2x512xf32>
    %443 = arith.mulf %442, %441 : vector<2x512xf32>
    %cst_176 = arith.constant 0.707106769 : f32
    %444 = vector.broadcast %cst_176 : f32 to vector<2x512xf32>
    %445 = arith.mulf %441, %444 : vector<2x512xf32>
    %446 = math.absf %445 : vector<2x512xf32>
    %cst_177 = arith.constant 0.327591091 : f32
    %447 = vector.broadcast %cst_177 : f32 to vector<2x512xf32>
    %448 = arith.mulf %447, %446 : vector<2x512xf32>
    %cst_178 = arith.constant 1.000000e+00 : f32
    %449 = vector.broadcast %cst_178 : f32 to vector<2x512xf32>
    %450 = arith.addf %449, %448 : vector<2x512xf32>
    %cst_179 = arith.constant 1.000000e+00 : f32
    %451 = vector.broadcast %cst_179 : f32 to vector<2x512xf32>
    %452 = arith.divf %451, %450 : vector<2x512xf32>
    %cst_180 = arith.constant 1.06140542 : f32
    %453 = vector.broadcast %cst_180 : f32 to vector<2x512xf32>
    %454 = arith.mulf %452, %453 : vector<2x512xf32>
    %cst_181 = arith.constant -1.45315206 : f32
    %455 = vector.broadcast %cst_181 : f32 to vector<2x512xf32>
    %456 = arith.addf %455, %454 : vector<2x512xf32>
    %457 = arith.mulf %452, %456 : vector<2x512xf32>
    %cst_182 = arith.constant 1.42141378 : f32
    %458 = vector.broadcast %cst_182 : f32 to vector<2x512xf32>
    %459 = arith.addf %458, %457 : vector<2x512xf32>
    %460 = arith.mulf %452, %459 : vector<2x512xf32>
    %cst_183 = arith.constant -0.284496725 : f32
    %461 = vector.broadcast %cst_183 : f32 to vector<2x512xf32>
    %462 = arith.addf %461, %460 : vector<2x512xf32>
    %463 = arith.mulf %452, %462 : vector<2x512xf32>
    %cst_184 = arith.constant 0.254829586 : f32
    %464 = vector.broadcast %cst_184 : f32 to vector<2x512xf32>
    %465 = arith.addf %464, %463 : vector<2x512xf32>
    %466 = arith.mulf %452, %465 : vector<2x512xf32>
    %cst_185 = arith.constant 0.000000e+00 : f32
    %467 = vector.broadcast %cst_185 : f32 to vector<2x512xf32>
    %468 = arith.subf %467, %446 : vector<2x512xf32>
    %469 = arith.mulf %468, %446 : vector<2x512xf32>
    %470 = math.exp %469 : vector<2x512xf32>
    %471 = arith.mulf %466, %470 : vector<2x512xf32>
    %cst_186 = arith.constant 1.000000e+00 : f32
    %472 = vector.broadcast %cst_186 : f32 to vector<2x512xf32>
    %473 = arith.subf %472, %471 : vector<2x512xf32>
    %cst_187 = arith.constant 0.000000e+00 : f32
    %474 = vector.broadcast %cst_187 : f32 to vector<2x512xf32>
    %475 = arith.cmpf oge, %445, %474 : vector<2x512xf32>
    %cst_188 = arith.constant 0.000000e+00 : f32
    %476 = vector.broadcast %cst_188 : f32 to vector<2x512xf32>
    %477 = arith.subf %476, %473 : vector<2x512xf32>
    %478 = arith.select %475, %473, %477 : vector<2x512xi1>, vector<2x512xf32>
    %cst_189 = arith.constant 1.000000e+00 : f32
    %479 = vector.broadcast %cst_189 : f32 to vector<2x512xf32>
    %480 = arith.addf %479, %478 : vector<2x512xf32>
    %481 = arith.mulf %443, %480 : vector<2x512xf32>
    %c0_190 = arith.constant 0 : index
    %c8_191 = arith.constant 8 : index
    %c0_192 = arith.constant 0 : index
    %482 = vector.load %arg8[%c0_190, %c8_191, %c0_192] : memref<2x16x512xf32, #tpu.memory_space<vmem>>, vector<1x2x512xf32>
    %483 = vector.shape_cast %482 : vector<1x2x512xf32> to vector<2x512xf32>
    %484 = vector.shape_cast %481 : vector<2x512xf32> to vector<1x2x512xf32>
    tpu.vector_store %arg8[%c0_190, %c8_191, %c0_192], %484 {strides = array<i32>} : memref<2x16x512xf32, #tpu.memory_space<vmem>>, vector<1x2x512xf32>,
    %485 = vector.extract_strided_slice %175 {offsets = [10, 0], sizes = [2, 512], strides = [1, 1]} : vector<16x512xf32> to vector<2x512xf32>
    %486 = vector.broadcast %196 : vector<2x1xf32> to vector<2x512xf32>
    %487 = arith.subf %485, %486 : vector<2x512xf32>
    %488 = vector.broadcast %244 : vector<2x1xf32> to vector<2x512xf32>
    %489 = arith.mulf %487, %488 : vector<2x512xf32>
    %cst_193 = arith.constant 5.000000e-01 : f32
    %490 = vector.broadcast %cst_193 : f32 to vector<2x512xf32>
    %491 = arith.mulf %490, %489 : vector<2x512xf32>
    %cst_194 = arith.constant 0.707106769 : f32
    %492 = vector.broadcast %cst_194 : f32 to vector<2x512xf32>
    %493 = arith.mulf %489, %492 : vector<2x512xf32>
    %494 = math.absf %493 : vector<2x512xf32>
    %cst_195 = arith.constant 0.327591091 : f32
    %495 = vector.broadcast %cst_195 : f32 to vector<2x512xf32>
    %496 = arith.mulf %495, %494 : vector<2x512xf32>
    %cst_196 = arith.constant 1.000000e+00 : f32
    %497 = vector.broadcast %cst_196 : f32 to vector<2x512xf32>
    %498 = arith.addf %497, %496 : vector<2x512xf32>
    %cst_197 = arith.constant 1.000000e+00 : f32
    %499 = vector.broadcast %cst_197 : f32 to vector<2x512xf32>
    %500 = arith.divf %499, %498 : vector<2x512xf32>
    %cst_198 = arith.constant 1.06140542 : f32
    %501 = vector.broadcast %cst_198 : f32 to vector<2x512xf32>
    %502 = arith.mulf %500, %501 : vector<2x512xf32>
    %cst_199 = arith.constant -1.45315206 : f32
    %503 = vector.broadcast %cst_199 : f32 to vector<2x512xf32>
    %504 = arith.addf %503, %502 : vector<2x512xf32>
    %505 = arith.mulf %500, %504 : vector<2x512xf32>
    %cst_200 = arith.constant 1.42141378 : f32
    %506 = vector.broadcast %cst_200 : f32 to vector<2x512xf32>
    %507 = arith.addf %506, %505 : vector<2x512xf32>
    %508 = arith.mulf %500, %507 : vector<2x512xf32>
    %cst_201 = arith.constant -0.284496725 : f32
    %509 = vector.broadcast %cst_201 : f32 to vector<2x512xf32>
    %510 = arith.addf %509, %508 : vector<2x512xf32>
    %511 = arith.mulf %500, %510 : vector<2x512xf32>
    %cst_202 = arith.constant 0.254829586 : f32
    %512 = vector.broadcast %cst_202 : f32 to vector<2x512xf32>
    %513 = arith.addf %512, %511 : vector<2x512xf32>
    %514 = arith.mulf %500, %513 : vector<2x512xf32>
    %cst_203 = arith.constant 0.000000e+00 : f32
    %515 = vector.broadcast %cst_203 : f32 to vector<2x512xf32>
    %516 = arith.subf %515, %494 : vector<2x512xf32>
    %517 = arith.mulf %516, %494 : vector<2x512xf32>
    %518 = math.exp %517 : vector<2x512xf32>
    %519 = arith.mulf %514, %518 : vector<2x512xf32>
    %cst_204 = arith.constant 1.000000e+00 : f32
    %520 = vector.broadcast %cst_204 : f32 to vector<2x512xf32>
    %521 = arith.subf %520, %519 : vector<2x512xf32>
    %cst_205 = arith.constant 0.000000e+00 : f32
    %522 = vector.broadcast %cst_205 : f32 to vector<2x512xf32>
    %523 = arith.cmpf oge, %493, %522 : vector<2x512xf32>
    %cst_206 = arith.constant 0.000000e+00 : f32
    %524 = vector.broadcast %cst_206 : f32 to vector<2x512xf32>
    %525 = arith.subf %524, %521 : vector<2x512xf32>
    %526 = arith.select %523, %521, %525 : vector<2x512xi1>, vector<2x512xf32>
    %cst_207 = arith.constant 1.000000e+00 : f32
    %527 = vector.broadcast %cst_207 : f32 to vector<2x512xf32>
    %528 = arith.addf %527, %526 : vector<2x512xf32>
    %529 = arith.mulf %491, %528 : vector<2x512xf32>
    %c0_208 = arith.constant 0 : index
    %c10 = arith.constant 10 : index
    %c0_209 = arith.constant 0 : index
    %530 = vector.load %arg8[%c0_208, %c10, %c0_209] : memref<2x16x512xf32, #tpu.memory_space<vmem>>, vector<1x2x512xf32>
    %531 = vector.shape_cast %530 : vector<1x2x512xf32> to vector<2x512xf32>
    %532 = vector.shape_cast %529 : vector<2x512xf32> to vector<1x2x512xf32>
    tpu.vector_store %arg8[%c0_208, %c10, %c0_209], %532 {strides = array<i32>} : memref<2x16x512xf32, #tpu.memory_space<vmem>>, vector<1x2x512xf32>,
    %533 = vector.extract_strided_slice %175 {offsets = [12, 0], sizes = [2, 512], strides = [1, 1]} : vector<16x512xf32> to vector<2x512xf32>
    %534 = vector.broadcast %196 : vector<2x1xf32> to vector<2x512xf32>
    %535 = arith.subf %533, %534 : vector<2x512xf32>
    %536 = vector.broadcast %244 : vector<2x1xf32> to vector<2x512xf32>
    %537 = arith.mulf %535, %536 : vector<2x512xf32>
    %cst_210 = arith.constant 5.000000e-01 : f32
    %538 = vector.broadcast %cst_210 : f32 to vector<2x512xf32>
    %539 = arith.mulf %538, %537 : vector<2x512xf32>
    %cst_211 = arith.constant 0.707106769 : f32
    %540 = vector.broadcast %cst_211 : f32 to vector<2x512xf32>
    %541 = arith.mulf %537, %540 : vector<2x512xf32>
    %542 = math.absf %541 : vector<2x512xf32>
    %cst_212 = arith.constant 0.327591091 : f32
    %543 = vector.broadcast %cst_212 : f32 to vector<2x512xf32>
    %544 = arith.mulf %543, %542 : vector<2x512xf32>
    %cst_213 = arith.constant 1.000000e+00 : f32
    %545 = vector.broadcast %cst_213 : f32 to vector<2x512xf32>
    %546 = arith.addf %545, %544 : vector<2x512xf32>
    %cst_214 = arith.constant 1.000000e+00 : f32
    %547 = vector.broadcast %cst_214 : f32 to vector<2x512xf32>
    %548 = arith.divf %547, %546 : vector<2x512xf32>
    %cst_215 = arith.constant 1.06140542 : f32
    %549 = vector.broadcast %cst_215 : f32 to vector<2x512xf32>
    %550 = arith.mulf %548, %549 : vector<2x512xf32>
    %cst_216 = arith.constant -1.45315206 : f32
    %551 = vector.broadcast %cst_216 : f32 to vector<2x512xf32>
    %552 = arith.addf %551, %550 : vector<2x512xf32>
    %553 = arith.mulf %548, %552 : vector<2x512xf32>
    %cst_217 = arith.constant 1.42141378 : f32
    %554 = vector.broadcast %cst_217 : f32 to vector<2x512xf32>
    %555 = arith.addf %554, %553 : vector<2x512xf32>
    %556 = arith.mulf %548, %555 : vector<2x512xf32>
    %cst_218 = arith.constant -0.284496725 : f32
    %557 = vector.broadcast %cst_218 : f32 to vector<2x512xf32>
    %558 = arith.addf %557, %556 : vector<2x512xf32>
    %559 = arith.mulf %548, %558 : vector<2x512xf32>
    %cst_219 = arith.constant 0.254829586 : f32
    %560 = vector.broadcast %cst_219 : f32 to vector<2x512xf32>
    %561 = arith.addf %560, %559 : vector<2x512xf32>
    %562 = arith.mulf %548, %561 : vector<2x512xf32>
    %cst_220 = arith.constant 0.000000e+00 : f32
    %563 = vector.broadcast %cst_220 : f32 to vector<2x512xf32>
    %564 = arith.subf %563, %542 : vector<2x512xf32>
    %565 = arith.mulf %564, %542 : vector<2x512xf32>
    %566 = math.exp %565 : vector<2x512xf32>
    %567 = arith.mulf %562, %566 : vector<2x512xf32>
    %cst_221 = arith.constant 1.000000e+00 : f32
    %568 = vector.broadcast %cst_221 : f32 to vector<2x512xf32>
    %569 = arith.subf %568, %567 : vector<2x512xf32>
    %cst_222 = arith.constant 0.000000e+00 : f32
    %570 = vector.broadcast %cst_222 : f32 to vector<2x512xf32>
    %571 = arith.cmpf oge, %541, %570 : vector<2x512xf32>
    %cst_223 = arith.constant 0.000000e+00 : f32
    %572 = vector.broadcast %cst_223 : f32 to vector<2x512xf32>
    %573 = arith.subf %572, %569 : vector<2x512xf32>
    %574 = arith.select %571, %569, %573 : vector<2x512xi1>, vector<2x512xf32>
    %cst_224 = arith.constant 1.000000e+00 : f32
    %575 = vector.broadcast %cst_224 : f32 to vector<2x512xf32>
    %576 = arith.addf %575, %574 : vector<2x512xf32>
    %577 = arith.mulf %539, %576 : vector<2x512xf32>
    %c0_225 = arith.constant 0 : index
    %c12_226 = arith.constant 12 : index
    %c0_227 = arith.constant 0 : index
    %578 = vector.load %arg8[%c0_225, %c12_226, %c0_227] : memref<2x16x512xf32, #tpu.memory_space<vmem>>, vector<1x2x512xf32>
    %579 = vector.shape_cast %578 : vector<1x2x512xf32> to vector<2x512xf32>
    %580 = vector.shape_cast %577 : vector<2x512xf32> to vector<1x2x512xf32>
    tpu.vector_store %arg8[%c0_225, %c12_226, %c0_227], %580 {strides = array<i32>} : memref<2x16x512xf32, #tpu.memory_space<vmem>>, vector<1x2x512xf32>,
    %581 = vector.extract_strided_slice %175 {offsets = [14, 0], sizes = [2, 512], strides = [1, 1]} : vector<16x512xf32> to vector<2x512xf32>
    %582 = vector.broadcast %196 : vector<2x1xf32> to vector<2x512xf32>
    %583 = arith.subf %581, %582 : vector<2x512xf32>
    %584 = vector.broadcast %244 : vector<2x1xf32> to vector<2x512xf32>
    %585 = arith.mulf %583, %584 : vector<2x512xf32>
    %cst_228 = arith.constant 5.000000e-01 : f32
    %586 = vector.broadcast %cst_228 : f32 to vector<2x512xf32>
    %587 = arith.mulf %586, %585 : vector<2x512xf32>
    %cst_229 = arith.constant 0.707106769 : f32
    %588 = vector.broadcast %cst_229 : f32 to vector<2x512xf32>
    %589 = arith.mulf %585, %588 : vector<2x512xf32>
    %590 = math.absf %589 : vector<2x512xf32>
    %cst_230 = arith.constant 0.327591091 : f32
    %591 = vector.broadcast %cst_230 : f32 to vector<2x512xf32>
    %592 = arith.mulf %591, %590 : vector<2x512xf32>
    %cst_231 = arith.constant 1.000000e+00 : f32
    %593 = vector.broadcast %cst_231 : f32 to vector<2x512xf32>
    %594 = arith.addf %593, %592 : vector<2x512xf32>
    %cst_232 = arith.constant 1.000000e+00 : f32
    %595 = vector.broadcast %cst_232 : f32 to vector<2x512xf32>
    %596 = arith.divf %595, %594 : vector<2x512xf32>
    %cst_233 = arith.constant 1.06140542 : f32
    %597 = vector.broadcast %cst_233 : f32 to vector<2x512xf32>
    %598 = arith.mulf %596, %597 : vector<2x512xf32>
    %cst_234 = arith.constant -1.45315206 : f32
    %599 = vector.broadcast %cst_234 : f32 to vector<2x512xf32>
    %600 = arith.addf %599, %598 : vector<2x512xf32>
    %601 = arith.mulf %596, %600 : vector<2x512xf32>
    %cst_235 = arith.constant 1.42141378 : f32
    %602 = vector.broadcast %cst_235 : f32 to vector<2x512xf32>
    %603 = arith.addf %602, %601 : vector<2x512xf32>
    %604 = arith.mulf %596, %603 : vector<2x512xf32>
    %cst_236 = arith.constant -0.284496725 : f32
    %605 = vector.broadcast %cst_236 : f32 to vector<2x512xf32>
    %606 = arith.addf %605, %604 : vector<2x512xf32>
    %607 = arith.mulf %596, %606 : vector<2x512xf32>
    %cst_237 = arith.constant 0.254829586 : f32
    %608 = vector.broadcast %cst_237 : f32 to vector<2x512xf32>
    %609 = arith.addf %608, %607 : vector<2x512xf32>
    %610 = arith.mulf %596, %609 : vector<2x512xf32>
    %cst_238 = arith.constant 0.000000e+00 : f32
    %611 = vector.broadcast %cst_238 : f32 to vector<2x512xf32>
    %612 = arith.subf %611, %590 : vector<2x512xf32>
    %613 = arith.mulf %612, %590 : vector<2x512xf32>
    %614 = math.exp %613 : vector<2x512xf32>
    %615 = arith.mulf %610, %614 : vector<2x512xf32>
    %cst_239 = arith.constant 1.000000e+00 : f32
    %616 = vector.broadcast %cst_239 : f32 to vector<2x512xf32>
    %617 = arith.subf %616, %615 : vector<2x512xf32>
    %cst_240 = arith.constant 0.000000e+00 : f32
    %618 = vector.broadcast %cst_240 : f32 to vector<2x512xf32>
    %619 = arith.cmpf oge, %589, %618 : vector<2x512xf32>
    %cst_241 = arith.constant 0.000000e+00 : f32
    %620 = vector.broadcast %cst_241 : f32 to vector<2x512xf32>
    %621 = arith.subf %620, %617 : vector<2x512xf32>
    %622 = arith.select %619, %617, %621 : vector<2x512xi1>, vector<2x512xf32>
    %cst_242 = arith.constant 1.000000e+00 : f32
    %623 = vector.broadcast %cst_242 : f32 to vector<2x512xf32>
    %624 = arith.addf %623, %622 : vector<2x512xf32>
    %625 = arith.mulf %587, %624 : vector<2x512xf32>
    %c0_243 = arith.constant 0 : index
    %c14 = arith.constant 14 : index
    %c0_244 = arith.constant 0 : index
    %626 = vector.load %arg8[%c0_243, %c14, %c0_244] : memref<2x16x512xf32, #tpu.memory_space<vmem>>, vector<1x2x512xf32>
    %627 = vector.shape_cast %626 : vector<1x2x512xf32> to vector<2x512xf32>
    %628 = vector.shape_cast %625 : vector<2x512xf32> to vector<1x2x512xf32>
    tpu.vector_store %arg8[%c0_243, %c14, %c0_244], %628 {strides = array<i32>} : memref<2x16x512xf32, #tpu.memory_space<vmem>>, vector<1x2x512xf32>,
    %c1_245 = arith.constant 1 : index
    %c0_246 = arith.constant 0 : index
    %c0_247 = arith.constant 0 : index
    %629 = vector.load %arg1[%c1_245, %c0_246, %c0_247] : memref<2x8x512xf32, #tpu.memory_space<vmem>>, vector<1x8x512xf32>
    %630 = vector.shape_cast %629 : vector<1x8x512xf32> to vector<8x512xf32>
    %cst_248 = arith.constant dense<0.000000e+00> : vector<12x512xf32>
    %631 = tpu.matmul %2, %630, %cst_248 {dimension_numbers = #tpu.dot_dimension_numbers<[1], [0], [0], [1], [0, 0, 1, 1], [], []>} : vector<12x8xf32>, vector<8x512xf32>, vector<12x512xf32> -> vector<12x512xf32>
    %632 = vector.broadcast %5 : vector<12x1xf32> to vector<12x512xf32>
    %633 = arith.addf %631, %632 : vector<12x512xf32>
    %634 = vector.extract_strided_slice %633 {offsets = [0, 0], sizes = [8, 512], strides = [1, 1]} : vector<12x512xf32> to vector<8x512xf32>
    %635 = vector.extract_strided_slice %633 {offsets = [8, 0], sizes = [4, 512], strides = [1, 1]} : vector<12x512xf32> to vector<4x512xf32>
    %c73_i32_249 = arith.constant 73 : i32
    %636 = tpu.dynamic_rotate %634 by %c73_i32_249 dim 1 : vector<8x512xf32>, i32 -> vector<8x512xf32>
    %c0_250 = arith.constant 0 : index
    %c0_251 = arith.constant 0 : index
    %637 = vector.load %arg9[%c0_250, %c0_251] : memref<216x512xf32, #tpu.memory_space<vmem>>, vector<8x512xf32>
    tpu.vector_store %arg9[%c0_250, %c0_251], %636 {strides = array<i32>} : memref<216x512xf32, #tpu.memory_space<vmem>>, vector<8x512xf32>,
    %c72_i32_252 = arith.constant 72 : i32
    %638 = tpu.dynamic_rotate %634 by %c72_i32_252 dim 1 : vector<8x512xf32>, i32 -> vector<8x512xf32>
    %c8_253 = arith.constant 8 : index
    %c0_254 = arith.constant 0 : index
    %639 = vector.load %arg9[%c8_253, %c0_254] : memref<216x512xf32, #tpu.memory_space<vmem>>, vector<8x512xf32>
    tpu.vector_store %arg9[%c8_253, %c0_254], %638 {strides = array<i32>} : memref<216x512xf32, #tpu.memory_space<vmem>>, vector<8x512xf32>,
    %c71_i32_255 = arith.constant 71 : i32
    %640 = tpu.dynamic_rotate %634 by %c71_i32_255 dim 1 : vector<8x512xf32>, i32 -> vector<8x512xf32>
    %c16_256 = arith.constant 16 : index
    %c0_257 = arith.constant 0 : index
    %641 = vector.load %arg9[%c16_256, %c0_257] : memref<216x512xf32, #tpu.memory_space<vmem>>, vector<8x512xf32>
    tpu.vector_store %arg9[%c16_256, %c0_257], %640 {strides = array<i32>} : memref<216x512xf32, #tpu.memory_space<vmem>>, vector<8x512xf32>,
    %c65_i32_258 = arith.constant 65 : i32
    %642 = tpu.dynamic_rotate %634 by %c65_i32_258 dim 1 : vector<8x512xf32>, i32 -> vector<8x512xf32>
    %c24_259 = arith.constant 24 : index
    %c0_260 = arith.constant 0 : index
    %643 = vector.load %arg9[%c24_259, %c0_260] : memref<216x512xf32, #tpu.memory_space<vmem>>, vector<8x512xf32>
    tpu.vector_store %arg9[%c24_259, %c0_260], %642 {strides = array<i32>} : memref<216x512xf32, #tpu.memory_space<vmem>>, vector<8x512xf32>,
    %c64_i32_261 = arith.constant 64 : i32
    %644 = tpu.dynamic_rotate %634 by %c64_i32_261 dim 1 : vector<8x512xf32>, i32 -> vector<8x512xf32>
    %c32_262 = arith.constant 32 : index
    %c0_263 = arith.constant 0 : index
    %645 = vector.load %arg9[%c32_262, %c0_263] : memref<216x512xf32, #tpu.memory_space<vmem>>, vector<8x512xf32>
    tpu.vector_store %arg9[%c32_262, %c0_263], %644 {strides = array<i32>} : memref<216x512xf32, #tpu.memory_space<vmem>>, vector<8x512xf32>,
    %c63_i32_264 = arith.constant 63 : i32
    %646 = tpu.dynamic_rotate %634 by %c63_i32_264 dim 1 : vector<8x512xf32>, i32 -> vector<8x512xf32>
    %c40_265 = arith.constant 40 : index
    %c0_266 = arith.constant 0 : index
    %647 = vector.load %arg9[%c40_265, %c0_266] : memref<216x512xf32, #tpu.memory_space<vmem>>, vector<8x512xf32>
    tpu.vector_store %arg9[%c40_265, %c0_266], %646 {strides = array<i32>} : memref<216x512xf32, #tpu.memory_space<vmem>>, vector<8x512xf32>,
    %c57_i32_267 = arith.constant 57 : i32
    %648 = tpu.dynamic_rotate %634 by %c57_i32_267 dim 1 : vector<8x512xf32>, i32 -> vector<8x512xf32>
    %c48_268 = arith.constant 48 : index
    %c0_269 = arith.constant 0 : index
    %649 = vector.load %arg9[%c48_268, %c0_269] : memref<216x512xf32, #tpu.memory_space<vmem>>, vector<8x512xf32>
    tpu.vector_store %arg9[%c48_268, %c0_269], %648 {strides = array<i32>} : memref<216x512xf32, #tpu.memory_space<vmem>>, vector<8x512xf32>,
    %c56_i32_270 = arith.constant 56 : i32
    %650 = tpu.dynamic_rotate %634 by %c56_i32_270 dim 1 : vector<8x512xf32>, i32 -> vector<8x512xf32>
    %c56_271 = arith.constant 56 : index
    %c0_272 = arith.constant 0 : index
    %651 = vector.load %arg9[%c56_271, %c0_272] : memref<216x512xf32, #tpu.memory_space<vmem>>, vector<8x512xf32>
    tpu.vector_store %arg9[%c56_271, %c0_272], %650 {strides = array<i32>} : memref<216x512xf32, #tpu.memory_space<vmem>>, vector<8x512xf32>,
    %c55_i32_273 = arith.constant 55 : i32
    %652 = tpu.dynamic_rotate %634 by %c55_i32_273 dim 1 : vector<8x512xf32>, i32 -> vector<8x512xf32>
    %c64_274 = arith.constant 64 : index
    %c0_275 = arith.constant 0 : index
    %653 = vector.load %arg9[%c64_274, %c0_275] : memref<216x512xf32, #tpu.memory_space<vmem>>, vector<8x512xf32>
    tpu.vector_store %arg9[%c64_274, %c0_275], %652 {strides = array<i32>} : memref<216x512xf32, #tpu.memory_space<vmem>>, vector<8x512xf32>,
    %c9_i32_276 = arith.constant 9 : i32
    %654 = tpu.dynamic_rotate %634 by %c9_i32_276 dim 1 : vector<8x512xf32>, i32 -> vector<8x512xf32>
    %c72_277 = arith.constant 72 : index
    %c0_278 = arith.constant 0 : index
    %655 = vector.load %arg9[%c72_277, %c0_278] : memref<216x512xf32, #tpu.memory_space<vmem>>, vector<8x512xf32>
    tpu.vector_store %arg9[%c72_277, %c0_278], %654 {strides = array<i32>} : memref<216x512xf32, #tpu.memory_space<vmem>>, vector<8x512xf32>,
    %c8_i32_279 = arith.constant 8 : i32
    %656 = tpu.dynamic_rotate %634 by %c8_i32_279 dim 1 : vector<8x512xf32>, i32 -> vector<8x512xf32>
    %c80_280 = arith.constant 80 : index
    %c0_281 = arith.constant 0 : index
    %657 = vector.load %arg9[%c80_280, %c0_281] : memref<216x512xf32, #tpu.memory_space<vmem>>, vector<8x512xf32>
    tpu.vector_store %arg9[%c80_280, %c0_281], %656 {strides = array<i32>} : memref<216x512xf32, #tpu.memory_space<vmem>>, vector<8x512xf32>,
    %c7_i32_282 = arith.constant 7 : i32
    %658 = tpu.dynamic_rotate %634 by %c7_i32_282 dim 1 : vector<8x512xf32>, i32 -> vector<8x512xf32>
    %c88_283 = arith.constant 88 : index
    %c0_284 = arith.constant 0 : index
    %659 = vector.load %arg9[%c88_283, %c0_284] : memref<216x512xf32, #tpu.memory_space<vmem>>, vector<8x512xf32>
    tpu.vector_store %arg9[%c88_283, %c0_284], %658 {strides = array<i32>} : memref<216x512xf32, #tpu.memory_space<vmem>>, vector<8x512xf32>,
    %c1_i32_285 = arith.constant 1 : i32
    %660 = tpu.dynamic_rotate %634 by %c1_i32_285 dim 1 : vector<8x512xf32>, i32 -> vector<8x512xf32>
    %c96_286 = arith.constant 96 : index
    %c0_287 = arith.constant 0 : index
    %661 = vector.load %arg9[%c96_286, %c0_287] : memref<216x512xf32, #tpu.memory_space<vmem>>, vector<8x512xf32>
    tpu.vector_store %arg9[%c96_286, %c0_287], %660 {strides = array<i32>} : memref<216x512xf32, #tpu.memory_space<vmem>>, vector<8x512xf32>,
    %c104_288 = arith.constant 104 : index
    %c0_289 = arith.constant 0 : index
    %662 = vector.load %arg9[%c104_288, %c0_289] : memref<216x512xf32, #tpu.memory_space<vmem>>, vector<8x512xf32>
    tpu.vector_store %arg9[%c104_288, %c0_289], %634 {strides = array<i32>} : memref<216x512xf32, #tpu.memory_space<vmem>>, vector<8x512xf32>,
    %c511_i32_290 = arith.constant 511 : i32
    %663 = tpu.dynamic_rotate %634 by %c511_i32_290 dim 1 : vector<8x512xf32>, i32 -> vector<8x512xf32>
    %c112_291 = arith.constant 112 : index
    %c0_292 = arith.constant 0 : index
    %664 = vector.load %arg9[%c112_291, %c0_292] : memref<216x512xf32, #tpu.memory_space<vmem>>, vector<8x512xf32>
    tpu.vector_store %arg9[%c112_291, %c0_292], %663 {strides = array<i32>} : memref<216x512xf32, #tpu.memory_space<vmem>>, vector<8x512xf32>,
    %c505_i32_293 = arith.constant 505 : i32
    %665 = tpu.dynamic_rotate %634 by %c505_i32_293 dim 1 : vector<8x512xf32>, i32 -> vector<8x512xf32>
    %c120_294 = arith.constant 120 : index
    %c0_295 = arith.constant 0 : index
    %666 = vector.load %arg9[%c120_294, %c0_295] : memref<216x512xf32, #tpu.memory_space<vmem>>, vector<8x512xf32>
    tpu.vector_store %arg9[%c120_294, %c0_295], %665 {strides = array<i32>} : memref<216x512xf32, #tpu.memory_space<vmem>>, vector<8x512xf32>,
    %c504_i32_296 = arith.constant 504 : i32
    %667 = tpu.dynamic_rotate %634 by %c504_i32_296 dim 1 : vector<8x512xf32>, i32 -> vector<8x512xf32>
    %c128_297 = arith.constant 128 : index
    %c0_298 = arith.constant 0 : index
    %668 = vector.load %arg9[%c128_297, %c0_298] : memref<216x512xf32, #tpu.memory_space<vmem>>, vector<8x512xf32>
    tpu.vector_store %arg9[%c128_297, %c0_298], %667 {strides = array<i32>} : memref<216x512xf32, #tpu.memory_space<vmem>>, vector<8x512xf32>,
    %c503_i32_299 = arith.constant 503 : i32
    %669 = tpu.dynamic_rotate %634 by %c503_i32_299 dim 1 : vector<8x512xf32>, i32 -> vector<8x512xf32>
    %c136_300 = arith.constant 136 : index
    %c0_301 = arith.constant 0 : index
    %670 = vector.load %arg9[%c136_300, %c0_301] : memref<216x512xf32, #tpu.memory_space<vmem>>, vector<8x512xf32>
    tpu.vector_store %arg9[%c136_300, %c0_301], %669 {strides = array<i32>} : memref<216x512xf32, #tpu.memory_space<vmem>>, vector<8x512xf32>,
    %c457_i32_302 = arith.constant 457 : i32
    %671 = tpu.dynamic_rotate %634 by %c457_i32_302 dim 1 : vector<8x512xf32>, i32 -> vector<8x512xf32>
    %c144_303 = arith.constant 144 : index
    %c0_304 = arith.constant 0 : index
    %672 = vector.load %arg9[%c144_303, %c0_304] : memref<216x512xf32, #tpu.memory_space<vmem>>, vector<8x512xf32>
    tpu.vector_store %arg9[%c144_303, %c0_304], %671 {strides = array<i32>} : memref<216x512xf32, #tpu.memory_space<vmem>>, vector<8x512xf32>,
    %c456_i32_305 = arith.constant 456 : i32
    %673 = tpu.dynamic_rotate %634 by %c456_i32_305 dim 1 : vector<8x512xf32>, i32 -> vector<8x512xf32>
    %c152_306 = arith.constant 152 : index
    %c0_307 = arith.constant 0 : index
    %674 = vector.load %arg9[%c152_306, %c0_307] : memref<216x512xf32, #tpu.memory_space<vmem>>, vector<8x512xf32>
    tpu.vector_store %arg9[%c152_306, %c0_307], %673 {strides = array<i32>} : memref<216x512xf32, #tpu.memory_space<vmem>>, vector<8x512xf32>,
    %c455_i32_308 = arith.constant 455 : i32
    %675 = tpu.dynamic_rotate %634 by %c455_i32_308 dim 1 : vector<8x512xf32>, i32 -> vector<8x512xf32>
    %c160_309 = arith.constant 160 : index
    %c0_310 = arith.constant 0 : index
    %676 = vector.load %arg9[%c160_309, %c0_310] : memref<216x512xf32, #tpu.memory_space<vmem>>, vector<8x512xf32>
    tpu.vector_store %arg9[%c160_309, %c0_310], %675 {strides = array<i32>} : memref<216x512xf32, #tpu.memory_space<vmem>>, vector<8x512xf32>,
    %c449_i32_311 = arith.constant 449 : i32
    %677 = tpu.dynamic_rotate %634 by %c449_i32_311 dim 1 : vector<8x512xf32>, i32 -> vector<8x512xf32>
    %c168_312 = arith.constant 168 : index
    %c0_313 = arith.constant 0 : index
    %678 = vector.load %arg9[%c168_312, %c0_313] : memref<216x512xf32, #tpu.memory_space<vmem>>, vector<8x512xf32>
    tpu.vector_store %arg9[%c168_312, %c0_313], %677 {strides = array<i32>} : memref<216x512xf32, #tpu.memory_space<vmem>>, vector<8x512xf32>,
    %c448_i32_314 = arith.constant 448 : i32
    %679 = tpu.dynamic_rotate %634 by %c448_i32_314 dim 1 : vector<8x512xf32>, i32 -> vector<8x512xf32>
    %c176_315 = arith.constant 176 : index
    %c0_316 = arith.constant 0 : index
    %680 = vector.load %arg9[%c176_315, %c0_316] : memref<216x512xf32, #tpu.memory_space<vmem>>, vector<8x512xf32>
    tpu.vector_store %arg9[%c176_315, %c0_316], %679 {strides = array<i32>} : memref<216x512xf32, #tpu.memory_space<vmem>>, vector<8x512xf32>,
    %c447_i32_317 = arith.constant 447 : i32
    %681 = tpu.dynamic_rotate %634 by %c447_i32_317 dim 1 : vector<8x512xf32>, i32 -> vector<8x512xf32>
    %c184_318 = arith.constant 184 : index
    %c0_319 = arith.constant 0 : index
    %682 = vector.load %arg9[%c184_318, %c0_319] : memref<216x512xf32, #tpu.memory_space<vmem>>, vector<8x512xf32>
    tpu.vector_store %arg9[%c184_318, %c0_319], %681 {strides = array<i32>} : memref<216x512xf32, #tpu.memory_space<vmem>>, vector<8x512xf32>,
    %c441_i32_320 = arith.constant 441 : i32
    %683 = tpu.dynamic_rotate %634 by %c441_i32_320 dim 1 : vector<8x512xf32>, i32 -> vector<8x512xf32>
    %c192_321 = arith.constant 192 : index
    %c0_322 = arith.constant 0 : index
    %684 = vector.load %arg9[%c192_321, %c0_322] : memref<216x512xf32, #tpu.memory_space<vmem>>, vector<8x512xf32>
    tpu.vector_store %arg9[%c192_321, %c0_322], %683 {strides = array<i32>} : memref<216x512xf32, #tpu.memory_space<vmem>>, vector<8x512xf32>,
    %c440_i32_323 = arith.constant 440 : i32
    %685 = tpu.dynamic_rotate %634 by %c440_i32_323 dim 1 : vector<8x512xf32>, i32 -> vector<8x512xf32>
    %c200_324 = arith.constant 200 : index
    %c0_325 = arith.constant 0 : index
    %686 = vector.load %arg9[%c200_324, %c0_325] : memref<216x512xf32, #tpu.memory_space<vmem>>, vector<8x512xf32>
    tpu.vector_store %arg9[%c200_324, %c0_325], %685 {strides = array<i32>} : memref<216x512xf32, #tpu.memory_space<vmem>>, vector<8x512xf32>,
    %c439_i32_326 = arith.constant 439 : i32
    %687 = tpu.dynamic_rotate %634 by %c439_i32_326 dim 1 : vector<8x512xf32>, i32 -> vector<8x512xf32>
    %c208_327 = arith.constant 208 : index
    %c0_328 = arith.constant 0 : index
    %688 = vector.load %arg9[%c208_327, %c0_328] : memref<216x512xf32, #tpu.memory_space<vmem>>, vector<8x512xf32>
    tpu.vector_store %arg9[%c208_327, %c0_328], %687 {strides = array<i32>} : memref<216x512xf32, #tpu.memory_space<vmem>>, vector<8x512xf32>,
    %c0_329 = arith.constant 0 : index
    %c0_330 = arith.constant 0 : index
    %689 = vector.load %arg9[%c0_329, %c0_330] : memref<216x512xf32, #tpu.memory_space<vmem>>, vector<216x512xf32>
    %cst_331 = arith.constant dense<0.000000e+00> : vector<8x512xf32>
    %690 = tpu.matmul %3, %689, %cst_331 {dimension_numbers = #tpu.dot_dimension_numbers<[1], [0], [0], [1], [0, 0, 1, 1], [], []>} : vector<8x216xf32>, vector<216x512xf32>, vector<8x512xf32> -> vector<8x512xf32>
    %691 = vector.broadcast %6 : vector<8x1xf32> to vector<8x512xf32>
    %692 = arith.addf %690, %691 : vector<8x512xf32>
    %693 = vector.extract_strided_slice %692 {offsets = [0, 0], sizes = [4, 512], strides = [1, 1]} : vector<8x512xf32> to vector<4x512xf32>
    %694 = vector.extract_strided_slice %692 {offsets = [4, 0], sizes = [4, 512], strides = [1, 1]} : vector<8x512xf32> to vector<4x512xf32>
    %695 = vector.broadcast %0 : vector<1x512xf32> to vector<4x512xf32>
    %696 = arith.mulf %694, %695 : vector<4x512xf32>
    %cst_332 = arith.constant dense<0.000000e+00> : vector<4xf32>
    %697 = vector.multi_reduction <add>, %696, %cst_332 [1] : vector<4x512xf32> to vector<4xf32>
    %698 = vector.shape_cast %697 : vector<4xf32> to vector<4x1xf32>
    %cst_333 = arith.constant 2.160000e+02 : f32
    %699 = vector.broadcast %cst_333 : f32 to vector<4x1xf32>
    %700 = arith.divf %698, %699 : vector<4x1xf32>
    %701 = vector.broadcast %700 : vector<4x1xf32> to vector<4x512xf32>
    %702 = arith.subf %694, %701 : vector<4x512xf32>
    %703 = vector.broadcast %0 : vector<1x512xf32> to vector<4x512xf32>
    %704 = arith.mulf %702, %703 : vector<4x512xf32>
    %705 = arith.mulf %704, %704 : vector<4x512xf32>
    %cst_334 = arith.constant dense<0.000000e+00> : vector<4xf32>
    %706 = vector.multi_reduction <add>, %705, %cst_334 [1] : vector<4x512xf32> to vector<4xf32>
    %707 = vector.shape_cast %706 : vector<4xf32> to vector<4x1xf32>
    %cst_335 = arith.constant 2.160000e+02 : f32
    %708 = vector.broadcast %cst_335 : f32 to vector<4x1xf32>
    %709 = arith.divf %707, %708 : vector<4x1xf32>
    %cst_336 = arith.constant 9.99999974E-6 : f32
    %710 = vector.broadcast %cst_336 : f32 to vector<4x1xf32>
    %711 = arith.addf %709, %710 : vector<4x1xf32>
    %712 = math.rsqrt %711 : vector<4x1xf32>
    %713 = vector.broadcast %712 : vector<4x1xf32> to vector<4x512xf32>
    %714 = arith.mulf %704, %713 : vector<4x512xf32>
    %cst_337 = arith.constant 5.000000e-01 : f32
    %715 = vector.broadcast %cst_337 : f32 to vector<4x512xf32>
    %716 = arith.mulf %715, %714 : vector<4x512xf32>
    %cst_338 = arith.constant 0.707106769 : f32
    %717 = vector.broadcast %cst_338 : f32 to vector<4x512xf32>
    %718 = arith.mulf %714, %717 : vector<4x512xf32>
    %719 = math.absf %718 : vector<4x512xf32>
    %cst_339 = arith.constant 0.327591091 : f32
    %720 = vector.broadcast %cst_339 : f32 to vector<4x512xf32>
    %721 = arith.mulf %720, %719 : vector<4x512xf32>
    %cst_340 = arith.constant 1.000000e+00 : f32
    %722 = vector.broadcast %cst_340 : f32 to vector<4x512xf32>
    %723 = arith.addf %722, %721 : vector<4x512xf32>
    %cst_341 = arith.constant 1.000000e+00 : f32
    %724 = vector.broadcast %cst_341 : f32 to vector<4x512xf32>
    %725 = arith.divf %724, %723 : vector<4x512xf32>
    %cst_342 = arith.constant 1.06140542 : f32
    %726 = vector.broadcast %cst_342 : f32 to vector<4x512xf32>
    %727 = arith.mulf %725, %726 : vector<4x512xf32>
    %cst_343 = arith.constant -1.45315206 : f32
    %728 = vector.broadcast %cst_343 : f32 to vector<4x512xf32>
    %729 = arith.addf %728, %727 : vector<4x512xf32>
    %730 = arith.mulf %725, %729 : vector<4x512xf32>
    %cst_344 = arith.constant 1.42141378 : f32
    %731 = vector.broadcast %cst_344 : f32 to vector<4x512xf32>
    %732 = arith.addf %731, %730 : vector<4x512xf32>
    %733 = arith.mulf %725, %732 : vector<4x512xf32>
    %cst_345 = arith.constant -0.284496725 : f32
    %734 = vector.broadcast %cst_345 : f32 to vector<4x512xf32>
    %735 = arith.addf %734, %733 : vector<4x512xf32>
    %736 = arith.mulf %725, %735 : vector<4x512xf32>
    %cst_346 = arith.constant 0.254829586 : f32
    %737 = vector.broadcast %cst_346 : f32 to vector<4x512xf32>
    %738 = arith.addf %737, %736 : vector<4x512xf32>
    %739 = arith.mulf %725, %738 : vector<4x512xf32>
    %cst_347 = arith.constant 0.000000e+00 : f32
    %740 = vector.broadcast %cst_347 : f32 to vector<4x512xf32>
    %741 = arith.subf %740, %719 : vector<4x512xf32>
    %742 = arith.mulf %741, %719 : vector<4x512xf32>
    %743 = math.exp %742 : vector<4x512xf32>
    %744 = arith.mulf %739, %743 : vector<4x512xf32>
    %cst_348 = arith.constant 1.000000e+00 : f32
    %745 = vector.broadcast %cst_348 : f32 to vector<4x512xf32>
    %746 = arith.subf %745, %744 : vector<4x512xf32>
    %cst_349 = arith.constant 0.000000e+00 : f32
    %747 = vector.broadcast %cst_349 : f32 to vector<4x512xf32>
    %748 = arith.cmpf oge, %718, %747 : vector<4x512xf32>
    %cst_350 = arith.constant 0.000000e+00 : f32
    %749 = vector.broadcast %cst_350 : f32 to vector<4x512xf32>
    %750 = arith.subf %749, %746 : vector<4x512xf32>
    %751 = arith.select %748, %746, %750 : vector<4x512xi1>, vector<4x512xf32>
    %cst_351 = arith.constant 1.000000e+00 : f32
    %752 = vector.broadcast %cst_351 : f32 to vector<4x512xf32>
    %753 = arith.addf %752, %751 : vector<4x512xf32>
    %754 = arith.mulf %716, %753 : vector<4x512xf32>
    %755 = arith.mulf %693, %754 : vector<4x512xf32>
    %cst_352 = arith.constant dense<0.000000e+00> : vector<4x512xf32>
    %756 = tpu.matmul %4, %755, %cst_352 {dimension_numbers = #tpu.dot_dimension_numbers<[1], [0], [0], [1], [0, 0, 1, 1], [], []>} : vector<4x4xf32>, vector<4x512xf32>, vector<4x512xf32> -> vector<4x512xf32>
    %757 = vector.broadcast %7 : vector<4x1xf32> to vector<4x512xf32>
    %758 = arith.addf %756, %757 : vector<4x512xf32>
    %cst_353 = arith.constant dense<0.000000e+00> : vector<4xf32>
    %759 = vector.multi_reduction <add>, %758, %cst_353 [1] : vector<4x512xf32> to vector<4xf32>
    %760 = vector.shape_cast %759 : vector<4xf32> to vector<4x1xf32>
    %cst_354 = arith.constant 5.120000e+02 : f32
    %761 = vector.broadcast %cst_354 : f32 to vector<4x1xf32>
    %762 = arith.divf %760, %761 : vector<4x1xf32>
    %763 = vector.broadcast %762 : vector<4x1xf32> to vector<4x512xf32>
    %764 = arith.subf %758, %763 : vector<4x512xf32>
    %765 = arith.mulf %764, %764 : vector<4x512xf32>
    %cst_355 = arith.constant dense<0.000000e+00> : vector<4xf32>
    %766 = vector.multi_reduction <add>, %765, %cst_355 [1] : vector<4x512xf32> to vector<4xf32>
    %767 = vector.shape_cast %766 : vector<4xf32> to vector<4x1xf32>
    %cst_356 = arith.constant 5.120000e+02 : f32
    %768 = vector.broadcast %cst_356 : f32 to vector<4x1xf32>
    %769 = arith.divf %767, %768 : vector<4x1xf32>
    %cst_357 = arith.constant 9.99999974E-6 : f32
    %770 = vector.broadcast %cst_357 : f32 to vector<4x1xf32>
    %771 = arith.addf %769, %770 : vector<4x1xf32>
    %772 = math.rsqrt %771 : vector<4x1xf32>
    %773 = vector.broadcast %772 : vector<4x1xf32> to vector<4x512xf32>
    %774 = arith.mulf %764, %773 : vector<4x512xf32>
    %775 = arith.addf %635, %774 : vector<4x512xf32>
    %c0_358 = arith.constant 0 : index
    %c0_359 = arith.constant 0 : index
    %776 = vector.load %arg10[%c0_358, %c0_359] : memref<32x512xf32, #tpu.memory_space<vmem>>, vector<4x512xf32>
    tpu.vector_store %arg10[%c0_358, %c0_359], %775 {strides = array<i32>} : memref<32x512xf32, #tpu.memory_space<vmem>>, vector<4x512xf32>,
    %c511_i32_360 = arith.constant 511 : i32
    %777 = tpu.dynamic_rotate %775 by %c511_i32_360 dim 1 : vector<4x512xf32>, i32 -> vector<4x512xf32>
    %c4_361 = arith.constant 4 : index
    %c0_362 = arith.constant 0 : index
    %778 = vector.load %arg10[%c4_361, %c0_362] : memref<32x512xf32, #tpu.memory_space<vmem>>, vector<4x512xf32>
    tpu.vector_store %arg10[%c4_361, %c0_362], %777 {strides = array<i32>} : memref<32x512xf32, #tpu.memory_space<vmem>>, vector<4x512xf32>,
    %c504_i32_363 = arith.constant 504 : i32
    %779 = tpu.dynamic_rotate %775 by %c504_i32_363 dim 1 : vector<4x512xf32>, i32 -> vector<4x512xf32>
    %c8_364 = arith.constant 8 : index
    %c0_365 = arith.constant 0 : index
    %780 = vector.load %arg10[%c8_364, %c0_365] : memref<32x512xf32, #tpu.memory_space<vmem>>, vector<4x512xf32>
    tpu.vector_store %arg10[%c8_364, %c0_365], %779 {strides = array<i32>} : memref<32x512xf32, #tpu.memory_space<vmem>>, vector<4x512xf32>,
    %c503_i32_366 = arith.constant 503 : i32
    %781 = tpu.dynamic_rotate %775 by %c503_i32_366 dim 1 : vector<4x512xf32>, i32 -> vector<4x512xf32>
    %c12_367 = arith.constant 12 : index
    %c0_368 = arith.constant 0 : index
    %782 = vector.load %arg10[%c12_367, %c0_368] : memref<32x512xf32, #tpu.memory_space<vmem>>, vector<4x512xf32>
    tpu.vector_store %arg10[%c12_367, %c0_368], %781 {strides = array<i32>} : memref<32x512xf32, #tpu.memory_space<vmem>>, vector<4x512xf32>,
    %c448_i32_369 = arith.constant 448 : i32
    %783 = tpu.dynamic_rotate %775 by %c448_i32_369 dim 1 : vector<4x512xf32>, i32 -> vector<4x512xf32>
    %c16_370 = arith.constant 16 : index
    %c0_371 = arith.constant 0 : index
    %784 = vector.load %arg10[%c16_370, %c0_371] : memref<32x512xf32, #tpu.memory_space<vmem>>, vector<4x512xf32>
    tpu.vector_store %arg10[%c16_370, %c0_371], %783 {strides = array<i32>} : memref<32x512xf32, #tpu.memory_space<vmem>>, vector<4x512xf32>,
    %c447_i32_372 = arith.constant 447 : i32
    %785 = tpu.dynamic_rotate %775 by %c447_i32_372 dim 1 : vector<4x512xf32>, i32 -> vector<4x512xf32>
    %c20_373 = arith.constant 20 : index
    %c0_374 = arith.constant 0 : index
    %786 = vector.load %arg10[%c20_373, %c0_374] : memref<32x512xf32, #tpu.memory_space<vmem>>, vector<4x512xf32>
    tpu.vector_store %arg10[%c20_373, %c0_374], %785 {strides = array<i32>} : memref<32x512xf32, #tpu.memory_space<vmem>>, vector<4x512xf32>,
    %c440_i32_375 = arith.constant 440 : i32
    %787 = tpu.dynamic_rotate %775 by %c440_i32_375 dim 1 : vector<4x512xf32>, i32 -> vector<4x512xf32>
    %c24_376 = arith.constant 24 : index
    %c0_377 = arith.constant 0 : index
    %788 = vector.load %arg10[%c24_376, %c0_377] : memref<32x512xf32, #tpu.memory_space<vmem>>, vector<4x512xf32>
    tpu.vector_store %arg10[%c24_376, %c0_377], %787 {strides = array<i32>} : memref<32x512xf32, #tpu.memory_space<vmem>>, vector<4x512xf32>,
    %c439_i32_378 = arith.constant 439 : i32
    %789 = tpu.dynamic_rotate %775 by %c439_i32_378 dim 1 : vector<4x512xf32>, i32 -> vector<4x512xf32>
    %c28_379 = arith.constant 28 : index
    %c0_380 = arith.constant 0 : index
    %790 = vector.load %arg10[%c28_379, %c0_380] : memref<32x512xf32, #tpu.memory_space<vmem>>, vector<4x512xf32>
    tpu.vector_store %arg10[%c28_379, %c0_380], %789 {strides = array<i32>} : memref<32x512xf32, #tpu.memory_space<vmem>>, vector<4x512xf32>,
    %c0_381 = arith.constant 0 : index
    %c0_382 = arith.constant 0 : index
    %791 = vector.load %arg10[%c0_381, %c0_382] : memref<32x512xf32, #tpu.memory_space<vmem>>, vector<32x512xf32>
    %cst_383 = arith.constant dense<0.000000e+00> : vector<16x512xf32>
    %792 = tpu.matmul %8, %791, %cst_383 {dimension_numbers = #tpu.dot_dimension_numbers<[1], [0], [0], [1], [0, 0, 1, 1], [], []>} : vector<16x32xf32>, vector<32x512xf32>, vector<16x512xf32> -> vector<16x512xf32>
    %793 = vector.broadcast %9 : vector<16x1xf32> to vector<16x512xf32>
    %794 = arith.addf %792, %793 : vector<16x512xf32>
    %795 = vector.extract_strided_slice %794 {offsets = [0, 0], sizes = [2, 512], strides = [1, 1]} : vector<16x512xf32> to vector<2x512xf32>
    %796 = vector.extract_strided_slice %794 {offsets = [2, 0], sizes = [2, 512], strides = [1, 1]} : vector<16x512xf32> to vector<2x512xf32>
    %797 = arith.addf %795, %796 : vector<2x512xf32>
    %798 = vector.extract_strided_slice %794 {offsets = [4, 0], sizes = [2, 512], strides = [1, 1]} : vector<16x512xf32> to vector<2x512xf32>
    %799 = arith.addf %797, %798 : vector<2x512xf32>
    %800 = vector.extract_strided_slice %794 {offsets = [6, 0], sizes = [2, 512], strides = [1, 1]} : vector<16x512xf32> to vector<2x512xf32>
    %801 = arith.addf %799, %800 : vector<2x512xf32>
    %802 = vector.extract_strided_slice %794 {offsets = [8, 0], sizes = [2, 512], strides = [1, 1]} : vector<16x512xf32> to vector<2x512xf32>
    %803 = arith.addf %801, %802 : vector<2x512xf32>
    %804 = vector.extract_strided_slice %794 {offsets = [10, 0], sizes = [2, 512], strides = [1, 1]} : vector<16x512xf32> to vector<2x512xf32>
    %805 = arith.addf %803, %804 : vector<2x512xf32>
    %806 = vector.extract_strided_slice %794 {offsets = [12, 0], sizes = [2, 512], strides = [1, 1]} : vector<16x512xf32> to vector<2x512xf32>
    %807 = arith.addf %805, %806 : vector<2x512xf32>
    %808 = vector.extract_strided_slice %794 {offsets = [14, 0], sizes = [2, 512], strides = [1, 1]} : vector<16x512xf32> to vector<2x512xf32>
    %809 = arith.addf %807, %808 : vector<2x512xf32>
    %810 = vector.broadcast %1 : vector<1x512xf32> to vector<2x512xf32>
    %811 = arith.mulf %809, %810 : vector<2x512xf32>
    %cst_384 = arith.constant dense<0.000000e+00> : vector<2xf32>
    %812 = vector.multi_reduction <add>, %811, %cst_384 [1] : vector<2x512xf32> to vector<2xf32>
    %813 = vector.shape_cast %812 : vector<2xf32> to vector<2x1xf32>
    %cst_385 = arith.constant 2.744000e+03 : f32
    %814 = vector.broadcast %cst_385 : f32 to vector<2x1xf32>
    %815 = arith.divf %813, %814 : vector<2x1xf32>
    %816 = vector.extract_strided_slice %794 {offsets = [0, 0], sizes = [2, 512], strides = [1, 1]} : vector<16x512xf32> to vector<2x512xf32>
    %817 = vector.broadcast %815 : vector<2x1xf32> to vector<2x512xf32>
    %818 = arith.subf %816, %817 : vector<2x512xf32>
    %819 = arith.mulf %818, %818 : vector<2x512xf32>
    %820 = vector.extract_strided_slice %794 {offsets = [2, 0], sizes = [2, 512], strides = [1, 1]} : vector<16x512xf32> to vector<2x512xf32>
    %821 = vector.broadcast %815 : vector<2x1xf32> to vector<2x512xf32>
    %822 = arith.subf %820, %821 : vector<2x512xf32>
    %823 = arith.mulf %822, %822 : vector<2x512xf32>
    %824 = arith.addf %819, %823 : vector<2x512xf32>
    %825 = vector.extract_strided_slice %794 {offsets = [4, 0], sizes = [2, 512], strides = [1, 1]} : vector<16x512xf32> to vector<2x512xf32>
    %826 = vector.broadcast %815 : vector<2x1xf32> to vector<2x512xf32>
    %827 = arith.subf %825, %826 : vector<2x512xf32>
    %828 = arith.mulf %827, %827 : vector<2x512xf32>
    %829 = arith.addf %824, %828 : vector<2x512xf32>
    %830 = vector.extract_strided_slice %794 {offsets = [6, 0], sizes = [2, 512], strides = [1, 1]} : vector<16x512xf32> to vector<2x512xf32>
    %831 = vector.broadcast %815 : vector<2x1xf32> to vector<2x512xf32>
    %832 = arith.subf %830, %831 : vector<2x512xf32>
    %833 = arith.mulf %832, %832 : vector<2x512xf32>
    %834 = arith.addf %829, %833 : vector<2x512xf32>
    %835 = vector.extract_strided_slice %794 {offsets = [8, 0], sizes = [2, 512], strides = [1, 1]} : vector<16x512xf32> to vector<2x512xf32>
    %836 = vector.broadcast %815 : vector<2x1xf32> to vector<2x512xf32>
    %837 = arith.subf %835, %836 : vector<2x512xf32>
    %838 = arith.mulf %837, %837 : vector<2x512xf32>
    %839 = arith.addf %834, %838 : vector<2x512xf32>
    %840 = vector.extract_strided_slice %794 {offsets = [10, 0], sizes = [2, 512], strides = [1, 1]} : vector<16x512xf32> to vector<2x512xf32>
    %841 = vector.broadcast %815 : vector<2x1xf32> to vector<2x512xf32>
    %842 = arith.subf %840, %841 : vector<2x512xf32>
    %843 = arith.mulf %842, %842 : vector<2x512xf32>
    %844 = arith.addf %839, %843 : vector<2x512xf32>
    %845 = vector.extract_strided_slice %794 {offsets = [12, 0], sizes = [2, 512], strides = [1, 1]} : vector<16x512xf32> to vector<2x512xf32>
    %846 = vector.broadcast %815 : vector<2x1xf32> to vector<2x512xf32>
    %847 = arith.subf %845, %846 : vector<2x512xf32>
    %848 = arith.mulf %847, %847 : vector<2x512xf32>
    %849 = arith.addf %844, %848 : vector<2x512xf32>
    %850 = vector.extract_strided_slice %794 {offsets = [14, 0], sizes = [2, 512], strides = [1, 1]} : vector<16x512xf32> to vector<2x512xf32>
    %851 = vector.broadcast %815 : vector<2x1xf32> to vector<2x512xf32>
    %852 = arith.subf %850, %851 : vector<2x512xf32>
    %853 = arith.mulf %852, %852 : vector<2x512xf32>
    %854 = arith.addf %849, %853 : vector<2x512xf32>
    %855 = vector.broadcast %1 : vector<1x512xf32> to vector<2x512xf32>
    %856 = arith.mulf %854, %855 : vector<2x512xf32>
    %cst_386 = arith.constant dense<0.000000e+00> : vector<2xf32>
    %857 = vector.multi_reduction <add>, %856, %cst_386 [1] : vector<2x512xf32> to vector<2xf32>
    %858 = vector.shape_cast %857 : vector<2xf32> to vector<2x1xf32>
    %cst_387 = arith.constant 2.744000e+03 : f32
    %859 = vector.broadcast %cst_387 : f32 to vector<2x1xf32>
    %860 = arith.divf %858, %859 : vector<2x1xf32>
    %cst_388 = arith.constant 9.99999974E-6 : f32
    %861 = vector.broadcast %cst_388 : f32 to vector<2x1xf32>
    %862 = arith.addf %860, %861 : vector<2x1xf32>
    %863 = math.rsqrt %862 : vector<2x1xf32>
    %864 = vector.extract_strided_slice %794 {offsets = [0, 0], sizes = [2, 512], strides = [1, 1]} : vector<16x512xf32> to vector<2x512xf32>
    %865 = vector.broadcast %815 : vector<2x1xf32> to vector<2x512xf32>
    %866 = arith.subf %864, %865 : vector<2x512xf32>
    %867 = vector.broadcast %863 : vector<2x1xf32> to vector<2x512xf32>
    %868 = arith.mulf %866, %867 : vector<2x512xf32>
    %cst_389 = arith.constant 5.000000e-01 : f32
    %869 = vector.broadcast %cst_389 : f32 to vector<2x512xf32>
    %870 = arith.mulf %869, %868 : vector<2x512xf32>
    %cst_390 = arith.constant 0.707106769 : f32
    %871 = vector.broadcast %cst_390 : f32 to vector<2x512xf32>
    %872 = arith.mulf %868, %871 : vector<2x512xf32>
    %873 = math.absf %872 : vector<2x512xf32>
    %cst_391 = arith.constant 0.327591091 : f32
    %874 = vector.broadcast %cst_391 : f32 to vector<2x512xf32>
    %875 = arith.mulf %874, %873 : vector<2x512xf32>
    %cst_392 = arith.constant 1.000000e+00 : f32
    %876 = vector.broadcast %cst_392 : f32 to vector<2x512xf32>
    %877 = arith.addf %876, %875 : vector<2x512xf32>
    %cst_393 = arith.constant 1.000000e+00 : f32
    %878 = vector.broadcast %cst_393 : f32 to vector<2x512xf32>
    %879 = arith.divf %878, %877 : vector<2x512xf32>
    %cst_394 = arith.constant 1.06140542 : f32
    %880 = vector.broadcast %cst_394 : f32 to vector<2x512xf32>
    %881 = arith.mulf %879, %880 : vector<2x512xf32>
    %cst_395 = arith.constant -1.45315206 : f32
    %882 = vector.broadcast %cst_395 : f32 to vector<2x512xf32>
    %883 = arith.addf %882, %881 : vector<2x512xf32>
    %884 = arith.mulf %879, %883 : vector<2x512xf32>
    %cst_396 = arith.constant 1.42141378 : f32
    %885 = vector.broadcast %cst_396 : f32 to vector<2x512xf32>
    %886 = arith.addf %885, %884 : vector<2x512xf32>
    %887 = arith.mulf %879, %886 : vector<2x512xf32>
    %cst_397 = arith.constant -0.284496725 : f32
    %888 = vector.broadcast %cst_397 : f32 to vector<2x512xf32>
    %889 = arith.addf %888, %887 : vector<2x512xf32>
    %890 = arith.mulf %879, %889 : vector<2x512xf32>
    %cst_398 = arith.constant 0.254829586 : f32
    %891 = vector.broadcast %cst_398 : f32 to vector<2x512xf32>
    %892 = arith.addf %891, %890 : vector<2x512xf32>
    %893 = arith.mulf %879, %892 : vector<2x512xf32>
    %cst_399 = arith.constant 0.000000e+00 : f32
    %894 = vector.broadcast %cst_399 : f32 to vector<2x512xf32>
    %895 = arith.subf %894, %873 : vector<2x512xf32>
    %896 = arith.mulf %895, %873 : vector<2x512xf32>
    %897 = math.exp %896 : vector<2x512xf32>
    %898 = arith.mulf %893, %897 : vector<2x512xf32>
    %cst_400 = arith.constant 1.000000e+00 : f32
    %899 = vector.broadcast %cst_400 : f32 to vector<2x512xf32>
    %900 = arith.subf %899, %898 : vector<2x512xf32>
    %cst_401 = arith.constant 0.000000e+00 : f32
    %901 = vector.broadcast %cst_401 : f32 to vector<2x512xf32>
    %902 = arith.cmpf oge, %872, %901 : vector<2x512xf32>
    %cst_402 = arith.constant 0.000000e+00 : f32
    %903 = vector.broadcast %cst_402 : f32 to vector<2x512xf32>
    %904 = arith.subf %903, %900 : vector<2x512xf32>
    %905 = arith.select %902, %900, %904 : vector<2x512xi1>, vector<2x512xf32>
    %cst_403 = arith.constant 1.000000e+00 : f32
    %906 = vector.broadcast %cst_403 : f32 to vector<2x512xf32>
    %907 = arith.addf %906, %905 : vector<2x512xf32>
    %908 = arith.mulf %870, %907 : vector<2x512xf32>
    %c1_404 = arith.constant 1 : index
    %c0_405 = arith.constant 0 : index
    %c0_406 = arith.constant 0 : index
    %909 = vector.load %arg8[%c1_404, %c0_405, %c0_406] : memref<2x16x512xf32, #tpu.memory_space<vmem>>, vector<1x2x512xf32>
    %910 = vector.shape_cast %909 : vector<1x2x512xf32> to vector<2x512xf32>
    %911 = vector.shape_cast %908 : vector<2x512xf32> to vector<1x2x512xf32>
    tpu.vector_store %arg8[%c1_404, %c0_405, %c0_406], %911 {strides = array<i32>} : memref<2x16x512xf32, #tpu.memory_space<vmem>>, vector<1x2x512xf32>,
    %912 = vector.extract_strided_slice %794 {offsets = [2, 0], sizes = [2, 512], strides = [1, 1]} : vector<16x512xf32> to vector<2x512xf32>
    %913 = vector.broadcast %815 : vector<2x1xf32> to vector<2x512xf32>
    %914 = arith.subf %912, %913 : vector<2x512xf32>
    %915 = vector.broadcast %863 : vector<2x1xf32> to vector<2x512xf32>
    %916 = arith.mulf %914, %915 : vector<2x512xf32>
    %cst_407 = arith.constant 5.000000e-01 : f32
    %917 = vector.broadcast %cst_407 : f32 to vector<2x512xf32>
    %918 = arith.mulf %917, %916 : vector<2x512xf32>
    %cst_408 = arith.constant 0.707106769 : f32
    %919 = vector.broadcast %cst_408 : f32 to vector<2x512xf32>
    %920 = arith.mulf %916, %919 : vector<2x512xf32>
    %921 = math.absf %920 : vector<2x512xf32>
    %cst_409 = arith.constant 0.327591091 : f32
    %922 = vector.broadcast %cst_409 : f32 to vector<2x512xf32>
    %923 = arith.mulf %922, %921 : vector<2x512xf32>
    %cst_410 = arith.constant 1.000000e+00 : f32
    %924 = vector.broadcast %cst_410 : f32 to vector<2x512xf32>
    %925 = arith.addf %924, %923 : vector<2x512xf32>
    %cst_411 = arith.constant 1.000000e+00 : f32
    %926 = vector.broadcast %cst_411 : f32 to vector<2x512xf32>
    %927 = arith.divf %926, %925 : vector<2x512xf32>
    %cst_412 = arith.constant 1.06140542 : f32
    %928 = vector.broadcast %cst_412 : f32 to vector<2x512xf32>
    %929 = arith.mulf %927, %928 : vector<2x512xf32>
    %cst_413 = arith.constant -1.45315206 : f32
    %930 = vector.broadcast %cst_413 : f32 to vector<2x512xf32>
    %931 = arith.addf %930, %929 : vector<2x512xf32>
    %932 = arith.mulf %927, %931 : vector<2x512xf32>
    %cst_414 = arith.constant 1.42141378 : f32
    %933 = vector.broadcast %cst_414 : f32 to vector<2x512xf32>
    %934 = arith.addf %933, %932 : vector<2x512xf32>
    %935 = arith.mulf %927, %934 : vector<2x512xf32>
    %cst_415 = arith.constant -0.284496725 : f32
    %936 = vector.broadcast %cst_415 : f32 to vector<2x512xf32>
    %937 = arith.addf %936, %935 : vector<2x512xf32>
    %938 = arith.mulf %927, %937 : vector<2x512xf32>
    %cst_416 = arith.constant 0.254829586 : f32
    %939 = vector.broadcast %cst_416 : f32 to vector<2x512xf32>
    %940 = arith.addf %939, %938 : vector<2x512xf32>
    %941 = arith.mulf %927, %940 : vector<2x512xf32>
    %cst_417 = arith.constant 0.000000e+00 : f32
    %942 = vector.broadcast %cst_417 : f32 to vector<2x512xf32>
    %943 = arith.subf %942, %921 : vector<2x512xf32>
    %944 = arith.mulf %943, %921 : vector<2x512xf32>
    %945 = math.exp %944 : vector<2x512xf32>
    %946 = arith.mulf %941, %945 : vector<2x512xf32>
    %cst_418 = arith.constant 1.000000e+00 : f32
    %947 = vector.broadcast %cst_418 : f32 to vector<2x512xf32>
    %948 = arith.subf %947, %946 : vector<2x512xf32>
    %cst_419 = arith.constant 0.000000e+00 : f32
    %949 = vector.broadcast %cst_419 : f32 to vector<2x512xf32>
    %950 = arith.cmpf oge, %920, %949 : vector<2x512xf32>
    %cst_420 = arith.constant 0.000000e+00 : f32
    %951 = vector.broadcast %cst_420 : f32 to vector<2x512xf32>
    %952 = arith.subf %951, %948 : vector<2x512xf32>
    %953 = arith.select %950, %948, %952 : vector<2x512xi1>, vector<2x512xf32>
    %cst_421 = arith.constant 1.000000e+00 : f32
    %954 = vector.broadcast %cst_421 : f32 to vector<2x512xf32>
    %955 = arith.addf %954, %953 : vector<2x512xf32>
    %956 = arith.mulf %918, %955 : vector<2x512xf32>
    %c1_422 = arith.constant 1 : index
    %c2_423 = arith.constant 2 : index
    %c0_424 = arith.constant 0 : index
    %957 = vector.load %arg8[%c1_422, %c2_423, %c0_424] : memref<2x16x512xf32, #tpu.memory_space<vmem>>, vector<1x2x512xf32>
    %958 = vector.shape_cast %957 : vector<1x2x512xf32> to vector<2x512xf32>
    %959 = vector.shape_cast %956 : vector<2x512xf32> to vector<1x2x512xf32>
    tpu.vector_store %arg8[%c1_422, %c2_423, %c0_424], %959 {strides = array<i32>} : memref<2x16x512xf32, #tpu.memory_space<vmem>>, vector<1x2x512xf32>,
    %960 = vector.extract_strided_slice %794 {offsets = [4, 0], sizes = [2, 512], strides = [1, 1]} : vector<16x512xf32> to vector<2x512xf32>
    %961 = vector.broadcast %815 : vector<2x1xf32> to vector<2x512xf32>
    %962 = arith.subf %960, %961 : vector<2x512xf32>
    %963 = vector.broadcast %863 : vector<2x1xf32> to vector<2x512xf32>
    %964 = arith.mulf %962, %963 : vector<2x512xf32>
    %cst_425 = arith.constant 5.000000e-01 : f32
    %965 = vector.broadcast %cst_425 : f32 to vector<2x512xf32>
    %966 = arith.mulf %965, %964 : vector<2x512xf32>
    %cst_426 = arith.constant 0.707106769 : f32
    %967 = vector.broadcast %cst_426 : f32 to vector<2x512xf32>
    %968 = arith.mulf %964, %967 : vector<2x512xf32>
    %969 = math.absf %968 : vector<2x512xf32>
    %cst_427 = arith.constant 0.327591091 : f32
    %970 = vector.broadcast %cst_427 : f32 to vector<2x512xf32>
    %971 = arith.mulf %970, %969 : vector<2x512xf32>
    %cst_428 = arith.constant 1.000000e+00 : f32
    %972 = vector.broadcast %cst_428 : f32 to vector<2x512xf32>
    %973 = arith.addf %972, %971 : vector<2x512xf32>
    %cst_429 = arith.constant 1.000000e+00 : f32
    %974 = vector.broadcast %cst_429 : f32 to vector<2x512xf32>
    %975 = arith.divf %974, %973 : vector<2x512xf32>
    %cst_430 = arith.constant 1.06140542 : f32
    %976 = vector.broadcast %cst_430 : f32 to vector<2x512xf32>
    %977 = arith.mulf %975, %976 : vector<2x512xf32>
    %cst_431 = arith.constant -1.45315206 : f32
    %978 = vector.broadcast %cst_431 : f32 to vector<2x512xf32>
    %979 = arith.addf %978, %977 : vector<2x512xf32>
    %980 = arith.mulf %975, %979 : vector<2x512xf32>
    %cst_432 = arith.constant 1.42141378 : f32
    %981 = vector.broadcast %cst_432 : f32 to vector<2x512xf32>
    %982 = arith.addf %981, %980 : vector<2x512xf32>
    %983 = arith.mulf %975, %982 : vector<2x512xf32>
    %cst_433 = arith.constant -0.284496725 : f32
    %984 = vector.broadcast %cst_433 : f32 to vector<2x512xf32>
    %985 = arith.addf %984, %983 : vector<2x512xf32>
    %986 = arith.mulf %975, %985 : vector<2x512xf32>
    %cst_434 = arith.constant 0.254829586 : f32
    %987 = vector.broadcast %cst_434 : f32 to vector<2x512xf32>
    %988 = arith.addf %987, %986 : vector<2x512xf32>
    %989 = arith.mulf %975, %988 : vector<2x512xf32>
    %cst_435 = arith.constant 0.000000e+00 : f32
    %990 = vector.broadcast %cst_435 : f32 to vector<2x512xf32>
    %991 = arith.subf %990, %969 : vector<2x512xf32>
    %992 = arith.mulf %991, %969 : vector<2x512xf32>
    %993 = math.exp %992 : vector<2x512xf32>
    %994 = arith.mulf %989, %993 : vector<2x512xf32>
    %cst_436 = arith.constant 1.000000e+00 : f32
    %995 = vector.broadcast %cst_436 : f32 to vector<2x512xf32>
    %996 = arith.subf %995, %994 : vector<2x512xf32>
    %cst_437 = arith.constant 0.000000e+00 : f32
    %997 = vector.broadcast %cst_437 : f32 to vector<2x512xf32>
    %998 = arith.cmpf oge, %968, %997 : vector<2x512xf32>
    %cst_438 = arith.constant 0.000000e+00 : f32
    %999 = vector.broadcast %cst_438 : f32 to vector<2x512xf32>
    %1000 = arith.subf %999, %996 : vector<2x512xf32>
    %1001 = arith.select %998, %996, %1000 : vector<2x512xi1>, vector<2x512xf32>
    %cst_439 = arith.constant 1.000000e+00 : f32
    %1002 = vector.broadcast %cst_439 : f32 to vector<2x512xf32>
    %1003 = arith.addf %1002, %1001 : vector<2x512xf32>
    %1004 = arith.mulf %966, %1003 : vector<2x512xf32>
    %c1_440 = arith.constant 1 : index
    %c4_441 = arith.constant 4 : index
    %c0_442 = arith.constant 0 : index
    %1005 = vector.load %arg8[%c1_440, %c4_441, %c0_442] : memref<2x16x512xf32, #tpu.memory_space<vmem>>, vector<1x2x512xf32>
    %1006 = vector.shape_cast %1005 : vector<1x2x512xf32> to vector<2x512xf32>
    %1007 = vector.shape_cast %1004 : vector<2x512xf32> to vector<1x2x512xf32>
    tpu.vector_store %arg8[%c1_440, %c4_441, %c0_442], %1007 {strides = array<i32>} : memref<2x16x512xf32, #tpu.memory_space<vmem>>, vector<1x2x512xf32>,
    %1008 = vector.extract_strided_slice %794 {offsets = [6, 0], sizes = [2, 512], strides = [1, 1]} : vector<16x512xf32> to vector<2x512xf32>
    %1009 = vector.broadcast %815 : vector<2x1xf32> to vector<2x512xf32>
    %1010 = arith.subf %1008, %1009 : vector<2x512xf32>
    %1011 = vector.broadcast %863 : vector<2x1xf32> to vector<2x512xf32>
    %1012 = arith.mulf %1010, %1011 : vector<2x512xf32>
    %cst_443 = arith.constant 5.000000e-01 : f32
    %1013 = vector.broadcast %cst_443 : f32 to vector<2x512xf32>
    %1014 = arith.mulf %1013, %1012 : vector<2x512xf32>
    %cst_444 = arith.constant 0.707106769 : f32
    %1015 = vector.broadcast %cst_444 : f32 to vector<2x512xf32>
    %1016 = arith.mulf %1012, %1015 : vector<2x512xf32>
    %1017 = math.absf %1016 : vector<2x512xf32>
    %cst_445 = arith.constant 0.327591091 : f32
    %1018 = vector.broadcast %cst_445 : f32 to vector<2x512xf32>
    %1019 = arith.mulf %1018, %1017 : vector<2x512xf32>
    %cst_446 = arith.constant 1.000000e+00 : f32
    %1020 = vector.broadcast %cst_446 : f32 to vector<2x512xf32>
    %1021 = arith.addf %1020, %1019 : vector<2x512xf32>
    %cst_447 = arith.constant 1.000000e+00 : f32
    %1022 = vector.broadcast %cst_447 : f32 to vector<2x512xf32>
    %1023 = arith.divf %1022, %1021 : vector<2x512xf32>
    %cst_448 = arith.constant 1.06140542 : f32
    %1024 = vector.broadcast %cst_448 : f32 to vector<2x512xf32>
    %1025 = arith.mulf %1023, %1024 : vector<2x512xf32>
    %cst_449 = arith.constant -1.45315206 : f32
    %1026 = vector.broadcast %cst_449 : f32 to vector<2x512xf32>
    %1027 = arith.addf %1026, %1025 : vector<2x512xf32>
    %1028 = arith.mulf %1023, %1027 : vector<2x512xf32>
    %cst_450 = arith.constant 1.42141378 : f32
    %1029 = vector.broadcast %cst_450 : f32 to vector<2x512xf32>
    %1030 = arith.addf %1029, %1028 : vector<2x512xf32>
    %1031 = arith.mulf %1023, %1030 : vector<2x512xf32>
    %cst_451 = arith.constant -0.284496725 : f32
    %1032 = vector.broadcast %cst_451 : f32 to vector<2x512xf32>
    %1033 = arith.addf %1032, %1031 : vector<2x512xf32>
    %1034 = arith.mulf %1023, %1033 : vector<2x512xf32>
    %cst_452 = arith.constant 0.254829586 : f32
    %1035 = vector.broadcast %cst_452 : f32 to vector<2x512xf32>
    %1036 = arith.addf %1035, %1034 : vector<2x512xf32>
    %1037 = arith.mulf %1023, %1036 : vector<2x512xf32>
    %cst_453 = arith.constant 0.000000e+00 : f32
    %1038 = vector.broadcast %cst_453 : f32 to vector<2x512xf32>
    %1039 = arith.subf %1038, %1017 : vector<2x512xf32>
    %1040 = arith.mulf %1039, %1017 : vector<2x512xf32>
    %1041 = math.exp %1040 : vector<2x512xf32>
    %1042 = arith.mulf %1037, %1041 : vector<2x512xf32>
    %cst_454 = arith.constant 1.000000e+00 : f32
    %1043 = vector.broadcast %cst_454 : f32 to vector<2x512xf32>
    %1044 = arith.subf %1043, %1042 : vector<2x512xf32>
    %cst_455 = arith.constant 0.000000e+00 : f32
    %1045 = vector.broadcast %cst_455 : f32 to vector<2x512xf32>
    %1046 = arith.cmpf oge, %1016, %1045 : vector<2x512xf32>
    %cst_456 = arith.constant 0.000000e+00 : f32
    %1047 = vector.broadcast %cst_456 : f32 to vector<2x512xf32>
    %1048 = arith.subf %1047, %1044 : vector<2x512xf32>
    %1049 = arith.select %1046, %1044, %1048 : vector<2x512xi1>, vector<2x512xf32>
    %cst_457 = arith.constant 1.000000e+00 : f32
    %1050 = vector.broadcast %cst_457 : f32 to vector<2x512xf32>
    %1051 = arith.addf %1050, %1049 : vector<2x512xf32>
    %1052 = arith.mulf %1014, %1051 : vector<2x512xf32>
    %c1_458 = arith.constant 1 : index
    %c6_459 = arith.constant 6 : index
    %c0_460 = arith.constant 0 : index
    %1053 = vector.load %arg8[%c1_458, %c6_459, %c0_460] : memref<2x16x512xf32, #tpu.memory_space<vmem>>, vector<1x2x512xf32>
    %1054 = vector.shape_cast %1053 : vector<1x2x512xf32> to vector<2x512xf32>
    %1055 = vector.shape_cast %1052 : vector<2x512xf32> to vector<1x2x512xf32>
    tpu.vector_store %arg8[%c1_458, %c6_459, %c0_460], %1055 {strides = array<i32>} : memref<2x16x512xf32, #tpu.memory_space<vmem>>, vector<1x2x512xf32>,
    %1056 = vector.extract_strided_slice %794 {offsets = [8, 0], sizes = [2, 512], strides = [1, 1]} : vector<16x512xf32> to vector<2x512xf32>
    %1057 = vector.broadcast %815 : vector<2x1xf32> to vector<2x512xf32>
    %1058 = arith.subf %1056, %1057 : vector<2x512xf32>
    %1059 = vector.broadcast %863 : vector<2x1xf32> to vector<2x512xf32>
    %1060 = arith.mulf %1058, %1059 : vector<2x512xf32>
    %cst_461 = arith.constant 5.000000e-01 : f32
    %1061 = vector.broadcast %cst_461 : f32 to vector<2x512xf32>
    %1062 = arith.mulf %1061, %1060 : vector<2x512xf32>
    %cst_462 = arith.constant 0.707106769 : f32
    %1063 = vector.broadcast %cst_462 : f32 to vector<2x512xf32>
    %1064 = arith.mulf %1060, %1063 : vector<2x512xf32>
    %1065 = math.absf %1064 : vector<2x512xf32>
    %cst_463 = arith.constant 0.327591091 : f32
    %1066 = vector.broadcast %cst_463 : f32 to vector<2x512xf32>
    %1067 = arith.mulf %1066, %1065 : vector<2x512xf32>
    %cst_464 = arith.constant 1.000000e+00 : f32
    %1068 = vector.broadcast %cst_464 : f32 to vector<2x512xf32>
    %1069 = arith.addf %1068, %1067 : vector<2x512xf32>
    %cst_465 = arith.constant 1.000000e+00 : f32
    %1070 = vector.broadcast %cst_465 : f32 to vector<2x512xf32>
    %1071 = arith.divf %1070, %1069 : vector<2x512xf32>
    %cst_466 = arith.constant 1.06140542 : f32
    %1072 = vector.broadcast %cst_466 : f32 to vector<2x512xf32>
    %1073 = arith.mulf %1071, %1072 : vector<2x512xf32>
    %cst_467 = arith.constant -1.45315206 : f32
    %1074 = vector.broadcast %cst_467 : f32 to vector<2x512xf32>
    %1075 = arith.addf %1074, %1073 : vector<2x512xf32>
    %1076 = arith.mulf %1071, %1075 : vector<2x512xf32>
    %cst_468 = arith.constant 1.42141378 : f32
    %1077 = vector.broadcast %cst_468 : f32 to vector<2x512xf32>
    %1078 = arith.addf %1077, %1076 : vector<2x512xf32>
    %1079 = arith.mulf %1071, %1078 : vector<2x512xf32>
    %cst_469 = arith.constant -0.284496725 : f32
    %1080 = vector.broadcast %cst_469 : f32 to vector<2x512xf32>
    %1081 = arith.addf %1080, %1079 : vector<2x512xf32>
    %1082 = arith.mulf %1071, %1081 : vector<2x512xf32>
    %cst_470 = arith.constant 0.254829586 : f32
    %1083 = vector.broadcast %cst_470 : f32 to vector<2x512xf32>
    %1084 = arith.addf %1083, %1082 : vector<2x512xf32>
    %1085 = arith.mulf %1071, %1084 : vector<2x512xf32>
    %cst_471 = arith.constant 0.000000e+00 : f32
    %1086 = vector.broadcast %cst_471 : f32 to vector<2x512xf32>
    %1087 = arith.subf %1086, %1065 : vector<2x512xf32>
    %1088 = arith.mulf %1087, %1065 : vector<2x512xf32>
    %1089 = math.exp %1088 : vector<2x512xf32>
    %1090 = arith.mulf %1085, %1089 : vector<2x512xf32>
    %cst_472 = arith.constant 1.000000e+00 : f32
    %1091 = vector.broadcast %cst_472 : f32 to vector<2x512xf32>
    %1092 = arith.subf %1091, %1090 : vector<2x512xf32>
    %cst_473 = arith.constant 0.000000e+00 : f32
    %1093 = vector.broadcast %cst_473 : f32 to vector<2x512xf32>
    %1094 = arith.cmpf oge, %1064, %1093 : vector<2x512xf32>
    %cst_474 = arith.constant 0.000000e+00 : f32
    %1095 = vector.broadcast %cst_474 : f32 to vector<2x512xf32>
    %1096 = arith.subf %1095, %1092 : vector<2x512xf32>
    %1097 = arith.select %1094, %1092, %1096 : vector<2x512xi1>, vector<2x512xf32>
    %cst_475 = arith.constant 1.000000e+00 : f32
    %1098 = vector.broadcast %cst_475 : f32 to vector<2x512xf32>
    %1099 = arith.addf %1098, %1097 : vector<2x512xf32>
    %1100 = arith.mulf %1062, %1099 : vector<2x512xf32>
    %c1_476 = arith.constant 1 : index
    %c8_477 = arith.constant 8 : index
    %c0_478 = arith.constant 0 : index
    %1101 = vector.load %arg8[%c1_476, %c8_477, %c0_478] : memref<2x16x512xf32, #tpu.memory_space<vmem>>, vector<1x2x512xf32>
    %1102 = vector.shape_cast %1101 : vector<1x2x512xf32> to vector<2x512xf32>
    %1103 = vector.shape_cast %1100 : vector<2x512xf32> to vector<1x2x512xf32>
    tpu.vector_store %arg8[%c1_476, %c8_477, %c0_478], %1103 {strides = array<i32>} : memref<2x16x512xf32, #tpu.memory_space<vmem>>, vector<1x2x512xf32>,
    %1104 = vector.extract_strided_slice %794 {offsets = [10, 0], sizes = [2, 512], strides = [1, 1]} : vector<16x512xf32> to vector<2x512xf32>
    %1105 = vector.broadcast %815 : vector<2x1xf32> to vector<2x512xf32>
    %1106 = arith.subf %1104, %1105 : vector<2x512xf32>
    %1107 = vector.broadcast %863 : vector<2x1xf32> to vector<2x512xf32>
    %1108 = arith.mulf %1106, %1107 : vector<2x512xf32>
    %cst_479 = arith.constant 5.000000e-01 : f32
    %1109 = vector.broadcast %cst_479 : f32 to vector<2x512xf32>
    %1110 = arith.mulf %1109, %1108 : vector<2x512xf32>
    %cst_480 = arith.constant 0.707106769 : f32
    %1111 = vector.broadcast %cst_480 : f32 to vector<2x512xf32>
    %1112 = arith.mulf %1108, %1111 : vector<2x512xf32>
    %1113 = math.absf %1112 : vector<2x512xf32>
    %cst_481 = arith.constant 0.327591091 : f32
    %1114 = vector.broadcast %cst_481 : f32 to vector<2x512xf32>
    %1115 = arith.mulf %1114, %1113 : vector<2x512xf32>
    %cst_482 = arith.constant 1.000000e+00 : f32
    %1116 = vector.broadcast %cst_482 : f32 to vector<2x512xf32>
    %1117 = arith.addf %1116, %1115 : vector<2x512xf32>
    %cst_483 = arith.constant 1.000000e+00 : f32
    %1118 = vector.broadcast %cst_483 : f32 to vector<2x512xf32>
    %1119 = arith.divf %1118, %1117 : vector<2x512xf32>
    %cst_484 = arith.constant 1.06140542 : f32
    %1120 = vector.broadcast %cst_484 : f32 to vector<2x512xf32>
    %1121 = arith.mulf %1119, %1120 : vector<2x512xf32>
    %cst_485 = arith.constant -1.45315206 : f32
    %1122 = vector.broadcast %cst_485 : f32 to vector<2x512xf32>
    %1123 = arith.addf %1122, %1121 : vector<2x512xf32>
    %1124 = arith.mulf %1119, %1123 : vector<2x512xf32>
    %cst_486 = arith.constant 1.42141378 : f32
    %1125 = vector.broadcast %cst_486 : f32 to vector<2x512xf32>
    %1126 = arith.addf %1125, %1124 : vector<2x512xf32>
    %1127 = arith.mulf %1119, %1126 : vector<2x512xf32>
    %cst_487 = arith.constant -0.284496725 : f32
    %1128 = vector.broadcast %cst_487 : f32 to vector<2x512xf32>
    %1129 = arith.addf %1128, %1127 : vector<2x512xf32>
    %1130 = arith.mulf %1119, %1129 : vector<2x512xf32>
    %cst_488 = arith.constant 0.254829586 : f32
    %1131 = vector.broadcast %cst_488 : f32 to vector<2x512xf32>
    %1132 = arith.addf %1131, %1130 : vector<2x512xf32>
    %1133 = arith.mulf %1119, %1132 : vector<2x512xf32>
    %cst_489 = arith.constant 0.000000e+00 : f32
    %1134 = vector.broadcast %cst_489 : f32 to vector<2x512xf32>
    %1135 = arith.subf %1134, %1113 : vector<2x512xf32>
    %1136 = arith.mulf %1135, %1113 : vector<2x512xf32>
    %1137 = math.exp %1136 : vector<2x512xf32>
    %1138 = arith.mulf %1133, %1137 : vector<2x512xf32>
    %cst_490 = arith.constant 1.000000e+00 : f32
    %1139 = vector.broadcast %cst_490 : f32 to vector<2x512xf32>
    %1140 = arith.subf %1139, %1138 : vector<2x512xf32>
    %cst_491 = arith.constant 0.000000e+00 : f32
    %1141 = vector.broadcast %cst_491 : f32 to vector<2x512xf32>
    %1142 = arith.cmpf oge, %1112, %1141 : vector<2x512xf32>
    %cst_492 = arith.constant 0.000000e+00 : f32
    %1143 = vector.broadcast %cst_492 : f32 to vector<2x512xf32>
    %1144 = arith.subf %1143, %1140 : vector<2x512xf32>
    %1145 = arith.select %1142, %1140, %1144 : vector<2x512xi1>, vector<2x512xf32>
    %cst_493 = arith.constant 1.000000e+00 : f32
    %1146 = vector.broadcast %cst_493 : f32 to vector<2x512xf32>
    %1147 = arith.addf %1146, %1145 : vector<2x512xf32>
    %1148 = arith.mulf %1110, %1147 : vector<2x512xf32>
    %c1_494 = arith.constant 1 : index
    %c10_495 = arith.constant 10 : index
    %c0_496 = arith.constant 0 : index
    %1149 = vector.load %arg8[%c1_494, %c10_495, %c0_496] : memref<2x16x512xf32, #tpu.memory_space<vmem>>, vector<1x2x512xf32>
    %1150 = vector.shape_cast %1149 : vector<1x2x512xf32> to vector<2x512xf32>
    %1151 = vector.shape_cast %1148 : vector<2x512xf32> to vector<1x2x512xf32>
    tpu.vector_store %arg8[%c1_494, %c10_495, %c0_496], %1151 {strides = array<i32>} : memref<2x16x512xf32, #tpu.memory_space<vmem>>, vector<1x2x512xf32>,
    %1152 = vector.extract_strided_slice %794 {offsets = [12, 0], sizes = [2, 512], strides = [1, 1]} : vector<16x512xf32> to vector<2x512xf32>
    %1153 = vector.broadcast %815 : vector<2x1xf32> to vector<2x512xf32>
    %1154 = arith.subf %1152, %1153 : vector<2x512xf32>
    %1155 = vector.broadcast %863 : vector<2x1xf32> to vector<2x512xf32>
    %1156 = arith.mulf %1154, %1155 : vector<2x512xf32>
    %cst_497 = arith.constant 5.000000e-01 : f32
    %1157 = vector.broadcast %cst_497 : f32 to vector<2x512xf32>
    %1158 = arith.mulf %1157, %1156 : vector<2x512xf32>
    %cst_498 = arith.constant 0.707106769 : f32
    %1159 = vector.broadcast %cst_498 : f32 to vector<2x512xf32>
    %1160 = arith.mulf %1156, %1159 : vector<2x512xf32>
    %1161 = math.absf %1160 : vector<2x512xf32>
    %cst_499 = arith.constant 0.327591091 : f32
    %1162 = vector.broadcast %cst_499 : f32 to vector<2x512xf32>
    %1163 = arith.mulf %1162, %1161 : vector<2x512xf32>
    %cst_500 = arith.constant 1.000000e+00 : f32
    %1164 = vector.broadcast %cst_500 : f32 to vector<2x512xf32>
    %1165 = arith.addf %1164, %1163 : vector<2x512xf32>
    %cst_501 = arith.constant 1.000000e+00 : f32
    %1166 = vector.broadcast %cst_501 : f32 to vector<2x512xf32>
    %1167 = arith.divf %1166, %1165 : vector<2x512xf32>
    %cst_502 = arith.constant 1.06140542 : f32
    %1168 = vector.broadcast %cst_502 : f32 to vector<2x512xf32>
    %1169 = arith.mulf %1167, %1168 : vector<2x512xf32>
    %cst_503 = arith.constant -1.45315206 : f32
    %1170 = vector.broadcast %cst_503 : f32 to vector<2x512xf32>
    %1171 = arith.addf %1170, %1169 : vector<2x512xf32>
    %1172 = arith.mulf %1167, %1171 : vector<2x512xf32>
    %cst_504 = arith.constant 1.42141378 : f32
    %1173 = vector.broadcast %cst_504 : f32 to vector<2x512xf32>
    %1174 = arith.addf %1173, %1172 : vector<2x512xf32>
    %1175 = arith.mulf %1167, %1174 : vector<2x512xf32>
    %cst_505 = arith.constant -0.284496725 : f32
    %1176 = vector.broadcast %cst_505 : f32 to vector<2x512xf32>
    %1177 = arith.addf %1176, %1175 : vector<2x512xf32>
    %1178 = arith.mulf %1167, %1177 : vector<2x512xf32>
    %cst_506 = arith.constant 0.254829586 : f32
    %1179 = vector.broadcast %cst_506 : f32 to vector<2x512xf32>
    %1180 = arith.addf %1179, %1178 : vector<2x512xf32>
    %1181 = arith.mulf %1167, %1180 : vector<2x512xf32>
    %cst_507 = arith.constant 0.000000e+00 : f32
    %1182 = vector.broadcast %cst_507 : f32 to vector<2x512xf32>
    %1183 = arith.subf %1182, %1161 : vector<2x512xf32>
    %1184 = arith.mulf %1183, %1161 : vector<2x512xf32>
    %1185 = math.exp %1184 : vector<2x512xf32>
    %1186 = arith.mulf %1181, %1185 : vector<2x512xf32>
    %cst_508 = arith.constant 1.000000e+00 : f32
    %1187 = vector.broadcast %cst_508 : f32 to vector<2x512xf32>
    %1188 = arith.subf %1187, %1186 : vector<2x512xf32>
    %cst_509 = arith.constant 0.000000e+00 : f32
    %1189 = vector.broadcast %cst_509 : f32 to vector<2x512xf32>
    %1190 = arith.cmpf oge, %1160, %1189 : vector<2x512xf32>
    %cst_510 = arith.constant 0.000000e+00 : f32
    %1191 = vector.broadcast %cst_510 : f32 to vector<2x512xf32>
    %1192 = arith.subf %1191, %1188 : vector<2x512xf32>
    %1193 = arith.select %1190, %1188, %1192 : vector<2x512xi1>, vector<2x512xf32>
    %cst_511 = arith.constant 1.000000e+00 : f32
    %1194 = vector.broadcast %cst_511 : f32 to vector<2x512xf32>
    %1195 = arith.addf %1194, %1193 : vector<2x512xf32>
    %1196 = arith.mulf %1158, %1195 : vector<2x512xf32>
    %c1_512 = arith.constant 1 : index
    %c12_513 = arith.constant 12 : index
    %c0_514 = arith.constant 0 : index
    %1197 = vector.load %arg8[%c1_512, %c12_513, %c0_514] : memref<2x16x512xf32, #tpu.memory_space<vmem>>, vector<1x2x512xf32>
    %1198 = vector.shape_cast %1197 : vector<1x2x512xf32> to vector<2x512xf32>
    %1199 = vector.shape_cast %1196 : vector<2x512xf32> to vector<1x2x512xf32>
    tpu.vector_store %arg8[%c1_512, %c12_513, %c0_514], %1199 {strides = array<i32>} : memref<2x16x512xf32, #tpu.memory_space<vmem>>, vector<1x2x512xf32>,
    %1200 = vector.extract_strided_slice %794 {offsets = [14, 0], sizes = [2, 512], strides = [1, 1]} : vector<16x512xf32> to vector<2x512xf32>
    %1201 = vector.broadcast %815 : vector<2x1xf32> to vector<2x512xf32>
    %1202 = arith.subf %1200, %1201 : vector<2x512xf32>
    %1203 = vector.broadcast %863 : vector<2x1xf32> to vector<2x512xf32>
    %1204 = arith.mulf %1202, %1203 : vector<2x512xf32>
    %cst_515 = arith.constant 5.000000e-01 : f32
    %1205 = vector.broadcast %cst_515 : f32 to vector<2x512xf32>
    %1206 = arith.mulf %1205, %1204 : vector<2x512xf32>
    %cst_516 = arith.constant 0.707106769 : f32
    %1207 = vector.broadcast %cst_516 : f32 to vector<2x512xf32>
    %1208 = arith.mulf %1204, %1207 : vector<2x512xf32>
    %1209 = math.absf %1208 : vector<2x512xf32>
    %cst_517 = arith.constant 0.327591091 : f32
    %1210 = vector.broadcast %cst_517 : f32 to vector<2x512xf32>
    %1211 = arith.mulf %1210, %1209 : vector<2x512xf32>
    %cst_518 = arith.constant 1.000000e+00 : f32
    %1212 = vector.broadcast %cst_518 : f32 to vector<2x512xf32>
    %1213 = arith.addf %1212, %1211 : vector<2x512xf32>
    %cst_519 = arith.constant 1.000000e+00 : f32
    %1214 = vector.broadcast %cst_519 : f32 to vector<2x512xf32>
    %1215 = arith.divf %1214, %1213 : vector<2x512xf32>
    %cst_520 = arith.constant 1.06140542 : f32
    %1216 = vector.broadcast %cst_520 : f32 to vector<2x512xf32>
    %1217 = arith.mulf %1215, %1216 : vector<2x512xf32>
    %cst_521 = arith.constant -1.45315206 : f32
    %1218 = vector.broadcast %cst_521 : f32 to vector<2x512xf32>
    %1219 = arith.addf %1218, %1217 : vector<2x512xf32>
    %1220 = arith.mulf %1215, %1219 : vector<2x512xf32>
    %cst_522 = arith.constant 1.42141378 : f32
    %1221 = vector.broadcast %cst_522 : f32 to vector<2x512xf32>
    %1222 = arith.addf %1221, %1220 : vector<2x512xf32>
    %1223 = arith.mulf %1215, %1222 : vector<2x512xf32>
    %cst_523 = arith.constant -0.284496725 : f32
    %1224 = vector.broadcast %cst_523 : f32 to vector<2x512xf32>
    %1225 = arith.addf %1224, %1223 : vector<2x512xf32>
    %1226 = arith.mulf %1215, %1225 : vector<2x512xf32>
    %cst_524 = arith.constant 0.254829586 : f32
    %1227 = vector.broadcast %cst_524 : f32 to vector<2x512xf32>
    %1228 = arith.addf %1227, %1226 : vector<2x512xf32>
    %1229 = arith.mulf %1215, %1228 : vector<2x512xf32>
    %cst_525 = arith.constant 0.000000e+00 : f32
    %1230 = vector.broadcast %cst_525 : f32 to vector<2x512xf32>
    %1231 = arith.subf %1230, %1209 : vector<2x512xf32>
    %1232 = arith.mulf %1231, %1209 : vector<2x512xf32>
    %1233 = math.exp %1232 : vector<2x512xf32>
    %1234 = arith.mulf %1229, %1233 : vector<2x512xf32>
    %cst_526 = arith.constant 1.000000e+00 : f32
    %1235 = vector.broadcast %cst_526 : f32 to vector<2x512xf32>
    %1236 = arith.subf %1235, %1234 : vector<2x512xf32>
    %cst_527 = arith.constant 0.000000e+00 : f32
    %1237 = vector.broadcast %cst_527 : f32 to vector<2x512xf32>
    %1238 = arith.cmpf oge, %1208, %1237 : vector<2x512xf32>
    %cst_528 = arith.constant 0.000000e+00 : f32
    %1239 = vector.broadcast %cst_528 : f32 to vector<2x512xf32>
    %1240 = arith.subf %1239, %1236 : vector<2x512xf32>
    %1241 = arith.select %1238, %1236, %1240 : vector<2x512xi1>, vector<2x512xf32>
    %cst_529 = arith.constant 1.000000e+00 : f32
    %1242 = vector.broadcast %cst_529 : f32 to vector<2x512xf32>
    %1243 = arith.addf %1242, %1241 : vector<2x512xf32>
    %1244 = arith.mulf %1206, %1243 : vector<2x512xf32>
    %c1_530 = arith.constant 1 : index
    %c14_531 = arith.constant 14 : index
    %c0_532 = arith.constant 0 : index
    %1245 = vector.load %arg8[%c1_530, %c14_531, %c0_532] : memref<2x16x512xf32, #tpu.memory_space<vmem>>, vector<1x2x512xf32>
    %1246 = vector.shape_cast %1245 : vector<1x2x512xf32> to vector<2x512xf32>
    %1247 = vector.shape_cast %1244 : vector<2x512xf32> to vector<1x2x512xf32>
    tpu.vector_store %arg8[%c1_530, %c14_531, %c0_532], %1247 {strides = array<i32>} : memref<2x16x512xf32, #tpu.memory_space<vmem>>, vector<1x2x512xf32>,
    return
  }
  func.func @transform_0(%arg0: i32) -> (i32, i32, i32) {
    %c0_i32 = arith.constant 0 : i32
    %c0_i32_0 = arith.constant 0 : i32
    %c0_i32_1 = arith.constant 0 : i32
    return %arg0, %c0_i32, %c0_i32_0 : i32, i32, i32
  }
  func.func @transform_1(%arg0: i32) -> (i32, i32) {
    %c0_i32 = arith.constant 0 : i32
    %c0_i32_0 = arith.constant 0 : i32
    %c0_i32_1 = arith.constant 0 : i32
    return %c0_i32, %c0_i32_0 : i32, i32
  }
  func.func @transform_2(%arg0: i32) -> (i32, i32) {
    %c0_i32 = arith.constant 0 : i32
    %c0_i32_0 = arith.constant 0 : i32
    %c0_i32_1 = arith.constant 0 : i32
    return %c0_i32, %c0_i32_0 : i32, i32
  }
  func.func @transform_3(%arg0: i32) -> (i32, i32) {
    %c0_i32 = arith.constant 0 : i32
    %c0_i32_0 = arith.constant 0 : i32
    %c0_i32_1 = arith.constant 0 : i32
    return %c0_i32, %c0_i32_0 : i32, i32
  }
  func.func @transform_4(%arg0: i32) -> (i32, i32) {
    %c0_i32 = arith.constant 0 : i32
    %c0_i32_0 = arith.constant 0 : i32
    %c0_i32_1 = arith.constant 0 : i32
    return %c0_i32, %c0_i32_0 : i32, i32
  }
  func.func @transform_5(%arg0: i32) -> (i32, i32) {
    %c0_i32 = arith.constant 0 : i32
    %c0_i32_0 = arith.constant 0 : i32
    %c0_i32_1 = arith.constant 0 : i32
    return %c0_i32, %c0_i32_0 : i32, i32
  }
  func.func @transform_6(%arg0: i32) -> (i32, i32) {
    %c0_i32 = arith.constant 0 : i32
    %c0_i32_0 = arith.constant 0 : i32
    %c0_i32_1 = arith.constant 0 : i32
    return %c0_i32, %c0_i32_0 : i32, i32
  }
  func.func @transform_7(%arg0: i32) -> (i32, i32, i32) {
    %c0_i32 = arith.constant 0 : i32
    %c0_i32_0 = arith.constant 0 : i32
    %c0_i32_1 = arith.constant 0 : i32
    return %arg0, %c0_i32, %c0_i32_0 : i32, i32, i32
  }
}

</mosaic_0001>

<bundles_post_ra>
// kernel: tile.8
= control target key start
LH: loop header
LB: loop body
LE: loop exit
PB: predicated region body
PF: predicated region fallthrough
CT: control target
= control target key end

     0   :  { %2 = vsyncpa [#allocation1], 0  ;;  %s44_s6 = smov [#allocation0]   ;;  %s70_s0 = inlined_call_operand.hbm [shape: f32[2], index: 0, kind: input, shape index: {}]   ;;  %s71_s1 = inlined_call_operand.vmem [shape: f32[8,2], index: 1, kind: output, shape index: {}]  }
   0x1   :  { %s9_s7 = sshll.u32 %s44_s6, 4  ;;  %s20_s10 = scalar_lea.hbm %s70_s0, 16  ;;  %s10_s7 = int_to_ptr.vmem [resolvable:$true] %s9_s7 }
   0x2   :  { %p21_p0 = scmp.ne.s32.totalorder %s70_s0, %s20_s10  ;;  %p24_p1 = scmp.lt.u32.totalorder %s20_s10, %s70_s0 }
   0x4   :  { %p26_p2 = pnand %p24_p1, %p21_p0 }
   0x6   :  { %29 = shalt.err (!%p26_p2)
}
   0x7   :  { %s30_s15 = scalar_lea.vmem %s10_s7, 16  ;;  %s34_s16 = scalar_lea.vmem %s10_s7, 32 }
   0x8   :  { %p31_p3 = scmp.ne.s32.totalorder %s10_s7, %s30_s15  ;;  %p35_p4 = scmp.lt.s32.totalorder %s10_s7, %s10_s7 }
   0x9   :  { %p36_p5 = scmp.lt.s32.totalorder %s34_s16, %s30_s15 }
   0xb   :  { %p37_p6 = por %p36_p5, %p35_p4 }
   0xd   :  { %p38_p7 = pnand %p37_p6, %p31_p3 }
   0xf   :  { %41 = shalt.err (!%p38_p7)
}
  0x10   :  { %12 = dma.hbm_to_vmem [thread:$0]  %s70_s0, 16, %s10_s7, [#allocation1]  }
  0x11   :  { %42 = dma.done.wait [#allocation1], 16  }
  0x12   :  { %43 = vsyncadd [#allocation1], 4294967280  ;;  %v16_v0 = vld [vmem:[#allocation0] ss:$0 sm:$0xff] }
  0x13   :  { %17 = vst [vmem:[%s71_s1] sm:$0xff] %v16_v0 }
  0x14   :  { %18 = vsyncpa [#allocation1], 1 }

// kernel: tile.9
= control target key start
LH: loop header
LB: loop body
LE: loop exit
PB: predicated region body
PF: predicated region fallthrough
CT: control target
= control target key end

     0   :  { %s67_s10 = smov 14   ;;  %s68_s11 = smov 10   ;;  %vm3_vm0 = vcmask 15360   ;;  %vm9_vm1 = vcmask 130160   ;;  %vm15_vm2 = vcmask 113760   ;;  %vm21_vm3 = vcmask 97360   ;;  %s111_s0 = inlined_call_operand.vmem [shape: f32[8,2], index: 0, kind: input, shape index: {}]   ;;  %s112_s1 = inlined_call_operand.vmem [shape: f32[16], index: 1, kind: output, shape index: {}]  }
   0x1   :  { %v53_v0 = vld [vmem:[%s111_s0 + $0x7] sm:$0x1]   ;;  %v55_v1 = vld [vmem:[%s111_s0 + $0x5] sm:$0x1]   ;;  %v54_v2 = vld [vmem:[%s111_s0 + $0x6] sm:$0x1]  }
   0x2   :  { %7 = vrot.lane.b32.xlu0 %v53_v0, %s67_s10  ;;  %19 = vrot.lane.b32.xlu1 %v55_v1, %s68_s11  ;;  %v56_v3 = vld [vmem:[%s111_s0 + $0x4] sm:$0x1]   ;;  %v2_v4 = vld [vmem:[%s111_s0] sm:$0x1]   ;;  %s69_s18 = smov 12   ;;  %s70_s19 = smov 8  }
   0x3   :  { %4 = vst.msk [vmem:[#allocation0] sm:$0x1] %vm3_vm0, %v2_v4   ;;  %v57_v5 = vld [vmem:[%s111_s0 + $0x3] sm:$0x1]   ;;  %v58_v6 = vld [vmem:[%s111_s0 + $0x2] sm:$0x1]  }
   0x4   :  { %s71_s24 = smov 6   ;;  %s72_s25 = smov 4   ;;  %v59_v7 = vld [vmem:[%s111_s0 + $0x1] sm:$0x1]   ;;  %vm27_vm4 = vcmask 80960   ;;  %vm33_vm5 = vcmask 64560  }
   0x5   :  { %s73_s0 = smov 2   ;;  %vm39_vm6 = vcmask 48160   ;;  %vm45_vm7 = vcmask 31760  }
   0x6   :  { %13 = vrot.lane.b32.xlu0 %v54_v2, %s69_s18  ;;  %25 = vrot.lane.b32.xlu1 %v56_v3, %s70_s19 }
   0xa   :  { %31 = vrot.lane.b32.xlu0 %v57_v5, %s71_s24  ;;  %37 = vrot.lane.b32.xlu1 %v58_v6, %s72_s25 }
   0xe   :  { %43 = vrot.lane.b32.xlu0 %v59_v7, %s73_s0 }
  0x74   :  { %v8_v8 = vpop.permute.xlu0 %7   ;;  %v20_v9 = vpop.permute.xlu1 %19  }
  0x75   :  { %10 = vst.msk [vmem:[#allocation0] sm:$0x1] %vm9_vm1, %v8_v8  }
  0x78   :  { %v14_v10 = vpop.permute.xlu0 %13   ;;  %v26_v11 = vpop.permute.xlu1 %25  }
  0x79   :  { %16 = vst.msk [vmem:[#allocation0] sm:$0x1] %vm15_vm2, %v14_v10  }
  0x7a   :  { %22 = vst.msk [vmem:[#allocation0] sm:$0x1] %vm21_vm3, %v20_v9  }
  0x7b   :  { %28 = vst.msk [vmem:[#allocation0] sm:$0x1] %vm27_vm4, %v26_v11  }
  0x7c   :  { %v32_v12 = vpop.permute.xlu0 %31   ;;  %v38_v13 = vpop.permute.xlu1 %37  }
  0x7d   :  { %34 = vst.msk [vmem:[#allocation0] sm:$0x1] %vm33_vm5, %v32_v12  }
  0x7e   :  { %40 = vst.msk [vmem:[#allocation0] sm:$0x1] %vm39_vm6, %v38_v13  }
  0x80   :  { %v44_v14 = vpop.permute.xlu0 %43  }
  0x81   :  { %46 = vst.msk [vmem:[#allocation0] sm:$0x1] %vm45_vm7, %v44_v14  }
  0x88   :  { %v50_v15 = vld [vmem:[#allocation0] sm:$0x1] }
  0x89   :  { %52 = vst [vmem:[%s112_s1] sm:$0x1] %v50_v15 }

// kernel: transformer_block_up.1
= control target key start
LH: loop header
LB: loop body
LE: loop exit
PB: predicated region body
PF: predicated region fallthrough
CT: control target
= control target key end

     0   :  { %12 = vsyncpa [#allocation5], 0  ;;  %s6416_s24 = smov [#allocation4]   ;;  %s9809_s0 = inlined_call_operand.vmem [shape: f32[2,8,512], index: 0, kind: input, shape index: {}]   ;;  %s9810_s1 = inlined_call_operand.vmem [shape: f32[2,512], index: 1, kind: input, shape index: {}]   ;;  %s9811_s2 = inlined_call_operand.vmem [shape: f32[12,8], index: 2, kind: input, shape index: {}]   ;;  %s9812_s3 = inlined_call_operand.vmem [shape: f32[8,216], index: 3, kind: input, shape index: {}]   ;;  %s9813_s4 = inlined_call_operand.hbm [shape: f32[4,4], index: 4, kind: input, shape index: {}]   ;;  %s9814_s5 = inlined_call_operand.vmem [shape: f32[16,32], index: 5, kind: input, shape index: {}]   ;;  %s9815_s6 = inlined_call_operand.vmem [shape: f32[48,1], index: 6, kind: input, shape index: {}]   ;;  %s9816_s7 = inlined_call_operand.vmem [shape: f32[2,16,512], index: 7, kind: output, shape index: {}]  }
   0x1   :  { %s27_s25 = sshll.u32 %s6416_s24, 4  ;;  %s6392_s28 = scalar_lea.hbm %s9813_s4, 64  ;;  %s28_s25 = int_to_ptr.vmem [resolvable:$true] %s27_s25 }
   0x2   :  { %p6393_p0 = scmp.ne.s32.totalorder %s9813_s4, %s6392_s28  ;;  %p6396_p1 = scmp.lt.u32.totalorder %s6392_s28, %s9813_s4 }
   0x4   :  { %p6398_p2 = pnand %p6396_p1, %p6393_p0 }
   0x6   :  { %6401 = shalt.err (!%p6398_p2)
}
   0x7   :  { %s6402_s10 = scalar_lea.vmem %s28_s25, 64  ;;  %p6407_p4 = scmp.lt.s32.totalorder %s28_s25, %s28_s25 }
   0x8   :  { %p6403_p3 = scmp.ne.s32.totalorder %s28_s25, %s6402_s10  ;;  %p6408_p5 = scmp.lt.s32.totalorder %s6402_s10, %s6402_s10 }
   0xa   :  { %p6409_p6 = por %p6408_p5, %p6407_p4 }
   0xc   :  { %p6410_p7 = pnand %p6409_p6, %p6403_p3 }
   0xe   :  { %6413 = shalt.err (!%p6410_p7)
}
   0xf   :  { %30 = dma.hbm_to_vmem [thread:$0]  %s9813_s4, 64, %s28_s25, [#allocation5]  }
  0x10   :  { %6414 = dma.done.wait [#allocation5], 64  }
  0x11   :  { %6415 = vsyncadd [#allocation5], 4294967232  ;;  %v9831_v0 = vmov 0.0   ;;  %v6418_v1 = vmov 0   ;;  %v55_v2 = vld [vmem:[%s9809_s0 + $0x8] sm:$0xff]  ;;  %v57_v3 = vld [vmem:[%s9809_s0 + $0x18] sm:$0xff]  ;;  %v237_v24 = vlaneseq }
  0x12   :  { %139 = vmatprep.mubr.f32.mxu0 %v9831_v0  ;;  %216 = vmatprep.mubr.f32.mxu1 %v9831_v0  ;;  %v54_v4 = vld [vmem:[%s9809_s0] sm:$0xff]  ;;  %vm68_vm0 = vcmask 64512   ;;  %v56_v5 = vld [vmem:[%s9809_s0 + $0x10] sm:$0xff]  ;;  %s6419_s24 = smov 55   ;;  %s6420_s25 = smov 73   ;;  %v44_v23 = vld [vmem:[%s9812_s3 + $0x8] sm:$0xff] }
  0x13   :  { %5773 = vset.pattern.permute.xlu0 %v6418_v1  ;;  %5929 = vset.pattern.permute.xlu1 %v6418_v1  ;;  %v41_v6 = vld [vmem:[%s9811_s2] sm:$0xff]  ;;  %s6421_s26 = smov 72   ;;  %s6422_s27 = smov 65   ;;  %v48_v21 = vld [vmem:[%s9815_s6 + $0x10] sm:$0xff]  ;;  %v42_v22 = vld [vmem:[%s9811_s2 + $0x8] sm:$0xf] }
  0x14   :  { %75 = vmatprep.subr.mxu0 %v55_v2  ;;  %152 = vmatprep.subr.mxu1 %v57_v3  ;;  %v46_v7 = vld [vmem:[%s9815_s6] sm:$0xff]  ;;  %s6423_s28 = smov 71   ;;  %s6424_s29 = smov 63   ;;  %vm673_vm1 = vcmask 719872   ;;  %v6595_v27 = vand.u32 127, %v237_v24 }
  0x15   :  { %76 = vmatpush1.msra.mxu0 %v54_v4  ;;  %153 = vmatpush1.msra.mxu1 %v56_v5  ;;  %s6425_s30 = smov 64   ;;  %s6426_s8 = smov 56  }
  0x16   :  { %5445 = vmatmul.mubr.msk.f32.vlgmr.msra.gmra.mrb[0].mxu0 %vm68_vm0, %v41_v6  ;;  %5447 = vmatmul.mubr.msk.f32.vlgmr.msra.gmra.mrb[0].mxu1 %vm68_vm0, %v41_v6  ;;  %s6427_s9 = smov 57   ;;  %s6428_s10 = smov 9   ;;  %vm256_vm2 = vcmp.lt.s32.totalorder %v6595_v27, 72  ;;  %vm239_vm3 = vcmp.lt.s32.totalorder %v6595_v27, 73  ;;  %vm9824_vm4 = vcmp.lt.s32.totalorder %v6595_v27, 65  ;;  %vm273_vm5 = vcmp.lt.s32.totalorder %v6595_v27, 71 }
  0x17   :  { %60 = vperm.xlu0 %5773, %v46_v7   ;;  %145 = vmatprep.mubr.f32.mxu0 %v9831_v0  ;;  %s6429_s11 = smov 7   ;;  %s6430_s12 = smov 8   ;;  %vm324_vm6 = vcmp.lt.s32.totalorder %v6595_v27, 63  ;;  %vm307_vm7 = vcmp.lt.s32.totalorder %v6595_v27, 64  ;;  %vm358_vm8 = vcmp.lt.s32.totalorder %v6595_v27, 56  ;;  %vm9823_vm9 = vcmp.lt.s32.totalorder %v6595_v27, 57 }
  0x18   :  { %222 = vmatprep.mubr.f32.mxu1 %v9831_v0  ;;  %s6431_s13 = smov 1   ;;  %s6432_s14 = smov 121   ;;  %vm375_vm10 = vcmp.lt.s32.totalorder %v6595_v27, 55  ;;  %vm9817_vm11 = vcmp.lt.s32.totalorder %v6595_v27, 9  ;;  %vm9819_vm12 = vcmp.lt.s32.totalorder %v6595_v27, 7  ;;  %vm9822_vm13 = vcmp.lt.s32.totalorder %v6595_v27, 8 }
  0x19   :  { %s6433_s15 = smov 127   ;;  %s9825_s16 = smov 119   ;;  %vm9818_vm14 = vcmp.lt.s32.totalorder %v6595_v27, 1  ;;  %vm9820_vm15 = vcmp.lt.s32.totalorder %v6595_v27, 121 }
  0x1a   :  { %s6435_s17 = smov 120   ;;  %5446 = vmatmul.mubr.msk.f32.gmra.mrb[2].mxu0 %vm68_vm0, %v42_v22  ;;  %5448 = vmatmul.mubr.msk.f32.gmra.mrb[2].mxu1 %vm68_vm0, %v42_v22 }
  0x1b   :  { %5449 = vmatprep.mubr.msk.f32.mxu0 %vm673_vm1, %v44_v23  ;;  %5450 = vmatprep.mubr.msk.f32.mxu1 %vm673_vm1, %v44_v23 }
  0x96   :  { %v6512_v8 = vpop.permute.xlu0 %60 }
  0xe9   :  { %v141_v9 = vpop.f32.mrb[0].mxu0  ;;  %v218_v10 = vpop.f32.mrb[0].mxu1 }
  0xea   :  { %v6515_v11 = vadd.f32 %v141_v9, %v6512_v8  ;;  %v6518_v12 = vadd.f32 %v218_v10, %v6512_v8  ;;  %v143_v13 = vpop.f32.mrb[1].mxu0  ;;  %v220_v14 = vpop.f32.mrb[1].mxu1 }
  0xeb   :  { %v6521_v15 = vadd.f32 %v143_v13, %v6512_v8  ;;  %v6530_v17 = vadd.f32 %v220_v14, %v6512_v8 }
  0xec   :  { %371 = vrot.lane.b32.xlu0 %v6518_v12, %s6419_s24  ;;  %367 = vrot.lane.b32.xlu1 %v6515_v11, %s6419_s24 }
  0xed   :  { %v5774_v16 = vpack.i.bf16 %v6521_v15, %v6515_v11  ;;  %v5789_v18 = vpack.i.bf16 %v6518_v12, %v6530_v17  ;;  %v5899_v19 = vpack.i.bf16 %v6518_v12, %v6521_v15  ;;  %v5909_v20 = vpack.i.bf16 %v6530_v17, %v6515_v11 }
  0xf0   :  { %5775 = vrot.lane.b32.xlu0 %v5774_v16, %s6420_s25  ;;  %5780 = vrot.lane.b32.xlu1 %v5774_v16, %s6421_s26 }
  0xf4   :  { %5790 = vrot.lane.b32.xlu0 %v5789_v18, %s6421_s26  ;;  %5785 = vrot.lane.b32.xlu1 %v5789_v18, %s6420_s25 }
  0xf8   :  { %5800 = vrot.lane.b32.xlu0 %v5774_v16, %s6422_s27  ;;  %5795 = vrot.lane.b32.xlu1 %v5774_v16, %s6423_s28 }
  0xfc   :  { %5810 = vrot.lane.b32.xlu0 %v5789_v18, %s6422_s27  ;;  %5805 = vrot.lane.b32.xlu1 %v5789_v18, %s6423_s28 }
 0x100   :  { %5820 = vrot.lane.b32.xlu0 %v5774_v16, %s6424_s29  ;;  %5815 = vrot.lane.b32.xlu1 %v5774_v16, %s6425_s30 }
 0x104   :  { %5830 = vrot.lane.b32.xlu0 %v5789_v18, %s6424_s29  ;;  %5825 = vrot.lane.b32.xlu1 %v5789_v18, %s6425_s30 }
 0x108   :  { %5840 = vrot.lane.b32.xlu0 %v5774_v16, %s6426_s8  ;;  %5835 = vrot.lane.b32.xlu1 %v5774_v16, %s6427_s9 }
 0x10c   :  { %5850 = vrot.lane.b32.xlu0 %v5789_v18, %s6426_s8  ;;  %5845 = vrot.lane.b32.xlu1 %v5789_v18, %s6427_s9 }
 0x110   :  { %369 = vrot.lane.b32.xlu0 %v6521_v15, %s6419_s24  ;;  %5855 = vrot.lane.b32.xlu1 %v5774_v16, %s6428_s10 }
 0x114   :  { %373 = vrot.lane.b32.xlu0 %v6530_v17, %s6419_s24  ;;  %5860 = vrot.lane.b32.xlu1 %v5789_v18, %s6428_s10 }
 0x118   :  { %5870 = vrot.lane.b32.xlu0 %v5774_v16, %s6429_s11  ;;  %5865 = vrot.lane.b32.xlu1 %v5774_v16, %s6430_s12 }
 0x11c   :  { %5880 = vrot.lane.b32.xlu0 %v5789_v18, %s6429_s11  ;;  %5875 = vrot.lane.b32.xlu1 %v5789_v18, %s6430_s12 }
 0x120   :  { %5890 = vrot.lane.b32.xlu0 %v5789_v18, %s6431_s13  ;;  %5885 = vrot.lane.b32.xlu1 %v5774_v16, %s6431_s13 }
 0x124   :  { %5900 = vrot.lane.b32.xlu0 %v5899_v19, %s6432_s14  ;;  %5895 = vrot.lane.b32.xlu1 %v5899_v19, %s6433_s15 }
 0x128   :  { %5910 = vrot.lane.b32.xlu0 %v5909_v20, %s6432_s14  ;;  %5905 = vrot.lane.b32.xlu1 %v5909_v20, %s6433_s15 }
 0x12c   :  { %5920 = vrot.lane.b32.xlu0 %v5899_v19, %s9825_s16  ;;  %5915 = vrot.lane.b32.xlu1 %v5899_v19, %s6435_s17 }
 0x130   :  { %507 = vrot.lane.b32.xlu0 %v6515_v11, %s9825_s16  ;;  %5925 = vrot.lane.b32.xlu1 %v5909_v20, %s6435_s17 }
 0x134   :  { %670 = vperm.xlu0 %5773, %v48_v21   ;;  %513 = vrot.lane.b32.xlu1 %v6530_v17, %s9825_s16 }
 0x15e   :  { %v6590_v25 = vpop.permute.xlu0 %371  ;;  %v6592_v26 = vpop.permute.xlu1 %367 }
 0x162   :  { %v5776_v28 = vpop.permute.xlu0 %5775  ;;  %v5781_v29 = vpop.permute.xlu1 %5780 }
 0x163   :  { %v5778_v30 = vunpack.i.h.bf16 %v5776_v28  ;;  %v5777_v31 = vunpack.i.l.bf16 %v5776_v28  ;;  %v5783_v32 = vunpack.i.h.bf16 %v5781_v29  ;;  %v5782_v33 = vunpack.i.l.bf16 %v5781_v29 }
 0x165   :  { %v242_v34 = vsel %vm239_vm3, %v5777_v31, %v5778_v30  ;;  %v259_v35 = vsel %vm256_vm2, %v5782_v33, %v5783_v32 }
 0x166   :  { %v5791_v36 = vpop.permute.xlu0 %5790  ;;  %v5786_v37 = vpop.permute.xlu1 %5785  ;;  %v6603_v38 = vpack.c.bf16 %v259_v35, %v242_v34 }
 0x167   :  { %v5793_v39 = vunpack.i.h.bf16 %v5791_v36  ;;  %v5792_v40 = vunpack.i.l.bf16 %v5791_v36  ;;  %v5788_v41 = vunpack.i.h.bf16 %v5786_v37  ;;  %v5787_v42 = vunpack.i.l.bf16 %v5786_v37 }
 0x168   :  { %5514 = vmatprep.subr.bf16.mxu0 %v6603_v38 }
 0x169   :  { %v258_v43 = vsel %vm256_vm2, %v5783_v32, %v5793_v39  ;;  %v260_v44 = vsel %vm256_vm2, %v5792_v40, %v5782_v33  ;;  %v241_v45 = vsel %vm239_vm3, %v5778_v30, %v5788_v41  ;;  %v243_v46 = vsel %vm239_vm3, %v5787_v42, %v5777_v31 }
 0x16a   :  { %v5801_v47 = vpop.permute.xlu0 %5800  ;;  %v5796_v48 = vpop.permute.xlu1 %5795  ;;  %v6616_v49 = vpack.c.bf16 %v260_v44, %v243_v46  ;;  %v240_v50 = vsel %vm239_vm3, %v5788_v41, %v5787_v42  ;;  %v257_v51 = vsel %vm256_vm2, %v5793_v39, %v5792_v40  ;;  %v6622_v52 = vpack.c.bf16 %v258_v43, %v241_v45 }
 0x16b   :  { %v5803_v53 = vunpack.i.h.bf16 %v5801_v47  ;;  %v5802_v54 = vunpack.i.l.bf16 %v5801_v47  ;;  %v5798_v55 = vunpack.i.h.bf16 %v5796_v48  ;;  %v5797_v56 = vunpack.i.l.bf16 %v5796_v48 }
 0x16c   :  { %5516 = vmatpush1.bf16.msra.mxu0 %v6616_v49  ;;  %v6625_v57 = vpack.c.bf16 %v257_v51, %v240_v50 }
 0x16d   :  { %v276_v58 = vsel %vm273_vm5, %v5797_v56, %v5798_v55  ;;  %v293_v59 = vsel %vm9824_vm4, %v5802_v54, %v5803_v53 }
 0x16e   :  { %5566 = vmatprep.subr.bf16.mxu1 %v6625_v57  ;;  %v5811_v60 = vpop.permute.xlu0 %5810  ;;  %v5806_v61 = vpop.permute.xlu1 %5805  ;;  %v6632_v62 = vpack.c.bf16 %v293_v59, %v276_v58 }
 0x16f   :  { %5568 = vmatpush1.bf16.msra.mxu1 %v6622_v52  ;;  %v5813_v63 = vunpack.i.h.bf16 %v5811_v60  ;;  %v5812_v1 = vunpack.i.l.bf16 %v5811_v60  ;;  %v5808_v2 = vunpack.i.h.bf16 %v5806_v61  ;;  %v5807_v3 = vunpack.i.l.bf16 %v5806_v61 }
 0x170   :  { %5518 = vmatprep.subr.bf16.mxu0 %v6632_v62 }
 0x171   :  { %v292_v4 = vsel %vm9824_vm4, %v5803_v53, %v5813_v63  ;;  %v294_v5 = vsel %vm9824_vm4, %v5812_v1, %v5802_v54  ;;  %v275_v6 = vsel %vm273_vm5, %v5798_v55, %v5808_v2  ;;  %v277_v7 = vsel %vm273_vm5, %v5807_v3, %v5797_v56 }
 0x172   :  { %v5821_v9 = vpop.permute.xlu0 %5820  ;;  %v5816_v10 = vpop.permute.xlu1 %5815  ;;  %v6646_v13 = vpack.c.bf16 %v294_v5, %v277_v7  ;;  %v274_v14 = vsel %vm273_vm5, %v5808_v2, %v5807_v3  ;;  %v291_v16 = vsel %vm9824_vm4, %v5813_v63, %v5812_v1  ;;  %v6652_v18 = vpack.c.bf16 %v292_v4, %v275_v6 }
 0x173   :  { %v5823_v19 = vunpack.i.h.bf16 %v5821_v9  ;;  %v5822_v20 = vunpack.i.l.bf16 %v5821_v9  ;;  %v5818_v21 = vunpack.i.h.bf16 %v5816_v10  ;;  %v5817_v22 = vunpack.i.l.bf16 %v5816_v10 }
 0x174   :  { %5520 = vmatpush1.bf16.msra.mxu0 %v6646_v13  ;;  %v6655_v23 = vpack.c.bf16 %v291_v16, %v274_v14  ;;  %vm1017_vm4 = vcmask 1043456  }
 0x175   :  { %v310_v28 = vsel %vm307_vm7, %v5817_v22, %v5818_v21  ;;  %v327_v29 = vsel %vm324_vm6, %v5822_v20, %v5823_v19 }
 0x176   :  { %5570 = vmatprep.subr.bf16.mxu1 %v6655_v23  ;;  %v5831_v30 = vpop.permute.xlu0 %5830  ;;  %v5826_v31 = vpop.permute.xlu1 %5825  ;;  %v6662_v32 = vpack.c.bf16 %v327_v29, %v310_v28 }
 0x177   :  { %5572 = vmatpush1.bf16.msra.mxu1 %v6652_v18  ;;  %v5833_v33 = vunpack.i.h.bf16 %v5831_v30  ;;  %v5832_v34 = vunpack.i.l.bf16 %v5831_v30  ;;  %v5828_v35 = vunpack.i.h.bf16 %v5826_v31  ;;  %v5827_v36 = vunpack.i.l.bf16 %v5826_v31 }
 0x178   :  { %5522 = vmatprep.subr.bf16.mxu0 %v6662_v32 }
 0x179   :  { %v326_v37 = vsel %vm324_vm6, %v5823_v19, %v5833_v33  ;;  %v328_v39 = vsel %vm324_vm6, %v5832_v34, %v5822_v20  ;;  %v309_v40 = vsel %vm307_vm7, %v5818_v21, %v5828_v35  ;;  %v311_v41 = vsel %vm307_vm7, %v5827_v36, %v5817_v22 }
 0x17a   :  { %v5841_v42 = vpop.permute.xlu0 %5840  ;;  %v5836_v43 = vpop.permute.xlu1 %5835  ;;  %v6676_v44 = vpack.c.bf16 %v328_v39, %v311_v41  ;;  %v308_v45 = vsel %vm307_vm7, %v5828_v35, %v5827_v36  ;;  %v325_v46 = vsel %vm324_vm6, %v5833_v33, %v5832_v34  ;;  %v6682_v47 = vpack.c.bf16 %v326_v37, %v309_v40 }
 0x17b   :  { %v5843_v48 = vunpack.i.h.bf16 %v5841_v42  ;;  %v5842_v50 = vunpack.i.l.bf16 %v5841_v42  ;;  %v5838_v51 = vunpack.i.h.bf16 %v5836_v43  ;;  %v5837_v53 = vunpack.i.l.bf16 %v5836_v43 }
 0x17c   :  { %5524 = vmatpush1.bf16.msra.mxu0 %v6676_v44  ;;  %v6685_v54 = vpack.c.bf16 %v325_v46, %v308_v45 }
 0x17d   :  { %v344_v55 = vsel %vm9823_vm9, %v5837_v53, %v5838_v51  ;;  %v361_v56 = vsel %vm358_vm8, %v5842_v50, %v5843_v48 }
 0x17e   :  { %5574 = vmatprep.subr.bf16.mxu1 %v6685_v54  ;;  %v5851_v58 = vpop.permute.xlu0 %5850  ;;  %v5846_v59 = vpop.permute.xlu1 %5845  ;;  %v6692_v60 = vpack.c.bf16 %v361_v56, %v344_v55 }
 0x17f   :  { %5576 = vmatpush1.bf16.msra.mxu1 %v6682_v47  ;;  %v5853_v61 = vunpack.i.h.bf16 %v5851_v58  ;;  %v5852_v63 = vunpack.i.l.bf16 %v5851_v58  ;;  %v5848_v1 = vunpack.i.h.bf16 %v5846_v59  ;;  %v5847_v2 = vunpack.i.l.bf16 %v5846_v59 }
 0x180   :  { %5526 = vmatprep.subr.bf16.mxu0 %v6692_v60 }
 0x181   :  { %v360_v3 = vsel %vm358_vm8, %v5843_v48, %v5853_v61  ;;  %v362_v4 = vsel %vm358_vm8, %v5852_v63, %v5842_v50  ;;  %v343_v5 = vsel %vm9823_vm9, %v5838_v51, %v5848_v1  ;;  %v345_v6 = vsel %vm9823_vm9, %v5847_v2, %v5837_v53 }
 0x182   :  { %v370_v7 = vpop.permute.xlu0 %369  ;;  %v5856_v9 = vpop.permute.xlu1 %5855  ;;  %v6705_v10 = vpack.c.bf16 %v362_v4, %v345_v6  ;;  %v342_v14 = vsel %vm9823_vm9, %v5848_v1, %v5847_v2  ;;  %v359_v16 = vsel %vm358_vm8, %v5853_v61, %v5852_v63  ;;  %v6712_v21 = vpack.c.bf16 %v360_v3, %v343_v5 }
 0x183   :  { %v5858_v19 = vunpack.i.h.bf16 %v5856_v9  ;;  %v5857_v20 = vunpack.i.l.bf16 %v5856_v9  ;;  %v6715_v22 = vpack.c.bf16 %v359_v16, %v342_v14  ;;  %v6720_v28 = vsel %vm375_vm10, %v6592_v26, %v370_v7 }
 0x184   :  { %5528 = vmatpush1.bf16.msra.mxu0 %v6705_v10  ;;  %v6730_v36 = vsel %vm375_vm10, %v370_v7, %v6590_v25 }
 0x185   :  { %v395_v29 = vsel %vm9817_vm11, %v5857_v20, %v5858_v19  ;;  %5578 = vmatprep.subr.bf16.mxu1 %v6715_v22 }
 0x186   :  { %v374_v30 = vpop.permute.xlu0 %373  ;;  %v5861_v31 = vpop.permute.xlu1 %5860  ;;  %v5529_v33 = vpack.c.bf16 %v395_v29, %v6720_v28  ;;  %5580 = vmatpush1.bf16.msra.mxu1 %v6712_v21 }
 0x187   :  { %v5863_v34 = vunpack.i.h.bf16 %v5861_v31  ;;  %v5862_v35 = vunpack.i.l.bf16 %v5861_v31  ;;  %v6735_v37 = vsel %vm375_vm10, %v6590_v25, %v374_v30  ;;  %v6741_v39 = vsel %vm375_vm10, %v374_v30, %v6592_v26 }
 0x188   :  { %5530 = vmatprep.subr.bf16.mxu0 %v5529_v33 }
 0x189   :  { %v394_v40 = vsel %vm9817_vm11, %v5858_v19, %v5863_v34  ;;  %v396_v41 = vsel %vm9817_vm11, %v5862_v35, %v5857_v20  ;;  %v393_v42 = vsel %vm9817_vm11, %v5863_v34, %v5862_v35  ;;  %vm464_vm11 = vcmp.lt.s32.totalorder %v6595_v27, 127 }
 0x18a   :  { %v5871_v43 = vpop.permute.xlu0 %5870  ;;  %v5866_v25 = vpop.permute.xlu1 %5865  ;;  %v5531_v45 = vpack.c.bf16 %v396_v41, %v6741_v39  ;;  %v5581_v46 = vpack.c.bf16 %v393_v42, %v6735_v37  ;;  %v5583_v48 = vpack.c.bf16 %v394_v40, %v6730_v36 }
 0x18b   :  { %v5873_v26 = vunpack.i.h.bf16 %v5871_v43  ;;  %v5872_v50 = vunpack.i.l.bf16 %v5871_v43  ;;  %v5868_v51 = vunpack.i.h.bf16 %v5866_v25  ;;  %v5867_v53 = vunpack.i.l.bf16 %v5866_v25 }
 0x18c   :  { %5532 = vmatpush1.bf16.msra.mxu0 %v5531_v45  ;;  %5582 = vmatprep.subr.bf16.mxu1 %v5581_v46 }
 0x18d   :  { %5584 = vmatpush1.bf16.msra.mxu1 %v5583_v48  ;;  %v412_v55 = vsel %vm9822_vm13, %v5867_v53, %v5868_v51  ;;  %v429_v56 = vsel %vm9819_vm12, %v5872_v50, %v5873_v26 }
 0x18e   :  { %v5881_v58 = vpop.permute.xlu0 %5880  ;;  %v5876_v59 = vpop.permute.xlu1 %5875  ;;  %v5533_v61 = vpack.c.bf16 %v429_v56, %v412_v55 }
 0x18f   :  { %v5883_v63 = vunpack.i.h.bf16 %v5881_v58  ;;  %v5882_v1 = vunpack.i.l.bf16 %v5881_v58  ;;  %v5878_v2 = vunpack.i.h.bf16 %v5876_v59  ;;  %v5877_v3 = vunpack.i.l.bf16 %v5876_v59 }
 0x190   :  { %5534 = vmatprep.subr.bf16.mxu0 %v5533_v61 }
 0x191   :  { %v428_v4 = vsel %vm9819_vm12, %v5873_v26, %v5883_v63  ;;  %v430_v5 = vsel %vm9819_vm12, %v5882_v1, %v5872_v50  ;;  %v411_v6 = vsel %vm9822_vm13, %v5868_v51, %v5878_v2  ;;  %v413_v7 = vsel %vm9822_vm13, %v5877_v3, %v5867_v53 }
 0x192   :  { %v5891_v9 = vpop.permute.xlu0 %5890  ;;  %v5886_v14 = vpop.permute.xlu1 %5885  ;;  %v5535_v16 = vpack.c.bf16 %v430_v5, %v413_v7  ;;  %v410_v19 = vsel %vm9822_vm13, %v5878_v2, %v5877_v3  ;;  %v427_v20 = vsel %vm9819_vm12, %v5883_v63, %v5882_v1  ;;  %v5587_v29 = vpack.c.bf16 %v428_v4, %v411_v6 }
 0x193   :  { %v5893_v30 = vunpack.i.h.bf16 %v5891_v9  ;;  %v5892_v31 = vunpack.i.l.bf16 %v5891_v9  ;;  %v5888_v33 = vunpack.i.h.bf16 %v5886_v14  ;;  %v5887_v34 = vunpack.i.l.bf16 %v5886_v14 }
 0x194   :  { %5536 = vmatpush1.bf16.msra.mxu0 %v5535_v16  ;;  %v5585_v35 = vpack.c.bf16 %v427_v20, %v410_v19  ;;  %vm498_vm12 = vcmp.lt.s32.totalorder %v6595_v27, 120 }
 0x195   :  { %v445_v40 = vsel %vm9818_vm14, %v5888_v33, %v5893_v30  ;;  %v447_v41 = vsel %vm9818_vm14, %v5892_v31, %v5887_v34  ;;  %v446_v42 = vsel %vm9818_vm14, %v5887_v34, %v5888_v33  ;;  %v444_v43 = vsel %vm9818_vm14, %v5893_v30, %v5892_v31 }
 0x196   :  { %5586 = vmatprep.subr.bf16.mxu1 %v5585_v35  ;;  %v5901_v25 = vpop.permute.xlu0 %5900  ;;  %v5896_v45 = vpop.permute.xlu1 %5895  ;;  %v5537_v46 = vpack.c.bf16 %v6521_v15, %v446_v42  ;;  %v5589_v48 = vpack.c.bf16 %v6530_v17, %v444_v43  ;;  %v5539_v26 = vpack.c.bf16 %v6515_v11, %v447_v41  ;;  %v5591_v50 = vpack.c.bf16 %v6518_v12, %v445_v40 }
 0x197   :  { %5588 = vmatpush1.bf16.msra.mxu1 %v5587_v29  ;;  %v5903_v51 = vunpack.i.h.bf16 %v5901_v25  ;;  %v5902_v53 = vunpack.i.l.bf16 %v5901_v25  ;;  %v5898_v55 = vunpack.i.h.bf16 %v5896_v45  ;;  %v5897_v56 = vunpack.i.l.bf16 %v5896_v45 }
 0x198   :  { %5538 = vmatprep.subr.bf16.mxu0 %v5537_v46  ;;  %5590 = vmatprep.subr.bf16.mxu1 %v5589_v48  ;;  %vm515_vm14 = vcmp.lt.s32.totalorder %v6595_v27, 119 }
 0x199   :  { %5540 = vmatpush1.bf16.msra.mxu0 %v5539_v26  ;;  %v466_v58 = vsel %vm464_vm11, %v5897_v56, %v5898_v55  ;;  %v483_v15 = vsel %vm9820_vm15, %v5902_v53, %v5903_v51 }
 0x19a   :  { %v5911_v59 = vpop.permute.xlu0 %5910  ;;  %v5906_v17 = vpop.permute.xlu1 %5905  ;;  %v5541_v61 = vpack.c.bf16 %v483_v15, %v466_v58 }
 0x19b   :  { %5592 = vmatpush1.bf16.msra.mxu1 %v5591_v50  ;;  %v5913_v11 = vunpack.i.h.bf16 %v5911_v59  ;;  %v5912_v12 = vunpack.i.l.bf16 %v5911_v59  ;;  %v5908_v63 = vunpack.i.h.bf16 %v5906_v17  ;;  %v5907_v1 = vunpack.i.l.bf16 %v5906_v17 }
 0x19c   :  { %5542 = vmatprep.subr.bf16.mxu0 %v5541_v61 }
 0x19d   :  { %v482_v2 = vsel %vm9820_vm15, %v5903_v51, %v5913_v11  ;;  %v484_v3 = vsel %vm9820_vm15, %v5912_v12, %v5902_v53  ;;  %v465_v4 = vsel %vm464_vm11, %v5898_v55, %v5908_v63  ;;  %v467_v5 = vsel %vm464_vm11, %v5907_v1, %v5897_v56 }
 0x19e   :  { %v5921_v6 = vpop.permute.xlu0 %5920  ;;  %v5916_v7 = vpop.permute.xlu1 %5915  ;;  %v5543_v9 = vpack.c.bf16 %v484_v3, %v467_v5  ;;  %v468_v14 = vsel %vm464_vm11, %v5908_v63, %v5907_v1  ;;  %v485_v16 = vsel %vm9820_vm15, %v5913_v11, %v5912_v12  ;;  %v5595_v19 = vpack.c.bf16 %v482_v2, %v465_v4 }
 0x19f   :  { %v5923_v20 = vunpack.i.h.bf16 %v5921_v6  ;;  %v5922_v29 = vunpack.i.l.bf16 %v5921_v6  ;;  %v5918_v30 = vunpack.i.h.bf16 %v5916_v7  ;;  %v5917_v31 = vunpack.i.l.bf16 %v5916_v7 }
 0x1a0   :  { %5544 = vmatpush1.bf16.msra.mxu0 %v5543_v9  ;;  %v5593_v33 = vpack.c.bf16 %v485_v16, %v468_v14  ;;  %vm9821_vm15 = vcmask 1047556  }
 0x1a1   :  { %v500_v34 = vsel %vm498_vm12, %v5917_v31, %v5918_v30  ;;  %v517_v35 = vsel %vm515_vm14, %v5922_v29, %v5923_v20 }
 0x1a2   :  { %5594 = vmatprep.subr.bf16.mxu1 %v5593_v33  ;;  %v508_v40 = vpop.permute.xlu0 %507  ;;  %v5926_v41 = vpop.permute.xlu1 %5925  ;;  %v5545_v42 = vpack.c.bf16 %v517_v35, %v500_v34 }
 0x1a3   :  { %5596 = vmatpush1.bf16.msra.mxu1 %v5595_v19  ;;  %v5928_v43 = vunpack.i.h.bf16 %v5926_v41  ;;  %v5927_v25 = vunpack.i.l.bf16 %v5926_v41  ;;  %v518_v45 = vsel %vm515_vm14, %v508_v40, %v5922_v29 }
 0x1a4   :  { %5546 = vmatprep.subr.bf16.mxu0 %v5545_v42 }
 0x1a5   :  { %v501_v46 = vsel %vm498_vm12, %v5927_v25, %v5917_v31  ;;  %v499_v50 = vsel %vm498_vm12, %v5918_v30, %v5928_v43  ;;  %v502_v55 = vsel %vm498_vm12, %v5928_v43, %v5927_v25 }
 0x1a6   :  { %v514_v48 = vpop.permute.xlu1 %513  ;;  %v5547_v26 = vpack.c.bf16 %v518_v45, %v501_v46 }
 0x1a7   :  { %v516_v51 = vsel %vm515_vm14, %v5923_v20, %v514_v48  ;;  %v519_v53 = vsel %vm515_vm14, %v514_v48, %v508_v40 }
 0x1a8   :  { %v5599_v56 = vpack.c.bf16 %v516_v51, %v499_v50  ;;  %5548 = vmatpush1.bf16.msra.mxu0 %v5547_v26  ;;  %v5597_v58 = vpack.c.bf16 %v519_v53, %v502_v55  ;;  %v49_v51 = vld [vmem:[%s9815_s6 + $0x18] sm:$0xf] }
 0x1a9   :  { %5550 = vmatprep.subr.bf16.mxu0 %v6622_v52  ;;  %v6845_v52 = vpop.f32.mrb[2].mxu1 }
 0x1aa   :  { %5598 = vmatprep.subr.bf16.mxu1 %v5597_v58 }
 0x1ab   :  { %5600 = vmatpush1.bf16.msra.mxu1 %v5599_v56 }
 0x1ac   :  { %5552 = vmatpush1.bf16.msra.mxu0 %v6603_v38  ;;  %5602 = vmatprep.subr.bf16.mxu1 %v6616_v49  ;;  %v43_v38 = vld [vmem:[%s9812_s3] sm:$0xff]  ;;  %v6843_v49 = vpop.f32.mrb[2].mxu0 }
 0x1ad   :  { %5554 = vmatprep.subr.bf16.mxu0 %v6652_v18 }
 0x1af   :  { %5604 = vmatpush1.bf16.msra.mxu1 %v6625_v57  ;;  %v6847_v57 = vpop.f32.mrb[3].mxu0 }
 0x1b0   :  { %5556 = vmatpush1.bf16.msra.mxu0 %v6632_v62  ;;  %5606 = vmatprep.subr.bf16.mxu1 %v6646_v13  ;;  %v6849_v62 = vpop.f32.mrb[3].mxu1  ;;  %v6852_v13 = vshrl.u32 %v237_v24, 7 }
 0x1b1   :  { %5558 = vmatprep.subr.bf16.mxu0 %v6682_v47 }
 0x1b2   :  { %9903 = vst [vmem:[#allocation7_spill] sm:$0xff] %v6852_v13  ;;  %v9830_v18 = vsub.s32 0, %v6852_v13 }
 0x1b3   :  { %5608 = vmatpush1.bf16.msra.mxu1 %v6655_v23  ;;  %v38_v23 = vld [vmem:[%s9810_s1] ss:$2 sm:$0xf] }
 0x1b4   :  { %5560 = vmatpush1.bf16.msra.mxu0 %v6662_v32  ;;  %5610 = vmatprep.subr.bf16.mxu1 %v6676_v44  ;;  %v9829_v32 = vsub.s32 1, %v6852_v13  ;;  %v9828_v44 = vsub.s32 2, %v6852_v13  ;;  %v6862_v47 = vrot.slane %v38_v23, %v9830_v18 }
 0x1b5   :  { %5562 = vmatprep.subr.bf16.mxu0 %v6712_v21 }
 0x1b7   :  { %5612 = vmatpush1.bf16.msra.mxu1 %v6685_v54  ;;  %v9827_v54 = vsub.s32 3, %v6852_v13 }
 0x1b8   :  { %5564 = vmatpush1.bf16.msra.mxu0 %v6692_v60  ;;  %5614 = vmatprep.subr.bf16.mxu1 %v6705_v10  ;;  %v6865_v60 = vpop.permute.xlu0 %670  ;;  %v6869_v10 = vrot.slane %v38_v23, %v9829_v32 }
 0x1b9   :  { %729 = vmatprep.subr.mxu0 %v6730_v36  ;;  %v6879_v36 = vrot.slane %v38_v23, %v9828_v44  ;;  %v6885_v15 = vrot.slane %v38_v23, %v9827_v54 }
 0x1bb   :  { %5616 = vmatpush1.bf16.msra.mxu1 %v6715_v22 }
 0x1bc   :  { %730 = vmatpush1.msra.mxu0 %v6720_v28  ;;  %800 = vmatprep.subr.mxu1 %v6741_v39 }
 0x1bd   :  { %742 = vmatmul.mubr.f32.vlgmr.msra.gmra.mrb[4].mxu0 %v43_v38 }
 0x1be   :  { %1094 = vmatprep.mubr.f32.mxu0 %v9831_v0 }
 0x1bf   :  { %801 = vmatpush1.msra.mxu1 %v6735_v37 }
 0x1c0   :  { %813 = vmatmul.mubr.f32.vlgmr.msra.gmra.mrb[4].mxu1 %v43_v38 }
 0x1c1   :  { %1165 = vmatprep.mubr.f32.mxu1 %v9831_v0 }
 0x290   :  { %v743_v24 = vpop.f32.mrb[4].mxu0 }
 0x291   :  { %v6872_v21 = vadd.f32 %v743_v24, %v6865_v60  ;;  %v745_v22 = vpop.f32.mrb[5].mxu0 }
 0x292   :  { %v6875_v28 = vadd.f32 %v745_v22, %v6865_v60 }
 0x293   :  { %v840_v37 = vmul.f32 %v6862_v47, %v6872_v21  ;;  %v814_v39 = vpop.f32.mrb[4].mxu1 }
 0x294   :  { %v841_v59 = vmul.f32 %v6869_v10, %v6875_v28  ;;  %v6890_v17 = vadd.f32 %v814_v39, %v6865_v60  ;;  %v816_v61 = vpop.f32.mrb[5].mxu1 }
 0x295   :  { %v6893_v11 = vadd.f32 %v816_v61, %v6865_v60  ;;  %v845_v12 = vsel %vm9821_vm15, %v840_v37, 0.0 }
 0x296   :  { %v842_v63 = vmul.f32 %v6879_v36, %v6890_v17  ;;  %v846_v1 = vsel %vm9821_vm15, %v841_v59, 0.0 }
 0x297   :  { %v843_v2 = vmul.f32 %v6885_v15, %v6893_v11  ;;  %v847_v3 = vadd.f32 %v846_v1, %v845_v12 }
 0x298   :  { %v848_v4 = vsel %vm9821_vm15, %v842_v63, 0.0 }
 0x299   :  { %v849_v5 = vadd.f32 %v848_v4, %v847_v3  ;;  %v850_v6 = vsel %vm9821_vm15, %v843_v2, 0.0 }
 0x29b   :  { %v851_v7 = vadd.f32 %v850_v6, %v849_v5 }
 0x29d   :  { %852 = vadd.xlane.f32.xlu1 %v851_v7 }
 0x32a   :  { %v853_v9 = vpop.xlane.xlu1 %852 }
 0x32b   :  { %v855_v14 = vmul.f32 0.0046296297, %v853_v9 }
 0x32d   :  { %v856_v16 = vsub.f32 %v6872_v21, %v855_v14  ;;  %v857_v19 = vsub.f32 %v6875_v28, %v855_v14  ;;  %v858_v20 = vsub.f32 %v6890_v17, %v855_v14  ;;  %v859_v29 = vsub.f32 %v6893_v11, %v855_v14 }
 0x32f   :  { %v860_v30 = vmul.f32 %v856_v16, %v6862_v47  ;;  %v861_v31 = vmul.f32 %v857_v19, %v6869_v10  ;;  %v862_v33 = vmul.f32 %v858_v20, %v6879_v36  ;;  %v863_v34 = vmul.f32 %v859_v29, %v6885_v15 }
 0x331   :  { %v864_v35 = vmul.f32 %v860_v30, %v860_v30  ;;  %v865_v40 = vmul.f32 %v861_v31, %v861_v31  ;;  %v866_v41 = vmul.f32 %v862_v33, %v862_v33  ;;  %v867_v42 = vmul.f32 %v863_v34, %v863_v34 }
 0x333   :  { %v868_v43 = vsel %vm9821_vm15, %v864_v35, 0.0  ;;  %v869_v25 = vsel %vm9821_vm15, %v865_v40, 0.0  ;;  %v871_v46 = vsel %vm9821_vm15, %v866_v41, 0.0  ;;  %v873_v26 = vsel %vm9821_vm15, %v867_v42, 0.0 }
 0x334   :  { %v870_v45 = vadd.f32 %v869_v25, %v868_v43 }
 0x336   :  { %v872_v48 = vadd.f32 %v871_v46, %v870_v45 }
 0x338   :  { %v874_v50 = vadd.f32 %v873_v26, %v872_v48 }
 0x33a   :  { %875 = vadd.xlane.f32.xlu0 %v874_v50 }
 0x350   :  { %1010 = vperm.xlu0 %5773, %v49_v51  }
 0x3c7   :  { %v876_v53 = vpop.xlane.xlu0 %875 }
 0x3c8   :  { %v877_v55 = vmul.f32 0.0046296297, %v876_v53 }
 0x3ca   :  { %v878_v56 = vadd.f32 1e-05, %v877_v55 }
 0x3cc   :  { %6085 = vrsqrt.f32 %v878_v56 }
 0x3d6   :  { %v6086_v58 = vpop.eup %6085 }
 0x3d7   :  { %v6918_v38 = vmul.f32 %v6086_v58, %v861_v31  ;;  %v6920_v23 = vmul.f32 %v6086_v58, %v863_v34  ;;  %v6922_v24 = vmul.f32 %v6086_v58, %v860_v30  ;;  %v6924_v22 = vmul.f32 %v6086_v58, %v862_v33 }
 0x3d9   :  { %v6927_v37 = vmul.f32 0.70710677, %v6918_v38  ;;  %v6930_v39 = vmul.f32 0.70710677, %v6920_v23  ;;  %v6933_v59 = vmul.f32 0.70710677, %v6922_v24 }
 0x3da   :  { %v6936_v61 = vmul.f32 0.70710677, %v6924_v22 }
 0x3db   :  { %v893_v12 = vand.u32 2147483647, %v6927_v37  ;;  %v895_v63 = vand.u32 2147483647, %v6930_v39  ;;  %v892_v1 = vand.u32 2147483647, %v6933_v59 }
 0x3dc   :  { %v894_v2 = vand.u32 2147483647, %v6936_v61  ;;  %vm973_vm15 = vcmp.ge.f32.partialorder %v6927_v37, 0.0  ;;  %vm975_vm13 = vcmp.ge.f32.partialorder %v6930_v39, 0.0  ;;  %vm972_vm9 = vcmp.ge.f32.partialorder %v6933_v59, 0.0 }
 0x3dd   :  { %v897_v3 = vmul.f32 0.3275911, %v893_v12  ;;  %v899_v4 = vmul.f32 0.3275911, %v895_v63  ;;  %v896_v5 = vmul.f32 0.3275911, %v892_v1 }
 0x3de   :  { %v898_v9 = vmul.f32 0.3275911, %v894_v2  ;;  %v949_v19 = vsub.f32 0.0, %v893_v12  ;;  %v951_v20 = vsub.f32 0.0, %v895_v63  ;;  %v948_v31 = vsub.f32 0.0, %v892_v1 }
 0x3df   :  { %v901_v6 = vadd.f32 1.0, %v897_v3  ;;  %v903_v7 = vadd.f32 1.0, %v899_v4  ;;  %v900_v14 = vadd.f32 1.0, %v896_v5  ;;  %v950_v41 = vsub.f32 0.0, %v894_v2 }
 0x3e0   :  { %v902_v16 = vadd.f32 1.0, %v898_v9  ;;  %v953_v30 = vmul.f32 %v949_v19, %v893_v12  ;;  %v955_v35 = vmul.f32 %v951_v20, %v895_v63  ;;  %v952_v46 = vmul.f32 %v948_v31, %v892_v1 }
 0x3e1   :  { %6087 = vrcp.f32 %v901_v6  ;;  %v954_v55 = vmul.f32 %v950_v41, %v894_v2  ;;  %v884_v39 = vmul.f32 0.5, %v6922_v24 }
 0x3e2   :  { %6089 = vrcp.f32 %v903_v7  ;;  %v958_v25 = vmul.f32 1.442695, %v953_v30  ;;  %v962_v26 = vmul.f32 1.442695, %v955_v35  ;;  %v956_v4 = vmul.f32 1.442695, %v952_v46 }
 0x3e3   :  { %6091 = vrcp.f32 %v900_v14  ;;  %v960_v9 = vmul.f32 1.442695, %v954_v55 }
 0x3e4   :  { %6093 = vrcp.f32 %v902_v16 }
 0x3e5   :  { %6095 = vpow2.f32 %v958_v25 }
 0x3e6   :  { %6097 = vpow2.f32 %v962_v26 }
 0x3e7   :  { %6099 = vpow2.f32 %v956_v4 }
 0x3e8   :  { %6101 = vpow2.f32 %v960_v9 }
 0x3eb   :  { %v6088_v29 = vpop.eup %6087 }
 0x3ec   :  { %v6090_v33 = vpop.eup %6089  ;;  %v913_v34 = vmul.f32 1.0614054, %v6088_v29 }
 0x3ed   :  { %v915_v40 = vmul.f32 1.0614054, %v6090_v33  ;;  %v6092_v43 = vpop.eup %6091 }
 0x3ee   :  { %v917_v42 = vadd.f32 -1.4531521, %v913_v34  ;;  %v912_v50 = vmul.f32 1.0614054, %v6092_v43  ;;  %v6094_v51 = vpop.eup %6093 }
 0x3ef   :  { %v919_v45 = vadd.f32 -1.4531521, %v915_v40  ;;  %v914_v12 = vmul.f32 1.0614054, %v6094_v51  ;;  %v6096_v46 = vpop.eup %6095 }
 0x3f0   :  { %v921_v48 = vmul.f32 %v6088_v29, %v917_v42  ;;  %v916_v58 = vadd.f32 -1.4531521, %v912_v50  ;;  %v6098_v26 = vpop.eup %6097 }
 0x3f1   :  { %v923_v53 = vmul.f32 %v6090_v33, %v919_v45  ;;  %v918_v6 = vadd.f32 -1.4531521, %v914_v12  ;;  %v6100_v4 = vpop.eup %6099 }
 0x3f2   :  { %v925_v56 = vadd.f32 1.4214138, %v921_v48  ;;  %v920_v5 = vmul.f32 %v6092_v43, %v916_v58  ;;  %v6102_v9 = vpop.eup %6101 }
 0x3f3   :  { %v927_v3 = vadd.f32 1.4214138, %v923_v53  ;;  %v922_v16 = vmul.f32 %v6094_v51, %v918_v6 }
 0x3f4   :  { %v929_v63 = vmul.f32 %v6088_v29, %v925_v56  ;;  %v924_v1 = vadd.f32 1.4214138, %v920_v5 }
 0x3f5   :  { %v931_v7 = vmul.f32 %v6090_v33, %v927_v3  ;;  %v926_v2 = vadd.f32 1.4214138, %v922_v16  ;;  %v885_v16 = vmul.f32 0.5, %v6918_v38 }
 0x3f6   :  { %v933_v14 = vadd.f32 -0.28449672, %v929_v63  ;;  %v928_v30 = vmul.f32 %v6092_v43, %v924_v1 }
 0x3f7   :  { %v935_v19 = vadd.f32 -0.28449672, %v931_v7  ;;  %v930_v40 = vmul.f32 %v6094_v51, %v926_v2 }
 0x3f8   :  { %v937_v20 = vmul.f32 %v6088_v29, %v933_v14  ;;  %v932_v35 = vadd.f32 -0.28449672, %v928_v30 }
 0x3f9   :  { %v939_v31 = vmul.f32 %v6090_v33, %v935_v19  ;;  %v934_v45 = vadd.f32 -0.28449672, %v930_v40 }
 0x3fa   :  { %v941_v34 = vadd.f32 0.2548296, %v937_v20  ;;  %v936_v25 = vmul.f32 %v6092_v43, %v932_v35 }
 0x3fb   :  { %v943_v41 = vadd.f32 0.2548296, %v939_v31  ;;  %v938_v55 = vmul.f32 %v6094_v51, %v934_v45  ;;  %v886_v45 = vmul.f32 0.5, %v6924_v22 }
 0x3fc   :  { %v945_v42 = vmul.f32 %v6088_v29, %v941_v34  ;;  %v940_v53 = vadd.f32 0.2548296, %v936_v25 }
 0x3fd   :  { %v947_v48 = vmul.f32 %v6090_v33, %v943_v41  ;;  %v942_v3 = vadd.f32 0.2548296, %v938_v55 }
 0x3fe   :  { %v965_v50 = vmul.f32 %v6096_v46, %v945_v42  ;;  %v944_v12 = vmul.f32 %v6092_v43, %v940_v53  ;;  %v887_v43 = vmul.f32 0.5, %v6920_v23 }
 0x3ff   :  { %v967_v56 = vmul.f32 %v6098_v26, %v947_v48  ;;  %v946_v7 = vmul.f32 %v6094_v51, %v942_v3 }
 0x400   :  { %v969_v58 = vsub.f32 1.0, %v965_v50  ;;  %v964_v6 = vmul.f32 %v6100_v4, %v944_v12  ;;  %v45_v50 = vld [vmem:[#allocation4] sm:$0xf] }
 0x401   :  { %v971_v63 = vsub.f32 1.0, %v967_v56  ;;  %v966_v1 = vmul.f32 %v6102_v9, %v946_v7 }
 0x402   :  { %v977_v5 = vsub.f32 0.0, %v969_v58  ;;  %v968_v33 = vsub.f32 1.0, %v964_v6 }
 0x403   :  { %v979_v29 = vsub.f32 0.0, %v971_v63  ;;  %v970_v31 = vsub.f32 1.0, %v966_v1 }
 0x404   :  { %v981_v14 = vsel %vm973_vm15, %v969_v58, %v977_v5  ;;  %v976_v2 = vsub.f32 0.0, %v968_v33  ;;  %vm974_vm15 = vcmp.ge.f32.partialorder %v6936_v61, 0.0 }
 0x405   :  { %v985_v19 = vadd.f32 1.0, %v981_v14  ;;  %v983_v20 = vsel %vm975_vm13, %v971_v63, %v979_v29  ;;  %v978_v35 = vsub.f32 0.0, %v970_v31  ;;  %vm1401_vm13 = vcmask 261120  }
 0x406   :  { %v987_v30 = vadd.f32 1.0, %v983_v20  ;;  %v980_v37 = vsel %vm972_vm9, %v968_v33, %v976_v2  ;;  %vm1013_vm9 = vcmask 31744  }
 0x407   :  { %v989_v34 = vmul.f32 %v985_v19, %v885_v16  ;;  %v984_v41 = vadd.f32 1.0, %v980_v37  ;;  %v982_v42 = vsel %vm974_vm15, %v970_v31, %v978_v35 }
 0x408   :  { %v991_v51 = vmul.f32 %v987_v30, %v887_v43  ;;  %v986_v46 = vadd.f32 1.0, %v982_v42 }
 0x409   :  { %v997_v40 = vrot.slane %v989_v34, 4  ;;  %v988_v25 = vmul.f32 %v984_v41, %v884_v39  ;;  %v47_v41 = vld [vmem:[%s9815_s6 + $0x8] sm:$0xf] }
 0x40a   :  { %v999_v38 = vrot.slane %v991_v51, 4  ;;  %v990_v26 = vmul.f32 %v986_v46, %v886_v45 }
 0x40b   :  { %v1005_v23 = vmul.f32 %v997_v40, %v6875_v28  ;;  %v996_v48 = vrot.slane %v988_v25, 4 }
 0x40c   :  { %v1007_v59 = vmul.f32 %v999_v38, %v6893_v11  ;;  %v998_v61 = vrot.slane %v990_v26, 4  ;;  %v6962_v11 = vpop.permute.xlu0 %1010 }
 0x40d   :  { %5451 = vmatprep.subr.msk.mxu0 %vm1017_vm4, %v1005_v23  ;;  %v1004_v24 = vmul.f32 %v996_v48, %v6872_v21 }
 0x40e   :  { %5454 = vmatprep.subr.msk.mxu1 %vm1017_vm4, %v1007_v59  ;;  %v1006_v28 = vmul.f32 %v998_v61, %v6890_v17 }
 0x40f   :  { %5452 = vmatpush1.msk.msra.mxu0 %vm1017_vm4, %v1004_v24 }
 0x410   :  { %5453 = vmatmul.mubr.msk.f32.vlgmr.msra.gmra.mrb[6].mxu0 %vm1013_vm9, %v45_v50  ;;  %5455 = vmatpush1.msk.msra.mxu1 %vm1017_vm4, %v1006_v28 }
 0x411   :  { %1472 = vmatprep.mubr.f32.mxu0 %v9831_v0  ;;  %5456 = vmatmul.mubr.msk.f32.vlgmr.msra.gmra.mrb[6].mxu1 %vm1013_vm9, %v45_v50 }
 0x412   :  { %1549 = vmatprep.mubr.f32.mxu1 %v9831_v0 }
 0x4e3   :  { %v1096_v21 = vpop.f32.mrb[6].mxu0 }
 0x4e4   :  { %v1097_v22 = vadd.f32 %v1096_v21, %v6962_v11  ;;  %v1098_v53 = vpop.f32.mrb[7].mxu0  ;;  %v1167_v55 = vpop.f32.mrb[6].mxu1 }
 0x4e5   :  { %v1099_v56 = vadd.f32 %v1098_v53, %v6962_v11  ;;  %v1168_v58 = vadd.f32 %v1167_v55, %v6962_v11  ;;  %v1169_v12 = vpop.f32.mrb[7].mxu1 }
 0x4e6   :  { %v1172_v17 = vsel %vm1017_vm4, %v1097_v22, 0.0  ;;  %v1170_v4 = vadd.f32 %v1169_v12, %v6962_v11 }
 0x4e7   :  { %v1173_v3 = vsel %vm1017_vm4, %v1099_v56, 0.0  ;;  %v1175_v5 = vsel %vm1017_vm4, %v1168_v58, 0.0 }
 0x4e8   :  { %v1174_v63 = vadd.f32 %v1173_v3, %v1172_v17  ;;  %v1177_v7 = vsel %vm1017_vm4, %v1170_v4, 0.0 }
 0x4ea   :  { %v1176_v6 = vadd.f32 %v1175_v5, %v1174_v63 }
 0x4ec   :  { %v1178_v9 = vadd.f32 %v1177_v7, %v1176_v6 }
 0x4ee   :  { %1179 = vadd.xlane.f32.xlu1 %v1178_v9 }
 0x57b   :  { %v1180_v29 = vpop.xlane.xlu1 %1179 }
 0x57c   :  { %v1182_v14 = vmul.f32 0.001953125, %v1180_v29 }
 0x57e   :  { %v1183_v33 = vsub.f32 %v1097_v22, %v1182_v14  ;;  %v1184_v1 = vsub.f32 %v1099_v56, %v1182_v14  ;;  %v1185_v16 = vsub.f32 %v1168_v58, %v1182_v14  ;;  %v1186_v19 = vsub.f32 %v1170_v4, %v1182_v14 }
 0x580   :  { %v1187_v20 = vmul.f32 %v1183_v33, %v1183_v33  ;;  %v1188_v43 = vmul.f32 %v1184_v1, %v1184_v1  ;;  %v1189_v30 = vmul.f32 %v1185_v16, %v1185_v16  ;;  %v1190_v2 = vmul.f32 %v1186_v19, %v1186_v19 }
 0x582   :  { %v1191_v31 = vsel %vm1017_vm4, %v1187_v20, 0.0  ;;  %v1192_v34 = vsel %vm1017_vm4, %v1188_v43, 0.0  ;;  %v1194_v37 = vsel %vm1017_vm4, %v1189_v30, 0.0  ;;  %v1196_v40 = vsel %vm1017_vm4, %v1190_v2, 0.0 }
 0x583   :  { %v1193_v51 = vadd.f32 %v1192_v34, %v1191_v31 }
 0x585   :  { %v1195_v35 = vadd.f32 %v1194_v37, %v1193_v51 }
 0x587   :  { %v1197_v39 = vadd.f32 %v1196_v40, %v1195_v35 }
 0x589   :  { %1198 = vadd.xlane.f32.xlu1 %v1197_v39 }
 0x59a   :  { %65 = vperm.xlu1 %5929, %v47_v41  }
 0x616   :  { %v1199_v38 = vpop.xlane.xlu1 %1198 }
 0x617   :  { %v1200_v42 = vmul.f32 0.001953125, %v1199_v38 }
 0x619   :  { %v1201_v23 = vadd.f32 1e-05, %v1200_v42 }
 0x61a   :  { %v6979_v25 = vpop.permute.xlu1 %65 }
 0x61b   :  { %6103 = vrsqrt.f32 %v1201_v23  ;;  %v148_v46 = vadd.f32 %v6843_v49, %v6979_v25  ;;  %v150_v59 = vadd.f32 %v6847_v57, %v6979_v25  ;;  %v225_v48 = vadd.f32 %v6845_v52, %v6979_v25 }
 0x61c   :  { %v227_v26 = vadd.f32 %v6849_v62, %v6979_v25 }
 0x625   :  { %v6104_v45 = vpop.eup %6103 }
 0x626   :  { %v1203_v24 = vmul.f32 %v6104_v45, %v1183_v33  ;;  %v1204_v61 = vmul.f32 %v6104_v45, %v1184_v1  ;;  %v1205_v50 = vmul.f32 %v6104_v45, %v1185_v16  ;;  %v1206_v28 = vmul.f32 %v6104_v45, %v1186_v19 }
 0x628   :  { %v1207_v21 = vadd.f32 %v1203_v24, %v148_v46  ;;  %v1208_v22 = vadd.f32 %v1204_v61, %v150_v59  ;;  %v1209_v53 = vadd.f32 %v1205_v50, %v225_v48  ;;  %v1210_v55 = vadd.f32 %v1206_v28, %v227_v26 }
 0x62a   :  { %1211 = vst [vmem:[#allocation3] sm:$0xf] %v1207_v21  ;;  %1212 = vst [vmem:[#allocation3 + $0x8] sm:$0xf] %v1208_v22  ;;  %1261 = vrot.lane.b32.xlu1 %v1208_v22, %s9825_s16  ;;  %1217 = vrot.lane.b32.xlu0 %v1208_v22, %s6433_s15 }
 0x62b   :  { %1213 = vst [vmem:[#allocation3 + $0x10] sm:$0xf] %v1209_v53  ;;  %1214 = vst [vmem:[#allocation3 + $0x18] sm:$0xf] %v1210_v55 }
 0x62e   :  { %1219 = vrot.lane.b32.xlu0 %v1209_v53, %s6433_s15  ;;  %1215 = vrot.lane.b32.xlu1 %v1207_v21, %s6433_s15 }
 0x632   :  { %1263 = vrot.lane.b32.xlu0 %v1209_v53, %s9825_s16  ;;  %1259 = vrot.lane.b32.xlu1 %v1207_v21, %s9825_s16 }
 0x636   :  { %1221 = vrot.lane.b32.xlu0 %v1210_v55, %s6433_s15  ;;  %1245 = vrot.lane.b32.xlu1 %v1208_v22, %s6435_s17 }
 0x63a   :  { %1265 = vrot.lane.b32.xlu0 %v1210_v55, %s9825_s16  ;;  %1243 = vrot.lane.b32.xlu1 %v1207_v21, %s6435_s17 }
 0x63e   :  { %1247 = vrot.lane.b32.xlu0 %v1209_v53, %s6435_s17  ;;  %1305 = vrot.lane.b32.xlu1 %v1208_v22, %s6424_s29 }
 0x642   :  { %1249 = vrot.lane.b32.xlu0 %v1210_v55, %s6435_s17  ;;  %1349 = vrot.lane.b32.xlu1 %v1208_v22, %s6419_s24 }
 0x646   :  { %1307 = vrot.lane.b32.xlu0 %v1209_v53, %s6424_s29  ;;  %1303 = vrot.lane.b32.xlu1 %v1207_v21, %s6424_s29 }
 0x64a   :  { %1351 = vrot.lane.b32.xlu0 %v1209_v53, %s6419_s24  ;;  %1347 = vrot.lane.b32.xlu1 %v1207_v21, %s6419_s24 }
 0x64e   :  { %1309 = vrot.lane.b32.xlu0 %v1210_v55, %s6424_s29  ;;  %1289 = vrot.lane.b32.xlu1 %v1208_v22, %s6425_s30 }
 0x652   :  { %1353 = vrot.lane.b32.xlu0 %v1210_v55, %s6419_s24  ;;  %1333 = vrot.lane.b32.xlu1 %v1208_v22, %s6426_s8 }
 0x656   :  { %1291 = vrot.lane.b32.xlu0 %v1209_v53, %s6425_s30  ;;  %1287 = vrot.lane.b32.xlu1 %v1207_v21, %s6425_s30 }
 0x65a   :  { %1335 = vrot.lane.b32.xlu0 %v1209_v53, %s6426_s8  ;;  %1331 = vrot.lane.b32.xlu1 %v1207_v21, %s6426_s8 }
 0x65e   :  { %1293 = vrot.lane.b32.xlu0 %v1210_v55, %s6425_s30 }
 0x662   :  { %1337 = vrot.lane.b32.xlu0 %v1210_v55, %s6426_s8 }
 0x69c   :  { %v1262_v49 = vpop.permute.xlu1 %1261  ;;  %v1218_v52 = vpop.permute.xlu0 %1217 }
 0x6a0   :  { %v1220_v57 = vpop.permute.xlu0 %1219  ;;  %v1216_v62 = vpop.permute.xlu1 %1215 }
 0x6a1   :  { %v1224_v56 = vsel %vm464_vm11, %v1218_v52, %v1220_v57  ;;  %v1225_v17 = vsel %vm464_vm11, %v1216_v62, %v1218_v52 }
 0x6a2   :  { %v1232_v58 = vrot.slane %v1224_v56, 4  ;;  %v1231_v12 = vrot.slane %v1225_v17, 4 }
 0x6a4   :  { %1240 = vst [vmem:[#allocation3 + $0x8] sm:$0xf0] %v1232_v58  ;;  %1239 = vst [vmem:[#allocation3] sm:$0xf0] %v1231_v12  ;;  %v1264_v3 = vpop.permute.xlu0 %1263  ;;  %v1260_v4 = vpop.permute.xlu1 %1259 }
 0x6a5   :  { %v1268_v63 = vsel %vm515_vm14, %v1262_v49, %v1264_v3  ;;  %v1269_v5 = vsel %vm515_vm14, %v1260_v4, %v1262_v49 }
 0x6a6   :  { %v1276_v6 = vrot.slane %v1268_v63, 4  ;;  %v1275_v7 = vrot.slane %v1269_v5, 4 }
 0x6a8   :  { %1284 = vst [vmem:[#allocation3 + $0x28] sm:$0xf0] %v1276_v6  ;;  %1283 = vst [vmem:[#allocation3 + $0x20] sm:$0xf0] %v1275_v7  ;;  %v1222_v9 = vpop.permute.xlu0 %1221  ;;  %v1246_v29 = vpop.permute.xlu1 %1245 }
 0x6a9   :  { %v1223_v14 = vsel %vm464_vm11, %v1220_v57, %v1222_v9  ;;  %v1226_v33 = vsel %vm464_vm11, %v1222_v9, %v1216_v62 }
 0x6aa   :  { %v1233_v1 = vrot.slane %v1223_v14, 4  ;;  %v1234_v16 = vrot.slane %v1226_v33, 4 }
 0x6ab   :  { %v1376_v48 = vld [vmem:[#allocation3 + $0x8] sm:$0xff]  ;;  %v1375_v28 = vld [vmem:[#allocation3] sm:$0xff] }
 0x6ac   :  { %1241 = vst [vmem:[#allocation3 + $0x10] sm:$0xf0] %v1233_v1  ;;  %1242 = vst [vmem:[#allocation3 + $0x18] sm:$0xf0] %v1234_v16  ;;  %v1266_v19 = vpop.permute.xlu0 %1265  ;;  %v1244_v20 = vpop.permute.xlu1 %1243 }
 0x6ad   :  { %v1267_v43 = vsel %vm515_vm14, %v1264_v3, %v1266_v19  ;;  %v1270_v30 = vsel %vm515_vm14, %v1266_v19, %v1260_v4  ;;  %v1253_v2 = vsel %vm498_vm12, %v1244_v20, %v1246_v29 }
 0x6ae   :  { %v1277_v31 = vrot.slane %v1267_v43, 4  ;;  %v1278_v34 = vrot.slane %v1270_v30, 4  ;;  %1255 = vst [vmem:[#allocation3 + $0x20] sm:$0xf] %v1253_v2 }
 0x6b0   :  { %1285 = vst [vmem:[#allocation3 + $0x30] sm:$0xf0] %v1277_v31  ;;  %1286 = vst [vmem:[#allocation3 + $0x38] sm:$0xf0] %v1278_v34  ;;  %v1248_v51 = vpop.permute.xlu0 %1247  ;;  %v1306_v37 = vpop.permute.xlu1 %1305 }
 0x6b1   :  { %v1252_v35 = vsel %vm498_vm12, %v1246_v29, %v1248_v51 }
 0x6b2   :  { %1256 = vst [vmem:[#allocation3 + $0x28] sm:$0xf] %v1252_v35 }
 0x6b3   :  { %v1378_v55 = vld [vmem:[#allocation3 + $0x18] sm:$0xff]  ;;  %v1377_v62 = vld [vmem:[#allocation3 + $0x10] sm:$0xff] }
 0x6b4   :  { %v1250_v40 = vpop.permute.xlu0 %1249  ;;  %v1350_v39 = vpop.permute.xlu1 %1349 }
 0x6b5   :  { %v1251_v41 = vsel %vm498_vm12, %v1248_v51, %v1250_v40  ;;  %v1254_v38 = vsel %vm498_vm12, %v1250_v40, %v1244_v20  ;;  %v1379_v45 = vld [vmem:[#allocation3 + $0x20] sm:$0xff] }
 0x6b6   :  { %1257 = vst [vmem:[#allocation3 + $0x30] sm:$0xf] %v1251_v41  ;;  %1258 = vst [vmem:[#allocation3 + $0x38] sm:$0xf] %v1254_v38  ;;  %v5619_v21 = vpack.c.bf16 %v1379_v45, %v1375_v28  ;;  %v51_v28 = vld [vmem:[%s9814_s5 + $0x8] sm:$0xff] }
 0x6b8   :  { %v1308_v42 = vpop.permute.xlu0 %1307  ;;  %v1304_v23 = vpop.permute.xlu1 %1303 }
 0x6b9   :  { %v1312_v46 = vsel %vm324_vm6, %v1306_v37, %v1308_v42  ;;  %v1313_v59 = vsel %vm324_vm6, %v1304_v23, %v1306_v37  ;;  %v1380_v26 = vld [vmem:[#allocation3 + $0x28] sm:$0xff] }
 0x6ba   :  { %v1320_v24 = vrot.slane %v1312_v46, 4  ;;  %v1319_v61 = vrot.slane %v1313_v59, 4  ;;  %v5617_v50 = vpack.c.bf16 %v1380_v26, %v1376_v48 }
 0x6bc   :  { %1328 = vst [vmem:[#allocation3 + $0x48] sm:$0xf0] %v1320_v24  ;;  %1327 = vst [vmem:[#allocation3 + $0x40] sm:$0xf0] %v1319_v61  ;;  %v1352_v22 = vpop.permute.xlu0 %1351  ;;  %5618 = vmatprep.subr.bf16.mxu0 %v5617_v50  ;;  %v1348_v53 = vpop.permute.xlu1 %1347  ;;  %v5462_v24 = vld [vmem:[%s9809_s0 + $0x28] sm:$0xff]  ;;  %v50_v61 = vld [vmem:[%s9814_s5] sm:$0xff] }
 0x6bd   :  { %v1356_v49 = vsel %vm375_vm10, %v1350_v39, %v1352_v22  ;;  %v1357_v52 = vsel %vm375_vm10, %v1348_v53, %v1350_v39  ;;  %5620 = vmatpush1.bf16.msra.mxu0 %v5619_v21  ;;  %v1382_v57 = vld [vmem:[#allocation3 + $0x38] sm:$0xff]  ;;  %v1381_v56 = vld [vmem:[#allocation3 + $0x30] sm:$0xff]  ;;  %v5461_v50 = vld [vmem:[%s9809_s0 + $0x20] sm:$0xff] }
 0x6be   :  { %v1364_v17 = vrot.slane %v1356_v49, 4  ;;  %v1363_v58 = vrot.slane %v1357_v52, 4  ;;  %v5625_v12 = vpack.c.bf16 %v1382_v57, %v1378_v55  ;;  %v5627_v3 = vpack.c.bf16 %v1381_v56, %v1377_v62  ;;  %v5464_v57 = vld [vmem:[%s9809_s0 + $0x38] sm:$0xff]  ;;  %v5463_v62 = vld [vmem:[%s9809_s0 + $0x30] sm:$0xff]  ;;  %v6385_v56 = vld [vmem:[%s9811_s2] sm:$0xff] }
 0x6c0   :  { %1372 = vst [vmem:[#allocation3 + $0x68] sm:$0xf0] %v1364_v17  ;;  %1371 = vst [vmem:[#allocation3 + $0x60] sm:$0xf0] %v1363_v58  ;;  %v1310_v4 = vpop.permute.xlu0 %1309  ;;  %5626 = vmatprep.subr.bf16.mxu1 %v5625_v12  ;;  %v1290_v63 = vpop.permute.xlu1 %1289  ;;  %v6386_v17 = vld [vmem:[%s9811_s2 + $0x8] sm:$0xf] }
 0x6c1   :  { %v1311_v5 = vsel %vm324_vm6, %v1308_v42, %v1310_v4  ;;  %v1314_v6 = vsel %vm324_vm6, %v1310_v4, %v1304_v23  ;;  %5628 = vmatpush1.bf16.msra.mxu1 %v5627_v3  ;;  %v6387_v58 = vld [vmem:[%s9812_s3 + $0x8] sm:$0xff]  ;;  %s9908_s2 = smov 119  }
 0x6c2   :  { %v1321_v7 = vrot.slane %v1311_v5, 4  ;;  %v1322_v9 = vrot.slane %v1314_v6, 4 }
 0x6c4   :  { %1329 = vst [vmem:[#allocation3 + $0x50] sm:$0xf0] %v1321_v7  ;;  %1330 = vst [vmem:[#allocation3 + $0x58] sm:$0xf0] %v1322_v9  ;;  %v1354_v29 = vpop.permute.xlu0 %1353  ;;  %v1334_v14 = vpop.permute.xlu1 %1333 }
 0x6c5   :  { %v1355_v33 = vsel %vm375_vm10, %v1352_v22, %v1354_v29  ;;  %v1358_v1 = vsel %vm375_vm10, %v1354_v29, %v1348_v53 }
 0x6c6   :  { %v1365_v16 = vrot.slane %v1355_v33, 4  ;;  %v1366_v19 = vrot.slane %v1358_v1, 4 }
 0x6c8   :  { %1373 = vst [vmem:[#allocation3 + $0x70] sm:$0xf0] %v1365_v16  ;;  %1374 = vst [vmem:[#allocation3 + $0x78] sm:$0xf0] %v1366_v19  ;;  %v1292_v20 = vpop.permute.xlu0 %1291  ;;  %v1288_v43 = vpop.permute.xlu1 %1287 }
 0x6c9   :  { %v1296_v30 = vsel %vm307_vm7, %v1290_v63, %v1292_v20  ;;  %v1297_v2 = vsel %vm307_vm7, %v1288_v43, %v1290_v63 }
 0x6ca   :  { %1300 = vst [vmem:[#allocation3 + $0x48] sm:$0xf] %v1296_v30  ;;  %1299 = vst [vmem:[#allocation3 + $0x40] sm:$0xf] %v1297_v2 }
 0x6cc   :  { %v1336_v31 = vpop.permute.xlu0 %1335  ;;  %v1332_v34 = vpop.permute.xlu1 %1331 }
 0x6cd   :  { %v1340_v51 = vsel %vm358_vm8, %v1334_v14, %v1336_v31  ;;  %v1341_v37 = vsel %vm358_vm8, %v1332_v34, %v1334_v14 }
 0x6ce   :  { %1344 = vst [vmem:[#allocation3 + $0x68] sm:$0xf] %v1340_v51  ;;  %1343 = vst [vmem:[#allocation3 + $0x60] sm:$0xf] %v1341_v37 }
 0x6d0   :  { %v1294_v35 = vpop.permute.xlu0 %1293 }
 0x6d1   :  { %v1295_v40 = vsel %vm307_vm7, %v1292_v20, %v1294_v35  ;;  %v1298_v39 = vsel %vm307_vm7, %v1294_v35, %v1288_v43  ;;  %v1384_v38 = vld [vmem:[#allocation3 + $0x48] sm:$0xff]  ;;  %v1383_v46 = vld [vmem:[#allocation3 + $0x40] sm:$0xff] }
 0x6d2   :  { %1301 = vst [vmem:[#allocation3 + $0x50] sm:$0xf] %v1295_v40  ;;  %1302 = vst [vmem:[#allocation3 + $0x58] sm:$0xf] %v1298_v39 }
 0x6d4   :  { %v1338_v41 = vpop.permute.xlu0 %1337 }
 0x6d5   :  { %v1339_v42 = vsel %vm358_vm8, %v1336_v31, %v1338_v41  ;;  %v1342_v23 = vsel %vm358_vm8, %v1338_v41, %v1332_v34  ;;  %v1388_v45 = vld [vmem:[#allocation3 + $0x68] sm:$0xff]  ;;  %v1387_v59 = vld [vmem:[#allocation3 + $0x60] sm:$0xff] }
 0x6d6   :  { %1345 = vst [vmem:[#allocation3 + $0x70] sm:$0xf] %v1339_v42  ;;  %1346 = vst [vmem:[#allocation3 + $0x78] sm:$0xf] %v1342_v23  ;;  %v5621_v48 = vpack.c.bf16 %v1388_v45, %v1384_v38  ;;  %v5623_v26 = vpack.c.bf16 %v1387_v59, %v1383_v46 }
 0x6d8   :  { %5622 = vmatprep.subr.bf16.mxu0 %v5621_v48 }
 0x6d9   :  { %5624 = vmatpush1.bf16.msra.mxu0 %v5623_v26  ;;  %v1386_v21 = vld [vmem:[#allocation3 + $0x58] sm:$0xff]  ;;  %v1385_v53 = vld [vmem:[#allocation3 + $0x50] sm:$0xff] }
 0x6da   :  { %2810 = vmatprep.subr.mxu0 %v5462_v24 }
 0x6dc   :  { %5457 = vmatmul.mubr.msk.f32.vlgmr.msra.gmra.mrb[8].mxu0 %vm1401_vm13, %v50_v61 }
 0x6dd   :  { %1478 = vmatprep.mubr.f32.mxu0 %v9831_v0  ;;  %v1390_v22 = vld [vmem:[#allocation3 + $0x78] sm:$0xff]  ;;  %v1389_v55 = vld [vmem:[#allocation3 + $0x70] sm:$0xff]  ;;  %2811 = vmatpush1.msra.mxu0 %v5461_v50 }
 0x6de   :  { %v5629_v49 = vpack.c.bf16 %v1390_v22, %v1386_v21  ;;  %v5631_v52 = vpack.c.bf16 %v1389_v55, %v1385_v53 }
 0x6e0   :  { %5458 = vmatmul.mubr.msk.f32.gmra.mrb[10].mxu0 %vm1401_vm13, %v51_v28  ;;  %5630 = vmatprep.subr.bf16.mxu1 %v5629_v49 }
 0x6e1   :  { %5632 = vmatpush1.bf16.msra.mxu1 %v5631_v52  ;;  %2874 = vmatprep.mubr.f32.mxu0 %v9831_v0 }
 0x6e2   :  { %2887 = vmatprep.subr.mxu1 %v5464_v57 }
 0x6e4   :  { %5459 = vmatmul.mubr.msk.f32.vlgmr.msra.gmra.mrb[8].mxu1 %vm1401_vm13, %v50_v61  ;;  %5465 = vmatmul.mubr.msk.f32.vlgmr.msra.gmra.mrb[12].mxu0 %vm68_vm0, %v6385_v56 }
 0x6e5   :  { %1555 = vmatprep.mubr.f32.mxu1 %v9831_v0  ;;  %2880 = vmatprep.mubr.f32.mxu0 %v9831_v0 }
 0x6e6   :  { %2888 = vmatpush1.msra.mxu1 %v5463_v62 }
 0x6e8   :  { %5460 = vmatmul.mubr.msk.f32.gmra.mrb[10].mxu1 %vm1401_vm13, %v51_v28  ;;  %5466 = vmatmul.mubr.msk.f32.gmra.mrb[14].mxu0 %vm68_vm0, %v6386_v17 }
 0x6e9   :  { %2951 = vmatprep.mubr.f32.mxu1 %v9831_v0  ;;  %5469 = vmatprep.mubr.msk.f32.mxu0 %vm673_vm1, %v6387_v58 }
 0x6ec   :  { %5467 = vmatmul.mubr.msk.f32.vlgmr.msra.gmra.mrb[12].mxu1 %vm68_vm0, %v6385_v56 }
 0x6ed   :  { %2957 = vmatprep.mubr.f32.mxu1 %v9831_v0 }
 0x6f0   :  { %5468 = vmatmul.mubr.msk.f32.gmra.mrb[14].mxu1 %vm68_vm0, %v6386_v17  ;;  %vm9909_vm0 = vcmp.lt.s32.totalorder %v6595_v27, 65 }
 0x6f1   :  { %5470 = vmatprep.mubr.msk.f32.mxu1 %vm673_vm1, %v6387_v58  ;;  %vm9910_vm1 = vmmov %vm9909_vm0 }
 0x7af   :  { %v7116_v12 = vpop.f32.mrb[8].mxu0 }
 0x7b0   :  { %v7118_v3 = vpop.f32.mrb[9].mxu0 }
 0x7b3   :  { %v7120_v4 = vpop.f32.mrb[10].mxu0 }
 0x7b4   :  { %9904 = vst [vmem:[#allocation8_spill] sm:$0xff] %v7120_v4  ;;  %v7122_v63 = vpop.f32.mrb[11].mxu0 }
 0x7b5   :  { %9905 = vst [vmem:[#allocation9_spill] sm:$0xff] %v7122_v63 }
 0x7b7   :  { %v7124_v5 = vpop.f32.mrb[8].mxu1  ;;  %v2876_v6 = vpop.f32.mrb[12].mxu0 }
 0x7b8   :  { %v7127_v7 = vadd.f32 %v2876_v6, %v6512_v8  ;;  %v7129_v9 = vpop.f32.mrb[9].mxu1  ;;  %v2878_v29 = vpop.f32.mrb[13].mxu0 }
 0x7b9   :  { %v7132_v14 = vadd.f32 %v2878_v29, %v6512_v8 }
 0x7ba   :  { %3092 = vrot.lane.b32.xlu1 %v7127_v7, %s6419_s24 }
 0x7bb   :  { %v7136_v33 = vpop.f32.mrb[10].mxu1  ;;  %v7138_v1 = vpop.f32.mrb[14].mxu0  ;;  %v5930_v16 = vpack.i.bf16 %v7132_v14, %v7127_v7 }
 0x7bc   :  { %9906 = vst [vmem:[#allocation10_spill] sm:$0xff] %v7136_v33  ;;  %v7142_v19 = vpop.f32.mrb[11].mxu1  ;;  %v7144_v20 = vpop.f32.mrb[15].mxu0 }
 0x7bd   :  { %9907 = vst [vmem:[#allocation11_spill] sm:$0xff] %v7142_v19 }
 0x7be   :  { %5931 = vrot.lane.b32.xlu1 %v5930_v16, %s6420_s25 }
 0x7bf   :  { %v2953_v43 = vpop.f32.mrb[12].mxu1 }
 0x7c0   :  { %v7148_v30 = vadd.f32 %v2953_v43, %v6512_v8  ;;  %v2955_v2 = vpop.f32.mrb[13].mxu1 }
 0x7c1   :  { %v7151_v31 = vadd.f32 %v2955_v2, %v6512_v8 }
 0x7c2   :  { %3096 = vrot.lane.b32.xlu0 %v7148_v30, %s6419_s24  ;;  %v6050_v8 = vpack.i.bf16 %v7148_v30, %v7132_v14 }
 0x7c3   :  { %v7155_v34 = vpop.f32.mrb[14].mxu1  ;;  %v5940_v51 = vpack.i.bf16 %v7148_v30, %v7151_v31  ;;  %v6060_v35 = vpack.i.bf16 %v7151_v31, %v7127_v7 }
 0x7c4   :  { %v7159_v37 = vpop.f32.mrb[15].mxu1 }
 0x7c5   :  { %5941 = vrot.lane.b32.xlu1 %v5940_v51, %s6420_s25 }
 0x7c6   :  { %5936 = vrot.lane.b32.xlu0 %v5930_v16, %s6421_s26 }
 0x7c9   :  { %5951 = vrot.lane.b32.xlu1 %v5930_v16, %s6423_s28 }
 0x7ca   :  { %5946 = vrot.lane.b32.xlu0 %v5940_v51, %s6421_s26 }
 0x7cd   :  { %5961 = vrot.lane.b32.xlu1 %v5940_v51, %s6423_s28 }
 0x7ce   :  { %5956 = vrot.lane.b32.xlu0 %v5930_v16, %s6422_s27 }
 0x7d1   :  { %5971 = vrot.lane.b32.xlu1 %v5930_v16, %s6425_s30 }
 0x7d2   :  { %5966 = vrot.lane.b32.xlu0 %v5940_v51, %s6422_s27 }
 0x7d5   :  { %5981 = vrot.lane.b32.xlu1 %v5940_v51, %s6425_s30 }
 0x7d6   :  { %5976 = vrot.lane.b32.xlu0 %v5930_v16, %s6424_s29 }
 0x7d9   :  { %5991 = vrot.lane.b32.xlu1 %v5930_v16, %s6427_s9 }
 0x7da   :  { %5986 = vrot.lane.b32.xlu0 %v5940_v51, %s6424_s29 }
 0x7dd   :  { %6001 = vrot.lane.b32.xlu1 %v5940_v51, %s6427_s9 }
 0x7de   :  { %5996 = vrot.lane.b32.xlu0 %v5930_v16, %s6426_s8 }
 0x7e1   :  { %6011 = vrot.lane.b32.xlu1 %v5930_v16, %s6428_s10 }
 0x7e2   :  { %6006 = vrot.lane.b32.xlu0 %v5940_v51, %s6426_s8 }
 0x7e5   :  { %6016 = vrot.lane.b32.xlu1 %v5940_v51, %s6428_s10 }
 0x7e6   :  { %3094 = vrot.lane.b32.xlu0 %v7132_v14, %s6419_s24 }
 0x7e9   :  { %6021 = vrot.lane.b32.xlu1 %v5930_v16, %s6430_s12 }
 0x7ea   :  { %3098 = vrot.lane.b32.xlu0 %v7151_v31, %s6419_s24 }
 0x7ed   :  { %6031 = vrot.lane.b32.xlu1 %v5940_v51, %s6430_s12 }
 0x7ee   :  { %6026 = vrot.lane.b32.xlu0 %v5930_v16, %s6429_s11 }
 0x7f1   :  { %6041 = vrot.lane.b32.xlu1 %v5930_v16, %s6431_s13 }
 0x7f2   :  { %6036 = vrot.lane.b32.xlu0 %v5940_v51, %s6429_s11 }
 0x7f5   :  { %6051 = vrot.lane.b32.xlu1 %v6050_v8, %s6433_s15 }
 0x7f6   :  { %6046 = vrot.lane.b32.xlu0 %v5940_v51, %s6431_s13 }
 0x7f9   :  { %6061 = vrot.lane.b32.xlu1 %v6060_v35, %s6433_s15 }
 0x7fa   :  { %6056 = vrot.lane.b32.xlu0 %v6050_v8, %s6432_s14 }
 0x7fd   :  { %6071 = vrot.lane.b32.xlu1 %v6050_v8, %s6435_s17 }
 0x7fe   :  { %6066 = vrot.lane.b32.xlu0 %v6060_v35, %s6432_s14 }
 0x801   :  { %6081 = vrot.lane.b32.xlu1 %v6060_v35, %s6435_s17 }
 0x802   :  { %6076 = vrot.lane.b32.xlu0 %v6050_v8, %s9908_s2 }
 0x805   :  { %3230 = vrot.lane.b32.xlu1 %v7151_v31, %s9908_s2 }
 0x806   :  { %3224 = vrot.lane.b32.xlu0 %v7127_v7, %s9908_s2 }
 0x82c   :  { %v7203_v40 = vpop.permute.xlu1 %3092 }
 0x830   :  { %v5932_v39 = vpop.permute.xlu1 %5931 }
 0x831   :  { %v5934_v38 = vunpack.i.h.bf16 %v5932_v39  ;;  %v5933_v42 = vunpack.i.l.bf16 %v5932_v39 }
 0x833   :  { %v2974_v61 = vsel %vm239_vm3, %v5933_v42, %v5934_v38 }
 0x834   :  { %v7205_v41 = vpop.permute.xlu0 %3096 }
 0x837   :  { %v5942_v23 = vpop.permute.xlu1 %5941 }
 0x838   :  { %v5937_v45 = vpop.permute.xlu0 %5936  ;;  %v5944_v48 = vunpack.i.h.bf16 %v5942_v23  ;;  %v5943_v26 = vunpack.i.l.bf16 %v5942_v23 }
 0x839   :  { %v5939_v46 = vunpack.i.h.bf16 %v5937_v45  ;;  %v5938_v59 = vunpack.i.l.bf16 %v5937_v45 }
 0x83a   :  { %v2973_v55 = vsel %vm239_vm3, %v5934_v38, %v5944_v48  ;;  %v2975_v49 = vsel %vm239_vm3, %v5943_v26, %v5933_v42  ;;  %v2972_v43 = vsel %vm239_vm3, %v5944_v48, %v5943_v26  ;;  %vm9912_vm3 = vmmov %vm9909_vm0 }
 0x83b   :  { %v5952_v24 = vpop.permute.xlu1 %5951  ;;  %v2990_v50 = vsel %vm256_vm2, %v5938_v59, %v5939_v46 }
 0x83c   :  { %v5947_v28 = vpop.permute.xlu0 %5946  ;;  %v7211_v21 = vpack.c.bf16 %v2990_v50, %v2974_v61  ;;  %v5954_v52 = vunpack.i.h.bf16 %v5952_v24  ;;  %v5953_v57 = vunpack.i.l.bf16 %v5952_v24 }
 0x83d   :  { %v5949_v22 = vunpack.i.h.bf16 %v5947_v28  ;;  %v5948_v53 = vunpack.i.l.bf16 %v5947_v28 }
 0x83e   :  { %5634 = vmatprep.subr.bf16.mxu0 %v7211_v21  ;;  %v3006_v42 = vsel %vm273_vm5, %v5953_v57, %v5954_v52 }
 0x83f   :  { %v2989_v62 = vsel %vm256_vm2, %v5939_v46, %v5949_v22  ;;  %v2991_v56 = vsel %vm256_vm2, %v5948_v53, %v5938_v59  ;;  %v5962_v17 = vpop.permute.xlu1 %5961  ;;  %v2988_v58 = vsel %vm256_vm2, %v5949_v22, %v5948_v53  ;;  %vm9911_vm2 = vmmov %vm9909_vm0 }
 0x840   :  { %v7224_v6 = vpack.c.bf16 %v2991_v56, %v2975_v49  ;;  %v7226_v29 = vpack.c.bf16 %v2989_v62, %v2973_v55  ;;  %v5957_v16 = vpop.permute.xlu0 %5956  ;;  %v7230_v8 = vpack.c.bf16 %v2988_v58, %v2972_v43  ;;  %v5964_v35 = vunpack.i.h.bf16 %v5962_v17 }
 0x841   :  { %v5959_v2 = vunpack.i.h.bf16 %v5957_v16  ;;  %v5958_v51 = vunpack.i.l.bf16 %v5957_v16  ;;  %v5963_v39 = vunpack.i.l.bf16 %v5962_v17 }
 0x842   :  { %5636 = vmatpush1.bf16.msra.mxu0 %v7224_v6  ;;  %5686 = vmatprep.subr.bf16.mxu1 %v7230_v8  ;;  %v3005_v26 = vsel %vm273_vm5, %v5954_v52, %v5964_v35 }
 0x843   :  { %v5972_v38 = vpop.permute.xlu1 %5971  ;;  %v3022_v23 = vsel %vm9909_vm0, %v5958_v51, %v5959_v2  ;;  %5688 = vmatpush1.bf16.msra.mxu1 %v7226_v29  ;;  %v3007_v24 = vsel %vm273_vm5, %v5963_v39, %v5953_v57  ;;  %v3004_v57 = vsel %vm273_vm5, %v5964_v35, %v5963_v39  ;;  %vm9913_vm5 = vcmp.lt.s32.totalorder %v6595_v27, 57 }
 0x844   :  { %v5967_v45 = vpop.permute.xlu0 %5966  ;;  %v7239_v46 = vpack.c.bf16 %v3022_v23, %v3006_v42  ;;  %v5974_v61 = vunpack.i.h.bf16 %v5972_v38  ;;  %v5973_v50 = vunpack.i.l.bf16 %v5972_v38  ;;  %vm9914_vm15 = vmmov %vm9913_vm5 }
 0x845   :  { %v5969_v59 = vunpack.i.h.bf16 %v5967_v45  ;;  %v5968_v48 = vunpack.i.l.bf16 %v5967_v45  ;;  %vm9915_vm0 = vmmov %vm9913_vm5 }
 0x846   :  { %5638 = vmatprep.subr.bf16.mxu0 %v7239_v46 }
 0x847   :  { %v3021_v28 = vsel %vm9910_vm1, %v5959_v2, %v5969_v59  ;;  %v3023_v22 = vsel %vm9911_vm2, %v5968_v48, %v5958_v51  ;;  %v5982_v53 = vpop.permute.xlu1 %5981  ;;  %v3020_v55 = vsel %vm9912_vm3, %v5969_v59, %v5968_v48  ;;  %v3038_v51 = vsel %vm307_vm7, %v5973_v50, %v5974_v61  ;;  %vm9916_vm1 = vmmov %vm9915_vm0 }
 0x848   :  { %v7252_v49 = vpack.c.bf16 %v3023_v22, %v3007_v24  ;;  %v7254_v52 = vpack.c.bf16 %v3021_v28, %v3005_v26  ;;  %v5977_v62 = vpop.permute.xlu0 %5976  ;;  %v7258_v58 = vpack.c.bf16 %v3020_v55, %v3004_v57  ;;  %v5984_v16 = vunpack.i.h.bf16 %v5982_v53 }
 0x849   :  { %v5979_v56 = vunpack.i.h.bf16 %v5977_v62  ;;  %v5978_v17 = vunpack.i.l.bf16 %v5977_v62  ;;  %v5983_v43 = vunpack.i.l.bf16 %v5982_v53  ;;  %vm9917_vm2 = vcmp.lt.s32.totalorder %v6595_v27, 9 }
 0x84a   :  { %5640 = vmatpush1.bf16.msra.mxu0 %v7252_v49  ;;  %5690 = vmatprep.subr.bf16.mxu1 %v7258_v58  ;;  %v3037_v45 = vsel %vm307_vm7, %v5974_v61, %v5984_v16  ;;  %vm9918_vm3 = vmmov %vm9917_vm2 }
 0x84b   :  { %v5992_v2 = vpop.permute.xlu1 %5991  ;;  %v3054_v38 = vsel %vm324_vm6, %v5978_v17, %v5979_v56  ;;  %5692 = vmatpush1.bf16.msra.mxu1 %v7254_v52  ;;  %v3039_v59 = vsel %vm307_vm7, %v5983_v43, %v5973_v50  ;;  %v3036_v50 = vsel %vm307_vm7, %v5984_v16, %v5983_v43 }
 0x84c   :  { %v5987_v35 = vpop.permute.xlu0 %5986  ;;  %v7267_v39 = vpack.c.bf16 %v3054_v38, %v3038_v51  ;;  %v5994_v48 = vunpack.i.h.bf16 %v5992_v2  ;;  %v5993_v26 = vunpack.i.l.bf16 %v5992_v2 }
 0x84d   :  { %v5989_v42 = vunpack.i.h.bf16 %v5987_v35  ;;  %v5988_v23 = vunpack.i.l.bf16 %v5987_v35 }
 0x84e   :  { %5642 = vmatprep.subr.bf16.mxu0 %v7267_v39  ;;  %v3070_v35 = vsel %vm9913_vm5, %v5993_v26, %v5994_v48  ;;  %vm9919_vm5 = vmmov %vm9917_vm2 }
 0x84f   :  { %v3053_v24 = vsel %vm324_vm6, %v5979_v56, %v5989_v42  ;;  %v3055_v28 = vsel %vm324_vm6, %v5988_v23, %v5978_v17  ;;  %v6002_v22 = vpop.permute.xlu1 %6001  ;;  %v3052_v53 = vsel %vm324_vm6, %v5989_v42, %v5988_v23 }
 0x850   :  { %v7280_v55 = vpack.c.bf16 %v3055_v28, %v3039_v59  ;;  %v7282_v61 = vpack.c.bf16 %v3053_v24, %v3037_v45  ;;  %v5997_v62 = vpop.permute.xlu0 %5996  ;;  %v7286_v51 = vpack.c.bf16 %v3052_v53, %v3036_v50  ;;  %v6004_v56 = vunpack.i.h.bf16 %v6002_v22 }
 0x851   :  { %v5999_v57 = vunpack.i.h.bf16 %v5997_v62  ;;  %v5998_v2 = vunpack.i.l.bf16 %v5997_v62  ;;  %v6003_v17 = vunpack.i.l.bf16 %v6002_v22 }
 0x852   :  { %5644 = vmatpush1.bf16.msra.mxu0 %v7280_v55  ;;  %5694 = vmatprep.subr.bf16.mxu1 %v7286_v51  ;;  %v3069_v28 = vsel %vm9914_vm15, %v5994_v48, %v6004_v56  ;;  %vm9920_vm15 = vmmov %vm9917_vm2 }
 0x853   :  { %v6012_v38 = vpop.permute.xlu1 %6011  ;;  %v3086_v42 = vsel %vm358_vm8, %v5998_v2, %v5999_v57  ;;  %5696 = vmatpush1.bf16.msra.mxu1 %v7282_v61  ;;  %v3071_v22 = vsel %vm9915_vm0, %v6003_v17, %v5993_v26  ;;  %v3068_v54 = vsel %vm9916_vm1, %v6004_v56, %v6003_v17  ;;  %vm9921_vm0 = vcmp.lt.s32.totalorder %v6595_v27, 8 }
 0x854   :  { %v6007_v16 = vpop.permute.xlu0 %6006  ;;  %v7295_v43 = vpack.c.bf16 %v3086_v42, %v3070_v35  ;;  %v6014_v23 = vunpack.i.h.bf16 %v6012_v38  ;;  %v6013_v45 = vunpack.i.l.bf16 %v6012_v38  ;;  %vm9922_vm1 = vcmp.lt.s32.totalorder %v6595_v27, 7 }
 0x855   :  { %v6009_v59 = vunpack.i.h.bf16 %v6007_v16  ;;  %v6008_v24 = vunpack.i.l.bf16 %v6007_v16 }
 0x856   :  { %5646 = vmatprep.subr.bf16.mxu0 %v7295_v43 }
 0x857   :  { %v3085_v53 = vsel %vm358_vm8, %v5999_v57, %v6009_v59  ;;  %v3087_v62 = vsel %vm358_vm8, %v6008_v24, %v5998_v2  ;;  %v6017_v50 = vpop.permute.xlu1 %6016  ;;  %v3084_v38 = vsel %vm358_vm8, %v6009_v59, %v6008_v24  ;;  %v3118_v2 = vsel %vm9917_vm2, %v6013_v45, %v6014_v23  ;;  %vm9923_vm2 = vmmov %vm9921_vm0 }
 0x858   :  { %v7308_v35 = vpack.c.bf16 %v3087_v62, %v3071_v22  ;;  %v7310_v42 = vpack.c.bf16 %v3085_v53, %v3069_v28  ;;  %v6019_v48 = vunpack.i.h.bf16 %v6017_v50  ;;  %v3095_v16 = vpop.permute.xlu0 %3094  ;;  %v6018_v26 = vunpack.i.l.bf16 %v6017_v50 }
 0x859   :  { %v7317_v57 = vsel %vm375_vm10, %v7203_v40, %v3095_v16  ;;  %v7321_v44 = vpack.c.bf16 %v3084_v38, %v3068_v54  ;;  %v7329_v56 = vsel %vm375_vm10, %v3095_v16, %v7205_v41 }
 0x85a   :  { %v5649_v59 = vpack.c.bf16 %v3118_v2, %v7317_v57  ;;  %5648 = vmatpush1.bf16.msra.mxu0 %v7308_v35  ;;  %v3117_v17 = vsel %vm9918_vm3, %v6014_v23, %v6019_v48  ;;  %v3116_v53 = vsel %vm9919_vm5, %v6019_v48, %v6018_v26  ;;  %v3119_v23 = vsel %vm9920_vm15, %v6018_v26, %v6013_v45  ;;  %vm9925_vm5 = vmmov %vm9921_vm0 }
 0x85b   :  { %5698 = vmatprep.subr.bf16.mxu1 %v7321_v44  ;;  %v6022_v24 = vpop.permute.xlu1 %6021  ;;  %v5703_v38 = vpack.c.bf16 %v3117_v17, %v7329_v56  ;;  %vm9924_vm3 = vcmp.lt.s32.totalorder %v6595_v27, 1  ;;  %vm9926_vm15 = vmmov %vm9922_vm1 }
 0x85c   :  { %5700 = vmatpush1.bf16.msra.mxu1 %v7310_v42  ;;  %v3099_v28 = vpop.permute.xlu0 %3098  ;;  %5650 = vmatprep.subr.bf16.mxu0 %v5649_v59  ;;  %v6024_v16 = vunpack.i.h.bf16 %v6022_v24 }
 0x85d   :  { %v7337_v54 = vsel %vm375_vm10, %v7205_v41, %v3099_v28  ;;  %v7342_v22 = vsel %vm375_vm10, %v3099_v28, %v7203_v40  ;;  %v6023_v41 = vunpack.i.l.bf16 %v6022_v24 }
 0x85e   :  { %v5651_v62 = vpack.c.bf16 %v3119_v23, %v7342_v22  ;;  %v5701_v50 = vpack.c.bf16 %v3116_v53, %v7337_v54 }
 0x85f   :  { %v6032_v2 = vpop.permute.xlu1 %6031  ;;  %v3134_v45 = vsel %vm9921_vm0, %v6023_v41, %v6024_v16  ;;  %vm9927_vm0 = vmmov %vm9922_vm1 }
 0x860   :  { %v6027_v59 = vpop.permute.xlu0 %6026  ;;  %5652 = vmatpush1.bf16.msra.mxu0 %v5651_v62  ;;  %5702 = vmatprep.subr.bf16.mxu1 %v5701_v50  ;;  %v6034_v32 = vunpack.i.h.bf16 %v6032_v2  ;;  %v6033_v48 = vunpack.i.l.bf16 %v6032_v2 }
 0x861   :  { %v6029_v40 = vunpack.i.h.bf16 %v6027_v59  ;;  %v6028_v28 = vunpack.i.l.bf16 %v6027_v59  ;;  %5704 = vmatpush1.bf16.msra.mxu1 %v5703_v38 }
 0x862   :  { %v3133_v62 = vsel %vm9923_vm2, %v6024_v16, %v6034_v32  ;;  %v3135_v38 = vsel %vm9925_vm5, %v6033_v48, %v6023_v41  ;;  %vm9929_vm5 = vmmov %vm9924_vm3 }
 0x863   :  { %v6042_v18 = vpop.permute.xlu1 %6041  ;;  %v3150_v26 = vsel %vm9922_vm1, %v6028_v28, %v6029_v40  ;;  %vm9928_vm1 = vmmov %vm9927_vm0 }
 0x864   :  { %v6044_v53 = vunpack.i.h.bf16 %v6042_v18  ;;  %v6043_v17 = vunpack.i.l.bf16 %v6042_v18  ;;  %v6037_v23 = vpop.permute.xlu0 %6036  ;;  %v5653_v24 = vpack.c.bf16 %v3150_v26, %v3134_v45 }
 0x865   :  { %v6039_v0 = vunpack.i.h.bf16 %v6037_v23  ;;  %v6038_v19 = vunpack.i.l.bf16 %v6037_v23 }
 0x866   :  { %5654 = vmatprep.subr.bf16.mxu0 %v5653_v24  ;;  %v3166_v50 = vsel %vm9924_vm3, %v6043_v17, %v6044_v53  ;;  %v3132_v24 = vsel %vm9923_vm2, %v6034_v32, %v6033_v48 }
 0x867   :  { %v3149_v2 = vsel %vm9926_vm15, %v6029_v40, %v6039_v0  ;;  %v3151_v18 = vsel %vm9927_vm0, %v6038_v19, %v6028_v28  ;;  %v6052_v59 = vpop.permute.xlu1 %6051  ;;  %v3148_v45 = vsel %vm9928_vm1, %v6039_v0, %v6038_v19  ;;  %v5657_v41 = vpack.c.bf16 %v7132_v14, %v3166_v50  ;;  %vm9930_vm15 = vmmov %vm9924_vm3 }
 0x868   :  { %v5655_v26 = vpack.c.bf16 %v3151_v18, %v3135_v38  ;;  %v5707_v23 = vpack.c.bf16 %v3149_v2, %v3133_v62  ;;  %v6047_v16 = vpop.permute.xlu0 %6046  ;;  %v5705_v4 = vpack.c.bf16 %v3148_v45, %v3132_v24  ;;  %v6054_v13 = vunpack.i.h.bf16 %v6052_v59 }
 0x869   :  { %v6049_v33 = vunpack.i.h.bf16 %v6047_v16  ;;  %v6048_v63 = vunpack.i.l.bf16 %v6047_v16  ;;  %v6053_v40 = vunpack.i.l.bf16 %v6052_v59  ;;  %vm9931_vm0 = vcmp.lt.s32.totalorder %v6595_v27, 121 }
 0x86a   :  { %5656 = vmatpush1.bf16.msra.mxu0 %v5655_v26  ;;  %5706 = vmatprep.subr.bf16.mxu1 %v5705_v4  ;;  %vm9932_vm1 = vmmov %vm9931_vm0 }
 0x86b   :  { %v3165_v28 = vsel %vm9924_vm3, %v6044_v53, %v6049_v33  ;;  %v3167_v0 = vsel %vm9929_vm5, %v6048_v63, %v6043_v17  ;;  %v6062_v19 = vpop.permute.xlu1 %6061  ;;  %5658 = vmatprep.subr.bf16.mxu0 %v5657_v41  ;;  %v3164_v32 = vsel %vm9930_vm15, %v6049_v33, %v6048_v63  ;;  %5708 = vmatpush1.bf16.msra.mxu1 %v5707_v23  ;;  %vm9933_vm2 = vmmov %vm9931_vm0  ;;  %vm9936_vm5 = vcmask 1047556  }
 0x86c   :  { %v5659_v48 = vpack.c.bf16 %v7127_v7, %v3167_v0  ;;  %v5711_v62 = vpack.c.bf16 %v7148_v30, %v3165_v28  ;;  %v6057_v14 = vpop.permute.xlu0 %6056  ;;  %v5709_v2 = vpack.c.bf16 %v7151_v31, %v3164_v32  ;;  %v6064_v53 = vunpack.i.h.bf16 %v6062_v19  ;;  %vm9934_vm3 = vmmov %vm9931_vm0 }
 0x86d   :  { %v6059_v50 = vunpack.i.h.bf16 %v6057_v14  ;;  %v6058_v38 = vunpack.i.l.bf16 %v6057_v14  ;;  %v6063_v18 = vunpack.i.l.bf16 %v6062_v19  ;;  %v3185_v17 = vsel %vm464_vm11, %v6053_v40, %v6054_v13  ;;  %vm9937_vm15 = vmmov %vm9936_vm5 }
 0x86e   :  { %5660 = vmatpush1.bf16.msra.mxu0 %v5659_v48  ;;  %5710 = vmatprep.subr.bf16.mxu1 %v5709_v2  ;;  %v3184_v45 = vsel %vm464_vm11, %v6054_v13, %v6064_v53 }
 0x86f   :  { %v6072_v4 = vpop.permute.xlu1 %6071  ;;  %v3201_v63 = vsel %vm9931_vm0, %v6058_v38, %v6059_v50  ;;  %5712 = vmatpush1.bf16.msra.mxu1 %v5711_v62  ;;  %v3186_v31 = vsel %vm464_vm11, %v6063_v18, %v6053_v40  ;;  %v3187_v40 = vsel %vm464_vm11, %v6064_v53, %v6063_v18  ;;  %vm9938_vm0 = vmmov %vm9936_vm5 }
 0x870   :  { %v6067_v7 = vpop.permute.xlu0 %6066  ;;  %v5661_v33 = vpack.c.bf16 %v3201_v63, %v3185_v17  ;;  %v6074_v26 = vunpack.i.h.bf16 %v6072_v4  ;;  %v6073_v23 = vunpack.i.l.bf16 %v6072_v4 }
 0x871   :  { %v6069_v30 = vunpack.i.h.bf16 %v6067_v7  ;;  %v6068_v59 = vunpack.i.l.bf16 %v6067_v7 }
 0x872   :  { %5662 = vmatprep.subr.bf16.mxu0 %v5661_v33 }
 0x873   :  { %v3200_v16 = vsel %vm9932_vm1, %v6059_v50, %v6069_v30  ;;  %v3202_v24 = vsel %vm9933_vm2, %v6068_v59, %v6058_v38  ;;  %v6082_v41 = vpop.permute.xlu1 %6081  ;;  %v3203_v28 = vsel %vm9934_vm3, %v6069_v30, %v6068_v59  ;;  %v3217_v38 = vsel %vm498_vm12, %v6073_v23, %v6074_v26  ;;  %vm9939_vm1 = vmmov %vm9938_vm0 }
 0x874   :  { %v5663_v0 = vpack.c.bf16 %v3202_v24, %v3186_v31  ;;  %v5715_v19 = vpack.c.bf16 %v3200_v16, %v3184_v45  ;;  %v6084_v32 = vunpack.i.h.bf16 %v6082_v41  ;;  %v6077_v13 = vpop.permute.xlu0 %6076  ;;  %v6083_v48 = vunpack.i.l.bf16 %v6082_v41  ;;  %vm9940_vm2 = vmmov %vm9938_vm0 }
 0x875   :  { %v6079_v62 = vunpack.i.h.bf16 %v6077_v13  ;;  %v6078_v14 = vunpack.i.l.bf16 %v6077_v13  ;;  %v5713_v2 = vpack.c.bf16 %v3203_v28, %v3187_v40  ;;  %vm9941_vm3 = vmmov %vm9938_vm0 }
 0x876   :  { %5664 = vmatpush1.bf16.msra.mxu0 %v5663_v0  ;;  %v3218_v53 = vsel %vm498_vm12, %v6083_v48, %v6073_v23  ;;  %v3219_v18 = vsel %vm498_vm12, %v6084_v32, %v6083_v48  ;;  %v3216_v59 = vsel %vm498_vm12, %v6074_v26, %v6084_v32 }
 0x877   :  { %5714 = vmatprep.subr.bf16.mxu1 %v5713_v2  ;;  %v3231_v50 = vpop.permute.xlu1 %3230  ;;  %v3233_v4 = vsel %vm515_vm14, %v6078_v14, %v6079_v62 }
 0x878   :  { %v3232_v17 = vsel %vm515_vm14, %v6079_v62, %v3231_v50  ;;  %5716 = vmatpush1.bf16.msra.mxu1 %v5715_v19  ;;  %v3225_v63 = vpop.permute.xlu0 %3224  ;;  %v5665_v7 = vpack.c.bf16 %v3233_v4, %v3217_v38 }
 0x879   :  { %v3234_v33 = vsel %vm515_vm14, %v3225_v63, %v6078_v14  ;;  %v3235_v30 = vsel %vm515_vm14, %v3231_v50, %v3225_v63  ;;  %v5719_v16 = vpack.c.bf16 %v3232_v17, %v3216_v59 }
 0x87a   :  { %v5667_v45 = vpack.c.bf16 %v3234_v33, %v3218_v53  ;;  %v5717_v31 = vpack.c.bf16 %v3235_v30, %v3219_v18  ;;  %5666 = vmatprep.subr.bf16.mxu0 %v5665_v7 }
 0x87c   :  { %5668 = vmatpush1.bf16.msra.mxu0 %v5667_v45  ;;  %5718 = vmatprep.subr.bf16.mxu1 %v5717_v31 }
 0x87d   :  { %5670 = vmatprep.subr.bf16.mxu0 %v7226_v29  ;;  %5720 = vmatpush1.bf16.msra.mxu1 %v5719_v16 }
 0x87e   :  { %5722 = vmatprep.subr.bf16.mxu1 %v7224_v6  ;;  %v9935_v6 = vmov 0.0  }
 0x880   :  { %5672 = vmatpush1.bf16.msra.mxu0 %v7211_v21  ;;  %v6388_v21 = vld [vmem:[%s9812_s3] sm:$0xff] }
 0x881   :  { %5674 = vmatprep.subr.bf16.mxu0 %v7254_v52  ;;  %5724 = vmatpush1.bf16.msra.mxu1 %v7230_v8 }
 0x882   :  { %5726 = vmatprep.subr.bf16.mxu1 %v7252_v49 }
 0x884   :  { %5676 = vmatpush1.bf16.msra.mxu0 %v7239_v46 }
 0x885   :  { %5678 = vmatprep.subr.bf16.mxu0 %v7282_v61  ;;  %5728 = vmatpush1.bf16.msra.mxu1 %v7258_v58 }
 0x886   :  { %5730 = vmatprep.subr.bf16.mxu1 %v7280_v55 }
 0x888   :  { %5680 = vmatpush1.bf16.msra.mxu0 %v7267_v39 }
 0x889   :  { %5682 = vmatprep.subr.bf16.mxu0 %v7310_v42  ;;  %5732 = vmatpush1.bf16.msra.mxu1 %v7286_v51 }
 0x88a   :  { %5734 = vmatprep.subr.bf16.mxu1 %v7308_v35 }
 0x88c   :  { %5684 = vmatpush1.bf16.msra.mxu0 %v7295_v43 }
 0x88d   :  { %3436 = vmatprep.subr.mxu0 %v7329_v56  ;;  %5736 = vmatpush1.bf16.msra.mxu1 %v7321_v44 }
 0x88e   :  { %3507 = vmatprep.subr.mxu1 %v7342_v22 }
 0x890   :  { %3437 = vmatpush1.msra.mxu0 %v7317_v57 }
 0x891   :  { %3449 = vmatmul.mubr.f32.vlgmr.msra.gmra.mrb[16].mxu0 %v6388_v21  ;;  %3508 = vmatpush1.msra.mxu1 %v7337_v54 }
 0x892   :  { %3520 = vmatmul.mubr.f32.vlgmr.msra.gmra.mrb[16].mxu1 %v6388_v21  ;;  %3768 = vmatprep.mubr.f32.mxu0 %v9935_v6 }
 0x893   :  { %3839 = vmatprep.mubr.f32.mxu1 %v9935_v6 }
 0x964   :  { %v3450_v29 = vpop.f32.mrb[16].mxu0 }
 0x965   :  { %v7437_v8 = vadd.f32 %v3450_v29, %v6865_v60  ;;  %v3452_v44 = vpop.f32.mrb[17].mxu0  ;;  %v3521_v46 = vpop.f32.mrb[16].mxu1 }
 0x966   :  { %v7440_v49 = vadd.f32 %v3452_v44, %v6865_v60  ;;  %v7443_v52 = vadd.f32 %v3521_v46, %v6865_v60  ;;  %v3523_v58 = vpop.f32.mrb[17].mxu1 }
 0x967   :  { %v3526_v39 = vmul.f32 %v7437_v8, %v6862_v47  ;;  %v7448_v55 = vadd.f32 %v3523_v58, %v6865_v60 }
 0x968   :  { %v3527_v61 = vmul.f32 %v7440_v49, %v6869_v10  ;;  %v3528_v51 = vmul.f32 %v7443_v52, %v6879_v36 }
 0x969   :  { %v3530_v43 = vsel %vm9936_vm5, %v3526_v39, 0.0  ;;  %v3529_v42 = vmul.f32 %v7448_v55, %v6885_v15  ;;  %vm9942_vm5 = vmmov %vm9938_vm0 }
 0x96a   :  { %v3531_v35 = vsel %vm9937_vm15, %v3527_v61, 0.0  ;;  %v3533_v56 = vsel %vm9938_vm0, %v3528_v51, 0.0  ;;  %vm9943_vm15 = vmmov %vm9938_vm0 }
 0x96b   :  { %v3532_v57 = vadd.f32 %v3531_v35, %v3530_v43  ;;  %v3535_v60 = vsel %vm9939_vm1, %v3529_v42, 0.0 }
 0x96d   :  { %v3534_v54 = vadd.f32 %v3533_v56, %v3532_v57 }
 0x96f   :  { %v3536_v22 = vadd.f32 %v3535_v60, %v3534_v54 }
 0x971   :  { %3537 = vadd.xlane.f32.xlu0 %v3536_v22 }
 0x9fe   :  { %v3538_v26 = vpop.xlane.xlu0 %3537 }
 0x9ff   :  { %v3539_v23 = vmul.f32 0.0046296297, %v3538_v26 }
 0xa01   :  { %v3540_v24 = vsub.f32 %v7437_v8, %v3539_v23  ;;  %v3541_v41 = vsub.f32 %v7440_v49, %v3539_v23  ;;  %v3542_v28 = vsub.f32 %v7443_v52, %v3539_v23  ;;  %v3543_v0 = vsub.f32 %v7448_v55, %v3539_v23 }
 0xa03   :  { %v3544_v19 = vmul.f32 %v3540_v24, %v6862_v47  ;;  %v3545_v32 = vmul.f32 %v3541_v41, %v6869_v10  ;;  %v3546_v13 = vmul.f32 %v3542_v28, %v6879_v36  ;;  %v3547_v40 = vmul.f32 %v3543_v0, %v6885_v15 }
 0xa05   :  { %v3548_v48 = vmul.f32 %v3544_v19, %v3544_v19  ;;  %v3549_v62 = vmul.f32 %v3545_v32, %v3545_v32  ;;  %v3550_v14 = vmul.f32 %v3546_v13, %v3546_v13  ;;  %v3551_v2 = vmul.f32 %v3547_v40, %v3547_v40 }
 0xa07   :  { %v3552_v50 = vsel %vm9940_vm2, %v3548_v48, 0.0  ;;  %v3553_v38 = vsel %vm9941_vm3, %v3549_v62, 0.0  ;;  %v3555_v17 = vsel %vm9942_vm5, %v3550_v14, 0.0  ;;  %v3557_v47 = vsel %vm9943_vm15, %v3551_v2, 0.0 }
 0xa08   :  { %v3554_v4 = vadd.f32 %v3553_v38, %v3552_v50 }
 0xa0a   :  { %v3556_v63 = vadd.f32 %v3555_v17, %v3554_v4 }
 0xa0c   :  { %v3558_v7 = vadd.f32 %v3557_v47, %v3556_v63 }
 0xa0e   :  { %3559 = vadd.xlane.f32.xlu1 %v3558_v7 }
 0xa9b   :  { %v3560_v10 = vpop.xlane.xlu1 %3559 }
 0xa9c   :  { %v3561_v36 = vmul.f32 0.0046296297, %v3560_v10 }
 0xa9e   :  { %v3562_v53 = vadd.f32 1e-05, %v3561_v36 }
 0xaa0   :  { %6105 = vrsqrt.f32 %v3562_v53 }
 0xaaa   :  { %v6106_v15 = vpop.eup %6105 }
 0xaab   :  { %v7472_v18 = vmul.f32 %v6106_v15, %v3545_v32  ;;  %v7474_v33 = vmul.f32 %v6106_v15, %v3547_v40  ;;  %v7476_v30 = vmul.f32 %v6106_v15, %v3544_v19  ;;  %v7478_v59 = vmul.f32 %v6106_v15, %v3546_v13 }
 0xaad   :  { %v7481_v45 = vmul.f32 0.70710677, %v7472_v18  ;;  %v7484_v31 = vmul.f32 0.70710677, %v7474_v33  ;;  %v7487_v16 = vmul.f32 0.70710677, %v7476_v30 }
 0xaae   :  { %v7490_v21 = vmul.f32 0.70710677, %v7478_v59 }
 0xaaf   :  { %v3577_v29 = vand.u32 2147483647, %v7481_v45  ;;  %v3579_v44 = vand.u32 2147483647, %v7484_v31  ;;  %v3576_v46 = vand.u32 2147483647, %v7487_v16 }
 0xab0   :  { %v3578_v58 = vand.u32 2147483647, %v7490_v21  ;;  %vm3657_vm0 = vcmp.ge.f32.partialorder %v7481_v45, 0.0  ;;  %vm3659_vm1 = vcmp.ge.f32.partialorder %v7484_v31, 0.0  ;;  %vm3656_vm2 = vcmp.ge.f32.partialorder %v7487_v16, 0.0 }
 0xab1   :  { %v3581_v39 = vmul.f32 0.3275911, %v3577_v29  ;;  %v3583_v61 = vmul.f32 0.3275911, %v3579_v44  ;;  %v3580_v51 = vmul.f32 0.3275911, %v3576_v46 }
 0xab2   :  { %v3582_v42 = vmul.f32 0.3275911, %v3578_v58  ;;  %v3633_v54 = vsub.f32 0.0, %v3577_v29  ;;  %v3635_v60 = vsub.f32 0.0, %v3579_v44  ;;  %v3632_v23 = vsub.f32 0.0, %v3576_v46 }
 0xab3   :  { %v3585_v43 = vadd.f32 1.0, %v3581_v39  ;;  %v3587_v35 = vadd.f32 1.0, %v3583_v61  ;;  %v3584_v57 = vadd.f32 1.0, %v3580_v51  ;;  %v3634_v19 = vsub.f32 0.0, %v3578_v58 }
 0xab4   :  { %v3586_v56 = vadd.f32 1.0, %v3582_v42  ;;  %v3637_v26 = vmul.f32 %v3633_v54, %v3577_v29  ;;  %v3639_v28 = vmul.f32 %v3635_v60, %v3579_v44  ;;  %v3636_v62 = vmul.f32 %v3632_v23, %v3576_v46 }
 0xab5   :  { %6107 = vrcp.f32 %v3585_v43  ;;  %v3638_v17 = vmul.f32 %v3634_v19, %v3578_v58  ;;  %v3568_v31 = vmul.f32 0.5, %v7476_v30  ;;  %vm3658_vm3 = vcmp.ge.f32.partialorder %v7490_v21, 0.0 }
 0xab6   :  { %6109 = vrcp.f32 %v3587_v35  ;;  %v3642_v40 = vmul.f32 1.442695, %v3637_v26  ;;  %v3646_v2 = vmul.f32 1.442695, %v3639_v28  ;;  %v3640_v36 = vmul.f32 1.442695, %v3636_v62 }
 0xab7   :  { %6111 = vrcp.f32 %v3584_v57  ;;  %v3644_v39 = vmul.f32 1.442695, %v3638_v17 }
 0xab8   :  { %6113 = vrcp.f32 %v3586_v56 }
 0xab9   :  { %6115 = vpow2.f32 %v3642_v40 }
 0xaba   :  { %6117 = vpow2.f32 %v3646_v2 }
 0xabb   :  { %6119 = vpow2.f32 %v3640_v36 }
 0xabc   :  { %6121 = vpow2.f32 %v3644_v39 }
 0xabf   :  { %v6108_v22 = vpop.eup %6107 }
 0xac0   :  { %v6110_v24 = vpop.eup %6109  ;;  %v3597_v41 = vmul.f32 1.0614054, %v6108_v22 }
 0xac1   :  { %v3599_v0 = vmul.f32 1.0614054, %v6110_v24  ;;  %v6112_v13 = vpop.eup %6111 }
 0xac2   :  { %v3601_v32 = vadd.f32 -1.4531521, %v3597_v41  ;;  %v3596_v50 = vmul.f32 1.0614054, %v6112_v13  ;;  %v6114_v38 = vpop.eup %6113 }
 0xac3   :  { %v3603_v48 = vadd.f32 -1.4531521, %v3599_v0  ;;  %v3598_v7 = vmul.f32 1.0614054, %v6114_v38  ;;  %v6116_v0 = vpop.eup %6115 }
 0xac4   :  { %v3605_v14 = vmul.f32 %v6108_v22, %v3601_v32  ;;  %v3600_v47 = vadd.f32 -1.4531521, %v3596_v50  ;;  %v6118_v32 = vpop.eup %6117 }
 0xac5   :  { %v3607_v4 = vmul.f32 %v6110_v24, %v3603_v48  ;;  %v3602_v29 = vadd.f32 -1.4531521, %v3598_v7  ;;  %v6120_v17 = vpop.eup %6119 }
 0xac6   :  { %v3609_v63 = vadd.f32 1.4214138, %v3605_v14  ;;  %v3604_v15 = vmul.f32 %v6112_v13, %v3600_v47  ;;  %v6122_v36 = vpop.eup %6121 }
 0xac7   :  { %v3611_v10 = vadd.f32 1.4214138, %v3607_v4  ;;  %v3606_v51 = vmul.f32 %v6114_v38, %v3602_v29  ;;  %v3569_v29 = vmul.f32 0.5, %v7472_v18 }
 0xac8   :  { %v3613_v53 = vmul.f32 %v6108_v22, %v3609_v63  ;;  %v3608_v46 = vadd.f32 1.4214138, %v3604_v15 }
 0xac9   :  { %v3615_v44 = vmul.f32 %v6110_v24, %v3611_v10  ;;  %v3610_v58 = vadd.f32 1.4214138, %v3606_v51 }
 0xaca   :  { %v3617_v61 = vadd.f32 -0.28449672, %v3613_v53  ;;  %v3612_v42 = vmul.f32 %v6112_v13, %v3608_v46 }
 0xacb   :  { %v3619_v43 = vadd.f32 -0.28449672, %v3615_v44  ;;  %v3614_v60 = vmul.f32 %v6114_v38, %v3610_v58 }
 0xacc   :  { %v3621_v35 = vmul.f32 %v6108_v22, %v3617_v61  ;;  %v3616_v54 = vadd.f32 -0.28449672, %v3612_v42 }
 0xacd   :  { %v3623_v57 = vmul.f32 %v6110_v24, %v3619_v43  ;;  %v3618_v28 = vadd.f32 -0.28449672, %v3614_v60 }
 0xace   :  { %v3625_v56 = vadd.f32 0.2548296, %v3621_v35  ;;  %v3620_v41 = vmul.f32 %v6112_v13, %v3616_v54  ;;  %v3570_v54 = vmul.f32 0.5, %v7478_v59 }
 0xacf   :  { %v3627_v26 = vadd.f32 0.2548296, %v3623_v57  ;;  %v3622_v62 = vmul.f32 %v6114_v38, %v3618_v28 }
 0xad0   :  { %v3629_v23 = vmul.f32 %v6108_v22, %v3625_v56  ;;  %v3624_v48 = vadd.f32 0.2548296, %v3620_v41 }
 0xad1   :  { %v3631_v19 = vmul.f32 %v6110_v24, %v3627_v26  ;;  %v3626_v4 = vadd.f32 0.2548296, %v3622_v62 }
 0xad2   :  { %v3649_v40 = vmul.f32 %v6116_v0, %v3629_v23  ;;  %v3628_v50 = vmul.f32 %v6112_v13, %v3624_v48  ;;  %v3571_v13 = vmul.f32 0.5, %v7474_v33 }
 0xad3   :  { %v3651_v14 = vmul.f32 %v6118_v32, %v3631_v19  ;;  %v3630_v10 = vmul.f32 %v6114_v38, %v3626_v4 }
 0xad4   :  { %v3653_v2 = vsub.f32 1.0, %v3649_v40  ;;  %v3648_v7 = vmul.f32 %v6120_v17, %v3628_v50 }
 0xad5   :  { %v3655_v63 = vsub.f32 1.0, %v3651_v14  ;;  %v3650_v15 = vmul.f32 %v6122_v36, %v3630_v10 }
 0xad6   :  { %v3661_v47 = vsub.f32 0.0, %v3653_v2  ;;  %v3652_v24 = vsub.f32 1.0, %v3648_v7 }
 0xad7   :  { %v3663_v22 = vsub.f32 0.0, %v3655_v63  ;;  %v3654_v51 = vsub.f32 1.0, %v3650_v15 }
 0xad8   :  { %v3665_v53 = vsel %vm3657_vm0, %v3653_v2, %v3661_v47  ;;  %v3660_v46 = vsub.f32 0.0, %v3652_v24 }
 0xad9   :  { %v3669_v44 = vadd.f32 1.0, %v3665_v53  ;;  %v3667_v39 = vsel %vm3659_vm1, %v3655_v63, %v3663_v22  ;;  %v3662_v35 = vsub.f32 0.0, %v3654_v51 }
 0xada   :  { %v3671_v61 = vadd.f32 1.0, %v3667_v39  ;;  %v3664_v45 = vsel %vm3656_vm2, %v3652_v24, %v3660_v46 }
 0xadb   :  { %v3673_v43 = vmul.f32 %v3669_v44, %v3569_v29  ;;  %v3668_v58 = vadd.f32 1.0, %v3664_v45  ;;  %v3666_v57 = vsel %vm3658_vm3, %v3654_v51, %v3662_v35  ;;  %v2883_v35 = vadd.f32 %v7138_v1, %v6979_v25  ;;  %v53_v1 = vld [vmem:[%s9815_s6 + $0x28] sm:$0xff] }
 0xadc   :  { %v3675_v38 = vmul.f32 %v3671_v61, %v3571_v13  ;;  %v3670_v60 = vadd.f32 1.0, %v3666_v57 }
 0xadd   :  { %v3681_v42 = vrot.slane %v3673_v43, 4  ;;  %v3672_v33 = vmul.f32 %v3668_v58, %v3568_v31  ;;  %v2960_v31 = vadd.f32 %v7155_v34, %v6979_v25  ;;  %v2962_v58 = vadd.f32 %v7159_v37, %v6979_v25 }
 0xade   :  { %v3683_v18 = vrot.slane %v3675_v38, 4  ;;  %v3674_v23 = vmul.f32 %v3670_v60, %v3570_v54 }
 0xadf   :  { %v3689_v56 = vmul.f32 %v3681_v42, %v7440_v49  ;;  %v3680_v16 = vrot.slane %v3672_v33, 4  ;;  %v6389_v49 = vld [vmem:[#allocation4] sm:$0xf]  ;;  %v2885_v42 = vadd.f32 %v7144_v20, %v6979_v25 }
 0xae0   :  { %v3691_v26 = vmul.f32 %v3683_v18, %v7448_v55  ;;  %v3682_v41 = vrot.slane %v3674_v23, 4  ;;  %v52_v25 = vld [vmem:[%s9815_s6 + $0x20] sm:$0xff] }
 0xae1   :  { %5471 = vmatprep.subr.msk.mxu0 %vm1017_vm4, %v3689_v56  ;;  %v3688_v30 = vmul.f32 %v3680_v16, %v7437_v8 }
 0xae2   :  { %5474 = vmatprep.subr.msk.mxu1 %vm1017_vm4, %v3691_v26  ;;  %v3690_v21 = vmul.f32 %v3682_v41, %v7443_v52 }
 0xae3   :  { %5472 = vmatpush1.msk.msra.mxu0 %vm1017_vm4, %v3688_v30 }
 0xae4   :  { %5473 = vmatmul.mubr.msk.f32.vlgmr.msra.gmra.mrb[18].mxu0 %vm1013_vm9, %v6389_v49  ;;  %5475 = vmatpush1.msk.msra.mxu1 %vm1017_vm4, %v3690_v21 }
 0xae5   :  { %4128 = vmatprep.mubr.f32.mxu0 %v9935_v6  ;;  %5476 = vmatmul.mubr.msk.f32.vlgmr.msra.gmra.mrb[18].mxu1 %vm1013_vm9, %v6389_v49 }
 0xae6   :  { %4205 = vmatprep.mubr.f32.mxu1 %v9935_v6 }
 0xbb7   :  { %v3770_v55 = vpop.f32.mrb[18].mxu0 }
 0xbb8   :  { %v3771_v59 = vadd.f32 %v3770_v55, %v6962_v11  ;;  %v3772_v8 = vpop.f32.mrb[19].mxu0  ;;  %v3841_v28 = vpop.f32.mrb[18].mxu1 }
 0xbb9   :  { %v3773_v0 = vadd.f32 %v3772_v8, %v6962_v11  ;;  %v3842_v19 = vadd.f32 %v3841_v28, %v6962_v11  ;;  %v3843_v32 = vpop.f32.mrb[19].mxu1 }
 0xbba   :  { %v3846_v52 = vsel %vm1017_vm4, %v3771_v59, 0.0  ;;  %v3844_v48 = vadd.f32 %v3843_v32, %v6962_v11 }
 0xbbb   :  { %v3847_v40 = vsel %vm1017_vm4, %v3773_v0, 0.0  ;;  %v3849_v14 = vsel %vm1017_vm4, %v3842_v19, 0.0 }
 0xbbc   :  { %v3848_v62 = vadd.f32 %v3847_v40, %v3846_v52  ;;  %v3851_v50 = vsel %vm1017_vm4, %v3844_v48, 0.0 }
 0xbbe   :  { %v3850_v2 = vadd.f32 %v3849_v14, %v3848_v62 }
 0xbc0   :  { %v3852_v4 = vadd.f32 %v3851_v50, %v3850_v2 }
 0xbc2   :  { %3853 = vadd.xlane.f32.xlu0 %v3852_v4 }
 0xc4f   :  { %v3854_v17 = vpop.xlane.xlu0 %3853 }
 0xc50   :  { %v3855_v63 = vmul.f32 0.001953125, %v3854_v17 }
 0xc52   :  { %v3856_v47 = vsub.f32 %v3771_v59, %v3855_v63  ;;  %v3857_v7 = vsub.f32 %v3773_v0, %v3855_v63  ;;  %v3858_v10 = vsub.f32 %v3842_v19, %v3855_v63  ;;  %v3859_v36 = vsub.f32 %v3844_v48, %v3855_v63 }
 0xc54   :  { %v3860_v22 = vmul.f32 %v3856_v47, %v3856_v47  ;;  %v3861_v53 = vmul.f32 %v3857_v7, %v3857_v7  ;;  %v3862_v24 = vmul.f32 %v3858_v10, %v3858_v10  ;;  %v3863_v15 = vmul.f32 %v3859_v36, %v3859_v36 }
 0xc56   :  { %v3864_v11 = vsel %vm1017_vm4, %v3860_v22, 0.0  ;;  %v3865_v29 = vsel %vm1017_vm4, %v3861_v53, 0.0  ;;  %v3867_v39 = vsel %vm1017_vm4, %v3862_v24, 0.0  ;;  %v3869_v61 = vsel %vm1017_vm4, %v3863_v15, 0.0 }
 0xc57   :  { %v3866_v44 = vadd.f32 %v3865_v29, %v3864_v11  ;;  %vm1671_vm4 = vcmask 1041408  }
 0xc59   :  { %v3868_v13 = vadd.f32 %v3867_v39, %v3866_v44 }
 0xc5b   :  { %v3870_v46 = vadd.f32 %v3869_v61, %v3868_v13 }
 0xc5d   :  { %3871 = vadd.xlane.f32.xlu0 %v3870_v46 }
 0xcea   :  { %v3872_v51 = vpop.xlane.xlu0 %3871 }
 0xceb   :  { %v3873_v43 = vmul.f32 0.001953125, %v3872_v51 }
 0xced   :  { %v3874_v38 = vadd.f32 1e-05, %v3873_v43 }
 0xcef   :  { %6123 = vrsqrt.f32 %v3874_v38 }
 0xcf9   :  { %v6124_v45 = vpop.eup %6123 }
 0xcfa   :  { %v3878_v18 = vmul.f32 %v6124_v45, %v3858_v10  ;;  %v3877_v57 = vmul.f32 %v6124_v45, %v3857_v7  ;;  %v3876_v56 = vmul.f32 %v6124_v45, %v3856_v47  ;;  %v3879_v33 = vmul.f32 %v6124_v45, %v3859_v36 }
 0xcfc   :  { %v3882_v54 = vadd.f32 %v3878_v18, %v2960_v31  ;;  %v3881_v60 = vadd.f32 %v3877_v57, %v2885_v42  ;;  %v3880_v26 = vadd.f32 %v3876_v56, %v2883_v35  ;;  %v3883_v16 = vadd.f32 %v3879_v33, %v2962_v58 }
 0xcfe   :  { %3892 = vrot.lane.b32.xlu0 %v3882_v54, %s6433_s15  ;;  %3886 = vst [vmem:[#allocation3 + $0x10] sm:$0xf] %v3882_v54  ;;  %3890 = vrot.lane.b32.xlu1 %v3881_v60, %s6433_s15  ;;  %3885 = vst [vmem:[#allocation3 + $0x8] sm:$0xf] %v3881_v60 }
 0xcff   :  { %3884 = vst [vmem:[#allocation3] sm:$0xf] %v3880_v26  ;;  %3887 = vst [vmem:[#allocation3 + $0x18] sm:$0xf] %v3883_v16 }
 0xd02   :  { %3934 = vrot.lane.b32.xlu1 %v3881_v60, %s9908_s2  ;;  %3888 = vrot.lane.b32.xlu0 %v3880_v26, %s6433_s15 }
 0xd06   :  { %3936 = vrot.lane.b32.xlu1 %v3882_v54, %s9908_s2  ;;  %3918 = vrot.lane.b32.xlu0 %v3881_v60, %s6435_s17 }
 0xd0a   :  { %3932 = vrot.lane.b32.xlu1 %v3880_v26, %s9908_s2  ;;  %3894 = vrot.lane.b32.xlu0 %v3883_v16, %s6433_s15 }
 0xd0e   :  { %3920 = vrot.lane.b32.xlu1 %v3882_v54, %s6435_s17  ;;  %3938 = vrot.lane.b32.xlu0 %v3883_v16, %s9908_s2 }
 0xd12   :  { %3916 = vrot.lane.b32.xlu1 %v3880_v26, %s6435_s17  ;;  %3980 = vrot.lane.b32.xlu0 %v3882_v54, %s6424_s29 }
 0xd16   :  { %3978 = vrot.lane.b32.xlu1 %v3881_v60, %s6424_s29  ;;  %4024 = vrot.lane.b32.xlu0 %v3882_v54, %s6419_s24 }
 0xd1a   :  { %4022 = vrot.lane.b32.xlu1 %v3881_v60, %s6419_s24  ;;  %3976 = vrot.lane.b32.xlu0 %v3880_v26, %s6424_s29 }
 0xd1e   :  { %3922 = vrot.lane.b32.xlu1 %v3883_v16, %s6435_s17  ;;  %3962 = vrot.lane.b32.xlu0 %v3881_v60, %s6425_s30 }
 0xd22   :  { %4020 = vrot.lane.b32.xlu1 %v3880_v26, %s6419_s24  ;;  %4006 = vrot.lane.b32.xlu0 %v3881_v60, %s6426_s8 }
 0xd26   :  { %3964 = vrot.lane.b32.xlu1 %v3882_v54, %s6425_s30  ;;  %3960 = vrot.lane.b32.xlu0 %v3880_v26, %s6425_s30 }
 0xd2a   :  { %4008 = vrot.lane.b32.xlu1 %v3882_v54, %s6426_s8  ;;  %4004 = vrot.lane.b32.xlu0 %v3880_v26, %s6426_s8 }
 0xd2e   :  { %3982 = vrot.lane.b32.xlu1 %v3883_v16, %s6424_s29  ;;  %3966 = vrot.lane.b32.xlu0 %v3883_v16, %s6425_s30 }
 0xd32   :  { %4026 = vrot.lane.b32.xlu1 %v3883_v16, %s6419_s24  ;;  %1393 = vperm.xlu0 %5773, %v52_v25  }
 0xd36   :  { %4010 = vrot.lane.b32.xlu1 %v3883_v16, %s6426_s8 }
 0xd3a   :  { %1398 = vperm.xlu1 %5929, %v53_v1  }
 0xd70   :  { %v3893_v20 = vpop.permute.xlu0 %3892  ;;  %v3891_v34 = vpop.permute.xlu1 %3890 }
 0xd71   :  { %v3897_v37 = vsel %vm464_vm11, %v3891_v34, %v3893_v20 }
 0xd72   :  { %v3905_v23 = vrot.slane %v3897_v37, 4 }
 0xd74   :  { %3913 = vst [vmem:[#allocation3 + $0x8] sm:$0xf0] %v3905_v23  ;;  %v3935_v30 = vpop.permute.xlu1 %3934  ;;  %v3889_v41 = vpop.permute.xlu0 %3888 }
 0xd75   :  { %v3898_v21 = vsel %vm464_vm11, %v3889_v41, %v3891_v34 }
 0xd76   :  { %v3904_v49 = vrot.slane %v3898_v21, 4 }
 0xd78   :  { %3912 = vst [vmem:[#allocation3] sm:$0xf0] %v3904_v49  ;;  %v3937_v55 = vpop.permute.xlu1 %3936  ;;  %v3919_v59 = vpop.permute.xlu0 %3918 }
 0xd79   :  { %v3941_v8 = vsel %vm515_vm14, %v3935_v30, %v3937_v55 }
 0xd7a   :  { %v3949_v28 = vrot.slane %v3941_v8, 4 }
 0xd7b   :  { %v4049_v11 = vld [vmem:[#allocation3 + $0x8] sm:$0xff] }
 0xd7c   :  { %3957 = vst [vmem:[#allocation3 + $0x28] sm:$0xf0] %v3949_v28  ;;  %v3933_v0 = vpop.permute.xlu1 %3932  ;;  %v3895_v52 = vpop.permute.xlu0 %3894 }
 0xd7d   :  { %v3942_v19 = vsel %vm515_vm14, %v3933_v0, %v3935_v30  ;;  %v3896_v32 = vsel %vm464_vm11, %v3893_v20, %v3895_v52  ;;  %v3899_v40 = vsel %vm464_vm11, %v3895_v52, %v3889_v41 }
 0xd7e   :  { %v3948_v48 = vrot.slane %v3942_v19, 4  ;;  %v3906_v62 = vrot.slane %v3896_v32, 4  ;;  %v3907_v14 = vrot.slane %v3899_v40, 4 }
 0xd7f   :  { %v4048_v43 = vld [vmem:[#allocation3] sm:$0xff] }
 0xd80   :  { %3956 = vst [vmem:[#allocation3 + $0x20] sm:$0xf0] %v3948_v48  ;;  %3914 = vst [vmem:[#allocation3 + $0x10] sm:$0xf0] %v3906_v62  ;;  %v3921_v2 = vpop.permute.xlu1 %3920  ;;  %v3939_v50 = vpop.permute.xlu0 %3938 }
 0xd81   :  { %3915 = vst [vmem:[#allocation3 + $0x18] sm:$0xf0] %v3907_v14  ;;  %v3925_v4 = vsel %vm498_vm12, %v3919_v59, %v3921_v2  ;;  %v3940_v17 = vsel %vm515_vm14, %v3937_v55, %v3939_v50  ;;  %v3943_v63 = vsel %vm515_vm14, %v3939_v50, %v3933_v0 }
 0xd82   :  { %3929 = vst [vmem:[#allocation3 + $0x28] sm:$0xf] %v3925_v4  ;;  %v3950_v47 = vrot.slane %v3940_v17, 4  ;;  %v3951_v7 = vrot.slane %v3943_v63, 4 }
 0xd84   :  { %3958 = vst [vmem:[#allocation3 + $0x30] sm:$0xf0] %v3950_v47  ;;  %3959 = vst [vmem:[#allocation3 + $0x38] sm:$0xf0] %v3951_v7  ;;  %v3917_v10 = vpop.permute.xlu1 %3916  ;;  %v3981_v36 = vpop.permute.xlu0 %3980 }
 0xd85   :  { %v3926_v22 = vsel %vm498_vm12, %v3917_v10, %v3919_v59 }
 0xd86   :  { %3928 = vst [vmem:[#allocation3 + $0x20] sm:$0xf] %v3926_v22 }
 0xd87   :  { %v4050_v37 = vld [vmem:[#allocation3 + $0x10] sm:$0xff] }
 0xd88   :  { %v3979_v53 = vpop.permute.xlu1 %3978  ;;  %v7590_v24 = vpop.permute.xlu0 %4024  ;;  %v4051_v25 = vld [vmem:[#allocation3 + $0x18] sm:$0xff] }
 0xd89   :  { %v3985_v15 = vsel %vm324_vm6, %v3979_v53, %v3981_v36  ;;  %v4053_v29 = vld [vmem:[#allocation3 + $0x28] sm:$0xff] }
 0xd8a   :  { %v3993_v44 = vrot.slane %v3985_v15, 4  ;;  %v5737_v39 = vpack.c.bf16 %v4053_v29, %v4049_v11  ;;  %v6390_v15 = vld [vmem:[%s9814_s5] sm:$0xff]  ;;  %v6391_v11 = vld [vmem:[%s9814_s5 + $0x8] sm:$0xff] }
 0xd8c   :  { %4001 = vst [vmem:[#allocation3 + $0x48] sm:$0xf0] %v3993_v44  ;;  %v4023_v13 = vpop.permute.xlu1 %4022  ;;  %5738 = vmatprep.subr.bf16.mxu0 %v5737_v39  ;;  %v3977_v61 = vpop.permute.xlu0 %3976 }
 0xd8d   :  { %v4029_v46 = vsel %vm375_vm10, %v4023_v13, %v7590_v24  ;;  %v3986_v51 = vsel %vm324_vm6, %v3977_v61, %v3979_v53  ;;  %v4052_v38 = vld [vmem:[#allocation3 + $0x20] sm:$0xff] }
 0xd8e   :  { %v4037_v45 = vrot.slane %v4029_v46, 4  ;;  %v3992_v35 = vrot.slane %v3986_v51, 4  ;;  %v5739_v42 = vpack.c.bf16 %v4052_v38, %v4048_v43  ;;  %v7660_v38 = vld [vmem:[%s9810_s1 + $0x1] ss:$2 sm:$0xf] }
 0xd90   :  { %4045 = vst [vmem:[#allocation3 + $0x68] sm:$0xf0] %v4037_v45  ;;  %4000 = vst [vmem:[#allocation3 + $0x40] sm:$0xf0] %v3992_v35  ;;  %v3923_v31 = vpop.permute.xlu1 %3922  ;;  %v3963_v58 = vpop.permute.xlu0 %3962  ;;  %5740 = vmatpush1.bf16.msra.mxu0 %v5739_v42 }
 0xd91   :  { %v3924_v18 = vsel %vm498_vm12, %v3921_v2, %v3923_v31  ;;  %v3927_v57 = vsel %vm498_vm12, %v3923_v31, %v3917_v10 }
 0xd92   :  { %3930 = vst [vmem:[#allocation3 + $0x30] sm:$0xf] %v3924_v18  ;;  %3931 = vst [vmem:[#allocation3 + $0x38] sm:$0xf] %v3927_v57 }
 0xd94   :  { %v4021_v56 = vpop.permute.xlu1 %4020  ;;  %v4007_v33 = vpop.permute.xlu0 %4006 }
 0xd95   :  { %v4030_v54 = vsel %vm375_vm10, %v4021_v56, %v4023_v13 }
 0xd96   :  { %v4036_v60 = vrot.slane %v4030_v54, 4 }
 0xd98   :  { %4044 = vst [vmem:[#allocation3 + $0x60] sm:$0xf0] %v4036_v60  ;;  %v3965_v26 = vpop.permute.xlu1 %3964  ;;  %v3961_v16 = vpop.permute.xlu0 %3960  ;;  %v9944_v60 = vld [vmem:[#allocation7_spill] sm:$0xff] }
 0xd99   :  { %v3969_v1 = vsel %vm307_vm7, %v3963_v58, %v3965_v26  ;;  %v3970_v20 = vsel %vm307_vm7, %v3961_v16, %v3963_v58  ;;  %v4055_v34 = vld [vmem:[#allocation3 + $0x38] sm:$0xff]  ;;  %v4054_v23 = vld [vmem:[#allocation3 + $0x30] sm:$0xff] }
 0xd9a   :  { %3973 = vst [vmem:[#allocation3 + $0x48] sm:$0xf] %v3969_v1  ;;  %3972 = vst [vmem:[#allocation3 + $0x40] sm:$0xf] %v3970_v20  ;;  %v5745_v30 = vpack.c.bf16 %v4055_v34, %v4051_v25  ;;  %v5747_v41 = vpack.c.bf16 %v4054_v23, %v4050_v37  ;;  %v9947_v25 = vsub.s32 1, %v9944_v60  ;;  %v9949_v20 = vsub.s32 2, %v9944_v60 }
 0xd9c   :  { %v4009_v21 = vpop.permute.xlu1 %4008  ;;  %5746 = vmatprep.subr.bf16.mxu1 %v5745_v30  ;;  %v4005_v49 = vpop.permute.xlu0 %4004  ;;  %v7682_v1 = vrot.slane %v7660_v38, %v9947_v25  ;;  %v7687_v34 = vrot.slane %v7660_v38, %v9949_v20 }
 0xd9d   :  { %v4013_v55 = vsel %vm358_vm8, %v4007_v33, %v4009_v21  ;;  %v4014_v59 = vsel %vm358_vm8, %v4005_v49, %v4007_v33  ;;  %5748 = vmatpush1.bf16.msra.mxu1 %v5747_v41 }
 0xd9e   :  { %4017 = vst [vmem:[#allocation3 + $0x68] sm:$0xf] %v4013_v55  ;;  %4016 = vst [vmem:[#allocation3 + $0x60] sm:$0xf] %v4014_v59 }
 0xd9f   :  { %9948 = vst [vmem:[#allocation12_spill] sm:$0xff] %v7682_v1  ;;  %9950 = vst [vmem:[#allocation13_spill] sm:$0xff] %v7687_v34 }
 0xda0   :  { %v3983_v8 = vpop.permute.xlu1 %3982  ;;  %v3967_v28 = vpop.permute.xlu0 %3966 }
 0xda1   :  { %v3984_v0 = vsel %vm324_vm6, %v3981_v36, %v3983_v8  ;;  %v3987_v52 = vsel %vm324_vm6, %v3983_v8, %v3977_v61  ;;  %v3968_v19 = vsel %vm307_vm7, %v3965_v26, %v3967_v28  ;;  %v3971_v32 = vsel %vm307_vm7, %v3967_v28, %v3961_v16  ;;  %v4057_v14 = vld [vmem:[#allocation3 + $0x48] sm:$0xff]  ;;  %v4056_v17 = vld [vmem:[#allocation3 + $0x40] sm:$0xff] }
 0xda2   :  { %v3994_v40 = vrot.slane %v3984_v0, 4  ;;  %v3995_v48 = vrot.slane %v3987_v52, 4  ;;  %3974 = vst [vmem:[#allocation3 + $0x50] sm:$0xf] %v3968_v19  ;;  %3975 = vst [vmem:[#allocation3 + $0x58] sm:$0xf] %v3971_v32 }
 0xda3   :  { %v9945_v26 = vsub.s32 0, %v9944_v60  ;;  %v9951_v28 = vld [vmem:[#allocation8_spill] sm:$0xff]  ;;  %v9952_v52 = vld [vmem:[#allocation9_spill] sm:$0xff]  ;;  %v9953_v32 = vld [vmem:[#allocation10_spill] sm:$0xff] }
 0xda4   :  { %4002 = vst [vmem:[#allocation3 + $0x50] sm:$0xf0] %v3994_v40  ;;  %4003 = vst [vmem:[#allocation3 + $0x58] sm:$0xf0] %v3995_v48  ;;  %v4027_v62 = vpop.permute.xlu1 %4026  ;;  %v9954_v48 = vld [vmem:[#allocation11_spill] sm:$0xff] }
 0xda5   :  { %v4028_v2 = vsel %vm375_vm10, %v7590_v24, %v4027_v62  ;;  %v4031_v50 = vsel %vm375_vm10, %v4027_v62, %v4021_v56  ;;  %v4061_v4 = vld [vmem:[#allocation3 + $0x68] sm:$0xff]  ;;  %v4060_v63 = vld [vmem:[#allocation3 + $0x60] sm:$0xff]  ;;  %v7677_v16 = vrot.slane %v7660_v38, %v9945_v26 }
 0xda6   :  { %v4038_v47 = vrot.slane %v4028_v2, 4  ;;  %v4039_v7 = vrot.slane %v4031_v50, 4  ;;  %v5741_v10 = vpack.c.bf16 %v4061_v4, %v4057_v14  ;;  %v5743_v36 = vpack.c.bf16 %v4060_v63, %v4056_v17 }
 0xda7   :  { %9946 = vst [vmem:[#allocation7_spill] sm:$0xff] %v7677_v16 }
 0xda8   :  { %4046 = vst [vmem:[#allocation3 + $0x70] sm:$0xf0] %v4038_v47  ;;  %4047 = vst [vmem:[#allocation3 + $0x78] sm:$0xf0] %v4039_v7  ;;  %v4011_v22 = vpop.permute.xlu1 %4010  ;;  %5742 = vmatprep.subr.bf16.mxu0 %v5741_v10 }
 0xda9   :  { %v4012_v53 = vsel %vm358_vm8, %v4009_v21, %v4011_v22  ;;  %v4015_v24 = vsel %vm358_vm8, %v4011_v22, %v4005_v49  ;;  %5744 = vmatpush1.bf16.msra.mxu0 %v5743_v36 }
 0xdaa   :  { %4018 = vst [vmem:[#allocation3 + $0x70] sm:$0xf] %v4012_v53  ;;  %4019 = vst [vmem:[#allocation3 + $0x78] sm:$0xf] %v4015_v24 }
 0xdab   :  { %v4059_v51 = vld [vmem:[#allocation3 + $0x58] sm:$0xff]  ;;  %v4058_v43 = vld [vmem:[#allocation3 + $0x50] sm:$0xff] }
 0xdac   :  { %5477 = vmatmul.mubr.msk.f32.vlgmr.msra.gmra.mrb[20].mxu0 %vm1401_vm13, %v6390_v15 }
 0xdad   :  { %4134 = vmatprep.mubr.f32.mxu0 %v9935_v6 }
 0xdb0   :  { %5478 = vmatmul.mubr.msk.f32.gmra.mrb[22].mxu0 %vm1401_vm13, %v6391_v11 }
 0xdb1   :  { %v7639_v29 = vpop.permute.xlu0 %1393  ;;  %v4063_v27 = vld [vmem:[#allocation3 + $0x78] sm:$0xff]  ;;  %v4062_v44 = vld [vmem:[#allocation3 + $0x70] sm:$0xff] }
 0xdb2   :  { %v7643_v39 = vadd.f32 %v7116_v12, %v7639_v29  ;;  %v7647_v13 = vadd.f32 %v7118_v3, %v7639_v29  ;;  %v7651_v61 = vadd.f32 %v7124_v5, %v7639_v29  ;;  %v7655_v46 = vadd.f32 %v7129_v9, %v7639_v29 }
 0xdb3   :  { %v5749_v12 = vpack.c.bf16 %v4063_v27, %v4059_v51  ;;  %v5751_v45 = vpack.c.bf16 %v4062_v44, %v4058_v43 }
 0xdb4   :  { %v1566_v3 = vrot.slane %v7643_v39, 2  ;;  %v1567_v35 = vrot.slane %v7647_v13, 2  ;;  %v1568_v5 = vrot.slane %v7651_v61, 2  ;;  %v1569_v42 = vrot.slane %v7655_v46, 2 }
 0xdb5   :  { %5750 = vmatprep.subr.bf16.mxu1 %v5749_v12  ;;  %v1578_v9 = vrot.slane %v7643_v39, 4  ;;  %v1579_v31 = vrot.slane %v7647_v13, 4  ;;  %v1580_v58 = vrot.slane %v7651_v61, 4  ;;  %v1581_v18 = vrot.slane %v7655_v46, 4 }
 0xdb6   :  { %5752 = vmatpush1.bf16.msra.mxu1 %v5751_v45  ;;  %v1574_v57 = vadd.f32 %v1566_v3, %v7643_v39  ;;  %v1575_v56 = vadd.f32 %v1567_v35, %v7647_v13  ;;  %v1576_v33 = vadd.f32 %v1568_v5, %v7651_v61  ;;  %v1577_v54 = vadd.f32 %v1569_v42, %v7655_v46 }
 0xdb7   :  { %v1590_v49 = vrot.slane %v7643_v39, 6  ;;  %v1591_v55 = vrot.slane %v7647_v13, 6  ;;  %v1592_v59 = vrot.slane %v7651_v61, 6  ;;  %v1593_v8 = vrot.slane %v7655_v46, 6 }
 0xdb8   :  { %v1586_v37 = vadd.f32 %v1578_v9, %v1574_v57  ;;  %v1587_v23 = vadd.f32 %v1579_v31, %v1575_v56  ;;  %v1588_v30 = vadd.f32 %v1580_v58, %v1576_v33  ;;  %v1589_v41 = vadd.f32 %v1581_v18, %v1577_v54 }
 0xdb9   :  { %5479 = vmatmul.mubr.msk.f32.vlgmr.msra.gmra.mrb[20].mxu1 %vm1401_vm13, %v6390_v15  ;;  %v7690_v21 = vpop.permute.xlu1 %1398  ;;  %v9955_v58 = vsub.s32 3, %v9944_v60 }
 0xdba   :  { %v7698_v0 = vadd.f32 %v9951_v28, %v7690_v21  ;;  %v7702_v19 = vadd.f32 %v9952_v52, %v7690_v21  ;;  %v7706_v40 = vadd.f32 %v9953_v32, %v7690_v21  ;;  %v7710_v62 = vadd.f32 %v9954_v48, %v7690_v21  ;;  %4211 = vmatprep.mubr.f32.mxu1 %v9935_v6 }
 0xdbb   :  { %v1598_v14 = vadd.f32 %v1590_v49, %v1586_v37  ;;  %v1599_v2 = vadd.f32 %v1591_v55, %v1587_v23  ;;  %v1600_v50 = vadd.f32 %v1592_v59, %v1588_v30  ;;  %v1601_v4 = vadd.f32 %v1593_v8, %v1589_v41 }
 0xdbc   :  { %v1610_v17 = vrot.slane %v7698_v0, 2  ;;  %v1611_v63 = vrot.slane %v7702_v19, 2  ;;  %v1612_v47 = vrot.slane %v7706_v40, 2  ;;  %v1613_v7 = vrot.slane %v7710_v62, 2 }
 0xdbd   :  { %5480 = vmatmul.mubr.msk.f32.gmra.mrb[22].mxu1 %vm1401_vm13, %v6391_v11  ;;  %v1602_v10 = vadd.f32 %v1598_v14, %v7698_v0  ;;  %v1603_v36 = vadd.f32 %v1599_v2, %v7702_v19  ;;  %v1604_v6 = vadd.f32 %v1600_v50, %v7706_v40  ;;  %v1605_v22 = vadd.f32 %v1601_v4, %v7710_v62 }
 0xdbe   :  { %v1622_v53 = vrot.slane %v7698_v0, 4  ;;  %v1623_v24 = vrot.slane %v7702_v19, 4  ;;  %v1624_v15 = vrot.slane %v7706_v40, 4  ;;  %v1625_v27 = vrot.slane %v7710_v62, 4 }
 0xdbf   :  { %v1618_v44 = vadd.f32 %v1610_v17, %v1602_v10  ;;  %v1619_v51 = vadd.f32 %v1611_v63, %v1603_v36  ;;  %v1620_v43 = vadd.f32 %v1612_v47, %v1604_v6  ;;  %v1621_v11 = vadd.f32 %v1613_v7, %v1605_v22 }
 0xdc0   :  { %v1634_v12 = vrot.slane %v7698_v0, 6  ;;  %v1635_v45 = vrot.slane %v7702_v19, 6  ;;  %v1636_v3 = vrot.slane %v7706_v40, 6  ;;  %v1637_v35 = vrot.slane %v7710_v62, 6 }
 0xdc1   :  { %v1630_v5 = vadd.f32 %v1622_v53, %v1618_v44  ;;  %v1631_v42 = vadd.f32 %v1623_v24, %v1619_v51  ;;  %v1632_v9 = vadd.f32 %v1624_v15, %v1620_v43  ;;  %v1633_v31 = vadd.f32 %v1625_v27, %v1621_v11 }
 0xdc2   :  { %v7733_v18 = vrot.slane %v7660_v38, %v9955_v58 }
 0xdc3   :  { %v1642_v57 = vadd.f32 %v1634_v12, %v1630_v5  ;;  %v1643_v56 = vadd.f32 %v1635_v45, %v1631_v42  ;;  %v1644_v33 = vadd.f32 %v1636_v3, %v1632_v9  ;;  %v1645_v54 = vadd.f32 %v1637_v35, %v1633_v31 }
 0xdc4   :  { %9956 = vst [vmem:[#allocation8_spill] sm:$0xff] %v7733_v18 }
 0xdc5   :  { %v1667_v26 = vmul.f32 %v7677_v16, %v1642_v57  ;;  %v1668_v25 = vmul.f32 %v7682_v1, %v1643_v56  ;;  %v1669_v20 = vmul.f32 %v7687_v34, %v1644_v33  ;;  %v1670_v37 = vmul.f32 %v7733_v18, %v1645_v54 }
 0xdc7   :  { %v1672_v23 = vsel %vm1671_vm4, %v1667_v26, 0.0  ;;  %v1673_v60 = vsel %vm1671_vm4, %v1668_v25, 0.0  ;;  %v1675_v38 = vsel %vm1671_vm4, %v1669_v20, 0.0  ;;  %v1677_v49 = vsel %vm1671_vm4, %v1670_v37, 0.0 }
 0xdc8   :  { %v1674_v30 = vadd.f32 %v1673_v60, %v1672_v23 }
 0xdca   :  { %v1676_v41 = vadd.f32 %v1675_v38, %v1674_v30 }
 0xdcc   :  { %v1678_v55 = vadd.f32 %v1677_v49, %v1676_v41 }
 0xdce   :  { %1679 = vadd.xlane.f32.xlu0 %v1678_v55 }
 0xe5b   :  { %v1680_v59 = vpop.xlane.xlu0 %1679 }
 0xe5c   :  { %v1682_v8 = vmul.f32 0.0003644315, %v1680_v59 }
 0xe5e   :  { %v7744_v28 = vsub.f32 %v7643_v39, %v1682_v8  ;;  %v7747_v52 = vsub.f32 %v7647_v13, %v1682_v8  ;;  %v7750_v32 = vsub.f32 %v7651_v61, %v1682_v8  ;;  %v7753_v48 = vsub.f32 %v7655_v46, %v1682_v8 }
 0xe5f   :  { %v7755_v14 = vrot.slane %v1682_v8, 6  ;;  %v7757_v2 = vrot.slane %v1682_v8, 4  ;;  %v7759_v50 = vrot.slane %v1682_v8, 2  ;;  %v7762_v4 = vsub.f32 %v7698_v0, %v1682_v8 }
 0xe60   :  { %v1687_v17 = vmul.f32 %v7744_v28, %v7744_v28  ;;  %v1688_v63 = vmul.f32 %v7747_v52, %v7747_v52  ;;  %v1689_v47 = vmul.f32 %v7750_v32, %v7750_v32  ;;  %v1690_v7 = vmul.f32 %v7753_v48, %v7753_v48 }
 0xe61   :  { %v7774_v10 = vsub.f32 %v7643_v39, %v7755_v14  ;;  %v7778_v36 = vsub.f32 %v7647_v13, %v7755_v14  ;;  %v7782_v6 = vsub.f32 %v7651_v61, %v7755_v14  ;;  %v7786_v22 = vsub.f32 %v7655_v46, %v7755_v14 }
 0xe62   :  { %v7790_v53 = vsub.f32 %v7643_v39, %v7757_v2  ;;  %v7794_v24 = vsub.f32 %v7647_v13, %v7757_v2  ;;  %v7798_v15 = vsub.f32 %v7651_v61, %v7757_v2  ;;  %v7802_v27 = vsub.f32 %v7655_v46, %v7757_v2 }
 0xe63   :  { %v1698_v44 = vmul.f32 %v7774_v10, %v7774_v10  ;;  %v1699_v51 = vmul.f32 %v7778_v36, %v7778_v36  ;;  %v1700_v43 = vmul.f32 %v7782_v6, %v7782_v6  ;;  %v1701_v11 = vmul.f32 %v7786_v22, %v7786_v22 }
 0xe64   :  { %v1724_v12 = vmul.f32 %v7790_v53, %v7790_v53  ;;  %v1725_v45 = vmul.f32 %v7794_v24, %v7794_v24  ;;  %v1726_v3 = vmul.f32 %v7798_v15, %v7798_v15  ;;  %v1727_v35 = vmul.f32 %v7802_v27, %v7802_v27 }
 0xe65   :  { %v1706_v5 = vrot.slane %v1698_v44, 2  ;;  %v1707_v42 = vrot.slane %v1699_v51, 2  ;;  %v1708_v9 = vrot.slane %v1700_v43, 2  ;;  %v1709_v31 = vrot.slane %v1701_v11, 2 }
 0xe66   :  { %v1732_v58 = vrot.slane %v1724_v12, 4  ;;  %v1733_v57 = vrot.slane %v1725_v45, 4  ;;  %v1734_v56 = vrot.slane %v1726_v3, 4  ;;  %v1735_v33 = vrot.slane %v1727_v35, 4 }
 0xe67   :  { %v1714_v54 = vadd.f32 %v1706_v5, %v1687_v17  ;;  %v1715_v26 = vadd.f32 %v1707_v42, %v1688_v63  ;;  %v1716_v25 = vadd.f32 %v1708_v9, %v1689_v47  ;;  %v1717_v20 = vadd.f32 %v1709_v31, %v1690_v7 }
 0xe68   :  { %v7822_v37 = vsub.f32 %v7643_v39, %v7759_v50  ;;  %v7826_v23 = vsub.f32 %v7647_v13, %v7759_v50  ;;  %v7830_v60 = vsub.f32 %v7651_v61, %v7759_v50  ;;  %v7834_v30 = vsub.f32 %v7655_v46, %v7759_v50 }
 0xe69   :  { %v1740_v38 = vadd.f32 %v1732_v58, %v1714_v54  ;;  %v1741_v41 = vadd.f32 %v1733_v57, %v1715_v26  ;;  %v1742_v49 = vadd.f32 %v1734_v56, %v1716_v25  ;;  %v1743_v55 = vadd.f32 %v1735_v33, %v1717_v20 }
 0xe6a   :  { %v1750_v39 = vmul.f32 %v7822_v37, %v7822_v37  ;;  %v1751_v59 = vmul.f32 %v7826_v23, %v7826_v23  ;;  %v1752_v13 = vmul.f32 %v7830_v60, %v7830_v60  ;;  %v1753_v61 = vmul.f32 %v7834_v30, %v7834_v30 }
 0xe6b   :  { %v7845_v17 = vsub.f32 %v7702_v19, %v1682_v8  ;;  %v7848_v46 = vsub.f32 %v7706_v40, %v1682_v8  ;;  %v7851_v63 = vsub.f32 %v7710_v62, %v1682_v8  ;;  %v1774_v47 = vmul.f32 %v7762_v4, %v7762_v4 }
 0xe6c   :  { %v1758_v7 = vrot.slane %v1750_v39, 6  ;;  %v1759_v44 = vrot.slane %v1751_v59, 6  ;;  %v1760_v51 = vrot.slane %v1752_v13, 6  ;;  %v1761_v43 = vrot.slane %v1753_v61, 6 }
 0xe6d   :  { %9957 = vst [vmem:[#allocation9_spill] sm:$0xff] %v7845_v17  ;;  %9958 = vst [vmem:[#allocation10_spill] sm:$0xff] %v7848_v46  ;;  %v1775_v11 = vmul.f32 %v7845_v17, %v7845_v17  ;;  %v1776_v12 = vmul.f32 %v7848_v46, %v7848_v46  ;;  %v1777_v45 = vmul.f32 %v7851_v63, %v7851_v63 }
 0xe6e   :  { %9959 = vst [vmem:[#allocation11_spill] sm:$0xff] %v7851_v63  ;;  %v7863_v8 = vsub.f32 %v7698_v0, %v7755_v14  ;;  %v1766_v3 = vadd.f32 %v1758_v7, %v1740_v38  ;;  %v1767_v35 = vadd.f32 %v1759_v44, %v1741_v41  ;;  %v1768_v5 = vadd.f32 %v1760_v51, %v1742_v49 }
 0xe6f   :  { %v1769_v42 = vadd.f32 %v1761_v43, %v1743_v55  ;;  %v7867_v9 = vsub.f32 %v7702_v19, %v7755_v14  ;;  %v7871_v31 = vsub.f32 %v7706_v40, %v7755_v14  ;;  %v7875_v58 = vsub.f32 %v7710_v62, %v7755_v14 }
 0xe70   :  { %9960 = vst [vmem:[#allocation14_spill] sm:$0xff] %v7863_v8  ;;  %v1786_v57 = vmul.f32 %v7863_v8, %v7863_v8  ;;  %v1778_v56 = vadd.f32 %v1774_v47, %v1766_v3  ;;  %v1779_v33 = vadd.f32 %v1775_v11, %v1767_v35  ;;  %v1780_v54 = vadd.f32 %v1776_v12, %v1768_v5 }
 0xe71   :  { %9961 = vst [vmem:[#allocation15_spill] sm:$0xff] %v7867_v9  ;;  %9962 = vst [vmem:[#allocation16_spill] sm:$0xff] %v7871_v31  ;;  %v1781_v26 = vadd.f32 %v1777_v45, %v1769_v42  ;;  %v1787_v25 = vmul.f32 %v7867_v9, %v7867_v9  ;;  %v1788_v20 = vmul.f32 %v7871_v31, %v7871_v31 }
 0xe72   :  { %9963 = vst [vmem:[#allocation17_spill] sm:$0xff] %v7875_v58  ;;  %v1789_v38 = vmul.f32 %v7875_v58, %v7875_v58  ;;  %v1794_v41 = vrot.slane %v1786_v57, 2  ;;  %v7887_v14 = vsub.f32 %v7698_v0, %v7757_v2  ;;  %v7891_v49 = vsub.f32 %v7702_v19, %v7757_v2 }
 0xe73   :  { %v7895_v55 = vsub.f32 %v7706_v40, %v7757_v2  ;;  %v7899_v39 = vsub.f32 %v7710_v62, %v7757_v2  ;;  %v1795_v59 = vrot.slane %v1787_v25, 2  ;;  %v1796_v13 = vrot.slane %v1788_v20, 2 }
 0xe74   :  { %9964 = vst [vmem:[#allocation18_spill] sm:$0xff] %v7887_v14  ;;  %9965 = vst [vmem:[#allocation19_spill] sm:$0xff] %v7891_v49  ;;  %v1797_v61 = vrot.slane %v1789_v38, 2  ;;  %v1802_v47 = vadd.f32 %v1794_v41, %v1778_v56  ;;  %v1810_v7 = vmul.f32 %v7887_v14, %v7887_v14  ;;  %v1811_v44 = vmul.f32 %v7891_v49, %v7891_v49 }
 0xe75   :  { %9966 = vst [vmem:[#allocation20_spill] sm:$0xff] %v7895_v55  ;;  %9967 = vst [vmem:[#allocation21_spill] sm:$0xff] %v7899_v39  ;;  %v1812_v51 = vmul.f32 %v7895_v55, %v7895_v55  ;;  %v1813_v43 = vmul.f32 %v7899_v39, %v7899_v39  ;;  %v1803_v11 = vadd.f32 %v1795_v59, %v1779_v33 }
 0xe76   :  { %v1804_v12 = vadd.f32 %v1796_v13, %v1780_v54  ;;  %v1805_v2 = vadd.f32 %v1797_v61, %v1781_v26  ;;  %v7911_v45 = vsub.f32 %v7698_v0, %v7759_v50  ;;  %v1818_v3 = vrot.slane %v1810_v7, 4 }
 0xe77   :  { %v1819_v35 = vrot.slane %v1811_v44, 4  ;;  %v1820_v5 = vrot.slane %v1812_v51, 4  ;;  %v1821_v42 = vrot.slane %v1813_v43, 4  ;;  %v7915_v57 = vsub.f32 %v7702_v19, %v7759_v50 }
 0xe78   :  { %9968 = vst [vmem:[#allocation22_spill] sm:$0xff] %v7911_v45  ;;  %v7919_v56 = vsub.f32 %v7706_v40, %v7759_v50  ;;  %v7923_v33 = vsub.f32 %v7710_v62, %v7759_v50  ;;  %v1834_v0 = vmul.f32 %v7911_v45, %v7911_v45  ;;  %v1826_v54 = vadd.f32 %v1818_v3, %v1802_v47 }
 0xe79   :  { %9969 = vst [vmem:[#allocation23_spill] sm:$0xff] %v7915_v57  ;;  %v1827_v26 = vadd.f32 %v1819_v35, %v1803_v11  ;;  %v1828_v25 = vadd.f32 %v1820_v5, %v1804_v12  ;;  %v1829_v20 = vadd.f32 %v1821_v42, %v1805_v2  ;;  %v1835_v38 = vmul.f32 %v7915_v57, %v7915_v57 }
 0xe7a   :  { %9970 = vst [vmem:[#allocation24_spill] sm:$0xff] %v7919_v56  ;;  %9971 = vst [vmem:[#allocation25_spill] sm:$0xff] %v7923_v33  ;;  %v1836_v19 = vmul.f32 %v7919_v56, %v7919_v56  ;;  %v1837_v40 = vmul.f32 %v7923_v33, %v7923_v33  ;;  %v1842_v41 = vrot.slane %v1834_v0, 6 }
 0xe7b   :  { %v1843_v59 = vrot.slane %v1835_v38, 6 }
 0xe7c   :  { %v1844_v62 = vrot.slane %v1836_v19, 6  ;;  %v1845_v50 = vrot.slane %v1837_v40, 6  ;;  %v1850_v13 = vadd.f32 %v1842_v41, %v1826_v54 }
 0xe7d   :  { %v1851_v61 = vadd.f32 %v1843_v59, %v1827_v26 }
 0xe7e   :  { %v1852_v7 = vadd.f32 %v1844_v62, %v1828_v25  ;;  %v1853_v47 = vadd.f32 %v1845_v50, %v1829_v20  ;;  %v1854_v44 = vmul.f32 %v1850_v13, %v7677_v16 }
 0xe7f   :  { %v1855_v51 = vmul.f32 %v1851_v61, %v7682_v1  ;;  %v4130_v12 = vpop.f32.mrb[20].mxu0 }
 0xe80   :  { %v1856_v43 = vmul.f32 %v1852_v7, %v7687_v34  ;;  %v1858_v11 = vsel %vm1671_vm4, %v1854_v44, 0.0  ;;  %v7938_v2 = vadd.f32 %v4130_v12, %v7639_v29  ;;  %v4132_v3 = vpop.f32.mrb[21].mxu0  ;;  %v1857_v35 = vmul.f32 %v1853_v47, %v7733_v18 }
 0xe81   :  { %v1859_v5 = vsel %vm1671_vm4, %v1855_v51, 0.0  ;;  %v7943_v42 = vadd.f32 %v4132_v3, %v7639_v29 }
 0xe82   :  { %9972 = vst [vmem:[#allocation26_spill] sm:$0xff] %v7938_v2  ;;  %v1860_v0 = vadd.f32 %v1859_v5, %v1858_v11  ;;  %v4222_v54 = vrot.slane %v7938_v2, 2  ;;  %v1861_v26 = vsel %vm1671_vm4, %v1856_v43, 0.0  ;;  %v4234_v41 = vrot.slane %v7938_v2, 4 }
 0xe83   :  { %9973 = vst [vmem:[#allocation27_spill] sm:$0xff] %v7943_v42  ;;  %v4136_v25 = vpop.f32.mrb[22].mxu0  ;;  %v4223_v20 = vrot.slane %v7943_v42, 2  ;;  %v1863_v59 = vsel %vm1671_vm4, %v1857_v35, 0.0  ;;  %v4235_v50 = vrot.slane %v7943_v42, 4  ;;  %v4246_v7 = vrot.slane %v7938_v2, 6 }
 0xe84   :  { %v1862_v38 = vadd.f32 %v1861_v26, %v1860_v0  ;;  %v4138_v19 = vpop.f32.mrb[23].mxu0  ;;  %v4230_v40 = vadd.f32 %v4222_v54, %v7938_v2  ;;  %v7955_v47 = vadd.f32 %v4136_v25, %v7690_v21  ;;  %v4247_v43 = vrot.slane %v7943_v42, 6 }
 0xe85   :  { %v4231_v62 = vadd.f32 %v4223_v20, %v7943_v42  ;;  %v7958_v44 = vadd.f32 %v4138_v19, %v7690_v21 }
 0xe86   :  { %v1864_v13 = vadd.f32 %v1863_v59, %v1862_v38  ;;  %v4242_v61 = vadd.f32 %v4234_v41, %v4230_v40  ;;  %9974 = vst [vmem:[#allocation28_spill] sm:$0xff] %v7955_v47  ;;  %v4266_v5 = vrot.slane %v7955_v47, 2  ;;  %v4278_v41 = vrot.slane %v7955_v47, 4 }
 0xe87   :  { %9975 = vst [vmem:[#allocation29_spill] sm:$0xff] %v7958_v44  ;;  %v4243_v51 = vadd.f32 %v4235_v50, %v4231_v62  ;;  %v4267_v0 = vrot.slane %v7958_v44, 2  ;;  %v4279_v59 = vrot.slane %v7958_v44, 4 }
 0xe88   :  { %1865 = vadd.xlane.f32.xlu0 %v1864_v13  ;;  %v4254_v11 = vadd.f32 %v4246_v7, %v4242_v61 }
 0xe89   :  { %v4255_v12 = vadd.f32 %v4247_v43, %v4243_v51 }
 0xe8a   :  { %v4258_v3 = vadd.f32 %v4254_v11, %v7955_v47 }
 0xe8b   :  { %v4259_v35 = vadd.f32 %v4255_v12, %v7958_v44  ;;  %v4290_v12 = vrot.slane %v7955_v47, 6 }
 0xe8c   :  { %v4207_v54 = vpop.f32.mrb[20].mxu1  ;;  %v4274_v20 = vadd.f32 %v4266_v5, %v4258_v3 }
 0xe8d   :  { %v7966_v26 = vadd.f32 %v4207_v54, %v7639_v29  ;;  %v4209_v25 = vpop.f32.mrb[21].mxu1  ;;  %v4275_v38 = vadd.f32 %v4267_v0, %v4259_v35  ;;  %v4291_v0 = vrot.slane %v7958_v44, 6 }
 0xe8e   :  { %v7969_v19 = vadd.f32 %v4209_v25, %v7639_v29  ;;  %v4286_v51 = vadd.f32 %v4278_v41, %v4274_v20 }
 0xe8f   :  { %9976 = vst [vmem:[#allocation30_spill] sm:$0xff] %v7966_v26  ;;  %v4224_v40 = vrot.slane %v7966_v26, 2  ;;  %v4236_v7 = vrot.slane %v7966_v26, 4  ;;  %v4287_v43 = vadd.f32 %v4279_v59, %v4275_v38  ;;  %v4248_v5 = vrot.slane %v7966_v26, 6 }
 0xe90   :  { %9977 = vst [vmem:[#allocation31_spill] sm:$0xff] %v7969_v19  ;;  %v4213_v62 = vpop.f32.mrb[22].mxu1  ;;  %v4225_v50 = vrot.slane %v7969_v19, 2  ;;  %v4237_v29 = vrot.slane %v7969_v19, 4  ;;  %v4249_v20 = vrot.slane %v7969_v19, 6 }
 0xe91   :  { %v4215_v13 = vpop.f32.mrb[23].mxu1  ;;  %v4232_v61 = vadd.f32 %v4224_v40, %v7966_v26  ;;  %v7981_v3 = vadd.f32 %v4213_v62, %v7690_v21  ;;  %v4298_v40 = vadd.f32 %v4290_v12, %v4286_v51  ;;  %v4299_v41 = vadd.f32 %v4291_v0, %v4287_v43 }
 0xe92   :  { %v4233_v11 = vadd.f32 %v4225_v50, %v7969_v19  ;;  %v7986_v54 = vadd.f32 %v4215_v13, %v7690_v21 }
 0xe93   :  { %9978 = vst [vmem:[#allocation32_spill] sm:$0xff] %v7981_v3  ;;  %v4244_v35 = vadd.f32 %v4236_v7, %v4232_v61  ;;  %v4268_v62 = vrot.slane %v7981_v3, 2  ;;  %v4280_v44 = vrot.slane %v7981_v3, 4  ;;  %v4302_v21 = vmul.f32 %v4298_v40, %v7677_v16 }
 0xe94   :  { %9979 = vst [vmem:[#allocation33_spill] sm:$0xff] %v7986_v54  ;;  %v4245_v25 = vadd.f32 %v4237_v29, %v4233_v11  ;;  %v4269_v7 = vrot.slane %v7986_v54, 2  ;;  %v4303_v13 = vmul.f32 %v4299_v41, %v7682_v1  ;;  %v4281_v51 = vrot.slane %v7986_v54, 4 }
 0xe95   :  { %v4256_v38 = vadd.f32 %v4248_v5, %v4244_v35  ;;  %v4292_v29 = vrot.slane %v7981_v3, 6  ;;  %v4293_v35 = vrot.slane %v7986_v54, 6  ;;  %v4306_v0 = vsel %vm1671_vm4, %v4302_v21, 0.0 }
 0xe96   :  { %v4257_v59 = vadd.f32 %v4249_v20, %v4245_v25  ;;  %v4307_v25 = vsel %vm1671_vm4, %v4303_v13, 0.0 }
 0xe97   :  { %v4260_v50 = vadd.f32 %v4256_v38, %v7981_v3  ;;  %v4308_v41 = vadd.f32 %v4307_v25, %v4306_v0 }
 0xe98   :  { %v4261_v61 = vadd.f32 %v4257_v59, %v7986_v54 }
 0xe99   :  { %v4276_v47 = vadd.f32 %v4268_v62, %v4260_v50 }
 0xe9a   :  { %v4277_v11 = vadd.f32 %v4269_v7, %v4261_v61 }
 0xe9b   :  { %v4288_v43 = vadd.f32 %v4280_v44, %v4276_v47 }
 0xe9c   :  { %v4289_v12 = vadd.f32 %v4281_v51, %v4277_v11 }
 0xe9d   :  { %v4300_v5 = vadd.f32 %v4292_v29, %v4288_v43 }
 0xe9e   :  { %v4301_v20 = vadd.f32 %v4293_v35, %v4289_v12 }
 0xe9f   :  { %v4304_v38 = vmul.f32 %v4300_v5, %v7687_v34 }
 0xea0   :  { %v4305_v40 = vmul.f32 %v4301_v20, %v7733_v18 }
 0xea1   :  { %v4309_v59 = vsel %vm1671_vm4, %v4304_v38, 0.0 }
 0xea2   :  { %v4310_v50 = vadd.f32 %v4309_v59, %v4308_v41  ;;  %v4311_v47 = vsel %vm1671_vm4, %v4305_v40, 0.0 }
 0xea4   :  { %v4312_v44 = vadd.f32 %v4311_v47, %v4310_v50 }
 0xea6   :  { %4313 = vadd.xlane.f32.xlu1 %v4312_v44 }
 0xf15   :  { %v1866_v62 = vpop.xlane.xlu0 %1865 }
 0xf16   :  { %v1867_v61 = vmul.f32 0.0003644315, %v1866_v62 }
 0xf18   :  { %v1868_v7 = vadd.f32 1e-05, %v1867_v61 }
 0xf1a   :  { %6125 = vrsqrt.f32 %v1868_v7 }
 0xf24   :  { %v8005_v21 = vpop.eup %6125 }
 0xf25   :  { %v1870_v13 = vmul.f32 %v8005_v21, %v7744_v28  ;;  %v1871_v11 = vmul.f32 %v8005_v21, %v7747_v52  ;;  %v1872_v51 = vmul.f32 %v8005_v21, %v7750_v32  ;;  %v1873_v43 = vmul.f32 %v8005_v21, %v7753_v48 }
 0xf26   :  { %v8016_v29 = vrot.slane %v8005_v21, 6  ;;  %v8031_v48 = vrot.slane %v8005_v21, 4  ;;  %v8034_v20 = vrot.slane %v8005_v21, 2 }
 0xf27   :  { %v8018_v12 = vmul.f32 0.70710677, %v1870_v13  ;;  %v8020_v35 = vmul.f32 0.70710677, %v1871_v11  ;;  %v8022_v5 = vmul.f32 0.70710677, %v1872_v51 }
 0xf28   :  { %9980 = vst [vmem:[#allocation34_spill] sm:$0xff] %v8016_v29  ;;  %v8024_v0 = vmul.f32 0.70710677, %v1873_v43  ;;  %9981 = vst [vmem:[#allocation35_spill] sm:$0xff] %v8031_v48  ;;  %v1989_v59 = vmul.f32 %v8016_v29, %v7774_v10  ;;  %v1990_v34 = vmul.f32 %v8016_v29, %v7778_v36  ;;  %v8040_v19 = vmul.f32 0.5, %v1870_v13 }
 0xf29   :  { %v1882_v28 = vand.u32 2147483647, %v8018_v12  ;;  %v1883_v52 = vand.u32 2147483647, %v8020_v35  ;;  %v1884_v32 = vand.u32 2147483647, %v8022_v5  ;;  %v8044_v10 = vmul.f32 %v8016_v29, %v7782_v6 }
 0xf2a   :  { %v1885_v25 = vand.u32 2147483647, %v8024_v0  ;;  %v8048_v26 = vmul.f32 %v8016_v29, %v7786_v22  ;;  %v8058_v6 = vmul.f32 0.70710677, %v1990_v34  ;;  %vm1962_vm6 = vcmp.ge.f32.partialorder %v8018_v12, 0.0 }
 0xf2b   :  { %v1886_v38 = vmul.f32 0.3275911, %v1882_v28  ;;  %v1887_v40 = vmul.f32 0.3275911, %v1883_v52  ;;  %v1888_v41 = vmul.f32 0.3275911, %v1884_v32 }
 0xf2c   :  { %v1889_v50 = vmul.f32 0.3275911, %v1885_v25  ;;  %v1938_v47 = vsub.f32 0.0, %v1882_v28  ;;  %v1939_v44 = vsub.f32 0.0, %v1883_v52  ;;  %v1940_v62 = vsub.f32 0.0, %v1884_v32 }
 0xf2d   :  { %v1890_v61 = vadd.f32 1.0, %v1886_v38  ;;  %v1891_v7 = vadd.f32 1.0, %v1887_v40  ;;  %v1892_v18 = vadd.f32 1.0, %v1888_v41  ;;  %v8050_v38 = vmul.f32 0.5, %v1871_v11 }
 0xf2e   :  { %v1893_v1 = vadd.f32 1.0, %v1889_v50  ;;  %v1942_v16 = vmul.f32 %v1938_v47, %v1882_v28  ;;  %v1943_v54 = vmul.f32 %v1939_v44, %v1883_v52  ;;  %v1944_v3 = vmul.f32 %v1940_v62, %v1884_v32 }
 0xf2f   :  { %6127 = vrcp.f32 %v1890_v61  ;;  %v1941_v40 = vsub.f32 0.0, %v1885_v25  ;;  %v8052_v41 = vmul.f32 0.5, %v1872_v51  ;;  %v8054_v28 = vmul.f32 0.5, %v1873_v43 }
 0xf30   :  { %6129 = vrcp.f32 %v1891_v7  ;;  %v1946_v36 = vmul.f32 1.442695, %v1942_v16  ;;  %v1948_v13 = vmul.f32 1.442695, %v1943_v54  ;;  %v1950_v52 = vmul.f32 1.442695, %v1944_v3 }
 0xf31   :  { %6131 = vrcp.f32 %v1892_v18  ;;  %v8056_v32 = vmul.f32 0.70710677, %v1989_v59  ;;  %v8061_v22 = vmul.f32 0.70710677, %v8044_v10  ;;  %v8064_v11 = vmul.f32 0.70710677, %v8048_v26 }
 0xf32   :  { %6133 = vrcp.f32 %v1893_v1  ;;  %v8068_v16 = vmul.f32 %v8031_v48, %v7790_v53  ;;  %v8072_v18 = vmul.f32 %v8031_v48, %v7794_v24  ;;  %v1945_v1 = vmul.f32 %v1941_v40, %v1885_v25 }
 0xf33   :  { %6135 = vpow2.f32 %v1946_v36  ;;  %v2001_v3 = vand.u32 2147483647, %v8056_v32  ;;  %v2002_v54 = vand.u32 2147483647, %v8058_v6  ;;  %v8076_v51 = vmul.f32 0.5, %v1989_v59 }
 0xf34   :  { %6137 = vpow2.f32 %v1948_v13  ;;  %v2003_v43 = vand.u32 2147483647, %v8061_v22  ;;  %v2004_v50 = vand.u32 2147483647, %v8064_v11  ;;  %v1952_v45 = vmul.f32 1.442695, %v1945_v1 }
 0xf35   :  { %6139 = vpow2.f32 %v1950_v52  ;;  %v2005_v53 = vmul.f32 0.3275911, %v2001_v3  ;;  %v2006_v47 = vmul.f32 0.3275911, %v2002_v54  ;;  %v2057_v44 = vsub.f32 0.0, %v2001_v3 }
 0xf36   :  { %v2007_v62 = vmul.f32 0.3275911, %v2003_v43  ;;  %v2008_v24 = vmul.f32 0.3275911, %v2004_v50  ;;  %v2058_v61 = vsub.f32 0.0, %v2002_v54  ;;  %v2059_v25 = vsub.f32 0.0, %v2003_v43 }
 0xf37   :  { %v2009_v7 = vadd.f32 1.0, %v2005_v53  ;;  %v2010_v40 = vadd.f32 1.0, %v2006_v47  ;;  %v2060_v36 = vsub.f32 0.0, %v2004_v50  ;;  %v2061_v42 = vmul.f32 %v2057_v44, %v2001_v3 }
 0xf38   :  { %v2011_v59 = vadd.f32 1.0, %v2007_v62  ;;  %v2012_v13 = vadd.f32 1.0, %v2008_v24  ;;  %v2062_v33 = vmul.f32 %v2058_v61, %v2002_v54  ;;  %v2063_v56 = vmul.f32 %v2059_v25, %v2003_v43 }
 0xf39   :  { %v8080_v2 = vpop.eup %6127  ;;  %6141 = vrcp.f32 %v2009_v7  ;;  %v2064_v39 = vmul.f32 %v2060_v36, %v2004_v50  ;;  %v8088_v47 = vmul.f32 0.5, %v1990_v34  ;;  %v2065_v3 = vmul.f32 1.442695, %v2061_v42 }
 0xf3a   :  { %v8082_v57 = vpop.eup %6129  ;;  %v1902_v52 = vmul.f32 1.0614054, %v8080_v2  ;;  %6143 = vrcp.f32 %v2010_v40  ;;  %v2067_v62 = vmul.f32 1.442695, %v2062_v33  ;;  %v2069_v50 = vmul.f32 1.442695, %v2063_v56 }
 0xf3b   :  { %v8085_v55 = vpop.eup %6131  ;;  %v1903_v53 = vmul.f32 1.0614054, %v8082_v57  ;;  %6145 = vrcp.f32 %v2011_v59  ;;  %v2071_v7 = vmul.f32 1.442695, %v2064_v39  ;;  %v8102_v33 = vmul.f32 %v8031_v48, %v7798_v15 }
 0xf3c   :  { %v8090_v44 = vpop.eup %6133  ;;  %v1904_v54 = vmul.f32 1.0614054, %v8085_v55  ;;  %v1906_v43 = vadd.f32 -1.4531521, %v1902_v52  ;;  %6147 = vrcp.f32 %v2012_v13  ;;  %vm1963_vm7 = vcmp.ge.f32.partialorder %v8020_v35, 0.0 }
 0xf3d   :  { %v1905_v24 = vmul.f32 1.0614054, %v8090_v44  ;;  %v1907_v1 = vadd.f32 -1.4531521, %v1903_v53  ;;  %v8094_v61 = vpop.eup %6135  ;;  %6149 = vpow2.f32 %v1952_v45  ;;  %v8109_v45 = vmul.f32 %v8031_v48, %v7802_v27 }
 0xf3e   :  { %v1908_v25 = vadd.f32 -1.4531521, %v1904_v54  ;;  %v1910_v34 = vmul.f32 %v8080_v2, %v1906_v43  ;;  %v8097_v42 = vpop.eup %6137  ;;  %6151 = vpow2.f32 %v2065_v3  ;;  %v8113_v53 = vmul.f32 0.5, %v8044_v10 }
 0xf3f   :  { %v1909_v40 = vadd.f32 -1.4531521, %v1905_v24  ;;  %v1911_v36 = vmul.f32 %v8082_v57, %v1907_v1  ;;  %v8104_v59 = vpop.eup %6139  ;;  %6153 = vpow2.f32 %v2067_v62  ;;  %9982 = vst [vmem:[#allocation36_spill] sm:$0xff] %v8109_v45  ;;  %v8117_v54 = vmul.f32 0.5, %v8048_v26 }
 0xf40   :  { %v1912_v56 = vmul.f32 %v8085_v55, %v1908_v25  ;;  %v1914_v13 = vadd.f32 1.4214138, %v1910_v34  ;;  %6155 = vpow2.f32 %v2069_v50  ;;  %v8121_v27 = vmul.f32 0.70710677, %v8068_v16 }
 0xf41   :  { %v1913_v39 = vmul.f32 %v8090_v44, %v1909_v40  ;;  %v1915_v52 = vadd.f32 1.4214138, %v1911_v36  ;;  %6157 = vpow2.f32 %v2071_v7  ;;  %v8124_v24 = vmul.f32 0.70710677, %v8072_v18 }
 0xf42   :  { %v1916_v3 = vadd.f32 1.4214138, %v1912_v56  ;;  %v1918_v15 = vmul.f32 %v8080_v2, %v1914_v13  ;;  %9983 = vst [vmem:[#allocation37_spill] sm:$0xff] %v8121_v27  ;;  %v8130_v25 = vmul.f32 0.70710677, %v8102_v33  ;;  %vm1964_vm8 = vcmp.ge.f32.partialorder %v8022_v5, 0.0 }
 0xf43   :  { %v1917_v43 = vadd.f32 1.4214138, %v1913_v39  ;;  %v1919_v62 = vmul.f32 %v8082_v57, %v1915_v52  ;;  %9984 = vst [vmem:[#allocation38_spill] sm:$0xff] %v8124_v24  ;;  %v8126_v1 = vpop.eup %6141  ;;  %v8133_v26 = vmul.f32 0.70710677, %v8109_v45  ;;  %vm1965_vm10 = vcmp.ge.f32.partialorder %v8024_v0, 0.0 }
 0xf44   :  { %v1920_v10 = vmul.f32 %v8085_v55, %v1916_v3  ;;  %v1922_v50 = vadd.f32 -0.28449672, %v1918_v15  ;;  %v8135_v34 = vpop.eup %6143  ;;  %v2021_v36 = vmul.f32 1.0614054, %v8126_v1  ;;  %v8140_v56 = vand.u32 2147483647, %v8121_v27 }
 0xf45   :  { %v1921_v7 = vmul.f32 %v8090_v44, %v1917_v43  ;;  %v1923_v40 = vadd.f32 -0.28449672, %v1919_v62  ;;  %v8142_v13 = vpop.eup %6145  ;;  %v2022_v3 = vmul.f32 1.0614054, %v8135_v34  ;;  %v8147_v15 = vand.u32 2147483647, %v8124_v24 }
 0xf46   :  { %v1924_v39 = vadd.f32 -0.28449672, %v1920_v10  ;;  %v1926_v52 = vmul.f32 %v8080_v2, %v1922_v50  ;;  %v8149_v49 = vpop.eup %6147  ;;  %v2023_v62 = vmul.f32 1.0614054, %v8142_v13  ;;  %v2025_v14 = vadd.f32 -1.4531521, %v2021_v36 }
 0xf47   :  { %v1925_v48 = vadd.f32 -0.28449672, %v1921_v7  ;;  %v1927_v43 = vmul.f32 %v8082_v57, %v1923_v40  ;;  %v6150_v58 = vpop.eup %6149  ;;  %v2024_v10 = vmul.f32 1.0614054, %v8149_v49  ;;  %v2026_v50 = vadd.f32 -1.4531521, %v2022_v3 }
 0xf48   :  { %v1928_v31 = vmul.f32 %v8085_v55, %v1924_v39  ;;  %v1930_v9 = vadd.f32 0.2548296, %v1926_v52  ;;  %v8155_v29 = vpop.eup %6151  ;;  %v2027_v7 = vadd.f32 -1.4531521, %v2023_v62  ;;  %v2029_v40 = vmul.f32 %v8126_v1, %v2025_v14 }
 0xf49   :  { %v1929_v8 = vmul.f32 %v8090_v44, %v1925_v48  ;;  %v1931_v63 = vadd.f32 0.2548296, %v1927_v43  ;;  %v8160_v46 = vpop.eup %6153  ;;  %v2028_v39 = vadd.f32 -1.4531521, %v2024_v10  ;;  %v2030_v52 = vmul.f32 %v8135_v34, %v2026_v50 }
 0xf4a   :  { %v1932_v36 = vadd.f32 0.2548296, %v1928_v31  ;;  %v1934_v17 = vmul.f32 %v8080_v2, %v1930_v9  ;;  %v8165_v3 = vpop.eup %6155  ;;  %v2031_v43 = vmul.f32 %v8142_v13, %v2027_v7  ;;  %v2033_v14 = vadd.f32 1.4214138, %v2029_v40 }
 0xf4b   :  { %v1933_v24 = vadd.f32 0.2548296, %v1929_v8  ;;  %v1935_v48 = vmul.f32 %v8082_v57, %v1931_v63  ;;  %v8170_v62 = vpop.eup %6157  ;;  %v2032_v2 = vmul.f32 %v8149_v49, %v2028_v39  ;;  %v2034_v10 = vadd.f32 1.4214138, %v2030_v52 }
 0xf4c   :  { %v1936_v31 = vmul.f32 %v8085_v55, %v1932_v36  ;;  %v1954_v9 = vmul.f32 %v8094_v61, %v1934_v17  ;;  %v2035_v57 = vadd.f32 1.4214138, %v2031_v43  ;;  %v2037_v50 = vmul.f32 %v8126_v1, %v2033_v14 }
 0xf4d   :  { %v1937_v8 = vmul.f32 %v8090_v44, %v1933_v24  ;;  %v1955_v63 = vmul.f32 %v8097_v42, %v1935_v48  ;;  %v2036_v27 = vadd.f32 1.4214138, %v2032_v2  ;;  %v2038_v55 = vmul.f32 %v8135_v34, %v2034_v10 }
 0xf4e   :  { %v1956_v7 = vmul.f32 %v8104_v59, %v1936_v31  ;;  %v1958_v40 = vsub.f32 1.0, %v1954_v9  ;;  %v2039_v61 = vmul.f32 %v8142_v13, %v2035_v57  ;;  %v2041_v45 = vadd.f32 -0.28449672, %v2037_v50 }
 0xf4f   :  { %v1957_v36 = vmul.f32 %v6150_v58, %v1937_v8  ;;  %v1959_v17 = vsub.f32 1.0, %v1955_v63  ;;  %v2040_v44 = vmul.f32 %v8149_v49, %v2036_v27  ;;  %v2042_v24 = vadd.f32 -0.28449672, %v2038_v55 }
 0xf50   :  { %v1960_v39 = vsub.f32 1.0, %v1956_v7  ;;  %v1966_v52 = vsub.f32 0.0, %v1958_v40  ;;  %v2043_v43 = vadd.f32 -0.28449672, %v2039_v61  ;;  %v2045_v14 = vmul.f32 %v8126_v1, %v2041_v45 }
 0xf51   :  { %v1961_v42 = vsub.f32 1.0, %v1957_v36  ;;  %v1967_v48 = vsub.f32 0.0, %v1959_v17  ;;  %v2044_v9 = vadd.f32 -0.28449672, %v2040_v44  ;;  %v2046_v58 = vmul.f32 %v8135_v34, %v2042_v24 }
 0xf52   :  { %v1968_v59 = vsub.f32 0.0, %v1960_v39  ;;  %v1970_v31 = vsel %vm1962_vm6, %v1958_v40, %v1966_v52  ;;  %v2047_v27 = vmul.f32 %v8142_v13, %v2043_v43  ;;  %v2049_v50 = vadd.f32 0.2548296, %v2045_v14 }
 0xf53   :  { %v1969_v2 = vsub.f32 0.0, %v1961_v42  ;;  %v1971_v10 = vsel %vm1963_vm7, %v1959_v17, %v1967_v48  ;;  %v1974_v8 = vadd.f32 1.0, %v1970_v31  ;;  %v2048_v45 = vmul.f32 %v8149_v49, %v2044_v9 }
 0xf54   :  { %v1972_v63 = vsel %vm1964_vm8, %v1960_v39, %v1968_v59  ;;  %v1975_v57 = vadd.f32 1.0, %v1971_v10  ;;  %v2050_v55 = vadd.f32 0.2548296, %v2046_v58  ;;  %v2051_v17 = vadd.f32 0.2548296, %v2047_v27 }
 0xf55   :  { %v1973_v12 = vsel %vm1965_vm10, %v1961_v42, %v1969_v2  ;;  %v1976_v7 = vadd.f32 1.0, %v1972_v63  ;;  %v1978_v40 = vmul.f32 %v1974_v8, %v8040_v19  ;;  %v2052_v61 = vadd.f32 0.2548296, %v2048_v45 }
 0xf56   :  { %v1977_v36 = vadd.f32 1.0, %v1973_v12  ;;  %v1979_v35 = vmul.f32 %v1975_v57, %v8050_v38  ;;  %vm2081_vm11 = vcmp.ge.f32.partialorder %v8056_v32, 0.0  ;;  %vm2082_vm12 = vcmp.ge.f32.partialorder %v8058_v6, 0.0 }
 0xf57   :  { %v1980_v5 = vmul.f32 %v1976_v7, %v8052_v41  ;;  %1982 = vst [vmem:[%s9816_s7] sm:$0x3] %v1978_v40  ;;  %v2053_v0 = vmul.f32 %v8126_v1, %v2049_v50  ;;  %v2054_v19 = vmul.f32 %v8135_v34, %v2050_v55  ;;  %vm2083_vm14 = vcmp.ge.f32.partialorder %v8061_v22, 0.0 }
 0xf58   :  { %vm2084_vm9 = vcmp.ge.f32.partialorder %v8064_v11, 0.0  ;;  %v2121_v38 = vand.u32 2147483647, %v8130_v25  ;;  %v1981_v39 = vmul.f32 %v1977_v36, %v8054_v28  ;;  %1983 = vst [vmem:[%s9816_s7 + $0x8] sm:$0x3] %v1979_v35  ;;  %v2055_v41 = vmul.f32 %v8142_v13, %v2051_v17 }
 0xf59   :  { %v2056_v52 = vmul.f32 %v8149_v49, %v2052_v61  ;;  %v2122_v1 = vand.u32 2147483647, %v8133_v26  ;;  %1984 = vst [vmem:[%s9816_s7 + $0x10] sm:$0x3] %v1980_v5  ;;  %v2073_v34 = vmul.f32 %v8155_v29, %v2053_v0  ;;  %v2074_v44 = vmul.f32 %v8160_v46, %v2054_v19 }
 0xf5a   :  { %v2123_v28 = vmul.f32 0.3275911, %v8140_v56  ;;  %v2124_v24 = vmul.f32 0.3275911, %v8147_v15  ;;  %1985 = vst [vmem:[%s9816_s7 + $0x18] sm:$0x3] %v1981_v39  ;;  %v2075_v49 = vmul.f32 %v8165_v3, %v2055_v41  ;;  %v8274_v39 = vmul.f32 %v8034_v20, %v7830_v60 }
 0xf5b   :  { %v2076_v13 = vmul.f32 %v8170_v62, %v2056_v52  ;;  %v2125_v42 = vmul.f32 0.3275911, %v2121_v38  ;;  %v2126_v48 = vmul.f32 0.3275911, %v2122_v1  ;;  %v2077_v43 = vsub.f32 1.0, %v2073_v34 }
 0xf5c   :  { %v2078_v14 = vsub.f32 1.0, %v2074_v44  ;;  %v2127_v59 = vadd.f32 1.0, %v2123_v28  ;;  %v2128_v29 = vadd.f32 1.0, %v2124_v24  ;;  %v2079_v31 = vsub.f32 1.0, %v2075_v49 }
 0xf5d   :  { %v2080_v46 = vsub.f32 1.0, %v2076_v13  ;;  %v2129_v9 = vadd.f32 1.0, %v2125_v42  ;;  %v2130_v58 = vadd.f32 1.0, %v2126_v48  ;;  %v2085_v2 = vsub.f32 0.0, %v2077_v43 }
 0xf5e   :  { %v2086_v10 = vsub.f32 0.0, %v2078_v14  ;;  %6159 = vrcp.f32 %v2127_v59  ;;  %v2175_v8 = vsub.f32 0.0, %v8140_v56  ;;  %v2087_v27 = vsub.f32 0.0, %v2079_v31 }
 0xf5f   :  { %v2088_v63 = vsub.f32 0.0, %v2080_v46  ;;  %6161 = vrcp.f32 %v2128_v29  ;;  %v2176_v3 = vsub.f32 0.0, %v8147_v15  ;;  %v2089_v62 = vsel %vm2081_vm11, %v2077_v43, %v2085_v2 }
 0xf60   :  { %v2090_v57 = vsel %vm2082_vm12, %v2078_v14, %v2086_v10  ;;  %6163 = vrcp.f32 %v2129_v9  ;;  %v2177_v45 = vsub.f32 0.0, %v2121_v38  ;;  %v2091_v50 = vsel %vm2083_vm14, %v2079_v31, %v2087_v27 }
 0xf61   :  { %v2092_v12 = vsel %vm2084_vm9, %v2080_v46, %v2088_v63  ;;  %v2093_v7 = vadd.f32 1.0, %v2089_v62  ;;  %v2094_v40 = vadd.f32 1.0, %v2090_v57  ;;  %v2095_v55 = vadd.f32 1.0, %v2091_v50 }
 0xf62   :  { %v2096_v36 = vadd.f32 1.0, %v2092_v12  ;;  %6165 = vrcp.f32 %v2130_v58  ;;  %v2178_v35 = vsub.f32 0.0, %v2122_v1  ;;  %v2179_v6 = vmul.f32 %v2175_v8, %v8140_v56 }
 0xf63   :  { %v2097_v32 = vmul.f32 %v2093_v7, %v8076_v51  ;;  %v2098_v17 = vmul.f32 %v2094_v40, %v8088_v47  ;;  %v2180_v61 = vmul.f32 %v2176_v3, %v8147_v15  ;;  %v2099_v22 = vmul.f32 %v2095_v55, %v8113_v53 }
 0xf64   :  { %v2100_v5 = vmul.f32 %v2096_v36, %v8117_v54  ;;  %v2181_v11 = vmul.f32 %v2177_v45, %v2121_v38  ;;  %v2182_v51 = vmul.f32 %v2178_v35, %v2122_v1  ;;  %v2183_v47 = vmul.f32 1.442695, %v2179_v6  ;;  %v9985_v1 = vld [vmem:[#allocation36_spill] sm:$0xff] }
 0xf65   :  { %2101 = vst [vmem:[%s9816_s7] sm:$0xc] %v2097_v32  ;;  %2102 = vst [vmem:[%s9816_s7 + $0x8] sm:$0xc] %v2098_v17  ;;  %v2185_v53 = vmul.f32 1.442695, %v2180_v61  ;;  %v8257_v54 = vmul.f32 %v8034_v20, %v7822_v37  ;;  %v8261_v56 = vmul.f32 %v8005_v21, %v7762_v4  ;;  %v8266_v0 = vmul.f32 0.5, %v8068_v16 }
 0xf66   :  { %2103 = vst [vmem:[%s9816_s7 + $0x10] sm:$0xc] %v2099_v22  ;;  %2104 = vst [vmem:[%s9816_s7 + $0x18] sm:$0xc] %v2100_v5  ;;  %v2187_v19 = vmul.f32 1.442695, %v2181_v11  ;;  %v8270_v38 = vmul.f32 %v8034_v20, %v7826_v23  ;;  %v8287_v52 = vmul.f32 %v8034_v20, %v7834_v30  ;;  %6167 = vpow2.f32 %v2183_v47 }
 0xf67   :  { %v8279_v41 = vmul.f32 0.5, %v8072_v18  ;;  %v8282_v4 = vmul.f32 0.5, %v8102_v33  ;;  %v8292_v34 = vmul.f32 0.5, %v9985_v1  ;;  %v2189_v44 = vmul.f32 1.442695, %v2182_v51 }
 0xf68   :  { %v8263_v15 = vpop.eup %6159  ;;  %6169 = vpow2.f32 %v2185_v53  ;;  %v8297_v33 = vmul.f32 0.70710677, %v8257_v54  ;;  %v8302_v49 = vmul.f32 0.70710677, %v8270_v38  ;;  %v8305_v13 = vmul.f32 0.70710677, %v8274_v39 }
 0xf69   :  { %v8276_v37 = vpop.eup %6161  ;;  %v2139_v16 = vmul.f32 1.0614054, %v8263_v15  ;;  %6171 = vpow2.f32 %v2187_v19  ;;  %v8310_v14 = vmul.f32 0.70710677, %v8287_v52  ;;  %vm2201_vm15 = vcmp.ge.f32.partialorder %v8130_v25, 0.0 }
 0xf6a   :  { %v8289_v23 = vpop.eup %6163  ;;  %v2140_v60 = vmul.f32 1.0614054, %v8276_v37  ;;  %v2237_v29 = vand.u32 2147483647, %v8297_v33  ;;  %v2238_v31 = vand.u32 2147483647, %v8302_v49  ;;  %6173 = vpow2.f32 %v2189_v44 }
 0xf6b   :  { %v2141_v18 = vmul.f32 1.0614054, %v8289_v23  ;;  %v2143_v28 = vadd.f32 -1.4531521, %v2139_v16  ;;  %v2239_v46 = vand.u32 2147483647, %v8305_v13 }
 0xf6c   :  { %v8299_v24 = vpop.eup %6165  ;;  %v2144_v30 = vadd.f32 -1.4531521, %v2140_v60  ;;  %v2240_v10 = vand.u32 2147483647, %v8310_v14  ;;  %v2241_v27 = vmul.f32 0.3275911, %v2237_v29 }
 0xf6d   :  { %v2142_v42 = vmul.f32 1.0614054, %v8299_v24  ;;  %v2145_v48 = vadd.f32 -1.4531521, %v2141_v18  ;;  %v2147_v43 = vmul.f32 %v8263_v15, %v2143_v28  ;;  %v2242_v63 = vmul.f32 0.3275911, %v2238_v31 }
 0xf6e   :  { %v2148_v59 = vmul.f32 %v8276_v37, %v2144_v30  ;;  %v2243_v45 = vmul.f32 0.3275911, %v2239_v46  ;;  %v2244_v12 = vmul.f32 0.3275911, %v2240_v10  ;;  %v2245_v7 = vadd.f32 1.0, %v2241_v27  ;;  %v9986_v30 = vld [vmem:[#allocation37_spill] sm:$0xff] }
 0xf6f   :  { %v2146_v9 = vadd.f32 -1.4531521, %v2142_v42  ;;  %v2149_v58 = vmul.f32 %v8289_v23, %v2145_v48  ;;  %v2151_v2 = vadd.f32 1.4214138, %v2147_v43  ;;  %v2246_v40 = vadd.f32 1.0, %v2242_v63 }
 0xf70   :  { %v2152_v8 = vadd.f32 1.4214138, %v2148_v59  ;;  %v2247_v32 = vadd.f32 1.0, %v2243_v45  ;;  %v6168_v17 = vpop.eup %6167  ;;  %v2248_v61 = vadd.f32 1.0, %v2244_v12  ;;  %6175 = vrcp.f32 %v2245_v7 }
 0xf71   :  { %v2150_v3 = vmul.f32 %v8299_v24, %v2146_v9  ;;  %v2153_v62 = vadd.f32 1.4214138, %v2149_v58  ;;  %v2155_v57 = vmul.f32 %v8263_v15, %v2151_v2  ;;  %v2293_v22 = vsub.f32 0.0, %v2237_v29  ;;  %v9987_v58 = vld [vmem:[#allocation38_spill] sm:$0xff]  ;;  %v9988_v2 = vld [vmem:[#allocation9_spill] sm:$0xff] }
 0xf72   :  { %v2156_v50 = vmul.f32 %v8276_v37, %v2152_v8  ;;  %v6170_v5 = vpop.eup %6169  ;;  %6177 = vrcp.f32 %v2246_v40  ;;  %v2294_v16 = vsub.f32 0.0, %v2238_v31  ;;  %v2295_v1 = vsub.f32 0.0, %v2239_v46 }
 0xf73   :  { %v2154_v55 = vadd.f32 1.4214138, %v2150_v3  ;;  %v2157_v36 = vmul.f32 %v8289_v23, %v2153_v62  ;;  %v2159_v35 = vadd.f32 -0.28449672, %v2155_v57  ;;  %v6172_v53 = vpop.eup %6171  ;;  %6179 = vrcp.f32 %v2247_v32  ;;  %v9989_v57 = vld [vmem:[#allocation10_spill] sm:$0xff] }
 0xf74   :  { %v2160_v6 = vadd.f32 -0.28449672, %v2156_v50  ;;  %6181 = vrcp.f32 %v2248_v61  ;;  %vm2199_vm13 = vcmp.ge.f32.partialorder %v9986_v30, 0.0  ;;  %v2296_v42 = vsub.f32 0.0, %v2240_v10  ;;  %v6174_v27 = vpop.eup %6173 }
 0xf75   :  { %v2158_v11 = vmul.f32 %v8299_v24, %v2154_v55  ;;  %v2161_v51 = vadd.f32 -0.28449672, %v2157_v36  ;;  %v2163_v47 = vmul.f32 %v8263_v15, %v2159_v35  ;;  %v2297_v48 = vmul.f32 %v2293_v22, %v2237_v29 }
 0xf76   :  { %v2164_v19 = vmul.f32 %v8276_v37, %v2160_v6  ;;  %vm2200_vm5 = vcmp.ge.f32.partialorder %v9987_v58, 0.0  ;;  %v8332_v8 = vmul.f32 %v8005_v21, %v9988_v2  ;;  %v2298_v3 = vmul.f32 %v2294_v16, %v2238_v31 }
 0xf77   :  { %v2162_v60 = vadd.f32 -0.28449672, %v2158_v11  ;;  %v2165_v44 = vmul.f32 %v8289_v23, %v2161_v51  ;;  %v2167_v18 = vadd.f32 0.2548296, %v2163_v47  ;;  %v2299_v62 = vmul.f32 %v2295_v1, %v2239_v46 }
 0xf78   :  { %v2168_v28 = vadd.f32 0.2548296, %v2164_v19  ;;  %v8338_v29 = vmul.f32 %v8005_v21, %v9989_v57  ;;  %v8342_v12 = vmul.f32 0.5, %v8257_v54  ;;  %vm2202_vm0 = vcmp.ge.f32.partialorder %v8133_v26, 0.0 }
 0xf79   :  { %v2166_v43 = vmul.f32 %v8299_v24, %v2162_v60  ;;  %v2169_v59 = vadd.f32 0.2548296, %v2165_v44  ;;  %v2171_v9 = vmul.f32 %v8263_v15, %v2167_v18  ;;  %v2300_v40 = vmul.f32 %v2296_v42, %v2240_v10 }
 0xf7a   :  { %v2172_v63 = vmul.f32 %v8276_v37, %v2168_v28  ;;  %v8346_v37 = vmul.f32 0.5, %v8270_v38  ;;  %v2301_v31 = vmul.f32 1.442695, %v2297_v48  ;;  %v8350_v35 = vmul.f32 0.5, %v8274_v39 }
 0xf7b   :  { %v2170_v45 = vadd.f32 0.2548296, %v2166_v43  ;;  %v2173_v15 = vmul.f32 %v8289_v23, %v2169_v59  ;;  %v2191_v50 = vmul.f32 %v6168_v17, %v2171_v9  ;;  %v8352_v23 = vpop.eup %6175  ;;  %v8355_v54 = vmul.f32 0.5, %v8287_v52 }
 0xf7c   :  { %v2192_v7 = vmul.f32 %v6170_v5, %v2172_v63  ;;  %v2303_v17 = vmul.f32 1.442695, %v2298_v3  ;;  %v2305_v6 = vmul.f32 1.442695, %v2299_v62  ;;  %v8357_v61 = vpop.eup %6177  ;;  %6183 = vpow2.f32 %v2301_v31 }
 0xf7d   :  { %v2174_v46 = vmul.f32 %v8299_v24, %v2170_v45  ;;  %v2193_v55 = vmul.f32 %v6172_v53, %v2173_v15  ;;  %v2195_v36 = vsub.f32 1.0, %v2191_v50  ;;  %v2257_v24 = vmul.f32 1.0614054, %v8352_v23  ;;  %v8360_v5 = vpop.eup %6179  ;;  %v9990_v45 = vld [vmem:[#allocation11_spill] sm:$0xff] }
 0xf7e   :  { %v2196_v32 = vsub.f32 1.0, %v2192_v7  ;;  %v2258_v39 = vmul.f32 1.0614054, %v8357_v61  ;;  %v2307_v51 = vmul.f32 1.442695, %v2300_v40  ;;  %v8363_v47 = vpop.eup %6181  ;;  %6185 = vpow2.f32 %v2303_v17 }
 0xf7f   :  { %v2194_v38 = vmul.f32 %v6174_v27, %v2174_v46  ;;  %v2197_v10 = vsub.f32 1.0, %v2193_v55  ;;  %v2203_v22 = vsub.f32 0.0, %v2195_v36  ;;  %v2259_v16 = vmul.f32 1.0614054, %v8360_v5 }
 0xf80   :  { %v2204_v11 = vsub.f32 0.0, %v2196_v32  ;;  %v2260_v44 = vmul.f32 1.0614054, %v8363_v47  ;;  %v2261_v18 = vadd.f32 -1.4531521, %v2257_v24  ;;  %v8390_v15 = vmul.f32 %v8005_v21, %v9990_v45 }
 0xf81   :  { %v2198_v52 = vsub.f32 1.0, %v2194_v38  ;;  %v2205_v53 = vsub.f32 0.0, %v2197_v10  ;;  %v2207_v19 = vsel %vm2199_vm13, %v2195_v36, %v2203_v22  ;;  %v2262_v43 = vadd.f32 -1.4531521, %v2258_v39 }
 0xf82   :  { %v2208_v1 = vsel %vm2200_vm5, %v2196_v32, %v2204_v11  ;;  %v2211_v60 = vadd.f32 1.0, %v2207_v19  ;;  %v2263_v30 = vadd.f32 -1.4531521, %v2259_v16  ;;  %v2264_v2 = vadd.f32 -1.4531521, %v2260_v44 }
 0xf83   :  { %v2206_v28 = vsub.f32 0.0, %v2198_v52  ;;  %v2209_v42 = vsel %vm2201_vm15, %v2197_v10, %v2205_v53  ;;  %v2212_v48 = vadd.f32 1.0, %v2208_v1  ;;  %v2265_v63 = vmul.f32 %v8352_v23, %v2261_v18 }
 0xf84   :  { %v2213_v59 = vadd.f32 1.0, %v2209_v42  ;;  %v2215_v9 = vmul.f32 %v2211_v60, %v8266_v0  ;;  %v2266_v3 = vmul.f32 %v8357_v61, %v2262_v43  ;;  %v2267_v0 = vmul.f32 %v8360_v5, %v2263_v30  ;;  %v9991_v43 = vld [vmem:[#allocation14_spill] sm:$0xff] }
 0xf85   :  { %v2210_v27 = vsel %vm2202_vm0, %v2198_v52, %v2206_v28  ;;  %v2216_v58 = vmul.f32 %v2212_v48, %v8279_v41  ;;  %v2268_v57 = vmul.f32 %v8363_v47, %v2264_v2  ;;  %v2269_v26 = vadd.f32 1.4214138, %v2265_v63 }
 0xf86   :  { %v2214_v62 = vadd.f32 1.0, %v2210_v27  ;;  %v2217_v25 = vmul.f32 %v2213_v59, %v8282_v4  ;;  %2219 = vst [vmem:[%s9816_s7] sm:$0x30] %v2215_v9  ;;  %v2270_v41 = vadd.f32 1.4214138, %v2266_v3  ;;  %v2271_v50 = vadd.f32 1.4214138, %v2267_v0  ;;  %v6184_v55 = vpop.eup %6183 }
 0xf87   :  { %2220 = vst [vmem:[%s9816_s7 + $0x8] sm:$0x30] %v2216_v58  ;;  %v2272_v7 = vadd.f32 1.4214138, %v2268_v57  ;;  %6187 = vpow2.f32 %v2305_v6  ;;  %v2273_v40 = vmul.f32 %v8352_v23, %v2269_v26  ;;  %v8399_v46 = vmul.f32 0.70710677, %v8261_v56 }
 0xf88   :  { %v2218_v4 = vmul.f32 %v2214_v62, %v8292_v34  ;;  %2221 = vst [vmem:[%s9816_s7 + $0x10] sm:$0x30] %v2217_v25  ;;  %v2274_v31 = vmul.f32 %v8357_v61, %v2270_v41  ;;  %6189 = vpow2.f32 %v2307_v51  ;;  %v2275_v21 = vmul.f32 %v8360_v5, %v2271_v50  ;;  %v9992_v59 = vld [vmem:[#allocation34_spill] sm:$0xff]  ;;  %v6186_v30 = vpop.eup %6185 }
 0xf89   :  { %v2276_v34 = vmul.f32 %v8363_v47, %v2272_v7  ;;  %v8407_v36 = vmul.f32 0.70710677, %v8332_v8  ;;  %v8410_v32 = vmul.f32 0.70710677, %v8338_v29  ;;  %v2277_v17 = vadd.f32 -0.28449672, %v2273_v40 }
 0xf8a   :  { %2222 = vst [vmem:[%s9816_s7 + $0x18] sm:$0x30] %v2218_v4  ;;  %v2278_v6 = vadd.f32 -0.28449672, %v2274_v31  ;;  %v8413_v38 = vmul.f32 0.70710677, %v8390_v15  ;;  %v8427_v9 = vmul.f32 %v9992_v59, %v9991_v43 }
 0xf8b   :  { %v2279_v10 = vadd.f32 -0.28449672, %v2275_v21  ;;  %v2280_v22 = vadd.f32 -0.28449672, %v2276_v34  ;;  %v2353_v24 = vand.u32 2147483647, %v8399_v46  ;;  %v2281_v11 = vmul.f32 %v8352_v23, %v2277_v17 }
 0xf8c   :  { %v2282_v39 = vmul.f32 %v8357_v61, %v2278_v6  ;;  %v2354_v51 = vand.u32 2147483647, %v8407_v36  ;;  %v2355_v52 = vand.u32 2147483647, %v8410_v32  ;;  %v2356_v16 = vand.u32 2147483647, %v8413_v38 }
 0xf8d   :  { %v2283_v53 = vmul.f32 %v8360_v5, %v2279_v10  ;;  %v2284_v19 = vmul.f32 %v8363_v47, %v2280_v22  ;;  %v2357_v1 = vmul.f32 0.3275911, %v2353_v24  ;;  %v2285_v60 = vadd.f32 0.2548296, %v2281_v11 }
 0xf8e   :  { %v2286_v44 = vadd.f32 0.2548296, %v2282_v39  ;;  %v2358_v18 = vmul.f32 0.3275911, %v2354_v51  ;;  %vm2317_vm1 = vcmp.ge.f32.partialorder %v8297_v33, 0.0  ;;  %vm2318_vm2 = vcmp.ge.f32.partialorder %v8302_v49, 0.0 }
 0xf8f   :  { %v2287_v28 = vadd.f32 0.2548296, %v2283_v53  ;;  %v2288_v42 = vadd.f32 0.2548296, %v2284_v19  ;;  %v2359_v48 = vmul.f32 0.3275911, %v2355_v52  ;;  %v2289_v2 = vmul.f32 %v8352_v23, %v2285_v60 }
 0xf90   :  { %v2290_v27 = vmul.f32 %v8357_v61, %v2286_v44  ;;  %vm2319_vm3 = vcmp.ge.f32.partialorder %v8305_v13, 0.0  ;;  %vm2320_vm6 = vcmp.ge.f32.partialorder %v8310_v14, 0.0  ;;  %v2360_v58 = vmul.f32 0.3275911, %v2356_v16 }
 0xf91   :  { %v2361_v63 = vadd.f32 1.0, %v2357_v1  ;;  %v6188_v3 = vpop.eup %6187  ;;  %v2291_v62 = vmul.f32 %v8360_v5, %v2287_v28  ;;  %v2292_v25 = vmul.f32 %v8363_v47, %v2288_v42  ;;  %v2362_v0 = vadd.f32 1.0, %v2358_v18 }
 0xf92   :  { %v2363_v57 = vadd.f32 1.0, %v2359_v48  ;;  %v6190_v26 = vpop.eup %6189  ;;  %v2309_v41 = vmul.f32 %v6184_v55, %v2289_v2  ;;  %v2310_v45 = vmul.f32 %v6186_v30, %v2290_v27  ;;  %v2364_v4 = vadd.f32 1.0, %v2360_v58 }
 0xf93   :  { %6191 = vrcp.f32 %v2361_v63  ;;  %v2311_v23 = vmul.f32 %v6188_v3, %v2291_v62  ;;  %v2312_v61 = vmul.f32 %v6190_v26, %v2292_v25  ;;  %v2409_v50 = vsub.f32 0.0, %v2353_v24  ;;  %v9997_v26 = vld [vmem:[#allocation35_spill] sm:$0xff] }
 0xf94   :  { %6193 = vrcp.f32 %v2362_v0  ;;  %v2313_v7 = vsub.f32 1.0, %v2309_v41  ;;  %v2314_v40 = vsub.f32 1.0, %v2310_v45  ;;  %v2410_v31 = vsub.f32 0.0, %v2354_v51 }
 0xf95   :  { %6195 = vrcp.f32 %v2363_v57  ;;  %v2315_v21 = vsub.f32 1.0, %v2311_v23  ;;  %v2316_v34 = vsub.f32 1.0, %v2312_v61  ;;  %v2411_v5 = vsub.f32 0.0, %v2355_v52  ;;  %v9996_v57 = vld [vmem:[#allocation18_spill] sm:$0xff]  ;;  %v9998_v23 = vld [vmem:[#allocation19_spill] sm:$0xff] }
 0xf96   :  { %6197 = vrcp.f32 %v2364_v4  ;;  %v2321_v47 = vsub.f32 0.0, %v2313_v7  ;;  %v2322_v17 = vsub.f32 0.0, %v2314_v40  ;;  %v2412_v6 = vsub.f32 0.0, %v2356_v16 }
 0xf97   :  { %v2413_v10 = vmul.f32 %v2409_v50, %v2353_v24  ;;  %v2323_v55 = vsub.f32 0.0, %v2315_v21  ;;  %v2324_v22 = vsub.f32 0.0, %v2316_v34  ;;  %v2414_v11 = vmul.f32 %v2410_v31, %v2354_v51 }
 0xf98   :  { %v2415_v39 = vmul.f32 %v2411_v5, %v2355_v52  ;;  %v2325_v53 = vsel %vm2317_vm1, %v2313_v7, %v2321_v47  ;;  %v2326_v19 = vsel %vm2318_vm2, %v2314_v40, %v2322_v17  ;;  %v2416_v1 = vmul.f32 %v2412_v6, %v2356_v16  ;;  %v9993_v52 = vld [vmem:[#allocation15_spill] sm:$0xff] }
 0xf99   :  { %v2417_v60 = vmul.f32 1.442695, %v2413_v10  ;;  %v2327_v44 = vsel %vm2319_vm3, %v2315_v21, %v2323_v55  ;;  %v2328_v18 = vsel %vm2320_vm6, %v2316_v34, %v2324_v22  ;;  %v2329_v28 = vadd.f32 1.0, %v2325_v53 }
 0xf9a   :  { %v2330_v24 = vadd.f32 1.0, %v2326_v19  ;;  %v2331_v42 = vadd.f32 1.0, %v2327_v44  ;;  %v2332_v48 = vadd.f32 1.0, %v2328_v18  ;;  %v2419_v51 = vmul.f32 1.442695, %v2414_v11 }
 0xf9b   :  { %v8445_v33 = vmul.f32 %v9992_v59, %v9993_v52  ;;  %v2333_v49 = vmul.f32 %v2329_v28, %v8342_v12  ;;  %v8450_v43 = vmul.f32 0.5, %v8261_v56  ;;  %v2421_v13 = vmul.f32 1.442695, %v2415_v39 }
 0xf9c   :  { %v2334_v16 = vmul.f32 %v2330_v24, %v8346_v37  ;;  %v2335_v14 = vmul.f32 %v2331_v42, %v8350_v35  ;;  %v2336_v2 = vmul.f32 %v2332_v48, %v8355_v54  ;;  %v8457_v27 = vmul.f32 0.5, %v8332_v8 }
 0xf9d   :  { %v8452_v30 = vpop.eup %6191  ;;  %v2423_v58 = vmul.f32 1.442695, %v2416_v1  ;;  %2337 = vst [vmem:[%s9816_s7] sm:$0xc0] %v2333_v49  ;;  %v8468_v56 = vmul.f32 0.5, %v8338_v29  ;;  %v8471_v12 = vmul.f32 0.5, %v8390_v15  ;;  %6199 = vpow2.f32 %v2417_v60  ;;  %v9994_v29 = vld [vmem:[#allocation16_spill] sm:$0xff] }
 0xf9e   :  { %v8459_v63 = vpop.eup %6193  ;;  %2338 = vst [vmem:[%s9816_s7 + $0x8] sm:$0xc0] %v2334_v16  ;;  %v2373_v8 = vmul.f32 1.0614054, %v8452_v30  ;;  %2339 = vst [vmem:[%s9816_s7 + $0x10] sm:$0xc0] %v2335_v14  ;;  %6201 = vpow2.f32 %v2419_v51  ;;  %v8485_v54 = vmul.f32 %v9992_v59, %v9994_v29  ;;  %v8496_v41 = vmul.f32 %v9997_v26, %v9996_v57 }
 0xf9f   :  { %v8474_v37 = vpop.eup %6195  ;;  %2340 = vst [vmem:[%s9816_s7 + $0x18] sm:$0xc0] %v2336_v2  ;;  %v2374_v35 = vmul.f32 1.0614054, %v8459_v63  ;;  %v9995_v15 = vld [vmem:[#allocation17_spill] sm:$0xff]  ;;  %6203 = vpow2.f32 %v2421_v13  ;;  %v8501_v61 = vmul.f32 %v9997_v26, %v9998_v23  ;;  %vm2433_vm7 = vcmp.ge.f32.partialorder %v8399_v46, 0.0 }
 0xfa0   :  { %v8489_v3 = vmul.f32 %v9992_v59, %v9995_v15  ;;  %v8491_v62 = vpop.eup %6197  ;;  %v2375_v25 = vmul.f32 1.0614054, %v8474_v37  ;;  %v2377_v0 = vadd.f32 -1.4531521, %v2373_v8  ;;  %6205 = vpow2.f32 %v2423_v58 }
 0xfa1   :  { %v2376_v45 = vmul.f32 1.0614054, %v8491_v62  ;;  %v2378_v4 = vadd.f32 -1.4531521, %v2374_v35  ;;  %v8505_v7 = vmul.f32 0.70710677, %v8427_v9 }
 0xfa2   :  { %v2379_v59 = vadd.f32 -1.4531521, %v2375_v25  ;;  %v2381_v50 = vmul.f32 %v8452_v30, %v2377_v0  ;;  %v8508_v40 = vmul.f32 0.70710677, %v8445_v33  ;;  %v8512_v34 = vmul.f32 0.70710677, %v8485_v54 }
 0xfa3   :  { %v2380_v31 = vadd.f32 -1.4531521, %v2376_v45  ;;  %v2382_v21 = vmul.f32 %v8459_v63, %v2378_v4  ;;  %v8515_v5 = vmul.f32 0.70710677, %v8489_v3  ;;  %v2469_v6 = vand.u32 2147483647, %v8505_v7 }
 0xfa4   :  { %v2383_v47 = vmul.f32 %v8474_v37, %v2379_v59  ;;  %v2385_v17 = vadd.f32 1.4214138, %v2381_v50  ;;  %v2470_v10 = vand.u32 2147483647, %v8508_v40  ;;  %v2471_v11 = vand.u32 2147483647, %v8512_v34 }
 0xfa5   :  { %v2384_v55 = vmul.f32 %v8491_v62, %v2380_v31  ;;  %v2386_v22 = vadd.f32 1.4214138, %v2382_v21  ;;  %v2472_v39 = vand.u32 2147483647, %v8515_v5  ;;  %v2473_v1 = vmul.f32 0.3275911, %v2469_v6 }
 0xfa6   :  { %v2387_v53 = vadd.f32 1.4214138, %v2383_v47  ;;  %v2389_v19 = vmul.f32 %v8452_v30, %v2385_v17  ;;  %v2474_v60 = vmul.f32 0.3275911, %v2470_v10  ;;  %v2475_v28 = vmul.f32 0.3275911, %v2471_v11 }
 0xfa7   :  { %v2388_v44 = vadd.f32 1.4214138, %v2384_v55  ;;  %v2390_v18 = vmul.f32 %v8459_v63, %v2386_v22  ;;  %v2476_v24 = vmul.f32 0.3275911, %v2472_v39  ;;  %v6200_v42 = vpop.eup %6199  ;;  %v2477_v52 = vadd.f32 1.0, %v2473_v1 }
 0xfa8   :  { %v2391_v48 = vmul.f32 %v8474_v37, %v2387_v53  ;;  %v2393_v51 = vadd.f32 -0.28449672, %v2389_v19  ;;  %v2478_v49 = vadd.f32 1.0, %v2474_v60  ;;  %v6202_v16 = vpop.eup %6201  ;;  %v2479_v2 = vadd.f32 1.0, %v2475_v28 }
 0xfa9   :  { %v2392_v13 = vmul.f32 %v8491_v62, %v2388_v44  ;;  %v2394_v14 = vadd.f32 -0.28449672, %v2390_v18  ;;  %v2480_v58 = vadd.f32 1.0, %v2476_v24  ;;  %v6204_v8 = vpop.eup %6203  ;;  %6207 = vrcp.f32 %v2477_v52 }
 0xfaa   :  { %v2395_v35 = vadd.f32 -0.28449672, %v2391_v48  ;;  %v2397_v29 = vmul.f32 %v8452_v30, %v2393_v51  ;;  %v2525_v15 = vsub.f32 0.0, %v2469_v6  ;;  %v6206_v25 = vpop.eup %6205  ;;  %6209 = vrcp.f32 %v2478_v49 }
 0xfab   :  { %v2396_v0 = vadd.f32 -0.28449672, %v2392_v13  ;;  %v2398_v57 = vmul.f32 %v8459_v63, %v2394_v14  ;;  %v2526_v45 = vsub.f32 0.0, %v2470_v10  ;;  %6211 = vrcp.f32 %v2479_v2 }
 0xfac   :  { %v2399_v4 = vmul.f32 %v8474_v37, %v2395_v35  ;;  %v2401_v23 = vadd.f32 0.2548296, %v2397_v29  ;;  %v2527_v59 = vsub.f32 0.0, %v2471_v11  ;;  %6213 = vrcp.f32 %v2480_v58 }
 0xfad   :  { %v2400_v50 = vmul.f32 %v8491_v62, %v2396_v0  ;;  %v2402_v31 = vadd.f32 0.2548296, %v2398_v57  ;;  %v2528_v21 = vsub.f32 0.0, %v2472_v39  ;;  %v2529_v55 = vmul.f32 %v2525_v15, %v2469_v6 }
 0xfae   :  { %v2403_v47 = vadd.f32 0.2548296, %v2399_v4  ;;  %v2405_v17 = vmul.f32 %v8452_v30, %v2401_v23  ;;  %vm2434_vm8 = vcmp.ge.f32.partialorder %v8407_v36, 0.0  ;;  %vm2435_vm10 = vcmp.ge.f32.partialorder %v8410_v32, 0.0 }
 0xfaf   :  { %v2404_v22 = vadd.f32 0.2548296, %v2400_v50  ;;  %v2406_v53 = vmul.f32 %v8459_v63, %v2402_v31  ;;  %v2530_v60 = vmul.f32 %v2526_v45, %v2470_v10  ;;  %v2531_v44 = vmul.f32 %v2527_v59, %v2471_v11 }
 0xfb0   :  { %v2407_v19 = vmul.f32 %v8474_v37, %v2403_v47  ;;  %v2425_v1 = vmul.f32 %v6200_v42, %v2405_v17  ;;  %vm2436_vm11 = vcmp.ge.f32.partialorder %v8413_v38, 0.0  ;;  %v2532_v30 = vmul.f32 %v2528_v21, %v2472_v39  ;;  %v9999_v37 = vld [vmem:[#allocation20_spill] sm:$0xff] }
 0xfb1   :  { %v2408_v18 = vmul.f32 %v8491_v62, %v2404_v22  ;;  %v2426_v28 = vmul.f32 %v6202_v16, %v2406_v53  ;;  %v8540_v48 = vmul.f32 0.5, %v8427_v9  ;;  %v2533_v63 = vmul.f32 1.442695, %v2529_v55 }
 0xfb2   :  { %v2427_v24 = vmul.f32 %v6204_v8, %v2407_v19  ;;  %v2429_v6 = vsub.f32 1.0, %v2425_v1  ;;  %v8543_v49 = vmul.f32 0.5, %v8445_v33  ;;  %v8547_v10 = vmul.f32 %v9997_v26, %v9999_v37 }
 0xfb3   :  { %v2428_v51 = vmul.f32 %v6206_v25, %v2408_v18  ;;  %v2430_v52 = vsub.f32 1.0, %v2426_v28  ;;  %v8549_v62 = vpop.eup %6207  ;;  %v2535_v39 = vmul.f32 1.442695, %v2530_v60  ;;  %v2537_v16 = vmul.f32 1.442695, %v2531_v44 }
 0xfb4   :  { %v2431_v11 = vsub.f32 1.0, %v2427_v24  ;;  %v2437_v42 = vsub.f32 0.0, %v2429_v6  ;;  %v8551_v13 = vpop.eup %6209  ;;  %v2489_v2 = vmul.f32 1.0614054, %v8549_v62  ;;  %v2539_v58 = vmul.f32 1.442695, %v2532_v30 }
 0xfb5   :  { %v2432_v9 = vsub.f32 1.0, %v2428_v51  ;;  %v2438_v14 = vsub.f32 0.0, %v2430_v52  ;;  %v8554_v8 = vpop.eup %6211  ;;  %v2490_v29 = vmul.f32 1.0614054, %v8551_v13  ;;  %6215 = vpow2.f32 %v2533_v63 }
 0xfb6   :  { %v2439_v33 = vsub.f32 0.0, %v2431_v11  ;;  %v2441_v35 = vsel %vm2433_vm7, %v2429_v6, %v2437_v42  ;;  %v8559_v15 = vpop.eup %6213  ;;  %v2491_v45 = vmul.f32 1.0614054, %v8554_v8  ;;  %v2493_v46 = vadd.f32 -1.4531521, %v2489_v2 }
 0xfb7   :  { %v2440_v25 = vsub.f32 0.0, %v2432_v9  ;;  %v2442_v0 = vsel %vm2434_vm8, %v2430_v52, %v2438_v14  ;;  %v2445_v57 = vadd.f32 1.0, %v2441_v35  ;;  %v2492_v59 = vmul.f32 1.0614054, %v8559_v15 }
 0xfb8   :  { %v2443_v4 = vsel %vm2435_vm10, %v2431_v11, %v2439_v33  ;;  %v2446_v23 = vadd.f32 1.0, %v2442_v0  ;;  %v2494_v47 = vadd.f32 -1.4531521, %v2490_v29  ;;  %v2495_v55 = vadd.f32 -1.4531521, %v2491_v45 }
 0xfb9   :  { %v2444_v50 = vsel %vm2436_vm11, %v2432_v9, %v2440_v25  ;;  %v2447_v31 = vadd.f32 1.0, %v2443_v4  ;;  %v2449_v21 = vmul.f32 %v2445_v57, %v8450_v43  ;;  %v2496_v22 = vadd.f32 -1.4531521, %v2492_v59 }
 0xfba   :  { %v2448_v17 = vadd.f32 1.0, %v2444_v50  ;;  %v2450_v36 = vmul.f32 %v2446_v23, %v8457_v27  ;;  %v2497_v32 = vmul.f32 %v8549_v62, %v2493_v46  ;;  %v2498_v38 = vmul.f32 %v8551_v13, %v2494_v47 }
 0xfbb   :  { %v2451_v53 = vmul.f32 %v2447_v31, %v8468_v56  ;;  %2453 = vst [vmem:[%s9816_s7 + $0x20] sm:$0x3] %v2449_v21  ;;  %6217 = vpow2.f32 %v2535_v39  ;;  %v2499_v43 = vmul.f32 %v8554_v8, %v2495_v55  ;;  %v2500_v27 = vmul.f32 %v8559_v15, %v2496_v22  ;;  %v10000_v56 = vld [vmem:[#allocation21_spill] sm:$0xff] }
 0xfbc   :  { %v2452_v19 = vmul.f32 %v2448_v17, %v8471_v12  ;;  %2454 = vst [vmem:[%s9816_s7 + $0x28] sm:$0x3] %v2450_v36  ;;  %v8585_v1 = vmul.f32 %v9997_v26, %v10000_v56  ;;  %v8591_v60 = vmul.f32 0.5, %v8485_v54  ;;  %v2501_v12 = vadd.f32 1.4214138, %v2497_v32 }
 0xfbd   :  { %2455 = vst [vmem:[%s9816_s7 + $0x30] sm:$0x3] %v2451_v53  ;;  %v2502_v44 = vadd.f32 1.4214138, %v2498_v38  ;;  %6219 = vpow2.f32 %v2537_v16  ;;  %v8597_v18 = vmul.f32 0.5, %v8489_v3  ;;  %vm2549_vm12 = vcmp.ge.f32.partialorder %v8505_v7, 0.0 }
 0xfbe   :  { %2456 = vst [vmem:[%s9816_s7 + $0x38] sm:$0x3] %v2452_v19  ;;  %v2503_v28 = vadd.f32 1.4214138, %v2499_v43  ;;  %v2504_v26 = vadd.f32 1.4214138, %v2500_v27  ;;  %6221 = vpow2.f32 %v2539_v58  ;;  %v2505_v30 = vmul.f32 %v8549_v62, %v2501_v12 }
 0xfbf   :  { %v2506_v24 = vmul.f32 %v8551_v13, %v2502_v44  ;;  %v8602_v54 = vmul.f32 0.70710677, %v8496_v41  ;;  %v8605_v6 = vmul.f32 0.70710677, %v8501_v61  ;;  %v6216_v63 = vpop.eup %6215  ;;  %v8610_v3 = vmul.f32 0.70710677, %v8547_v10 }
 0xfc0   :  { %v2507_v51 = vmul.f32 %v8554_v8, %v2503_v28  ;;  %v2508_v52 = vmul.f32 %v8559_v15, %v2504_v26  ;;  %v8613_v37 = vmul.f32 0.70710677, %v8585_v1  ;;  %v2509_v11 = vadd.f32 -0.28449672, %v2505_v30 }
 0xfc1   :  { %v2510_v42 = vadd.f32 -0.28449672, %v2506_v24  ;;  %v2585_v39 = vand.u32 2147483647, %v8602_v54  ;;  %v2586_v14 = vand.u32 2147483647, %v8605_v6 }
 0xfc2   :  { %v2511_v16 = vadd.f32 -0.28449672, %v2507_v51  ;;  %v2512_v9 = vadd.f32 -0.28449672, %v2508_v52  ;;  %v2513_v2 = vmul.f32 %v8549_v62, %v2509_v11  ;;  %v2587_v33 = vand.u32 2147483647, %v8610_v3 }
 0xfc3   :  { %v2514_v58 = vmul.f32 %v8551_v13, %v2510_v42  ;;  %v2588_v35 = vand.u32 2147483647, %v8613_v37  ;;  %v2589_v0 = vmul.f32 0.3275911, %v2585_v39  ;;  %v2590_v57 = vmul.f32 0.3275911, %v2586_v14 }
 0xfc4   :  { %v2515_v29 = vmul.f32 %v8554_v8, %v2511_v16  ;;  %v2516_v25 = vmul.f32 %v8559_v15, %v2512_v9  ;;  %v2517_v4 = vadd.f32 0.2548296, %v2513_v2  ;;  %v2591_v59 = vmul.f32 0.3275911, %v2587_v33 }
 0xfc5   :  { %v6218_v45 = vpop.eup %6217  ;;  %v2518_v23 = vadd.f32 0.2548296, %v2514_v58  ;;  %vm2550_vm14 = vcmp.ge.f32.partialorder %v8508_v40, 0.0  ;;  %v2592_v31 = vmul.f32 0.3275911, %v2588_v35  ;;  %vm2551_vm9 = vcmp.ge.f32.partialorder %v8512_v34, 0.0 }
 0xfc6   :  { %v2519_v46 = vadd.f32 0.2548296, %v2515_v29  ;;  %v2520_v50 = vadd.f32 0.2548296, %v2516_v25  ;;  %v2521_v47 = vmul.f32 %v8549_v62, %v2517_v4  ;;  %v2593_v36 = vadd.f32 1.0, %v2589_v0 }
 0xfc7   :  { %v6220_v21 = vpop.eup %6219  ;;  %v2522_v17 = vmul.f32 %v8551_v13, %v2518_v23  ;;  %v2594_v55 = vadd.f32 1.0, %v2590_v57  ;;  %v2595_v38 = vadd.f32 1.0, %v2591_v59  ;;  %v2596_v19 = vadd.f32 1.0, %v2592_v31 }
 0xfc8   :  { %v6222_v22 = vpop.eup %6221  ;;  %v2523_v53 = vmul.f32 %v8554_v8, %v2519_v46  ;;  %v2524_v32 = vmul.f32 %v8559_v15, %v2520_v50  ;;  %v2541_v43 = vmul.f32 %v6216_v63, %v2521_v47  ;;  %6223 = vrcp.f32 %v2593_v36  ;;  %v10001_v50 = vld [vmem:[#allocation22_spill] sm:$0xff]  ;;  %v10004_v36 = vld [vmem:[#allocation25_spill] sm:$0xff] }
 0xfc9   :  { %v2542_v27 = vmul.f32 %v6218_v45, %v2522_v17  ;;  %v2641_v56 = vsub.f32 0.0, %v2585_v39  ;;  %6225 = vrcp.f32 %v2594_v55  ;;  %v2642_v62 = vsub.f32 0.0, %v2586_v14 }
 0xfca   :  { %v2543_v12 = vmul.f32 %v6220_v21, %v2523_v53  ;;  %v2544_v44 = vmul.f32 %v6222_v22, %v2524_v32  ;;  %v2545_v13 = vsub.f32 1.0, %v2541_v43  ;;  %6227 = vrcp.f32 %v2595_v38 }
 0xfcb   :  { %v2546_v28 = vsub.f32 1.0, %v2542_v27  ;;  %v2643_v26 = vsub.f32 0.0, %v2587_v33  ;;  %6229 = vrcp.f32 %v2596_v19  ;;  %v2644_v8 = vsub.f32 0.0, %v2588_v35 }
 0xfcc   :  { %v2547_v30 = vsub.f32 1.0, %v2543_v12  ;;  %v2548_v24 = vsub.f32 1.0, %v2544_v44  ;;  %v2553_v51 = vsub.f32 0.0, %v2545_v13  ;;  %v2645_v52 = vmul.f32 %v2641_v56, %v2585_v39 }
 0xfcd   :  { %v2554_v15 = vsub.f32 0.0, %v2546_v28  ;;  %v2646_v11 = vmul.f32 %v2642_v62, %v2586_v14  ;;  %vm2552_vm13 = vcmp.ge.f32.partialorder %v8515_v5, 0.0  ;;  %v2647_v16 = vmul.f32 %v2643_v26, %v2587_v33 }
 0xfce   :  { %v2555_v63 = vsub.f32 0.0, %v2547_v30  ;;  %v2556_v42 = vsub.f32 0.0, %v2548_v24  ;;  %v2557_v9 = vsel %vm2549_vm12, %v2545_v13, %v2553_v51  ;;  %v2648_v58 = vmul.f32 %v2644_v8, %v2588_v35 }
 0xfcf   :  { %v2558_v2 = vsel %vm2550_vm14, %v2546_v28, %v2554_v15  ;;  %v2649_v29 = vmul.f32 1.442695, %v2645_v52  ;;  %v2561_v57 = vadd.f32 1.0, %v2557_v9  ;;  %v8638_v5 = vmul.f32 0.5, %v8496_v41 }
 0xfd0   :  { %v2559_v25 = vsel %vm2551_vm9, %v2547_v30, %v2555_v63  ;;  %v2560_v0 = vsel %vm2552_vm13, %v2548_v24, %v2556_v42  ;;  %v2562_v39 = vadd.f32 1.0, %v2558_v2  ;;  %v2651_v33 = vmul.f32 1.442695, %v2646_v11 }
 0xfd1   :  { %v2563_v14 = vadd.f32 1.0, %v2559_v25  ;;  %v2564_v45 = vadd.f32 1.0, %v2560_v0  ;;  %v2565_v7 = vmul.f32 %v2561_v57, %v8540_v48  ;;  %v8643_v40 = vmul.f32 0.5, %v8501_v61  ;;  %v10002_v48 = vld [vmem:[#allocation23_spill] sm:$0xff] }
 0xfd2   :  { %v2566_v4 = vmul.f32 %v2562_v39, %v8543_v49  ;;  %v2653_v35 = vmul.f32 1.442695, %v2647_v16  ;;  %v8645_v23 = vpop.eup %6223  ;;  %v2655_v46 = vmul.f32 1.442695, %v2648_v58  ;;  %v8651_v41 = vmul.f32 %v8034_v20, %v10001_v50 }
 0xfd3   :  { %v2567_v34 = vmul.f32 %v2563_v14, %v8591_v60  ;;  %v2568_v59 = vmul.f32 %v2564_v45, %v8597_v18  ;;  %v8653_v31 = vpop.eup %6225  ;;  %2569 = vst [vmem:[%s9816_s7 + $0x20] sm:$0xc] %v2565_v7  ;;  %v2605_v61 = vmul.f32 1.0614054, %v8645_v23  ;;  %6231 = vpow2.f32 %v2649_v29  ;;  %v10003_v60 = vld [vmem:[#allocation24_spill] sm:$0xff] }
 0xfd4   :  { %2570 = vst [vmem:[%s9816_s7 + $0x28] sm:$0xc] %v2566_v4  ;;  %v8664_v49 = vmul.f32 %v8034_v20, %v10002_v48  ;;  %v8668_v18 = vmul.f32 %v8034_v20, %v10003_v60  ;;  %v8670_v21 = vpop.eup %6227  ;;  %v8679_v47 = vmul.f32 0.5, %v8547_v10  ;;  %v2606_v17 = vmul.f32 1.0614054, %v8653_v31 }
 0xfd5   :  { %2571 = vst [vmem:[%s9816_s7 + $0x30] sm:$0xc] %v2567_v34  ;;  %2572 = vst [vmem:[%s9816_s7 + $0x38] sm:$0xc] %v2568_v59  ;;  %6233 = vpow2.f32 %v2651_v33  ;;  %v8684_v55 = vmul.f32 %v8034_v20, %v10004_v36  ;;  %v8686_v22 = vpop.eup %6229  ;;  %v8689_v53 = vmul.f32 0.5, %v8585_v1  ;;  %vm2665_vm5 = vcmp.ge.f32.partialorder %v8602_v54, 0.0 }
 0xfd6   :  { %v2607_v32 = vmul.f32 1.0614054, %v8670_v21  ;;  %v2609_v38 = vadd.f32 -1.4531521, %v2605_v61  ;;  %6235 = vpow2.f32 %v2653_v35  ;;  %v2608_v19 = vmul.f32 1.0614054, %v8686_v22 }
 0xfd7   :  { %v2610_v10 = vadd.f32 -1.4531521, %v2606_v17  ;;  %6237 = vpow2.f32 %v2655_v46  ;;  %v8694_v43 = vmul.f32 0.70710677, %v8651_v41  ;;  %v8698_v56 = vmul.f32 0.70710677, %v8664_v49 }
 0xfd8   :  { %v2611_v27 = vadd.f32 -1.4531521, %v2607_v32  ;;  %v2613_v20 = vmul.f32 %v8645_v23, %v2609_v38  ;;  %v8701_v1 = vmul.f32 0.70710677, %v8668_v18  ;;  %v2612_v12 = vadd.f32 -1.4531521, %v2608_v19 }
 0xfd9   :  { %v2614_v44 = vmul.f32 %v8653_v31, %v2610_v10  ;;  %v8705_v62 = vmul.f32 0.70710677, %v8684_v55  ;;  %v2701_v13 = vand.u32 2147483647, %v8694_v43  ;;  %v2702_v30 = vand.u32 2147483647, %v8698_v56 }
 0xfda   :  { %v2615_v28 = vmul.f32 %v8670_v21, %v2611_v27  ;;  %v2617_v26 = vadd.f32 1.4214138, %v2613_v20  ;;  %v2703_v24 = vand.u32 2147483647, %v8701_v1  ;;  %v2616_v8 = vmul.f32 %v8686_v22, %v2612_v12 }
 0xfdb   :  { %v2618_v51 = vadd.f32 1.4214138, %v2614_v44  ;;  %v2704_v15 = vand.u32 2147483647, %v8705_v62  ;;  %v2705_v52 = vmul.f32 0.3275911, %v2701_v13 }
 0xfdc   :  { %v2619_v11 = vadd.f32 1.4214138, %v2615_v28  ;;  %v2621_v63 = vmul.f32 %v8645_v23, %v2617_v26  ;;  %v2706_v42 = vmul.f32 0.3275911, %v2702_v30  ;;  %v2707_v16 = vmul.f32 0.3275911, %v2703_v24 }
 0xfdd   :  { %v2620_v9 = vadd.f32 1.4214138, %v2616_v8  ;;  %v2622_v2 = vmul.f32 %v8653_v31, %v2618_v51  ;;  %v2708_v58 = vmul.f32 0.3275911, %v2704_v15  ;;  %v2709_v29 = vadd.f32 1.0, %v2705_v52  ;;  %v6232_v25 = vpop.eup %6231 }
 0xfde   :  { %v2623_v0 = vmul.f32 %v8670_v21, %v2619_v11  ;;  %v2625_v57 = vadd.f32 -0.28449672, %v2621_v63  ;;  %v2710_v39 = vadd.f32 1.0, %v2706_v42  ;;  %v2711_v14 = vadd.f32 1.0, %v2707_v16 }
 0xfdf   :  { %v6234_v45 = vpop.eup %6233  ;;  %v2624_v33 = vmul.f32 %v8686_v22, %v2620_v9  ;;  %v2626_v7 = vadd.f32 -0.28449672, %v2622_v2  ;;  %v2712_v4 = vadd.f32 1.0, %v2708_v58  ;;  %6239 = vrcp.f32 %v2709_v29 }
 0xfe0   :  { %v6236_v35 = vpop.eup %6235  ;;  %v2627_v34 = vadd.f32 -0.28449672, %v2623_v0  ;;  %v2629_v59 = vmul.f32 %v8645_v23, %v2625_v57  ;;  %6241 = vrcp.f32 %v2710_v39  ;;  %v2757_v46 = vsub.f32 0.0, %v2701_v13 }
 0xfe1   :  { %v6238_v50 = vpop.eup %6237  ;;  %v2628_v61 = vadd.f32 -0.28449672, %v2624_v33  ;;  %v2630_v48 = vmul.f32 %v8653_v31, %v2626_v7  ;;  %6243 = vrcp.f32 %v2711_v14  ;;  %v2758_v60 = vsub.f32 0.0, %v2702_v30 }
 0xfe2   :  { %v2631_v17 = vmul.f32 %v8670_v21, %v2627_v34  ;;  %v2633_v36 = vadd.f32 0.2548296, %v2629_v59  ;;  %6245 = vrcp.f32 %v2712_v4  ;;  %v2759_v32 = vsub.f32 0.0, %v2703_v24 }
 0xfe3   :  { %v2632_v38 = vmul.f32 %v8686_v22, %v2628_v61  ;;  %v2634_v19 = vadd.f32 0.2548296, %v2630_v48  ;;  %v2760_v10 = vsub.f32 0.0, %v2704_v15  ;;  %v2761_v27 = vmul.f32 %v2757_v46, %v2701_v13 }
 0xfe4   :  { %v2635_v20 = vadd.f32 0.2548296, %v2631_v17  ;;  %v2637_v12 = vmul.f32 %v8645_v23, %v2633_v36  ;;  %vm2666_vm15 = vcmp.ge.f32.partialorder %v8605_v6, 0.0  ;;  %v2762_v44 = vmul.f32 %v2758_v60, %v2702_v30 }
 0xfe5   :  { %v2636_v28 = vadd.f32 0.2548296, %v2632_v38  ;;  %v2638_v26 = vmul.f32 %v8653_v31, %v2634_v19  ;;  %vm2667_vm0 = vcmp.ge.f32.partialorder %v8610_v3, 0.0  ;;  %v2763_v8 = vmul.f32 %v2759_v32, %v2703_v24  ;;  %v4314_v38 = vpop.xlane.xlu1 %4313 }
 0xfe6   :  { %v2765_v51 = vmul.f32 1.442695, %v2761_v27  ;;  %v2639_v52 = vmul.f32 %v8670_v21, %v2635_v20  ;;  %v2657_v11 = vmul.f32 %v6232_v25, %v2637_v12  ;;  %vm2668_vm1 = vcmp.ge.f32.partialorder %v8613_v37, 0.0 }
 0xfe7   :  { %v2764_v63 = vmul.f32 %v2760_v10, %v2704_v15  ;;  %v2640_v13 = vmul.f32 %v8686_v22, %v2636_v28  ;;  %v2658_v42 = vmul.f32 %v6234_v45, %v2638_v26  ;;  %v8730_v23 = vmul.f32 0.5, %v8651_v41 }
 0xfe8   :  { %v2767_v30 = vmul.f32 1.442695, %v2762_v44  ;;  %v2659_v16 = vmul.f32 %v6236_v35, %v2639_v52  ;;  %v2661_v9 = vsub.f32 1.0, %v2657_v11  ;;  %v8733_v31 = vmul.f32 0.5, %v8664_v49  ;;  %v10005_v52 = vld [vmem:[#allocation26_spill] sm:$0xff] }
 0xfe9   :  { %v8736_v24 = vmul.f32 0.5, %v8668_v18  ;;  %v8738_v21 = vpop.eup %6239  ;;  %v2660_v2 = vmul.f32 %v6238_v50, %v2640_v13  ;;  %v2662_v58 = vsub.f32 1.0, %v2658_v42  ;;  %6247 = vpow2.f32 %v2765_v51 }
 0xfea   :  { %v2769_v15 = vmul.f32 1.442695, %v2763_v8  ;;  %v8740_v22 = vpop.eup %6241  ;;  %v2663_v29 = vsub.f32 1.0, %v2659_v16  ;;  %v2669_v41 = vsub.f32 0.0, %v2661_v9  ;;  %v2721_v25 = vmul.f32 1.0614054, %v8738_v21 }
 0xfeb   :  { %v2771_v0 = vmul.f32 1.442695, %v2764_v63  ;;  %v8743_v57 = vpop.eup %6243  ;;  %v2664_v49 = vsub.f32 1.0, %v2660_v2  ;;  %v2670_v39 = vsub.f32 0.0, %v2662_v58  ;;  %v2722_v18 = vmul.f32 1.0614054, %v8740_v22 }
 0xfec   :  { %6249 = vpow2.f32 %v2767_v30  ;;  %v8746_v14 = vpop.eup %6245  ;;  %v2671_v45 = vsub.f32 0.0, %v2663_v29  ;;  %v2673_v33 = vsel %vm2665_vm5, %v2661_v9, %v2669_v41  ;;  %v2723_v7 = vmul.f32 1.0614054, %v8743_v57  ;;  %v10006_v63 = vld [vmem:[#allocation27_spill] sm:$0xff]  ;;  %v10007_v16 = vld [vmem:[#allocation30_spill] sm:$0xff] }
 0xfed   :  { %v2725_v4 = vadd.f32 -1.4531521, %v2721_v25  ;;  %v2672_v35 = vsub.f32 0.0, %v2664_v49  ;;  %v2674_v34 = vsel %vm2666_vm15, %v2662_v58, %v2670_v39  ;;  %v2677_v59 = vadd.f32 1.0, %v2673_v33  ;;  %v10008_v2 = vld [vmem:[#allocation31_spill] sm:$0xff] }
 0xfee   :  { %v2724_v46 = vmul.f32 1.0614054, %v8746_v14  ;;  %v2675_v50 = vsel %vm2667_vm0, %v2663_v29, %v2671_v45  ;;  %v2678_v61 = vadd.f32 1.0, %v2674_v34  ;;  %v2726_v48 = vadd.f32 -1.4531521, %v2722_v18 }
 0xfef   :  { %v2727_v60 = vadd.f32 -1.4531521, %v2723_v7  ;;  %v2676_v54 = vsel %vm2668_vm1, %v2664_v49, %v2672_v35  ;;  %v2679_v17 = vadd.f32 1.0, %v2675_v50  ;;  %v2681_v36 = vmul.f32 %v2677_v59, %v8638_v5 }
 0xff0   :  { %v2728_v32 = vadd.f32 -1.4531521, %v2724_v46  ;;  %v2680_v19 = vadd.f32 1.0, %v2676_v54  ;;  %v2682_v6 = vmul.f32 %v2678_v61, %v8643_v40  ;;  %v2729_v10 = vmul.f32 %v8738_v21, %v2725_v4  ;;  %v10009_v46 = vld [vmem:[#allocation28_spill] sm:$0xff] }
 0xff1   :  { %v2730_v27 = vmul.f32 %v8740_v22, %v2726_v48  ;;  %v2683_v3 = vmul.f32 %v2679_v17, %v8679_v47  ;;  %2685 = vst [vmem:[%s9816_s7 + $0x20] sm:$0x30] %v2681_v36  ;;  %v2731_v37 = vmul.f32 %v8743_v57, %v2727_v60  ;;  %6251 = vpow2.f32 %v2769_v15 }
 0xff2   :  { %v2732_v20 = vmul.f32 %v8746_v14, %v2728_v32  ;;  %v2684_v5 = vmul.f32 %v2680_v19, %v8689_v53  ;;  %2686 = vst [vmem:[%s9816_s7 + $0x28] sm:$0x30] %v2682_v6  ;;  %v2733_v40 = vadd.f32 1.4214138, %v2729_v10  ;;  %v8772_v44 = vmul.f32 0.0003644315, %v4314_v38 }
 0xff3   :  { %v2734_v12 = vadd.f32 1.4214138, %v2730_v27  ;;  %v6248_v47 = vpop.eup %6247  ;;  %2687 = vst [vmem:[%s9816_s7 + $0x30] sm:$0x30] %v2683_v3  ;;  %v8778_v28 = vmul.f32 0.5, %v8684_v55  ;;  %6253 = vpow2.f32 %v2771_v0  ;;  %vm2781_vm2 = vcmp.ge.f32.partialorder %v8694_v43, 0.0 }
 0xff4   :  { %v2735_v26 = vadd.f32 1.4214138, %v2731_v37  ;;  %v2736_v8 = vadd.f32 1.4214138, %v2732_v20  ;;  %2688 = vst [vmem:[%s9816_s7 + $0x38] sm:$0x30] %v2684_v5  ;;  %v2737_v53 = vmul.f32 %v8738_v21, %v2733_v40  ;;  %v8787_v11 = vsub.f32 %v10005_v52, %v8772_v44 }
 0xff5   :  { %v2738_v51 = vmul.f32 %v8740_v22, %v2734_v12  ;;  %v8791_v13 = vsub.f32 %v10006_v63, %v8772_v44  ;;  %v8797_v9 = vsub.f32 %v10007_v16, %v8772_v44  ;;  %v8801_v58 = vsub.f32 %v10008_v2, %v8772_v44 }
 0xff6   :  { %v6250_v55 = vpop.eup %6249  ;;  %v2739_v42 = vmul.f32 %v8743_v57, %v2735_v26  ;;  %v2740_v30 = vmul.f32 %v8746_v14, %v2736_v8  ;;  %v2741_v15 = vadd.f32 -0.28449672, %v2737_v53  ;;  %v4320_v41 = vmul.f32 %v8787_v11, %v8787_v11 }
 0xff7   :  { %v2742_v29 = vadd.f32 -0.28449672, %v2738_v51  ;;  %v4321_v25 = vmul.f32 %v8791_v13, %v8791_v13  ;;  %v4322_v39 = vmul.f32 %v8797_v9, %v8797_v9  ;;  %v4323_v18 = vmul.f32 %v8801_v58, %v8801_v58 }
 0xff8   :  { %v2743_v0 = vadd.f32 -0.28449672, %v2739_v42  ;;  %v2744_v49 = vadd.f32 -0.28449672, %v2740_v30  ;;  %v2745_v45 = vmul.f32 %v8738_v21, %v2741_v15  ;;  %v8814_v7 = vrot.slane %v8772_v44, 6 }
 0xff9   :  { %v2746_v33 = vmul.f32 %v8740_v22, %v2742_v29  ;;  %v8817_v4 = vrot.slane %v8772_v44, 4  ;;  %v8822_v59 = vrot.slane %v8772_v44, 2  ;;  %v8826_v50 = vsub.f32 %v10009_v46, %v8772_v44 }
 0xffa   :  { %v2747_v35 = vmul.f32 %v8743_v57, %v2743_v0  ;;  %v2748_v34 = vmul.f32 %v8746_v14, %v2744_v49  ;;  %v2749_v61 = vadd.f32 0.2548296, %v2745_v45  ;;  %v8830_v60 = vsub.f32 %v10005_v52, %v8814_v7 }
 0xffb   :  { %v2750_v48 = vadd.f32 0.2548296, %v2746_v33  ;;  %v8834_v54 = vsub.f32 %v10006_v63, %v8814_v7  ;;  %v6252_v17 = vpop.eup %6251  ;;  %vm2782_vm3 = vcmp.ge.f32.partialorder %v8698_v56, 0.0  ;;  %v8840_v38 = vsub.f32 %v10007_v16, %v8814_v7 }
 0xffc   :  { %v2751_v36 = vadd.f32 0.2548296, %v2747_v35  ;;  %v2752_v32 = vadd.f32 0.2548296, %v2748_v34  ;;  %v8844_v19 = vsub.f32 %v10008_v2, %v8814_v7  ;;  %v2753_v6 = vmul.f32 %v8738_v21, %v2749_v61 }
 0xffd   :  { %v2754_v10 = vmul.f32 %v8740_v22, %v2750_v48  ;;  %vm2783_vm6 = vcmp.ge.f32.partialorder %v8701_v1, 0.0  ;;  %vm2784_vm7 = vcmp.ge.f32.partialorder %v8705_v62, 0.0  ;;  %v4331_v27 = vmul.f32 %v8830_v60, %v8830_v60  ;;  %v6254_v37 = vpop.eup %6253 }
 0xffe   :  { %v4332_v3 = vmul.f32 %v8834_v54, %v8834_v54  ;;  %v2755_v20 = vmul.f32 %v8743_v57, %v2751_v36  ;;  %v2756_v5 = vmul.f32 %v8746_v14, %v2752_v32  ;;  %v4333_v21 = vmul.f32 %v8840_v38, %v8840_v38 }
 0xfff   :  { %v4334_v22 = vmul.f32 %v8844_v19, %v8844_v19  ;;  %v2773_v40 = vmul.f32 %v6248_v47, %v2753_v6  ;;  %v2774_v12 = vmul.f32 %v6250_v55, %v2754_v10  ;;  %v4339_v26 = vrot.slane %v4331_v27, 2 }
0x1000   :  { %v4340_v8 = vrot.slane %v4332_v3, 2  ;;  %v2775_v53 = vmul.f32 %v6252_v17, %v2755_v20  ;;  %v2776_v51 = vmul.f32 %v6254_v37, %v2756_v5  ;;  %v4341_v42 = vrot.slane %v4333_v21, 2 }
0x1001   :  { %v4342_v30 = vrot.slane %v4334_v22, 2  ;;  %v2777_v15 = vsub.f32 1.0, %v2773_v40  ;;  %v2778_v29 = vsub.f32 1.0, %v2774_v12  ;;  %v4347_v0 = vadd.f32 %v4339_v26, %v4320_v41 }
0x1002   :  { %v4348_v57 = vadd.f32 %v4340_v8, %v4321_v25  ;;  %v2779_v49 = vsub.f32 1.0, %v2775_v53  ;;  %v2780_v14 = vsub.f32 1.0, %v2776_v51  ;;  %v4349_v45 = vadd.f32 %v4341_v42, %v4322_v39  ;;  %v10010_v42 = vld [vmem:[#allocation29_spill] sm:$0xff] }
0x1003   :  { %v4350_v33 = vadd.f32 %v4342_v30, %v4323_v18  ;;  %v2785_v35 = vsub.f32 0.0, %v2777_v15  ;;  %v2786_v34 = vsub.f32 0.0, %v2778_v29  ;;  %v8862_v47 = vsub.f32 %v10005_v52, %v8817_v4 }
0x1004   :  { %v8866_v55 = vsub.f32 %v10006_v63, %v8817_v4  ;;  %v2787_v61 = vsub.f32 0.0, %v2779_v49  ;;  %v2788_v48 = vsub.f32 0.0, %v2780_v14  ;;  %v8870_v41 = vsub.f32 %v10007_v16, %v8817_v4 }
0x1005   :  { %v8874_v25 = vsub.f32 %v10008_v2, %v8817_v4  ;;  %v2789_v39 = vsel %vm2781_vm2, %v2777_v15, %v2785_v35  ;;  %v2790_v18 = vsel %vm2782_vm3, %v2778_v29, %v2786_v34  ;;  %v4357_v17 = vmul.f32 %v8862_v47, %v8862_v47  ;;  %v10012_v15 = vld [vmem:[#allocation32_spill] sm:$0xff] }
0x1006   :  { %v4358_v36 = vmul.f32 %v8866_v55, %v8866_v55  ;;  %v2791_v32 = vsel %vm2783_vm6, %v2779_v49, %v2787_v61  ;;  %v2792_v6 = vsel %vm2784_vm7, %v2780_v14, %v2788_v48  ;;  %v2793_v10 = vadd.f32 1.0, %v2789_v39 }
0x1007   :  { %v2794_v27 = vadd.f32 1.0, %v2790_v18  ;;  %v2795_v3 = vadd.f32 1.0, %v2791_v32  ;;  %v2796_v43 = vadd.f32 1.0, %v2792_v6  ;;  %v4359_v56 = vmul.f32 %v8870_v41, %v8870_v41 }
0x1008   :  { %v4360_v37 = vmul.f32 %v8874_v25, %v8874_v25  ;;  %v2797_v20 = vmul.f32 %v2793_v10, %v8730_v23  ;;  %v4365_v21 = vrot.slane %v4357_v17, 4  ;;  %v4366_v1 = vrot.slane %v4358_v36, 4 }
0x1009   :  { %v2798_v5 = vmul.f32 %v2794_v27, %v8733_v31  ;;  %v2799_v22 = vmul.f32 %v2795_v3, %v8736_v24  ;;  %v2800_v62 = vmul.f32 %v2796_v43, %v8778_v28  ;;  %v4367_v40 = vrot.slane %v4359_v56, 4 }
0x100a   :  { %v4368_v12 = vrot.slane %v4360_v37, 4  ;;  %2801 = vst [vmem:[%s9816_s7 + $0x20] sm:$0xc0] %v2797_v20  ;;  %v4373_v26 = vadd.f32 %v4365_v21, %v4347_v0  ;;  %v4374_v23 = vadd.f32 %v4366_v1, %v4348_v57  ;;  %v8904_v31 = vsub.f32 %v10005_v52, %v8822_v59  ;;  %v10014_v0 = vld [vmem:[#allocation33_spill] sm:$0xff] }
0x100b   :  { %2802 = vst [vmem:[%s9816_s7 + $0x28] sm:$0xc0] %v2798_v5  ;;  %v8908_v24 = vsub.f32 %v10006_v63, %v8822_v59  ;;  %2803 = vst [vmem:[%s9816_s7 + $0x30] sm:$0xc0] %v2799_v22  ;;  %v4375_v28 = vadd.f32 %v4367_v40, %v4349_v45  ;;  %v8918_v53 = vsub.f32 %v10007_v16, %v8822_v59 }
0x100c   :  { %2804 = vst [vmem:[%s9816_s7 + $0x38] sm:$0xc0] %v2800_v62  ;;  %v4376_v8 = vadd.f32 %v4368_v12, %v4350_v33  ;;  %v8922_v52 = vsub.f32 %v10008_v2, %v8822_v59  ;;  %v4383_v63 = vmul.f32 %v8904_v31, %v8904_v31  ;;  %v8930_v30 = vsub.f32 %v10010_v42, %v8772_v44 }
0x100d   :  { %v4384_v51 = vmul.f32 %v8908_v24, %v8908_v24  ;;  %v8934_v29 = vsub.f32 %v10012_v15, %v8772_v44  ;;  %v4385_v16 = vmul.f32 %v8918_v53, %v8918_v53  ;;  %v8942_v57 = vsub.f32 %v10014_v0, %v8772_v44 }
0x100e   :  { %10011 = vst [vmem:[#allocation36_spill] sm:$0xff] %v8930_v30  ;;  %v4386_v2 = vmul.f32 %v8922_v52, %v8922_v52  ;;  %v4407_v49 = vmul.f32 %v8826_v50, %v8826_v50  ;;  %v4391_v14 = vrot.slane %v4383_v63, 6  ;;  %v4408_v33 = vmul.f32 %v8930_v30, %v8930_v30 }
0x100f   :  { %10013 = vst [vmem:[#allocation37_spill] sm:$0xff] %v8934_v29  ;;  %10015 = vst [vmem:[#allocation38_spill] sm:$0xff] %v8942_v57  ;;  %v4392_v45 = vrot.slane %v4384_v51, 6  ;;  %v4409_v35 = vmul.f32 %v8934_v29, %v8934_v29  ;;  %v4393_v34 = vrot.slane %v4385_v16, 6  ;;  %v4410_v48 = vmul.f32 %v8942_v57, %v8942_v57 }
0x1010   :  { %v4394_v61 = vrot.slane %v4386_v2, 6  ;;  %v8954_v44 = vsub.f32 %v10009_v46, %v8814_v7  ;;  %v4399_v39 = vadd.f32 %v4391_v14, %v4373_v26  ;;  %v8958_v17 = vsub.f32 %v10010_v42, %v8814_v7 }
0x1011   :  { %v4400_v18 = vadd.f32 %v4392_v45, %v4374_v23  ;;  %v8962_v36 = vsub.f32 %v10012_v15, %v8814_v7  ;;  %v4401_v32 = vadd.f32 %v4393_v34, %v4375_v28  ;;  %v8966_v10 = vsub.f32 %v10014_v0, %v8814_v7 }
0x1012   :  { %10016 = vst [vmem:[#allocation9_spill] sm:$0xff] %v8954_v44  ;;  %10017 = vst [vmem:[#allocation10_spill] sm:$0xff] %v8958_v17  ;;  %v4402_v6 = vadd.f32 %v4394_v61, %v4376_v8  ;;  %v4419_v27 = vmul.f32 %v8954_v44, %v8954_v44  ;;  %v4411_v3 = vadd.f32 %v4407_v49, %v4399_v39 }
0x1013   :  { %10018 = vst [vmem:[#allocation11_spill] sm:$0xff] %v8962_v36  ;;  %10019 = vst [vmem:[#allocation14_spill] sm:$0xff] %v8966_v10  ;;  %v4412_v43 = vadd.f32 %v4408_v33, %v4400_v18  ;;  %v4420_v56 = vmul.f32 %v8958_v17, %v8958_v17  ;;  %v4421_v37 = vmul.f32 %v8962_v36, %v8962_v36 }
0x1014   :  { %v4413_v20 = vadd.f32 %v4409_v35, %v4401_v32  ;;  %v4414_v5 = vadd.f32 %v4410_v48, %v4402_v6  ;;  %v4422_v21 = vmul.f32 %v8966_v10, %v8966_v10  ;;  %v4427_v1 = vrot.slane %v4419_v27, 2 }
0x1015   :  { %v4428_v22 = vrot.slane %v4420_v56, 2  ;;  %v4429_v7 = vrot.slane %v4421_v37, 2  ;;  %v8978_v62 = vsub.f32 %v10009_v46, %v8817_v4  ;;  %v8982_v40 = vsub.f32 %v10010_v42, %v8817_v4 }
0x1016   :  { %v4430_v12 = vrot.slane %v4422_v21, 2  ;;  %v4435_v26 = vadd.f32 %v4427_v1, %v4411_v3  ;;  %v8986_v23 = vsub.f32 %v10012_v15, %v8817_v4  ;;  %v8990_v28 = vsub.f32 %v10014_v0, %v8817_v4  ;;  %v10028_v1 = vld [vmem:[#allocation7_spill] sm:$0xff] }
0x1017   :  { %10020 = vst [vmem:[#allocation34_spill] sm:$0xff] %v8978_v62  ;;  %10021 = vst [vmem:[#allocation15_spill] sm:$0xff] %v8982_v40  ;;  %v4436_v8 = vadd.f32 %v4428_v22, %v4412_v43  ;;  %v4437_v63 = vadd.f32 %v4429_v7, %v4413_v20  ;;  %v4443_v51 = vmul.f32 %v8978_v62, %v8978_v62  ;;  %v10029_v7 = vld [vmem:[#allocation12_spill] sm:$0xff] }
0x1018   :  { %10022 = vst [vmem:[#allocation16_spill] sm:$0xff] %v8986_v23  ;;  %10023 = vst [vmem:[#allocation17_spill] sm:$0xff] %v8990_v28  ;;  %v4444_v16 = vmul.f32 %v8982_v40, %v8982_v40  ;;  %v4438_v2 = vadd.f32 %v4430_v12, %v4414_v5  ;;  %v4445_v49 = vmul.f32 %v8986_v23, %v8986_v23 }
0x1019   :  { %v4446_v14 = vmul.f32 %v8990_v28, %v8990_v28  ;;  %v9002_v45 = vsub.f32 %v10009_v46, %v8822_v59  ;;  %v4451_v4 = vrot.slane %v4443_v51, 4  ;;  %v9006_v35 = vsub.f32 %v10010_v42, %v8822_v59  ;;  %v10031_v51 = vld [vmem:[#allocation8_spill] sm:$0xff] }
0x101a   :  { %v4452_v33 = vrot.slane %v4444_v16, 4  ;;  %v9010_v34 = vsub.f32 %v10012_v15, %v8822_v59  ;;  %v4453_v61 = vrot.slane %v4445_v49, 4  ;;  %v9014_v39 = vsub.f32 %v10014_v0, %v8822_v59 }
0x101b   :  { %10024 = vst [vmem:[#allocation18_spill] sm:$0xff] %v9002_v45  ;;  %10025 = vst [vmem:[#allocation35_spill] sm:$0xff] %v9006_v35  ;;  %v4454_v48 = vrot.slane %v4446_v14, 4  ;;  %v4467_v46 = vmul.f32 %v9002_v45, %v9002_v45  ;;  %v4459_v18 = vadd.f32 %v4451_v4, %v4435_v26  ;;  %v4468_v6 = vmul.f32 %v9006_v35, %v9006_v35  ;;  %v10030_v26 = vld [vmem:[#allocation13_spill] sm:$0xff] }
0x101c   :  { %10026 = vst [vmem:[#allocation19_spill] sm:$0xff] %v9010_v34  ;;  %10027 = vst [vmem:[#allocation20_spill] sm:$0xff] %v9014_v39  ;;  %v4460_v32 = vadd.f32 %v4452_v33, %v4436_v8  ;;  %v4469_v42 = vmul.f32 %v9010_v34, %v9010_v34  ;;  %v4461_v27 = vadd.f32 %v4453_v61, %v4437_v63 }
0x101d   :  { %v4462_v15 = vadd.f32 %v4454_v48, %v4438_v2  ;;  %v4470_v3 = vmul.f32 %v9014_v39, %v9014_v39  ;;  %v4475_v43 = vrot.slane %v4467_v46, 6  ;;  %v4476_v56 = vrot.slane %v4468_v6, 6 }
0x101e   :  { %v4477_v59 = vrot.slane %v4469_v42, 6 }
0x101f   :  { %v4478_v0 = vrot.slane %v4470_v3, 6  ;;  %v4483_v37 = vadd.f32 %v4475_v43, %v4459_v18  ;;  %v4484_v20 = vadd.f32 %v4476_v56, %v4460_v32 }
0x1020   :  { %v4485_v5 = vadd.f32 %v4477_v59, %v4461_v27 }
0x1021   :  { %v4486_v21 = vadd.f32 %v4478_v0, %v4462_v15  ;;  %v4487_v22 = vmul.f32 %v4483_v37, %v10028_v1  ;;  %v4488_v12 = vmul.f32 %v4484_v20, %v10029_v7 }
0x1022   :  { %v4489_v8 = vmul.f32 %v4485_v5, %v10030_v26 }
0x1023   :  { %v4491_v63 = vsel %vm1671_vm4, %v4487_v22, 0.0  ;;  %v4490_v16 = vmul.f32 %v4486_v21, %v10031_v51  ;;  %v4492_v2 = vsel %vm1671_vm4, %v4488_v12, 0.0 }
0x1024   :  { %v4493_v49 = vadd.f32 %v4492_v2, %v4491_v63  ;;  %v4494_v14 = vsel %vm1671_vm4, %v4489_v8, 0.0 }
0x1025   :  { %v4496_v33 = vsel %vm1671_vm4, %v4490_v16, 0.0 }
0x1026   :  { %v4495_v4 = vadd.f32 %v4494_v14, %v4493_v49 }
0x1028   :  { %v4497_v61 = vadd.f32 %v4496_v33, %v4495_v4 }
0x102a   :  { %4498 = vadd.xlane.f32.xlu0 %v4497_v61 }
0x10b7   :  { %v4499_v48 = vpop.xlane.xlu0 %4498 }
0x10b8   :  { %v4500_v46 = vmul.f32 0.0003644315, %v4499_v48 }
0x10ba   :  { %v4501_v18 = vadd.f32 1e-05, %v4500_v46 }
0x10bc   :  { %6255 = vrsqrt.f32 %v4501_v18 }
0x10c6   :  { %v9032_v32 = vpop.eup %6255 }
0x10c7   :  { %v4503_v6 = vmul.f32 %v9032_v32, %v8787_v11  ;;  %v4504_v42 = vmul.f32 %v9032_v32, %v8791_v13  ;;  %v4505_v27 = vmul.f32 %v9032_v32, %v8797_v9  ;;  %v4506_v15 = vmul.f32 %v9032_v32, %v8801_v58 }
0x10c8   :  { %v9043_v3 = vrot.slane %v9032_v32, 6  ;;  %v9058_v58 = vrot.slane %v9032_v32, 4  ;;  %v9061_v20 = vrot.slane %v9032_v32, 2 }
0x10c9   :  { %v9045_v43 = vmul.f32 0.70710677, %v4503_v6  ;;  %v9047_v56 = vmul.f32 0.70710677, %v4504_v42  ;;  %v9049_v59 = vmul.f32 0.70710677, %v4505_v27 }
0x10ca   :  { %10032 = vst [vmem:[#allocation21_spill] sm:$0xff] %v9043_v3  ;;  %v9051_v0 = vmul.f32 0.70710677, %v4506_v15  ;;  %10033 = vst [vmem:[#allocation22_spill] sm:$0xff] %v9058_v58  ;;  %v4623_v22 = vmul.f32 %v9043_v3, %v8830_v60  ;;  %v4624_v2 = vmul.f32 %v9043_v3, %v8834_v54  ;;  %v9067_v61 = vmul.f32 0.5, %v4503_v6 }
0x10cb   :  { %v4515_v11 = vand.u32 2147483647, %v9045_v43  ;;  %v4516_v13 = vand.u32 2147483647, %v9047_v56  ;;  %v4517_v9 = vand.u32 2147483647, %v9049_v59  ;;  %v9071_v60 = vmul.f32 %v9043_v3, %v8840_v38 }
0x10cc   :  { %v4518_v37 = vand.u32 2147483647, %v9051_v0  ;;  %v9075_v48 = vmul.f32 %v9043_v3, %v8844_v19  ;;  %v9077_v46 = vmul.f32 0.5, %v4504_v42  ;;  %v9085_v38 = vmul.f32 0.70710677, %v4624_v2 }
0x10cd   :  { %v4519_v5 = vmul.f32 0.3275911, %v4515_v11  ;;  %v4520_v21 = vmul.f32 0.3275911, %v4516_v13  ;;  %v4521_v1 = vmul.f32 0.3275911, %v4517_v9 }
0x10ce   :  { %v4522_v7 = vmul.f32 0.3275911, %v4518_v37  ;;  %v4571_v12 = vsub.f32 0.0, %v4515_v11  ;;  %v4572_v26 = vsub.f32 0.0, %v4516_v13  ;;  %v4573_v8 = vsub.f32 0.0, %v4517_v9 }
0x10cf   :  { %v4523_v63 = vadd.f32 1.0, %v4519_v5  ;;  %v4524_v51 = vadd.f32 1.0, %v4520_v21  ;;  %v4525_v16 = vadd.f32 1.0, %v4521_v1  ;;  %v4574_v18 = vsub.f32 0.0, %v4518_v37 }
0x10d0   :  { %v4526_v49 = vadd.f32 1.0, %v4522_v7  ;;  %v4575_v14 = vmul.f32 %v4571_v12, %v4515_v11  ;;  %v4576_v4 = vmul.f32 %v4572_v26, %v4516_v13  ;;  %v4577_v33 = vmul.f32 %v4573_v8, %v4517_v9 }
0x10d1   :  { %6257 = vrcp.f32 %v4523_v63  ;;  %v9079_v5 = vmul.f32 0.5, %v4505_v27  ;;  %v9081_v11 = vmul.f32 0.5, %v4506_v15  ;;  %v9083_v9 = vmul.f32 0.70710677, %v4623_v22 }
0x10d2   :  { %6259 = vrcp.f32 %v4524_v51  ;;  %v4579_v54 = vmul.f32 1.442695, %v4575_v14  ;;  %v4581_v6 = vmul.f32 1.442695, %v4576_v4  ;;  %v4583_v13 = vmul.f32 1.442695, %v4577_v33 }
0x10d3   :  { %6261 = vrcp.f32 %v4525_v16  ;;  %v9088_v19 = vmul.f32 0.70710677, %v9071_v60  ;;  %v9091_v42 = vmul.f32 0.70710677, %v9075_v48  ;;  %v9095_v27 = vmul.f32 %v9058_v58, %v8862_v47 }
0x10d4   :  { %6263 = vrcp.f32 %v4526_v49  ;;  %v9099_v15 = vmul.f32 %v9058_v58, %v8866_v55  ;;  %v4578_v21 = vmul.f32 %v4574_v18, %v4518_v37  ;;  %v4635_v1 = vand.u32 2147483647, %v9083_v9 }
0x10d5   :  { %6265 = vpow2.f32 %v4579_v54  ;;  %v4636_v7 = vand.u32 2147483647, %v9085_v38  ;;  %v9103_v12 = vmul.f32 0.5, %v4623_v22  ;;  %v4637_v26 = vand.u32 2147483647, %v9088_v19 }
0x10d6   :  { %6267 = vpow2.f32 %v4581_v6  ;;  %v4638_v8 = vand.u32 2147483647, %v9091_v42  ;;  %v4639_v47 = vmul.f32 0.3275911, %v4635_v1  ;;  %v4691_v51 = vsub.f32 0.0, %v4635_v1 }
0x10d7   :  { %6269 = vpow2.f32 %v4583_v13  ;;  %v4640_v63 = vmul.f32 0.3275911, %v4636_v7  ;;  %v4641_v16 = vmul.f32 0.3275911, %v4637_v26  ;;  %v4692_v49 = vsub.f32 0.0, %v4636_v7 }
0x10d8   :  { %v4642_v55 = vmul.f32 0.3275911, %v4638_v8  ;;  %v4693_v37 = vsub.f32 0.0, %v4637_v26  ;;  %v4643_v14 = vadd.f32 1.0, %v4639_v47  ;;  %v4694_v33 = vsub.f32 0.0, %v4638_v8 }
0x10d9   :  { %v4644_v4 = vadd.f32 1.0, %v4640_v63  ;;  %v4695_v18 = vmul.f32 %v4691_v51, %v4635_v1  ;;  %v4645_v22 = vadd.f32 1.0, %v4641_v16  ;;  %v4696_v39 = vmul.f32 %v4692_v49, %v4636_v7 }
0x10da   :  { %v4646_v6 = vadd.f32 1.0, %v4642_v55  ;;  %v4697_v34 = vmul.f32 %v4693_v37, %v4637_v26  ;;  %v4585_v45 = vmul.f32 1.442695, %v4578_v21  ;;  %6271 = vrcp.f32 %v4643_v14 }
0x10db   :  { %v9107_v54 = vpop.eup %6257  ;;  %v4698_v28 = vmul.f32 %v4694_v33, %v4638_v8  ;;  %v9115_v63 = vmul.f32 0.5, %v4624_v2  ;;  %6273 = vrcp.f32 %v4644_v4  ;;  %v4699_v1 = vmul.f32 1.442695, %v4695_v18 }
0x10dc   :  { %v9109_v35 = vpop.eup %6259  ;;  %v4535_v13 = vmul.f32 1.0614054, %v9107_v54  ;;  %6275 = vrcp.f32 %v4645_v22  ;;  %v4701_v16 = vmul.f32 1.442695, %v4696_v39  ;;  %v4703_v8 = vmul.f32 1.442695, %v4697_v34 }
0x10dd   :  { %v9112_v23 = vpop.eup %6261  ;;  %v4536_v47 = vmul.f32 1.0614054, %v9109_v35  ;;  %6277 = vrcp.f32 %v4646_v6  ;;  %v4705_v14 = vmul.f32 1.442695, %v4698_v28  ;;  %v9129_v39 = vmul.f32 %v9058_v58, %v8870_v41 }
0x10de   :  { %v9117_v51 = vpop.eup %6263  ;;  %v4537_v7 = vmul.f32 1.0614054, %v9112_v23  ;;  %v4539_v26 = vadd.f32 -1.4531521, %v4535_v13  ;;  %6279 = vpow2.f32 %v4585_v45  ;;  %v9136_v45 = vmul.f32 %v9058_v58, %v8874_v25 }
0x10df   :  { %v4538_v55 = vmul.f32 1.0614054, %v9117_v51  ;;  %v4540_v21 = vadd.f32 -1.4531521, %v4536_v47  ;;  %v9121_v49 = vpop.eup %6265  ;;  %6281 = vpow2.f32 %v4699_v1  ;;  %v9140_v47 = vmul.f32 0.5, %v9071_v60 }
0x10e0   :  { %v4541_v37 = vadd.f32 -1.4531521, %v4537_v7  ;;  %v4543_v2 = vmul.f32 %v9107_v54, %v4539_v26  ;;  %v9124_v4 = vpop.eup %6267  ;;  %6283 = vpow2.f32 %v4701_v16  ;;  %10034 = vst [vmem:[#allocation23_spill] sm:$0xff] %v9136_v45  ;;  %v9144_v7 = vmul.f32 0.5, %v9075_v48 }
0x10e1   :  { %v4542_v33 = vadd.f32 -1.4531521, %v4538_v55  ;;  %v4544_v18 = vmul.f32 %v9109_v35, %v4540_v21  ;;  %v9131_v22 = vpop.eup %6269  ;;  %6285 = vpow2.f32 %v4703_v8  ;;  %v9148_v25 = vmul.f32 0.70710677, %v9095_v27 }
0x10e2   :  { %v4545_v34 = vmul.f32 %v9112_v23, %v4541_v37  ;;  %v4547_v6 = vadd.f32 1.4214138, %v4543_v2  ;;  %6287 = vpow2.f32 %v4705_v14  ;;  %v9151_v55 = vmul.f32 0.70710677, %v9099_v15 }
0x10e3   :  { %v4546_v28 = vmul.f32 %v9117_v51, %v4542_v33  ;;  %v4548_v13 = vadd.f32 1.4214138, %v4544_v18  ;;  %10035 = vst [vmem:[#allocation24_spill] sm:$0xff] %v9148_v25  ;;  %v9157_v37 = vmul.f32 0.70710677, %v9129_v39  ;;  %vm4595_vm4 = vcmp.ge.f32.partialorder %v9045_v43, 0.0 }
0x10e4   :  { %v4549_v1 = vadd.f32 1.4214138, %v4545_v34  ;;  %v4551_v41 = vmul.f32 %v9107_v54, %v4547_v6  ;;  %10036 = vst [vmem:[#allocation25_spill] sm:$0xff] %v9151_v55  ;;  %v9153_v21 = vpop.eup %6271  ;;  %v9160_v48 = vmul.f32 0.70710677, %v9136_v45  ;;  %vm4596_vm8 = vcmp.ge.f32.partialorder %v9047_v56, 0.0 }
0x10e5   :  { %v4550_v26 = vadd.f32 1.4214138, %v4546_v28  ;;  %v4552_v16 = vmul.f32 %v9109_v35, %v4548_v13  ;;  %v9162_v2 = vpop.eup %6273  ;;  %v4655_v18 = vmul.f32 1.0614054, %v9153_v21  ;;  %v9167_v34 = vand.u32 2147483647, %v9148_v25 }
0x10e6   :  { %v4553_v60 = vmul.f32 %v9112_v23, %v4549_v1  ;;  %v4555_v8 = vadd.f32 -0.28449672, %v4551_v41  ;;  %v9169_v6 = vpop.eup %6275  ;;  %v4656_v1 = vmul.f32 1.0614054, %v9162_v2  ;;  %v9174_v41 = vand.u32 2147483647, %v9151_v55 }
0x10e7   :  { %v4554_v14 = vmul.f32 %v9117_v51, %v4550_v26  ;;  %v4556_v33 = vadd.f32 -0.28449672, %v4552_v16  ;;  %v9176_v40 = vpop.eup %6277  ;;  %v4657_v16 = vmul.f32 1.0614054, %v9169_v6  ;;  %v4659_v62 = vadd.f32 -1.4531521, %v4655_v18 }
0x10e8   :  { %v4557_v28 = vadd.f32 -0.28449672, %v4553_v60  ;;  %v4559_v13 = vmul.f32 %v9107_v54, %v4555_v8  ;;  %v6280_v10 = vpop.eup %6279  ;;  %v4658_v60 = vmul.f32 1.0614054, %v9176_v40  ;;  %v4660_v8 = vadd.f32 -1.4531521, %v4656_v1 }
0x10e9   :  { %v4558_v58 = vadd.f32 -0.28449672, %v4554_v14  ;;  %v4560_v26 = vmul.f32 %v9109_v35, %v4556_v33  ;;  %v9182_v3 = vpop.eup %6281  ;;  %v4661_v14 = vadd.f32 -1.4531521, %v4657_v16  ;;  %v4663_v33 = vmul.f32 %v9153_v21, %v4659_v62 }
0x10ea   :  { %v4561_v36 = vmul.f32 %v9112_v23, %v4557_v28  ;;  %v4563_v17 = vadd.f32 0.2548296, %v4559_v13  ;;  %v9187_v29 = vpop.eup %6283  ;;  %v4662_v28 = vadd.f32 -1.4531521, %v4658_v60  ;;  %v4664_v13 = vmul.f32 %v9162_v2, %v4660_v8 }
0x10eb   :  { %v4562_v44 = vmul.f32 %v9117_v51, %v4558_v58  ;;  %v4564_v57 = vadd.f32 0.2548296, %v4560_v26  ;;  %v9192_v1 = vpop.eup %6285  ;;  %vm4597_vm10 = vcmp.ge.f32.partialorder %v9049_v59, 0.0  ;;  %v4665_v26 = vmul.f32 %v9169_v6, %v4661_v14 }
0x10ec   :  { %v4565_v18 = vadd.f32 0.2548296, %v4561_v36  ;;  %v4567_v30 = vmul.f32 %v9107_v54, %v4563_v17  ;;  %v4667_v62 = vadd.f32 1.4214138, %v4663_v33  ;;  %v9197_v16 = vpop.eup %6287  ;;  %vm4598_vm11 = vcmp.ge.f32.partialorder %v9051_v0, 0.0 }
0x10ed   :  { %v4566_v55 = vadd.f32 0.2548296, %v4562_v44  ;;  %v4568_v58 = vmul.f32 %v9109_v35, %v4564_v57  ;;  %v4666_v54 = vmul.f32 %v9176_v40, %v4662_v28  ;;  %v4668_v60 = vadd.f32 1.4214138, %v4664_v13 }
0x10ee   :  { %v4569_v36 = vmul.f32 %v9112_v23, %v4565_v18  ;;  %v4587_v17 = vmul.f32 %v9121_v49, %v4567_v30  ;;  %v4669_v35 = vadd.f32 1.4214138, %v4665_v26  ;;  %v4671_v8 = vmul.f32 %v9153_v21, %v4667_v62 }
0x10ef   :  { %v4570_v44 = vmul.f32 %v9117_v51, %v4566_v55  ;;  %v4588_v57 = vmul.f32 %v9124_v4, %v4568_v58  ;;  %v4670_v25 = vadd.f32 1.4214138, %v4666_v54  ;;  %v4672_v23 = vmul.f32 %v9162_v2, %v4668_v60 }
0x10f0   :  { %v4589_v14 = vmul.f32 %v9131_v22, %v4569_v36  ;;  %v4591_v33 = vsub.f32 1.0, %v4587_v17  ;;  %v4673_v49 = vmul.f32 %v9169_v6, %v4669_v35  ;;  %v4675_v45 = vadd.f32 -0.28449672, %v4671_v8 }
0x10f1   :  { %v4590_v18 = vmul.f32 %v6280_v10, %v4570_v44  ;;  %v4592_v30 = vsub.f32 1.0, %v4588_v57  ;;  %v4674_v51 = vmul.f32 %v9176_v40, %v4670_v25  ;;  %v4676_v55 = vadd.f32 -0.28449672, %v4672_v23 }
0x10f2   :  { %v4593_v28 = vsub.f32 1.0, %v4589_v14  ;;  %v4599_v13 = vsub.f32 0.0, %v4591_v33  ;;  %v4677_v26 = vadd.f32 -0.28449672, %v4673_v49  ;;  %v4679_v62 = vmul.f32 %v9153_v21, %v4675_v45 }
0x10f3   :  { %v4594_v4 = vsub.f32 1.0, %v4590_v18  ;;  %v4600_v58 = vsub.f32 0.0, %v4592_v30  ;;  %v4678_v17 = vadd.f32 -0.28449672, %v4674_v51  ;;  %v4680_v10 = vmul.f32 %v9162_v2, %v4676_v55 }
0x10f4   :  { %v4601_v22 = vsub.f32 0.0, %v4593_v28  ;;  %v4603_v36 = vsel %vm4595_vm4, %v4591_v33, %v4599_v13  ;;  %v4681_v25 = vmul.f32 %v9169_v6, %v4677_v26  ;;  %v4683_v8 = vadd.f32 0.2548296, %v4679_v62 }
0x10f5   :  { %v4602_v54 = vsub.f32 0.0, %v4594_v4  ;;  %v4604_v60 = vsel %vm4596_vm8, %v4592_v30, %v4600_v58  ;;  %v4607_v44 = vadd.f32 1.0, %v4603_v36  ;;  %v4682_v45 = vmul.f32 %v9176_v40, %v4678_v17 }
0x10f6   :  { %v4605_v57 = vsel %vm4597_vm10, %v4593_v28, %v4601_v22  ;;  %v4608_v35 = vadd.f32 1.0, %v4604_v60  ;;  %v4684_v23 = vadd.f32 0.2548296, %v4680_v10  ;;  %v4685_v30 = vadd.f32 0.2548296, %v4681_v25 }
0x10f7   :  { %v4606_v43 = vsel %vm4598_vm11, %v4594_v4, %v4602_v54  ;;  %v4609_v14 = vadd.f32 1.0, %v4605_v57  ;;  %v4611_v33 = vmul.f32 %v4607_v44, %v9067_v61  ;;  %v4686_v49 = vadd.f32 0.2548296, %v4682_v45 }
0x10f8   :  { %v4610_v18 = vadd.f32 1.0, %v4606_v43  ;;  %v4612_v56 = vmul.f32 %v4608_v35, %v9077_v46  ;;  %vm4715_vm12 = vcmp.ge.f32.partialorder %v9083_v9, 0.0  ;;  %vm4716_vm14 = vcmp.ge.f32.partialorder %v9085_v38, 0.0 }
0x10f9   :  { %v4613_v59 = vmul.f32 %v4609_v14, %v9079_v5  ;;  %5481 = vst [vmem:[%s9816_s7 + $0x40] sm:$0x3] %v4611_v33  ;;  %v4687_v0 = vmul.f32 %v9153_v21, %v4683_v8  ;;  %v4688_v61 = vmul.f32 %v9162_v2, %v4684_v23  ;;  %vm4717_vm9 = vcmp.ge.f32.partialorder %v9088_v19, 0.0 }
0x10fa   :  { %vm4718_vm13 = vcmp.ge.f32.partialorder %v9091_v42, 0.0  ;;  %v4755_v46 = vand.u32 2147483647, %v9157_v37  ;;  %v4614_v28 = vmul.f32 %v4610_v18, %v9081_v11  ;;  %5482 = vst [vmem:[%s9816_s7 + $0x48] sm:$0x3] %v4612_v56  ;;  %v4689_v5 = vmul.f32 %v9169_v6, %v4685_v30 }
0x10fb   :  { %v4690_v13 = vmul.f32 %v9176_v40, %v4686_v49  ;;  %v4756_v21 = vand.u32 2147483647, %v9160_v48  ;;  %5483 = vst [vmem:[%s9816_s7 + $0x50] sm:$0x3] %v4613_v59  ;;  %v4707_v2 = vmul.f32 %v9182_v3, %v4687_v0  ;;  %v4708_v51 = vmul.f32 %v9187_v29, %v4688_v61 }
0x10fc   :  { %v4757_v11 = vmul.f32 0.3275911, %v9167_v34  ;;  %v4758_v55 = vmul.f32 0.3275911, %v9174_v41  ;;  %5484 = vst [vmem:[%s9816_s7 + $0x58] sm:$0x3] %v4614_v28  ;;  %v4709_v40 = vmul.f32 %v9192_v1, %v4689_v5  ;;  %v9301_v28 = vmul.f32 %v9061_v20, %v8918_v53 }
0x10fd   :  { %v4710_v6 = vmul.f32 %v9197_v16, %v4690_v13  ;;  %v4759_v4 = vmul.f32 0.3275911, %v4755_v46  ;;  %v4760_v58 = vmul.f32 0.3275911, %v4756_v21  ;;  %v4711_v26 = vsub.f32 1.0, %v4707_v2 }
0x10fe   :  { %v4712_v62 = vsub.f32 1.0, %v4708_v51  ;;  %v4761_v22 = vadd.f32 1.0, %v4757_v11  ;;  %v4762_v3 = vadd.f32 1.0, %v4758_v55  ;;  %v4713_v36 = vsub.f32 1.0, %v4709_v40 }
0x10ff   :  { %v4714_v29 = vsub.f32 1.0, %v4710_v6  ;;  %v4763_v17 = vadd.f32 1.0, %v4759_v4  ;;  %v4764_v10 = vadd.f32 1.0, %v4760_v58  ;;  %v4719_v54 = vsub.f32 0.0, %v4711_v26 }
0x1100   :  { %v4720_v60 = vsub.f32 0.0, %v4712_v62  ;;  %6289 = vrcp.f32 %v4761_v22  ;;  %v4809_v44 = vsub.f32 0.0, %v9167_v34  ;;  %v4721_v25 = vsub.f32 0.0, %v4713_v36 }
0x1101   :  { %v4722_v57 = vsub.f32 0.0, %v4714_v29  ;;  %6291 = vrcp.f32 %v4762_v3  ;;  %v4810_v1 = vsub.f32 0.0, %v9174_v41  ;;  %v4723_v16 = vsel %vm4715_vm12, %v4711_v26, %v4719_v54 }
0x1102   :  { %v4724_v35 = vsel %vm4716_vm14, %v4712_v62, %v4720_v60  ;;  %6293 = vrcp.f32 %v4763_v17  ;;  %v4811_v45 = vsub.f32 0.0, %v4755_v46  ;;  %v4725_v8 = vsel %vm4717_vm9, %v4713_v36, %v4721_v25 }
0x1103   :  { %v4726_v43 = vsel %vm4718_vm13, %v4714_v29, %v4722_v57  ;;  %v4727_v14 = vadd.f32 1.0, %v4723_v16  ;;  %v4728_v33 = vadd.f32 1.0, %v4724_v35  ;;  %v4729_v23 = vadd.f32 1.0, %v4725_v8 }
0x1104   :  { %v4730_v18 = vadd.f32 1.0, %v4726_v43  ;;  %6295 = vrcp.f32 %v4764_v10  ;;  %v4812_v56 = vsub.f32 0.0, %v4756_v21  ;;  %v4813_v38 = vmul.f32 %v4809_v44, %v9167_v34 }
0x1105   :  { %v4731_v9 = vmul.f32 %v4727_v14, %v9103_v12  ;;  %v4732_v30 = vmul.f32 %v4728_v33, %v9115_v63  ;;  %v4814_v49 = vmul.f32 %v4810_v1, %v9174_v41  ;;  %v4733_v19 = vmul.f32 %v4729_v23, %v9140_v47 }
0x1106   :  { %v4734_v59 = vmul.f32 %v4730_v18, %v9144_v7  ;;  %v4815_v42 = vmul.f32 %v4811_v45, %v4755_v46  ;;  %v4816_v12 = vmul.f32 %v4812_v56, %v4756_v21  ;;  %v4817_v63 = vmul.f32 1.442695, %v4813_v38  ;;  %v10037_v21 = vld [vmem:[#allocation23_spill] sm:$0xff] }
0x1107   :  { %5485 = vst [vmem:[%s9816_s7 + $0x40] sm:$0xc] %v4731_v9  ;;  %5486 = vst [vmem:[%s9816_s7 + $0x48] sm:$0xc] %v4732_v30  ;;  %v4819_v47 = vmul.f32 1.442695, %v4814_v49  ;;  %v9284_v7 = vmul.f32 %v9061_v20, %v8904_v31  ;;  %v9288_v34 = vmul.f32 %v9032_v32, %v8826_v50  ;;  %v9297_v46 = vmul.f32 %v9061_v20, %v8908_v24 }
0x1108   :  { %5487 = vst [vmem:[%s9816_s7 + $0x50] sm:$0xc] %v4733_v19  ;;  %5488 = vst [vmem:[%s9816_s7 + $0x58] sm:$0xc] %v4734_v59  ;;  %v9293_v0 = vmul.f32 0.5, %v9095_v27  ;;  %v9306_v5 = vmul.f32 0.5, %v9099_v15  ;;  %v9314_v13 = vmul.f32 %v9061_v20, %v8922_v52  ;;  %6297 = vpow2.f32 %v4817_v63 }
0x1109   :  { %v4821_v61 = vmul.f32 1.442695, %v4815_v42  ;;  %v9309_v50 = vmul.f32 0.5, %v9129_v39  ;;  %v9319_v2 = vmul.f32 0.5, %v10037_v21  ;;  %v4823_v51 = vmul.f32 1.442695, %v4816_v12 }
0x110a   :  { %v9290_v41 = vpop.eup %6289  ;;  %6299 = vpow2.f32 %v4819_v47  ;;  %v9324_v39 = vmul.f32 0.70710677, %v9284_v7  ;;  %v9329_v40 = vmul.f32 0.70710677, %v9297_v46  ;;  %v9332_v6 = vmul.f32 0.70710677, %v9301_v28 }
0x110b   :  { %v9303_v31 = vpop.eup %6291  ;;  %v4773_v27 = vmul.f32 1.0614054, %v9290_v41  ;;  %6301 = vpow2.f32 %v4821_v61  ;;  %v9337_v62 = vmul.f32 0.70710677, %v9314_v13  ;;  %vm4835_vm0 = vcmp.ge.f32.partialorder %v9157_v37, 0.0 }
0x110c   :  { %v9316_v24 = vpop.eup %6293  ;;  %v4774_v53 = vmul.f32 1.0614054, %v9303_v31  ;;  %v4871_v3 = vand.u32 2147483647, %v9324_v39  ;;  %v4872_v36 = vand.u32 2147483647, %v9329_v40  ;;  %6303 = vpow2.f32 %v4823_v51 }
0x110d   :  { %v4775_v15 = vmul.f32 1.0614054, %v9316_v24  ;;  %v4777_v11 = vadd.f32 -1.4531521, %v4773_v27  ;;  %v4873_v29 = vand.u32 2147483647, %v9332_v6 }
0x110e   :  { %v9326_v55 = vpop.eup %6295  ;;  %v4778_v52 = vadd.f32 -1.4531521, %v4774_v53  ;;  %v4874_v60 = vand.u32 2147483647, %v9337_v62  ;;  %v4875_v25 = vmul.f32 0.3275911, %v4871_v3 }
0x110f   :  { %v4776_v4 = vmul.f32 1.0614054, %v9326_v55  ;;  %v4779_v58 = vadd.f32 -1.4531521, %v4775_v15  ;;  %v4781_v26 = vmul.f32 %v9290_v41, %v4777_v11  ;;  %v4876_v57 = vmul.f32 0.3275911, %v4872_v36 }
0x1110   :  { %v4782_v22 = vmul.f32 %v9303_v31, %v4778_v52  ;;  %v4877_v45 = vmul.f32 0.3275911, %v4873_v29  ;;  %v4878_v43 = vmul.f32 0.3275911, %v4874_v60  ;;  %v4879_v14 = vadd.f32 1.0, %v4875_v25  ;;  %v10038_v52 = vld [vmem:[#allocation24_spill] sm:$0xff] }
0x1111   :  { %v4780_v17 = vadd.f32 -1.4531521, %v4776_v4  ;;  %v4783_v10 = vmul.f32 %v9316_v24, %v4779_v58  ;;  %v4785_v54 = vadd.f32 1.4214138, %v4781_v26  ;;  %v4880_v33 = vadd.f32 1.0, %v4876_v57 }
0x1112   :  { %v4786_v44 = vadd.f32 1.4214138, %v4782_v22  ;;  %v4881_v9 = vadd.f32 1.0, %v4877_v45  ;;  %v6298_v30 = vpop.eup %6297  ;;  %v4882_v49 = vadd.f32 1.0, %v4878_v43  ;;  %6305 = vrcp.f32 %v4879_v14 }
0x1113   :  { %v4784_v1 = vmul.f32 %v9326_v55, %v4780_v17  ;;  %v4787_v16 = vadd.f32 1.4214138, %v4783_v10  ;;  %v4789_v35 = vmul.f32 %v9290_v41, %v4785_v54  ;;  %v4927_v19 = vsub.f32 0.0, %v4871_v3  ;;  %v10039_v10 = vld [vmem:[#allocation25_spill] sm:$0xff]  ;;  %v10040_v54 = vld [vmem:[#allocation36_spill] sm:$0xff] }
0x1114   :  { %v4790_v8 = vmul.f32 %v9303_v31, %v4786_v44  ;;  %v6300_v59 = vpop.eup %6299  ;;  %6307 = vrcp.f32 %v4880_v33  ;;  %v4928_v27 = vsub.f32 0.0, %v4872_v36  ;;  %v4929_v21 = vsub.f32 0.0, %v4873_v29 }
0x1115   :  { %v4788_v23 = vadd.f32 1.4214138, %v4784_v1  ;;  %v4791_v18 = vmul.f32 %v9316_v24, %v4787_v16  ;;  %v4793_v56 = vadd.f32 -0.28449672, %v4789_v35  ;;  %v6302_v47 = vpop.eup %6301  ;;  %6309 = vrcp.f32 %v4881_v9  ;;  %v10041_v35 = vld [vmem:[#allocation37_spill] sm:$0xff] }
0x1116   :  { %v4794_v38 = vadd.f32 -0.28449672, %v4790_v8  ;;  %6311 = vrcp.f32 %v4882_v49  ;;  %vm4833_vm5 = vcmp.ge.f32.partialorder %v10038_v52, 0.0  ;;  %v4930_v4 = vsub.f32 0.0, %v4874_v60  ;;  %v6304_v25 = vpop.eup %6303 }
0x1117   :  { %v4792_v42 = vmul.f32 %v9326_v55, %v4788_v23  ;;  %v4795_v12 = vadd.f32 -0.28449672, %v4791_v18  ;;  %v4797_v63 = vmul.f32 %v9290_v41, %v4793_v56  ;;  %v4931_v58 = vmul.f32 %v4927_v19, %v4871_v3 }
0x1118   :  { %v4798_v61 = vmul.f32 %v9303_v31, %v4794_v38  ;;  %vm4834_vm15 = vcmp.ge.f32.partialorder %v10039_v10, 0.0  ;;  %v9359_v44 = vmul.f32 %v9032_v32, %v10040_v54  ;;  %v4932_v1 = vmul.f32 %v4928_v27, %v4872_v36 }
0x1119   :  { %v4796_v53 = vadd.f32 -0.28449672, %v4792_v42  ;;  %v4799_v51 = vmul.f32 %v9316_v24, %v4795_v12  ;;  %v4801_v15 = vadd.f32 0.2548296, %v4797_v63  ;;  %v4933_v16 = vmul.f32 %v4929_v21, %v4873_v29 }
0x111a   :  { %v4802_v11 = vadd.f32 0.2548296, %v4798_v61  ;;  %v9365_v3 = vmul.f32 %v9032_v32, %v10041_v35  ;;  %v9369_v43 = vmul.f32 0.5, %v9284_v7  ;;  %vm4836_vm1 = vcmp.ge.f32.partialorder %v9160_v48, 0.0 }
0x111b   :  { %v4800_v26 = vmul.f32 %v9326_v55, %v4796_v53  ;;  %v4803_v22 = vadd.f32 0.2548296, %v4799_v51  ;;  %v4805_v17 = vmul.f32 %v9290_v41, %v4801_v15  ;;  %v4934_v33 = vmul.f32 %v4930_v4, %v4874_v60 }
0x111c   :  { %v4806_v57 = vmul.f32 %v9303_v31, %v4802_v11  ;;  %v9373_v31 = vmul.f32 0.5, %v9297_v46  ;;  %v4935_v36 = vmul.f32 1.442695, %v4931_v58  ;;  %v9377_v56 = vmul.f32 0.5, %v9301_v28 }
0x111d   :  { %v4804_v45 = vadd.f32 0.2548296, %v4800_v26  ;;  %v4807_v41 = vmul.f32 %v9316_v24, %v4803_v22  ;;  %v4825_v8 = vmul.f32 %v6298_v30, %v4805_v17  ;;  %v9379_v24 = vpop.eup %6305  ;;  %v9382_v7 = vmul.f32 0.5, %v9314_v13 }
0x111e   :  { %v4826_v14 = vmul.f32 %v6300_v59, %v4806_v57  ;;  %v4937_v30 = vmul.f32 1.442695, %v4932_v1  ;;  %v4939_v38 = vmul.f32 1.442695, %v4933_v16  ;;  %v9384_v49 = vpop.eup %6307  ;;  %6313 = vpow2.f32 %v4935_v36 }
0x111f   :  { %v4808_v29 = vmul.f32 %v9326_v55, %v4804_v45  ;;  %v4827_v23 = vmul.f32 %v6302_v47, %v4807_v41  ;;  %v4829_v18 = vsub.f32 1.0, %v4825_v8  ;;  %v4891_v55 = vmul.f32 1.0614054, %v9379_v24  ;;  %v9387_v59 = vpop.eup %6309  ;;  %v10042_v45 = vld [vmem:[#allocation38_spill] sm:$0xff] }
0x1120   :  { %v4830_v9 = vsub.f32 1.0, %v4826_v14  ;;  %v4892_v28 = vmul.f32 1.0614054, %v9384_v49  ;;  %v4941_v12 = vmul.f32 1.442695, %v4934_v33  ;;  %v9390_v63 = vpop.eup %6311  ;;  %6315 = vpow2.f32 %v4937_v30 }
0x1121   :  { %v4828_v46 = vmul.f32 %v6304_v25, %v4808_v29  ;;  %v4831_v60 = vsub.f32 1.0, %v4827_v23  ;;  %v4837_v19 = vsub.f32 0.0, %v4829_v18  ;;  %v4893_v27 = vmul.f32 1.0614054, %v9387_v59 }
0x1122   :  { %v4838_v42 = vsub.f32 0.0, %v4830_v9  ;;  %v4894_v51 = vmul.f32 1.0614054, %v9390_v63  ;;  %v4895_v15 = vadd.f32 -1.4531521, %v4891_v55  ;;  %v9417_v41 = vmul.f32 %v9032_v32, %v10042_v45 }
0x1123   :  { %v4832_v13 = vsub.f32 1.0, %v4828_v46  ;;  %v4839_v47 = vsub.f32 0.0, %v4831_v60  ;;  %v4841_v61 = vsel %vm4833_vm5, %v4829_v18, %v4837_v19  ;;  %v4896_v26 = vadd.f32 -1.4531521, %v4892_v28 }
0x1124   :  { %v4842_v21 = vsel %vm4834_vm15, %v4830_v9, %v4838_v42  ;;  %v4845_v53 = vadd.f32 1.0, %v4841_v61  ;;  %v4897_v52 = vadd.f32 -1.4531521, %v4893_v27  ;;  %v4898_v54 = vadd.f32 -1.4531521, %v4894_v51 }
0x1125   :  { %v4840_v11 = vsub.f32 0.0, %v4832_v13  ;;  %v4843_v4 = vsel %vm4835_vm0, %v4831_v60, %v4839_v47  ;;  %v4846_v58 = vadd.f32 1.0, %v4842_v21  ;;  %v4899_v57 = vmul.f32 %v9379_v24, %v4895_v15 }
0x1126   :  { %v4847_v22 = vadd.f32 1.0, %v4843_v4  ;;  %v4849_v17 = vmul.f32 %v4845_v53, %v9293_v0  ;;  %v4900_v1 = vmul.f32 %v9384_v49, %v4896_v26  ;;  %v4901_v0 = vmul.f32 %v9387_v59, %v4897_v52 }
0x1127   :  { %v4844_v25 = vsel %vm4836_vm1, %v4832_v13, %v4840_v11  ;;  %v4850_v10 = vmul.f32 %v4846_v58, %v9306_v5  ;;  %v4902_v35 = vmul.f32 %v9390_v63, %v4898_v54  ;;  %v4903_v48 = vadd.f32 1.4214138, %v4899_v57 }
0x1128   :  { %v4848_v16 = vadd.f32 1.0, %v4844_v25  ;;  %v4851_v37 = vmul.f32 %v4847_v22, %v9309_v50  ;;  %5489 = vst [vmem:[%s9816_s7 + $0x40] sm:$0x30] %v4849_v17  ;;  %v4904_v5 = vadd.f32 1.4214138, %v4900_v1  ;;  %6317 = vpow2.f32 %v4939_v38  ;;  %v6314_v23 = vpop.eup %6313 }
0x1129   :  { %5490 = vst [vmem:[%s9816_s7 + $0x48] sm:$0x30] %v4850_v10  ;;  %v4905_v8 = vadd.f32 1.4214138, %v4901_v0  ;;  %v4906_v14 = vadd.f32 1.4214138, %v4902_v35  ;;  %v4907_v33 = vmul.f32 %v9379_v24, %v4903_v48  ;;  %6319 = vpow2.f32 %v4941_v12 }
0x112a   :  { %v4852_v50 = vmul.f32 %v4848_v16, %v9319_v2  ;;  %5491 = vst [vmem:[%s9816_s7 + $0x50] sm:$0x30] %v4851_v37  ;;  %v4908_v36 = vmul.f32 %v9384_v49, %v4904_v5  ;;  %v9426_v29 = vmul.f32 0.70710677, %v9288_v34  ;;  %v9434_v18 = vmul.f32 0.70710677, %v9359_v44  ;;  %v6316_v26 = vpop.eup %6315 }
0x112b   :  { %v4909_v32 = vmul.f32 %v9387_v59, %v4905_v8  ;;  %v4910_v2 = vmul.f32 %v9390_v63, %v4906_v14  ;;  %v9437_v9 = vmul.f32 0.70710677, %v9365_v3  ;;  %v4911_v30 = vadd.f32 -0.28449672, %v4907_v33 }
0x112c   :  { %5492 = vst [vmem:[%s9816_s7 + $0x58] sm:$0x30] %v4852_v50  ;;  %v4912_v38 = vadd.f32 -0.28449672, %v4908_v36  ;;  %v9440_v46 = vmul.f32 0.70710677, %v9417_v41 }
0x112d   :  { %v4913_v60 = vadd.f32 -0.28449672, %v4909_v32  ;;  %v4914_v19 = vadd.f32 -0.28449672, %v4910_v2  ;;  %v4987_v55 = vand.u32 2147483647, %v9426_v29  ;;  %v4915_v42 = vmul.f32 %v9379_v24, %v4911_v30 }
0x112e   :  { %v4916_v28 = vmul.f32 %v9384_v49, %v4912_v38  ;;  %v4988_v12 = vand.u32 2147483647, %v9434_v18  ;;  %v4989_v13 = vand.u32 2147483647, %v9437_v9  ;;  %v4990_v27 = vand.u32 2147483647, %v9440_v46 }
0x112f   :  { %v4917_v47 = vmul.f32 %v9387_v59, %v4913_v60  ;;  %v4918_v61 = vmul.f32 %v9390_v63, %v4914_v19  ;;  %v4991_v21 = vmul.f32 0.3275911, %v4987_v55  ;;  %v4919_v53 = vadd.f32 0.2548296, %v4915_v42 }
0x1130   :  { %v4920_v51 = vadd.f32 0.2548296, %v4916_v28  ;;  %v4992_v15 = vmul.f32 0.3275911, %v4988_v12  ;;  %vm4951_vm2 = vcmp.ge.f32.partialorder %v9324_v39, 0.0  ;;  %vm4952_vm3 = vcmp.ge.f32.partialorder %v9329_v40, 0.0 }
0x1131   :  { %v4921_v11 = vadd.f32 0.2548296, %v4917_v47  ;;  %v4922_v4 = vadd.f32 0.2548296, %v4918_v61  ;;  %v4993_v58 = vmul.f32 0.3275911, %v4989_v13  ;;  %v4923_v22 = vmul.f32 %v9379_v24, %v4919_v53 }
0x1132   :  { %v4924_v17 = vmul.f32 %v9384_v49, %v4920_v51  ;;  %vm4953_vm6 = vcmp.ge.f32.partialorder %v9332_v6, 0.0  ;;  %vm4954_vm7 = vcmp.ge.f32.partialorder %v9337_v62, 0.0  ;;  %v4994_v52 = vmul.f32 0.3275911, %v4990_v27  ;;  %v6318_v25 = vpop.eup %6317 }
0x1133   :  { %v4995_v54 = vadd.f32 1.0, %v4991_v21  ;;  %v4925_v10 = vmul.f32 %v9387_v59, %v4921_v11  ;;  %v4926_v57 = vmul.f32 %v9390_v63, %v4922_v4  ;;  %v4996_v1 = vadd.f32 1.0, %v4992_v15  ;;  %v6320_v37 = vpop.eup %6319  ;;  %v10044_v11 = vld [vmem:[#allocation21_spill] sm:$0xff] }
0x1134   :  { %v4997_v16 = vadd.f32 1.0, %v4993_v58  ;;  %v4943_v0 = vmul.f32 %v6314_v23, %v4923_v22  ;;  %v4944_v35 = vmul.f32 %v6316_v26, %v4924_v17  ;;  %v4998_v48 = vadd.f32 1.0, %v4994_v52  ;;  %v10045_v58 = vld [vmem:[#allocation10_spill] sm:$0xff] }
0x1135   :  { %6321 = vrcp.f32 %v4995_v54  ;;  %v4945_v24 = vmul.f32 %v6318_v25, %v4925_v10  ;;  %v4946_v49 = vmul.f32 %v6320_v37, %v4926_v57  ;;  %v5043_v5 = vsub.f32 0.0, %v4987_v55  ;;  %v10047_v25 = vld [vmem:[#allocation14_spill] sm:$0xff] }
0x1136   :  { %6323 = vrcp.f32 %v4996_v1  ;;  %v4947_v45 = vsub.f32 1.0, %v4943_v0  ;;  %v4948_v50 = vsub.f32 1.0, %v4944_v35  ;;  %v5044_v8 = vsub.f32 0.0, %v4988_v12 }
0x1137   :  { %6325 = vrcp.f32 %v4997_v16  ;;  %v4949_v14 = vsub.f32 1.0, %v4945_v24  ;;  %v4950_v33 = vsub.f32 1.0, %v4946_v49  ;;  %v5045_v59 = vsub.f32 0.0, %v4989_v13  ;;  %v10049_v24 = vld [vmem:[#allocation22_spill] sm:$0xff] }
0x1138   :  { %6327 = vrcp.f32 %v4998_v48  ;;  %v4955_v63 = vsub.f32 0.0, %v4947_v45  ;;  %v4956_v36 = vsub.f32 0.0, %v4948_v50  ;;  %v5046_v32 = vsub.f32 0.0, %v4990_v27  ;;  %v10048_v48 = vld [vmem:[#allocation34_spill] sm:$0xff] }
0x1139   :  { %v5047_v2 = vmul.f32 %v5043_v5, %v4987_v55  ;;  %v4957_v23 = vsub.f32 0.0, %v4949_v14  ;;  %v4958_v30 = vsub.f32 0.0, %v4950_v33  ;;  %v5048_v38 = vmul.f32 %v5044_v8, %v4988_v12 }
0x113a   :  { %v5049_v60 = vmul.f32 %v5045_v59, %v4989_v13  ;;  %v4959_v19 = vsel %vm4951_vm2, %v4947_v45, %v4955_v63  ;;  %v4960_v42 = vsel %vm4952_vm3, %v4948_v50, %v4956_v36  ;;  %v5050_v28 = vmul.f32 %v5046_v32, %v4990_v27  ;;  %v10043_v13 = vld [vmem:[#allocation9_spill] sm:$0xff] }
0x113b   :  { %v5051_v47 = vmul.f32 1.442695, %v5047_v2  ;;  %v4961_v61 = vsel %vm4953_vm6, %v4949_v14, %v4957_v23  ;;  %v4962_v21 = vsel %vm4954_vm7, %v4950_v33, %v4958_v30  ;;  %v4963_v53 = vadd.f32 1.0, %v4959_v19 }
0x113c   :  { %v4964_v55 = vadd.f32 1.0, %v4960_v42  ;;  %v4965_v51 = vadd.f32 1.0, %v4961_v61  ;;  %v4966_v15 = vadd.f32 1.0, %v4962_v21  ;;  %v5053_v12 = vmul.f32 1.442695, %v5048_v38 }
0x113d   :  { %v9468_v39 = vmul.f32 %v10044_v11, %v10043_v13  ;;  %v4967_v40 = vmul.f32 %v4963_v53, %v9369_v43  ;;  %v5055_v4 = vmul.f32 1.442695, %v5049_v60  ;;  %v9474_v6 = vmul.f32 %v10044_v11, %v10045_v58 }
0x113e   :  { %v4968_v27 = vmul.f32 %v4964_v55, %v9373_v31  ;;  %v4969_v26 = vmul.f32 %v4965_v51, %v9377_v56  ;;  %v4970_v22 = vmul.f32 %v4966_v15, %v9382_v7  ;;  %v9481_v17 = vmul.f32 0.5, %v9288_v34 }
0x113f   :  { %v9476_v62 = vpop.eup %6321  ;;  %v5057_v52 = vmul.f32 1.442695, %v5050_v28  ;;  %5493 = vst [vmem:[%s9816_s7 + $0x40] sm:$0xc0] %v4967_v40  ;;  %v9492_v43 = vmul.f32 0.5, %v9359_v44  ;;  %v9495_v31 = vmul.f32 0.5, %v9365_v3  ;;  %6329 = vpow2.f32 %v5051_v47 }
0x1140   :  { %v9483_v54 = vpop.eup %6323  ;;  %5494 = vst [vmem:[%s9816_s7 + $0x48] sm:$0xc0] %v4968_v27  ;;  %v5007_v34 = vmul.f32 1.0614054, %v9476_v62  ;;  %5495 = vst [vmem:[%s9816_s7 + $0x50] sm:$0xc0] %v4969_v26  ;;  %6331 = vpow2.f32 %v5053_v12  ;;  %v9513_v10 = vmul.f32 %v10044_v11, %v10047_v25  ;;  %v9524_v49 = vmul.f32 %v10049_v24, %v10048_v48 }
0x1141   :  { %v9498_v56 = vpop.eup %6325  ;;  %5496 = vst [vmem:[%s9816_s7 + $0x58] sm:$0xc0] %v4970_v22  ;;  %v5008_v7 = vmul.f32 1.0614054, %v9483_v54  ;;  %v10046_v44 = vld [vmem:[#allocation11_spill] sm:$0xff]  ;;  %v9518_v1 = vmul.f32 0.5, %v9417_v41  ;;  %6333 = vpow2.f32 %v5055_v4 }
0x1142   :  { %v9509_v3 = vmul.f32 %v10044_v11, %v10046_v44  ;;  %v9515_v57 = vpop.eup %6327  ;;  %v5009_v16 = vmul.f32 1.0614054, %v9498_v56  ;;  %v5011_v37 = vadd.f32 -1.4531521, %v5007_v34  ;;  %6335 = vpow2.f32 %v5057_v52 }
0x1143   :  { %v5010_v0 = vmul.f32 1.0614054, %v9515_v57  ;;  %v5012_v35 = vadd.f32 -1.4531521, %v5008_v7  ;;  %v9528_v50 = vmul.f32 0.70710677, %v9468_v39 }
0x1144   :  { %v5013_v5 = vadd.f32 -1.4531521, %v5009_v16  ;;  %v5015_v45 = vmul.f32 %v9476_v62, %v5011_v37  ;;  %v9531_v41 = vmul.f32 0.70710677, %v9474_v6  ;;  %v9535_v33 = vmul.f32 0.70710677, %v9509_v3 }
0x1145   :  { %v5014_v8 = vadd.f32 -1.4531521, %v5010_v0  ;;  %v5016_v14 = vmul.f32 %v9483_v54, %v5012_v35  ;;  %v9538_v59 = vmul.f32 0.70710677, %v9513_v10  ;;  %v5103_v32 = vand.u32 2147483647, %v9528_v50 }
0x1146   :  { %v5017_v63 = vmul.f32 %v9498_v56, %v5013_v5  ;;  %v5019_v36 = vadd.f32 1.4214138, %v5015_v45  ;;  %v5104_v2 = vand.u32 2147483647, %v9531_v41  ;;  %v5105_v38 = vand.u32 2147483647, %v9535_v33 }
0x1147   :  { %v5018_v23 = vmul.f32 %v9515_v57, %v5014_v8  ;;  %v5020_v30 = vadd.f32 1.4214138, %v5016_v14  ;;  %v5106_v60 = vand.u32 2147483647, %v9538_v59  ;;  %v5107_v28 = vmul.f32 0.3275911, %v5103_v32 }
0x1148   :  { %v5021_v19 = vadd.f32 1.4214138, %v5017_v63  ;;  %v5023_v42 = vmul.f32 %v9476_v62, %v5019_v36  ;;  %v5108_v47 = vmul.f32 0.3275911, %v5104_v2  ;;  %v5109_v53 = vmul.f32 0.3275911, %v5105_v38 }
0x1149   :  { %v5022_v61 = vadd.f32 1.4214138, %v5018_v23  ;;  %v5024_v21 = vmul.f32 %v9483_v54, %v5020_v30  ;;  %v5110_v55 = vmul.f32 0.3275911, %v5106_v60  ;;  %v6330_v51 = vpop.eup %6329  ;;  %v5111_v13 = vadd.f32 1.0, %v5107_v28  ;;  %v10050_v23 = vld [vmem:[#allocation15_spill] sm:$0xff] }
0x114a   :  { %v5025_v15 = vmul.f32 %v9498_v56, %v5021_v19  ;;  %v5027_v12 = vadd.f32 -0.28449672, %v5023_v42  ;;  %v5112_v11 = vadd.f32 1.0, %v5108_v47  ;;  %v6332_v40 = vpop.eup %6331  ;;  %v5113_v58 = vadd.f32 1.0, %v5109_v53 }
0x114b   :  { %v5026_v27 = vmul.f32 %v9515_v57, %v5022_v61  ;;  %v5028_v4 = vadd.f32 -0.28449672, %v5024_v21  ;;  %v5114_v26 = vadd.f32 1.0, %v5110_v55  ;;  %v6334_v22 = vpop.eup %6333  ;;  %6337 = vrcp.f32 %v5111_v13 }
0x114c   :  { %v5029_v52 = vadd.f32 -0.28449672, %v5025_v15  ;;  %v5031_v34 = vmul.f32 %v9476_v62, %v5027_v12  ;;  %v5159_v7 = vsub.f32 0.0, %v5103_v32  ;;  %v6336_v44 = vpop.eup %6335  ;;  %6339 = vrcp.f32 %v5112_v11 }
0x114d   :  { %v5030_v25 = vadd.f32 -0.28449672, %v5026_v27  ;;  %v5032_v16 = vmul.f32 %v9483_v54, %v5028_v4  ;;  %v5160_v37 = vsub.f32 0.0, %v5104_v2  ;;  %6341 = vrcp.f32 %v5113_v58 }
0x114e   :  { %v5033_v0 = vmul.f32 %v9498_v56, %v5029_v52  ;;  %v5035_v35 = vadd.f32 0.2548296, %v5031_v34  ;;  %v5161_v48 = vsub.f32 0.0, %v5105_v38  ;;  %6343 = vrcp.f32 %v5114_v26 }
0x114f   :  { %v5034_v5 = vmul.f32 %v9515_v57, %v5030_v25  ;;  %v5036_v45 = vadd.f32 0.2548296, %v5032_v16  ;;  %v5162_v8 = vsub.f32 0.0, %v5106_v60  ;;  %v5163_v36 = vmul.f32 %v5159_v7, %v5103_v32 }
0x1150   :  { %v5037_v14 = vadd.f32 0.2548296, %v5033_v0  ;;  %v5039_v63 = vmul.f32 %v9476_v62, %v5035_v35  ;;  %v9557_v30 = vmul.f32 %v10049_v24, %v10050_v23  ;;  %vm5067_vm4 = vcmp.ge.f32.partialorder %v9426_v29, 0.0 }
0x1151   :  { %v5038_v19 = vadd.f32 0.2548296, %v5034_v5  ;;  %v5040_v42 = vmul.f32 %v9483_v54, %v5036_v45  ;;  %vm5068_vm8 = vcmp.ge.f32.partialorder %v9434_v18, 0.0  ;;  %v5164_v61 = vmul.f32 %v5160_v37, %v5104_v2 }
0x1152   :  { %v5041_v28 = vmul.f32 %v9498_v56, %v5037_v14  ;;  %v5059_v47 = vmul.f32 %v6330_v51, %v5039_v63  ;;  %v5165_v21 = vmul.f32 %v5161_v48, %v5105_v38  ;;  %vm5069_vm10 = vcmp.ge.f32.partialorder %v9437_v9, 0.0  ;;  %v10051_v56 = vld [vmem:[#allocation16_spill] sm:$0xff] }
0x1153   :  { %v5042_v53 = vmul.f32 %v9515_v57, %v5038_v19  ;;  %v5060_v62 = vmul.f32 %v6332_v40, %v5040_v42  ;;  %v5166_v32 = vmul.f32 %v5162_v8, %v5106_v60  ;;  %vm5070_vm11 = vcmp.ge.f32.partialorder %v9440_v46, 0.0 }
0x1154   :  { %v5061_v55 = vmul.f32 %v6334_v22, %v5041_v28  ;;  %v5063_v15 = vsub.f32 1.0, %v5059_v47  ;;  %v5167_v54 = vmul.f32 1.442695, %v5163_v36  ;;  %v9567_v11 = vmul.f32 0.5, %v9468_v39 }
0x1155   :  { %v5062_v12 = vmul.f32 %v6336_v44, %v5042_v53  ;;  %v5064_v13 = vsub.f32 1.0, %v5060_v62  ;;  %v9571_v2 = vmul.f32 %v10049_v24, %v10051_v56  ;;  %v9573_v38 = vpop.eup %6337  ;;  %v5169_v40 = vmul.f32 1.442695, %v5164_v61 }
0x1156   :  { %v5065_v57 = vsub.f32 1.0, %v5061_v55  ;;  %v5071_v51 = vsub.f32 0.0, %v5063_v15  ;;  %v5171_v60 = vmul.f32 1.442695, %v5165_v21  ;;  %v9575_v27 = vpop.eup %6339  ;;  %v5123_v26 = vmul.f32 1.0614054, %v9573_v38 }
0x1157   :  { %v5066_v4 = vsub.f32 1.0, %v5062_v12  ;;  %v5072_v58 = vsub.f32 0.0, %v5064_v13  ;;  %v5173_v22 = vmul.f32 1.442695, %v5166_v32  ;;  %v9578_v52 = vpop.eup %6341  ;;  %v5124_v7 = vmul.f32 1.0614054, %v9575_v27 }
0x1158   :  { %v5073_v39 = vsub.f32 0.0, %v5065_v57  ;;  %v5075_v34 = vsel %vm5067_vm4, %v5063_v15, %v5071_v51  ;;  %6345 = vpow2.f32 %v5167_v54  ;;  %v9583_v44 = vpop.eup %6343  ;;  %v5125_v0 = vmul.f32 1.0614054, %v9578_v52 }
0x1159   :  { %v5074_v25 = vsub.f32 0.0, %v5066_v4  ;;  %v5076_v16 = vsel %vm5068_vm8, %v5064_v13, %v5072_v58  ;;  %v5079_v37 = vadd.f32 1.0, %v5075_v34  ;;  %v5126_v5 = vmul.f32 1.0614054, %v9583_v44 }
0x115a   :  { %v5077_v35 = vsel %vm5069_vm10, %v5065_v57, %v5073_v39  ;;  %v5080_v48 = vadd.f32 1.0, %v5076_v16  ;;  %v5127_v29 = vadd.f32 -1.4531521, %v5123_v26  ;;  %v5128_v63 = vadd.f32 -1.4531521, %v5124_v7 }
0x115b   :  { %v5078_v45 = vsel %vm5070_vm11, %v5066_v4, %v5074_v25  ;;  %v5081_v8 = vadd.f32 1.0, %v5077_v35  ;;  %v5083_v14 = vmul.f32 %v5079_v37, %v9481_v17  ;;  %v5129_v23 = vadd.f32 -1.4531521, %v5125_v0 }
0x115c   :  { %v5082_v36 = vadd.f32 1.0, %v5078_v45  ;;  %v5084_v18 = vmul.f32 %v5080_v48, %v9492_v43  ;;  %v5130_v19 = vadd.f32 -1.4531521, %v5126_v5  ;;  %v5131_v9 = vmul.f32 %v9573_v38, %v5127_v29 }
0x115d   :  { %v5085_v42 = vmul.f32 %v5081_v8, %v9495_v31  ;;  %5497 = vst [vmem:[%s9816_s7 + $0x60] sm:$0x3] %v5083_v14  ;;  %v5132_v46 = vmul.f32 %v9575_v27, %v5128_v63  ;;  %6347 = vpow2.f32 %v5169_v40  ;;  %v5133_v17 = vmul.f32 %v9578_v52, %v5129_v23  ;;  %v10052_v31 = vld [vmem:[#allocation17_spill] sm:$0xff] }
0x115e   :  { %v5086_v28 = vmul.f32 %v5082_v36, %v9518_v1  ;;  %5498 = vst [vmem:[%s9816_s7 + $0x68] sm:$0x3] %v5084_v18  ;;  %v5134_v43 = vmul.f32 %v9583_v44, %v5130_v19  ;;  %v9609_v47 = vmul.f32 %v10049_v24, %v10052_v31  ;;  %v9615_v61 = vmul.f32 0.5, %v9474_v6 }
0x115f   :  { %5499 = vst [vmem:[%s9816_s7 + $0x70] sm:$0x3] %v5085_v42  ;;  %v5135_v1 = vadd.f32 1.4214138, %v5131_v9  ;;  %v5136_v21 = vadd.f32 1.4214138, %v5132_v46  ;;  %6349 = vpow2.f32 %v5171_v60 }
0x1160   :  { %5500 = vst [vmem:[%s9816_s7 + $0x78] sm:$0x3] %v5086_v28  ;;  %v9621_v53 = vmul.f32 0.5, %v9509_v3  ;;  %v5137_v62 = vadd.f32 1.4214138, %v5133_v17  ;;  %6351 = vpow2.f32 %v5173_v22  ;;  %vm5183_vm12 = vcmp.ge.f32.partialorder %v9528_v50, 0.0 }
0x1161   :  { %v5138_v24 = vadd.f32 1.4214138, %v5134_v43  ;;  %v5139_v32 = vmul.f32 %v9573_v38, %v5135_v1  ;;  %v5140_v55 = vmul.f32 %v9575_v27, %v5136_v21  ;;  %v9626_v6 = vmul.f32 0.70710677, %v9524_v49 }
0x1162   :  { %v9629_v15 = vmul.f32 0.70710677, %v9557_v30  ;;  %v6346_v54 = vpop.eup %6345  ;;  %v5141_v12 = vmul.f32 %v9578_v52, %v5137_v62  ;;  %v9634_v3 = vmul.f32 0.70710677, %v9571_v2  ;;  %v9637_v56 = vmul.f32 0.70710677, %v9609_v47 }
0x1163   :  { %v5142_v13 = vmul.f32 %v9583_v44, %v5138_v24  ;;  %v5143_v57 = vadd.f32 -0.28449672, %v5139_v32  ;;  %v5144_v51 = vadd.f32 -0.28449672, %v5140_v55  ;;  %v5219_v40 = vand.u32 2147483647, %v9626_v6 }
0x1164   :  { %v5145_v60 = vadd.f32 -0.28449672, %v5141_v12  ;;  %v5220_v58 = vand.u32 2147483647, %v9629_v15  ;;  %v5221_v39 = vand.u32 2147483647, %v9634_v3 }
0x1165   :  { %v5146_v4 = vadd.f32 -0.28449672, %v5142_v13  ;;  %v5147_v26 = vmul.f32 %v9573_v38, %v5143_v57  ;;  %v5148_v22 = vmul.f32 %v9575_v27, %v5144_v51  ;;  %v5222_v34 = vand.u32 2147483647, %v9637_v56 }
0x1166   :  { %v5149_v7 = vmul.f32 %v9578_v52, %v5145_v60  ;;  %v5223_v16 = vmul.f32 0.3275911, %v5219_v40  ;;  %v5224_v37 = vmul.f32 0.3275911, %v5220_v58  ;;  %v5225_v5 = vmul.f32 0.3275911, %v5221_v39 }
0x1167   :  { %v5150_v25 = vmul.f32 %v9583_v44, %v5146_v4  ;;  %v6348_v0 = vpop.eup %6347  ;;  %v5151_v35 = vadd.f32 0.2548296, %v5147_v26  ;;  %v5152_v48 = vadd.f32 0.2548296, %v5148_v22  ;;  %vm5184_vm14 = vcmp.ge.f32.partialorder %v9531_v41, 0.0 }
0x1168   :  { %v5153_v29 = vadd.f32 0.2548296, %v5149_v7  ;;  %v5226_v8 = vmul.f32 0.3275911, %v5222_v34  ;;  %vm5185_vm9 = vcmp.ge.f32.partialorder %v9535_v33, 0.0  ;;  %v5227_v18 = vadd.f32 1.0, %v5223_v16 }
0x1169   :  { %v5154_v45 = vadd.f32 0.2548296, %v5150_v25  ;;  %v6350_v14 = vpop.eup %6349  ;;  %v5155_v63 = vmul.f32 %v9573_v38, %v5151_v35  ;;  %v5156_v36 = vmul.f32 %v9575_v27, %v5152_v48  ;;  %v5228_v23 = vadd.f32 1.0, %v5224_v37 }
0x116a   :  { %v6352_v19 = vpop.eup %6351  ;;  %v5157_v42 = vmul.f32 %v9578_v52, %v5153_v29  ;;  %v5229_v46 = vadd.f32 1.0, %v5225_v5  ;;  %v5230_v28 = vadd.f32 1.0, %v5226_v8  ;;  %6353 = vrcp.f32 %v5227_v18  ;;  %v10053_v29 = vld [vmem:[#allocation18_spill] sm:$0xff]  ;;  %v10056_v18 = vld [vmem:[#allocation20_spill] sm:$0xff] }
0x116b   :  { %v5158_v9 = vmul.f32 %v9583_v44, %v5154_v45  ;;  %v5175_v17 = vmul.f32 %v6346_v54, %v5155_v63  ;;  %v5176_v43 = vmul.f32 %v6348_v0, %v5156_v36  ;;  %v5275_v31 = vsub.f32 0.0, %v5219_v40 }
0x116c   :  { %v5177_v1 = vmul.f32 %v6350_v14, %v5157_v42  ;;  %6355 = vrcp.f32 %v5228_v23  ;;  %v5276_v38 = vsub.f32 0.0, %v5220_v58  ;;  %v5277_v24 = vsub.f32 0.0, %v5221_v39 }
0x116d   :  { %v5178_v21 = vmul.f32 %v6352_v19, %v5158_v9  ;;  %v5179_v27 = vsub.f32 1.0, %v5175_v17  ;;  %v5180_v62 = vsub.f32 1.0, %v5176_v43  ;;  %6357 = vrcp.f32 %v5229_v46 }
0x116e   :  { %v5181_v32 = vsub.f32 1.0, %v5177_v1  ;;  %6359 = vrcp.f32 %v5230_v28  ;;  %v5278_v52 = vsub.f32 0.0, %v5222_v34  ;;  %v5279_v13 = vmul.f32 %v5275_v31, %v5219_v40 }
0x116f   :  { %v5182_v55 = vsub.f32 1.0, %v5178_v21  ;;  %v5187_v12 = vsub.f32 0.0, %v5179_v27  ;;  %v5188_v44 = vsub.f32 0.0, %v5180_v62  ;;  %v5280_v57 = vmul.f32 %v5276_v38, %v5220_v58 }
0x1170   :  { %vm5186_vm13 = vcmp.ge.f32.partialorder %v9538_v59, 0.0  ;;  %v5189_v54 = vsub.f32 0.0, %v5181_v32  ;;  %v5281_v60 = vmul.f32 %v5277_v24, %v5221_v39  ;;  %v5282_v22 = vmul.f32 %v5278_v52, %v5222_v34 }
0x1171   :  { %v5190_v51 = vsub.f32 0.0, %v5182_v55  ;;  %v5191_v4 = vsel %vm5183_vm12, %v5179_v27, %v5187_v12  ;;  %v5192_v26 = vsel %vm5184_vm14, %v5180_v62, %v5188_v44  ;;  %v5283_v7 = vmul.f32 1.442695, %v5279_v13 }
0x1172   :  { %v5193_v25 = vsel %vm5185_vm9, %v5181_v32, %v5189_v54  ;;  %v5195_v37 = vadd.f32 1.0, %v5191_v4  ;;  %v5196_v40 = vadd.f32 1.0, %v5192_v26  ;;  %v5098_v58 = vmul.f32 0.5, %v9513_v10 }
0x1173   :  { %v5194_v16 = vsel %vm5186_vm13, %v5182_v55, %v5190_v51  ;;  %v5197_v59 = vadd.f32 1.0, %v5193_v25  ;;  %v5285_v35 = vmul.f32 1.442695, %v5280_v57  ;;  %v5287_v48 = vmul.f32 1.442695, %v5281_v60 }
0x1174   :  { %v5198_v0 = vadd.f32 1.0, %v5194_v16  ;;  %v5199_v39 = vmul.f32 %v5195_v37, %v9567_v11  ;;  %v5200_v50 = vmul.f32 %v5196_v40, %v9615_v61  ;;  %v9664_v41 = vpop.eup %6353  ;;  %v5289_v33 = vmul.f32 1.442695, %v5282_v22  ;;  %v10054_v11 = vld [vmem:[#allocation35_spill] sm:$0xff] }
0x1175   :  { %v5201_v34 = vmul.f32 %v5197_v59, %v9621_v53  ;;  %v9669_v45 = vmul.f32 %v9061_v20, %v10053_v29  ;;  %v5239_v10 = vmul.f32 1.0614054, %v9664_v41  ;;  %6361 = vpow2.f32 %v5283_v7  ;;  %v10055_v53 = vld [vmem:[#allocation19_spill] sm:$0xff] }
0x1176   :  { %v5202_v5 = vmul.f32 %v5198_v0, %v5098_v58  ;;  %v9671_v8 = vpop.eup %6355  ;;  %5501 = vst [vmem:[%s9816_s7 + $0x60] sm:$0xc] %v5199_v39  ;;  %5502 = vst [vmem:[%s9816_s7 + $0x68] sm:$0xc] %v5200_v50  ;;  %v9682_v61 = vmul.f32 %v9061_v20, %v10054_v11  ;;  %v9686_v14 = vmul.f32 %v9061_v20, %v10055_v53  ;;  %6363 = vpow2.f32 %v5285_v35 }
0x1177   :  { %v9688_v63 = vpop.eup %6357  ;;  %5503 = vst [vmem:[%s9816_s7 + $0x70] sm:$0xc] %v5201_v34  ;;  %v5240_v36 = vmul.f32 1.0614054, %v9671_v8  ;;  %v9699_v23 = vmul.f32 %v9061_v20, %v10056_v18  ;;  %v9704_v42 = vmul.f32 0.5, %v9524_v49  ;;  %6365 = vpow2.f32 %v5287_v48 }
0x1178   :  { %5504 = vst [vmem:[%s9816_s7 + $0x78] sm:$0xc] %v5202_v5  ;;  %v9701_v19 = vpop.eup %6359  ;;  %v5241_v9 = vmul.f32 1.0614054, %v9688_v63  ;;  %v5243_v46 = vadd.f32 -1.4531521, %v5239_v10  ;;  %6367 = vpow2.f32 %v5289_v33 }
0x1179   :  { %v5242_v28 = vmul.f32 1.0614054, %v9701_v19  ;;  %v5244_v17 = vadd.f32 -1.4531521, %v5240_v36  ;;  %v9709_v43 = vmul.f32 0.70710677, %v9669_v45 }
0x117a   :  { %v5245_v31 = vadd.f32 -1.4531521, %v5241_v9  ;;  %v5247_v20 = vmul.f32 %v9664_v41, %v5243_v46  ;;  %v9713_v1 = vmul.f32 0.70710677, %v9682_v61  ;;  %v9716_v49 = vmul.f32 0.70710677, %v9686_v14 }
0x117b   :  { %v5246_v21 = vadd.f32 -1.4531521, %v5242_v28  ;;  %v5248_v38 = vmul.f32 %v9671_v8, %v5244_v17  ;;  %v9720_v27 = vmul.f32 0.70710677, %v9699_v23  ;;  %v5335_v62 = vand.u32 2147483647, %v9709_v43 }
0x117c   :  { %v5249_v24 = vmul.f32 %v9688_v63, %v5245_v31  ;;  %v5251_v32 = vadd.f32 1.4214138, %v5247_v20  ;;  %v5336_v55 = vand.u32 2147483647, %v9713_v1  ;;  %v5337_v52 = vand.u32 2147483647, %v9716_v49 }
0x117d   :  { %v5250_v12 = vmul.f32 %v9701_v19, %v5246_v21  ;;  %v5252_v44 = vadd.f32 1.4214138, %v5248_v38  ;;  %v5338_v13 = vand.u32 2147483647, %v9720_v27  ;;  %v5339_v57 = vmul.f32 0.3275911, %v5335_v62 }
0x117e   :  { %v5253_v54 = vadd.f32 1.4214138, %v5249_v24  ;;  %v5255_v51 = vmul.f32 %v9664_v41, %v5251_v32  ;;  %v5340_v60 = vmul.f32 0.3275911, %v5336_v55  ;;  %v5341_v4 = vmul.f32 0.3275911, %v5337_v52 }
0x117f   :  { %v5254_v26 = vadd.f32 1.4214138, %v5250_v12  ;;  %v5256_v22 = vmul.f32 %v9671_v8, %v5252_v44  ;;  %v5342_v7 = vmul.f32 0.3275911, %v5338_v13  ;;  %v5343_v25 = vadd.f32 1.0, %v5339_v57  ;;  %v6362_v16 = vpop.eup %6361 }
0x1180   :  { %v5257_v37 = vmul.f32 %v9688_v63, %v5253_v54  ;;  %v5259_v40 = vadd.f32 -0.28449672, %v5255_v51  ;;  %v5344_v58 = vadd.f32 1.0, %v5340_v60  ;;  %v5345_v59 = vadd.f32 1.0, %v5341_v4  ;;  %v6364_v0 = vpop.eup %6363 }
0x1181   :  { %v5258_v35 = vmul.f32 %v9701_v19, %v5254_v26  ;;  %v5260_v39 = vadd.f32 -0.28449672, %v5256_v22  ;;  %v5346_v50 = vadd.f32 1.0, %v5342_v7  ;;  %6369 = vrcp.f32 %v5343_v25  ;;  %v6366_v48 = vpop.eup %6365 }
0x1182   :  { %v5261_v34 = vadd.f32 -0.28449672, %v5257_v37  ;;  %v5263_v5 = vmul.f32 %v9664_v41, %v5259_v40  ;;  %6371 = vrcp.f32 %v5344_v58  ;;  %v5391_v33 = vsub.f32 0.0, %v5335_v62  ;;  %v6368_v29 = vpop.eup %6367 }
0x1183   :  { %v5262_v10 = vadd.f32 -0.28449672, %v5258_v35  ;;  %v5264_v11 = vmul.f32 %v9671_v8, %v5260_v39  ;;  %6373 = vrcp.f32 %v5345_v59  ;;  %v5392_v53 = vsub.f32 0.0, %v5336_v55 }
0x1184   :  { %v5265_v36 = vmul.f32 %v9688_v63, %v5261_v34  ;;  %v5267_v18 = vadd.f32 0.2548296, %v5263_v5  ;;  %6375 = vrcp.f32 %v5346_v50  ;;  %v5393_v9 = vsub.f32 0.0, %v5337_v52 }
0x1185   :  { %v5212_v46 = vmul.f32 0.5, %v9557_v30  ;;  %v5266_v28 = vmul.f32 %v9701_v19, %v5262_v10  ;;  %v5268_v17 = vadd.f32 0.2548296, %v5264_v11  ;;  %v5394_v31 = vsub.f32 0.0, %v5338_v13 }
0x1186   :  { %v5213_v20 = vmul.f32 0.5, %v9571_v2  ;;  %v5214_v21 = vmul.f32 0.5, %v9609_v47  ;;  %v5269_v38 = vadd.f32 0.2548296, %v5265_v36  ;;  %v5271_v24 = vmul.f32 %v9664_v41, %v5267_v18 }
0x1187   :  { %v5270_v32 = vadd.f32 0.2548296, %v5266_v28  ;;  %v5272_v12 = vmul.f32 %v9671_v8, %v5268_v17  ;;  %v5395_v44 = vmul.f32 %v5391_v33, %v5335_v62  ;;  %v5396_v57 = vmul.f32 %v5392_v53, %v5336_v55 }
0x1188   :  { %v5273_v54 = vmul.f32 %v9688_v63, %v5269_v38  ;;  %v5291_v51 = vmul.f32 %v6362_v16, %v5271_v24  ;;  %vm5299_vm5 = vcmp.ge.f32.partialorder %v9626_v6, 0.0  ;;  %v5397_v30 = vmul.f32 %v5393_v9, %v5337_v52 }
0x1189   :  { %v5274_v60 = vmul.f32 %v9701_v19, %v5270_v32  ;;  %v5292_v4 = vmul.f32 %v6364_v0, %v5272_v12  ;;  %vm5300_vm15 = vcmp.ge.f32.partialorder %v9629_v15, 0.0  ;;  %v5398_v2 = vmul.f32 %v5394_v31, %v5338_v13 }
0x118a   :  { %v5293_v47 = vmul.f32 %v6366_v48, %v5273_v54  ;;  %v5295_v26 = vsub.f32 1.0, %v5291_v51  ;;  %vm5301_vm0 = vcmp.ge.f32.partialorder %v9634_v3, 0.0  ;;  %vm5302_vm1 = vcmp.ge.f32.partialorder %v9637_v56, 0.0 }
0x118b   :  { %v9747_v41 = vpop.eup %6369  ;;  %v5294_v8 = vmul.f32 %v6368_v29, %v5274_v60  ;;  %v5296_v63 = vsub.f32 1.0, %v5292_v4  ;;  %v5399_v62 = vmul.f32 1.442695, %v5395_v44  ;;  %v5401_v55 = vmul.f32 1.442695, %v5396_v57 }
0x118c   :  { %v9749_v22 = vpop.eup %6371  ;;  %v5297_v52 = vsub.f32 1.0, %v5293_v47  ;;  %v5303_v19 = vsub.f32 0.0, %v5295_v26  ;;  %v5355_v7 = vmul.f32 1.0614054, %v9747_v41  ;;  %v5403_v25 = vmul.f32 1.442695, %v5397_v30 }
0x118d   :  { %v9752_v13 = vpop.eup %6373  ;;  %v5298_v16 = vsub.f32 1.0, %v5294_v8  ;;  %v5304_v37 = vsub.f32 0.0, %v5296_v63  ;;  %v5356_v40 = vmul.f32 1.0614054, %v9749_v22  ;;  %v5405_v58 = vmul.f32 1.442695, %v5398_v2 }
0x118e   :  { %v6376_v59 = vpop.eup %6375  ;;  %v5305_v0 = vsub.f32 0.0, %v5297_v52  ;;  %v5307_v35 = vsel %vm5299_vm5, %v5295_v26, %v5303_v19  ;;  %v5357_v39 = vmul.f32 1.0614054, %v9752_v13  ;;  %v5359_v50 = vadd.f32 -1.4531521, %v5355_v7 }
0x118f   :  { %v5306_v48 = vsub.f32 0.0, %v5298_v16  ;;  %v5308_v34 = vsel %vm5300_vm15, %v5296_v63, %v5304_v37  ;;  %v5311_v5 = vadd.f32 1.0, %v5307_v35  ;;  %v5358_v33 = vmul.f32 1.0614054, %v6376_v59 }
0x1190   :  { %v5309_v29 = vsel %vm5301_vm0, %v5297_v52, %v5305_v0  ;;  %v5312_v10 = vadd.f32 1.0, %v5308_v34  ;;  %v5360_v11 = vadd.f32 -1.4531521, %v5356_v40  ;;  %v5361_v53 = vadd.f32 -1.4531521, %v5357_v39 }
0x1191   :  { %v5310_v36 = vsel %vm5302_vm1, %v5298_v16, %v5306_v48  ;;  %v5313_v6 = vadd.f32 1.0, %v5309_v29  ;;  %v5315_v18 = vmul.f32 %v5311_v5, %v9704_v42  ;;  %v5362_v9 = vadd.f32 -1.4531521, %v5358_v33 }
0x1192   :  { %v5314_v28 = vadd.f32 1.0, %v5310_v36  ;;  %v5316_v17 = vmul.f32 %v5312_v10, %v5212_v46  ;;  %v5363_v15 = vmul.f32 %v9747_v41, %v5359_v50  ;;  %v5364_v31 = vmul.f32 %v9749_v22, %v5360_v11 }
0x1193   :  { %v5317_v38 = vmul.f32 %v5313_v6, %v5213_v20  ;;  %5505 = vst [vmem:[%s9816_s7 + $0x60] sm:$0x30] %v5315_v18  ;;  %v5365_v3 = vmul.f32 %v9752_v13, %v5361_v53  ;;  %v5366_v24 = vmul.f32 %v6376_v59, %v5362_v9  ;;  %6377 = vpow2.f32 %v5399_v62 }
0x1194   :  { %v5318_v56 = vmul.f32 %v5314_v28, %v5214_v21  ;;  %5506 = vst [vmem:[%s9816_s7 + $0x68] sm:$0x30] %v5316_v17  ;;  %v5367_v42 = vadd.f32 1.4214138, %v5363_v15  ;;  %v5368_v46 = vadd.f32 1.4214138, %v5364_v31  ;;  %6379 = vpow2.f32 %v5401_v55 }
0x1195   :  { %5507 = vst [vmem:[%s9816_s7 + $0x70] sm:$0x30] %v5317_v38  ;;  %v5369_v20 = vadd.f32 1.4214138, %v5365_v3  ;;  %v5370_v32 = vadd.f32 1.4214138, %v5366_v24  ;;  %6381 = vpow2.f32 %v5403_v25 }
0x1196   :  { %5508 = vst [vmem:[%s9816_s7 + $0x78] sm:$0x30] %v5318_v56  ;;  %v5371_v21 = vmul.f32 %v9747_v41, %v5367_v42  ;;  %v5372_v12 = vmul.f32 %v9749_v22, %v5368_v46  ;;  %6383 = vpow2.f32 %v5405_v58  ;;  %v5327_v29 = vmul.f32 0.5, %v9669_v45 }
0x1197   :  { %v5373_v44 = vmul.f32 %v9752_v13, %v5369_v20  ;;  %v5374_v57 = vmul.f32 %v6376_v59, %v5370_v32  ;;  %v5328_v10 = vmul.f32 0.5, %v9682_v61  ;;  %vm5415_vm2 = vcmp.ge.f32.partialorder %v9709_v43, 0.0 }
0x1198   :  { %v5375_v54 = vadd.f32 -0.28449672, %v5371_v21  ;;  %v5376_v51 = vadd.f32 -0.28449672, %v5372_v12  ;;  %vm5416_vm3 = vcmp.ge.f32.partialorder %v9713_v1, 0.0  ;;  %vm5417_vm6 = vcmp.ge.f32.partialorder %v9716_v49, 0.0 }
0x1199   :  { %v5377_v30 = vadd.f32 -0.28449672, %v5373_v44  ;;  %v5378_v60 = vadd.f32 -0.28449672, %v5374_v57  ;;  %vm5418_vm7 = vcmp.ge.f32.partialorder %v9720_v27, 0.0  ;;  %v5329_v61 = vmul.f32 0.5, %v9686_v14 }
0x119a   :  { %v5379_v4 = vmul.f32 %v9747_v41, %v5375_v54  ;;  %v5380_v2 = vmul.f32 %v9749_v22, %v5376_v51  ;;  %v5330_v9 = vmul.f32 0.5, %v9699_v23 }
0x119b   :  { %v5381_v47 = vmul.f32 %v9752_v13, %v5377_v30  ;;  %v5382_v26 = vmul.f32 %v6376_v59, %v5378_v60 }
0x119c   :  { %v5383_v8 = vadd.f32 0.2548296, %v5379_v4  ;;  %v5384_v63 = vadd.f32 0.2548296, %v5380_v2 }
0x119d   :  { %v6378_v62 = vpop.eup %6377  ;;  %v5385_v55 = vadd.f32 0.2548296, %v5381_v47  ;;  %v5386_v52 = vadd.f32 0.2548296, %v5382_v26 }
0x119e   :  { %v6380_v19 = vpop.eup %6379  ;;  %v5387_v7 = vmul.f32 %v9747_v41, %v5383_v8  ;;  %v5388_v25 = vmul.f32 %v9749_v22, %v5384_v63 }
0x119f   :  { %v6382_v16 = vpop.eup %6381  ;;  %v5389_v37 = vmul.f32 %v9752_v13, %v5385_v55  ;;  %v5390_v40 = vmul.f32 %v6376_v59, %v5386_v52 }
0x11a0   :  { %v6384_v58 = vpop.eup %6383  ;;  %v5407_v0 = vmul.f32 %v6378_v62, %v5387_v7  ;;  %v5408_v35 = vmul.f32 %v6380_v19, %v5388_v25 }
0x11a1   :  { %v5409_v39 = vmul.f32 %v6382_v16, %v5389_v37  ;;  %v5410_v50 = vmul.f32 %v6384_v58, %v5390_v40 }
0x11a2   :  { %v5411_v48 = vsub.f32 1.0, %v5407_v0  ;;  %v5412_v34 = vsub.f32 1.0, %v5408_v35 }
0x11a3   :  { %v5413_v5 = vsub.f32 1.0, %v5409_v39  ;;  %v5414_v33 = vsub.f32 1.0, %v5410_v50 }
0x11a4   :  { %v5419_v41 = vsub.f32 0.0, %v5411_v48  ;;  %v5420_v11 = vsub.f32 0.0, %v5412_v34 }
0x11a5   :  { %v5421_v22 = vsub.f32 0.0, %v5413_v5  ;;  %v5422_v13 = vsub.f32 0.0, %v5414_v33 }
0x11a6   :  { %v5423_v59 = vsel %vm5415_vm2, %v5411_v48, %v5419_v41  ;;  %v5424_v53 = vsel %vm5416_vm3, %v5412_v34, %v5420_v11 }
0x11a7   :  { %v5425_v36 = vsel %vm5417_vm6, %v5413_v5, %v5421_v22  ;;  %v5426_v6 = vsel %vm5418_vm7, %v5414_v33, %v5422_v13  ;;  %v5427_v18 = vadd.f32 1.0, %v5423_v59  ;;  %v5428_v45 = vadd.f32 1.0, %v5424_v53 }
0x11a8   :  { %v5429_v28 = vadd.f32 1.0, %v5425_v36  ;;  %v5430_v43 = vadd.f32 1.0, %v5426_v6 }
0x11a9   :  { %v5431_v17 = vmul.f32 %v5427_v18, %v5327_v29  ;;  %v5432_v1 = vmul.f32 %v5428_v45, %v5328_v10 }
0x11aa   :  { %v5433_v15 = vmul.f32 %v5429_v28, %v5329_v61  ;;  %v5434_v31 = vmul.f32 %v5430_v43, %v5330_v9 }
0x11ab   :  { %5509 = vst [vmem:[%s9816_s7 + $0x60] sm:$0xc0] %v5431_v17  ;;  %5510 = vst [vmem:[%s9816_s7 + $0x68] sm:$0xc0] %v5432_v1 }
0x11ac   :  { %5511 = vst [vmem:[%s9816_s7 + $0x70] sm:$0xc0] %v5433_v15  ;;  %5512 = vst [vmem:[%s9816_s7 + $0x78] sm:$0xc0] %v5434_v31 }
0x11ad   :  { %5443 = vsyncpa [#allocation5], 1 }

</bundles_post_ra>
